<compile_context>
chip_gen: v7x
topology: tpu7x:2x2x1
jax: 0.10.0
libtpu: 0.0.40
codegen_flags: <defaults>
</compile_context>

<pallas_src>
import numpy as np
import jax
import jax.numpy as jnp
from jax.experimental import pallas as pl
from jax.experimental.pallas import tpu as pltpu


def _round_up(x, m):
    return ((x + m - 1) // m) * m


# ----------------------------------------------------------------------------
# Fused bidirectional GRU + decoder-loss kernel (single program, grid=(1,))
# ----------------------------------------------------------------------------
def make_naomi_kernel(n_layers, levels, T, B, Hp):
    n_lv = len(levels)

    def kernel(*refs):
        xf_ref, xb_ref, gt_ref = refs[:3]
        w_refs = refs[3:3 + 8 * n_layers]
        base = 3 + 8 * n_layers
        d_refs = refs[base:base + 5 * n_lv]
        out_ref = refs[base + 5 * n_lv]
        (gxf_ref, gxb_ref, xbf_ref, xbb_ref,
         hf_ref, hba_ref) = refs[base + 5 * n_lv + 1:]

        zeros_h = jnp.zeros((B, Hp), jnp.float32)

        src_f, src_b = xf_ref, xb_ref
        for l in range(n_layers):
            (wihf_ref, whhf_ref, bgxf_ref, bhnf_ref,
             wihb_ref, whhb_ref, bgxb_ref, bhnb_ref) = w_refs[8 * l:8 * l + 8]

            # Whole-sequence input projection, one big MXU matmul per direction
            # (b_ih and the r/z parts of b_hh are pre-folded into b_gx).
            gxf_ref[...] = (jnp.dot(src_f[...], wihf_ref[...],
                                    preferred_element_type=jnp.float32)
                            + bgxf_ref[...])
            gxb_ref[...] = (jnp.dot(src_b[...], wihb_ref[...],
                                    preferred_element_type=jnp.float32)
                            + bgxb_ref[...])

            whh_f = whhf_ref[...]
            whh_b = whhb_ref[...]
            # Hoisted once per layer (JAX does not CSE broadcast_in_dim).
            bhn_f = jnp.broadcast_to(bhnf_ref[...], (B, Hp))
            bhn_b = jnp.broadcast_to(bhnb_ref[...], (B, Hp))

            last = (l == n_layers - 1)
            dst_f = hf_ref if last else xbf_ref
            dst_b = hba_ref if last else xbb_ref

            def cell(gxt, gh, bhn, h):
                rz = jax.nn.sigmoid(gxt[:, :2 * Hp] + gh[:, :2 * Hp])
                r = rz[:, :Hp]
                z = rz[:, Hp:]
                n = jnp.tanh(gxt[:, 2 * Hp:] + r * (gh[:, 2 * Hp:] + bhn))
                return (1.0 - z) * n + z * h

            def step(t, carry, whh_f=whh_f, whh_b=whh_b, bhn_f=bhn_f,
                     bhn_b=bhn_b, dst_f=dst_f, dst_b=dst_b, last=last):
                h_f, h_b = carry
                row = pl.multiple_of(t * B, B)
                gxt_f = gxf_ref[pl.ds(row, B), :]
                gxt_b = gxb_ref[pl.ds(row, B), :]
                # Two independent dependency chains -> interleaved MXU pushes.
                gh_f = jnp.dot(h_f, whh_f, preferred_element_type=jnp.float32)
                gh_b = jnp.dot(h_b, whh_b, preferred_element_type=jnp.float32)
                h_f_new = cell(gxt_f, gh_f, bhn_f, h_f)
                h_b_new = cell(gxt_b, gh_b, bhn_b, h_b)
                dst_f[pl.ds(row, B), :] = h_f_new
                if last:
                    # Backward outputs written pre-reversed in h_back_dict
                    # layout: output after consuming data[T-1-t] is
                    # h_back_dict[T-1-t].  t = T-1 consumes the zero-pad step
                    # and lands in slot 0, which the loss never reads.
                    brow = pl.multiple_of((T - 1 - t) * B, B)
                else:
                    brow = row
                dst_b[pl.ds(brow, B), :] = h_b_new
                return h_f_new, h_b_new

            jax.lax.fori_loop(0, T, step, (zeros_h, zeros_h), unroll=True)
            src_f, src_b = xbf_ref, xbb_ref

        # Terminal backward state: h_back_dict[T] = zeros.
        hba_ref[pl.ds(T * B, B), :] = jnp.zeros((B, Hp), jnp.float32)

        # Decoder + squared-error loss, batched over valid timesteps per level.
        total = jnp.zeros((1, 1), jnp.float32)
        for idx, s in enumerate(levels):
            nv = T - 2 * s + 1                    # number of valid timesteps
            if nv <= 0:
                continue
            wdf_ref, wdb_ref, bd_ref, wm_ref, bm_ref = d_refs[5 * idx:5 * idx + 5]
            hf = hf_ref[pl.ds(0, nv * B), :]                    # h[t]
            hb = hba_ref[pl.ds(2 * s * B, nv * B), :]           # h_back[t+2s]
            g = gt_ref[pl.ds(s * B, nv * B), :]                 # gt[t+s]
            # cat([hf, hb], 1) @ Wd  ==  hf @ Wd[:H] + hb @ Wd[H:]
            pre = (jnp.dot(hf, wdf_ref[...], preferred_element_type=jnp.float32)
                   + jnp.dot(hb, wdb_ref[...], preferred_element_type=jnp.float32)
                   + bd_ref[...])
            dec = jnp.maximum(pre, 0.0)                         # ReLU
            mean = jnp.dot(dec, wm_ref[...],
                           preferred_element_type=jnp.float32) + bm_ref[...]
            diff = mean - g
            total = total + jnp.sum(diff * diff)

        out_ref[...] = total

    return kernel


# ----------------------------------------------------------------------------
# Weight packing: stack gates (r,z,n) into 3Hp-wide matrices, zero-pad to
# lane-aligned sizes, fold r/z biases into the precomputed projection bias.
# ----------------------------------------------------------------------------
def _pack_gru_dir(lw, H, Hp, in_pad):
    w_ih, w_hh, b_ih, b_hh = lw            # (3,d,H), (3,H,H), (3,1,H), (3,1,H)
    d = w_ih.shape[1]
    Wih = jnp.zeros((in_pad, 3 * Hp), jnp.float32)
    Whh = jnp.zeros((Hp, 3 * Hp), jnp.float32)
    bgx = jnp.zeros((1, 3 * Hp), jnp.float32)
    bhn = jnp.zeros((1, Hp), jnp.float32)
    for g in range(3):
        Wih = Wih.at[:d, g * Hp:g * Hp + H].set(w_ih[g])
        Whh = Whh.at[:H, g * Hp:g * Hp + H].set(w_hh[g])
        b = b_ih[g] + (b_hh[g] if g < 2 else 0.0)
        bgx = bgx.at[:, g * Hp:g * Hp + H].set(b)
    bhn = bhn.at[:, :H].set(b_hh[2])
    return Wih, Whh, bgx, bhn


def _pack_dec(dw, H, Hp):
    Wd, bd, Wm, bm = dw                    # (2H,dim), (1,dim), (dim,Y), (1,Y)
    dim = Wd.shape[1]
    Wdf = jnp.zeros((Hp, dim), jnp.float32).at[:H].set(Wd[:H])
    Wdb = jnp.zeros((Hp, dim), jnp.float32).at[:H].set(Wd[H:2 * H])
    return Wdf, Wdb, bd, Wm, bm


# ----------------------------------------------------------------------------
# NAOMI forward (Pallas)
# ----------------------------------------------------------------------------
def naomi_forward_pallas(data, ground_truth, back_weights, fwd_weights,
                         dec_weights, highest):
    T, B, Db = data.shape                  # Db = y_dim + 1
    Y = ground_truth.shape[2]
    H = fwd_weights[0][1].shape[2]         # w_hh is (3, H, H)
    n_layers = len(fwd_weights)

    Hp = _round_up(H, 128)                 # lane-dense hidden size
    Dp = _round_up(max(Db, Y), 128)        # lane/K-aligned input feature dim

    # Forward GRU input: ground_truth zero-padded to Dp features.
    x_f = jnp.zeros((T, B, Dp), jnp.float32).at[:, :, :Y].set(ground_truth)
    # Backward GRU input: data[1:][::-1] plus one trailing zero timestep (the
    # extra step's output lands in h_back_dict[0], never read by the loss).
    x_b = jnp.zeros((T, B, Dp), jnp.float32).at[:T - 1, :, :Db].set(
        data[1:][::-1])
    x_f = x_f.reshape(T * B, Dp)
    x_b = x_b.reshape(T * B, Dp)
    gt_flat = ground_truth.reshape(T * B, Y)

    levels = []
    s = 1
    while s <= highest:
        levels.append(s)
        s *= 2

    args = [x_f, x_b, gt_flat]
    for l in range(n_layers):
        in_pad = Dp if l == 0 else Hp
        args += list(_pack_gru_dir(fwd_weights[l], H, Hp, in_pad))
        args += list(_pack_gru_dir(back_weights[l], H, Hp, in_pad))
    for sl in levels:
        args += list(_pack_dec(dec_weights[sl], H, Hp))

    in_specs = [pl.BlockSpec(a.shape, lambda i: (0, 0)) for a in args]

    scratch_shapes = [
        pltpu.VMEM((T * B, 3 * Hp), jnp.float32),    # gx forward
        pltpu.VMEM((T * B, 3 * Hp), jnp.float32),    # gx backward
        pltpu.VMEM((T * B, Hp), jnp.float32),        # inter-layer fwd outputs
        pltpu.VMEM((T * B, Hp), jnp.float32),        # inter-layer back outputs
        pltpu.VMEM((T * B, Hp), jnp.float32),        # last-layer fwd h[t]
        pltpu.VMEM(((T + 1) * B, Hp), jnp.float32),  # h_back_dict table
    ]

    in_bytes = sum(int(a.size) * a.dtype.itemsize for a in args)
    scratch_bytes = 4 * (2 * T * B * 3 * Hp + 3 * T * B * Hp + (T + 1) * B * Hp)
    vmem_limit = int(min(max(2 * in_bytes + scratch_bytes + (8 << 20),
                             32 << 20), 64 << 20))

    out = pl.pallas_call(
        make_naomi_kernel(n_layers, levels, T, B, Hp),
        grid=(1,),
        in_specs=in_specs,
        out_specs=pl.BlockSpec((1, 1), lambda i: (0, 0)),
        out_shape=jax.ShapeDtypeStruct((1, 1), jnp.float32),
        scratch_shapes=scratch_shapes,
        compiler_params=pltpu.CompilerParams(
            dimension_semantics=("arbitrary",),
            vmem_limit_bytes=vmem_limit),
    )(*args)
    return out[0, 0] / T / B


# ----------------------------------------------------------------------------
# Pure-JAX reference (mirrors the PyTorch forward exactly)
# ----------------------------------------------------------------------------
def gru_sequence_ref(x_seq, layer_weights):
    S, B, _ = x_seq.shape
    H = layer_weights[0][1].shape[1]
    hs = [jnp.zeros((B, H), jnp.float32) for _ in layer_weights]
    outs = []
    for t in range(S):
        x = x_seq[t]
        for l, (w_ih, w_hh, b_ih, b_hh) in enumerate(layer_weights):
            h = hs[l]
            r = jax.nn.sigmoid(x @ w_ih[0] + b_ih[0] + h @ w_hh[0] + b_hh[0])
            z = jax.nn.sigmoid(x @ w_ih[1] + b_ih[1] + h @ w_hh[1] + b_hh[1])
            n = jnp.tanh(x @ w_ih[2] + b_ih[2] + r * (h @ w_hh[2] + b_hh[2]))
            h = (1.0 - z) * n + z * h
            hs[l] = h
            x = h
        outs.append(x)
    return jnp.stack(outs)


def naomi_forward_ref(data, ground_truth, back_weights, fwd_weights,
                      dec_weights, highest):
    T, B, _ = data.shape
    H = fwd_weights[0][1].shape[1]
    hb_rev = gru_sequence_ref(data[1:][::-1], back_weights)
    hb_arr = jnp.zeros((T + 1, B, H), jnp.float32).at[2:T].set(
        hb_rev[:T - 2][::-1])
    h_fwd = gru_sequence_ref(ground_truth, fwd_weights)

    total = jnp.float32(0.0)
    s = 1
    while s <= highest:
        Wd, bd, Wm, bm = dec_weights[s]
        for t in range(T):
            if t + 2 * s <= T:
                inp = jnp.concatenate([h_fwd[t], hb_arr[t + 2 * s]], axis=1)
                dec = jnp.maximum(inp @ Wd + bd, 0.0)
                mean = dec @ Wm + bm
                total = total + jnp.sum((mean - ground_truth[t + s]) ** 2)
        s *= 2
    return total / T / B


# ----------------------------------------------------------------------------
# Deterministic parameter construction
# ----------------------------------------------------------------------------
def uniform(key, shape, fan_in):
    b = 1.0 / np.sqrt(fan_in)
    return jax.random.uniform(key, shape, jnp.float32, -b, b)


def make_gru_weights(key, n_layers, in_dim, H):
    weights = []
    for l in range(n_layers):
        d = in_dim if l == 0 else H
        key, k1, k2, k3, k4 = jax.random.split(key, 5)
        w_ih = uniform(k1, (3, d, H), H)
        w_hh = uniform(k2, (3, H, H), H)
        b_ih = uniform(k3, (3, 1, H), H)
        b_hh = uniform(k4, (3, 1, H), H)
        weights.append((w_ih, w_hh, b_ih, b_hh))
    return weights


if __name__ == "__main__":
    T, B = 10, 8
    y_dim, rnn_dim, n_layers, highest = 4, 32, 2, 4
    dec_dims = {1: 16, 2: 16, 4: 16}

    key = jax.random.PRNGKey(0)
    key, kd, kg = jax.random.split(key, 3)
    data = jax.random.normal(kd, (T, B, y_dim + 1), jnp.float32)
    ground_truth = jax.random.normal(kg, (T, B, y_dim), jnp.float32)

    key, kb, kf = jax.random.split(key, 3)
    back_weights = make_gru_weights(kb, n_layers, y_dim + 1, rnn_dim)  # back_gru
    fwd_weights = make_gru_weights(kf, n_layers, y_dim, rnn_dim)       # gru

    dec_weights = {}
    for s, dim in dec_dims.items():
        key, k1, k2, k3, k4 = jax.random.split(key, 5)
        Wd = uniform(k1, (2 * rnn_dim, dim), 2 * rnn_dim)
        bd = uniform(k2, (1, dim), 2 * rnn_dim)
        Wm = uniform(k3, (dim, y_dim), dim)
        bm = uniform(k4, (1, y_dim), dim)
        dec_weights[s] = (Wd, bd, Wm, bm)

    loss_pallas = naomi_forward_pallas(data, ground_truth, back_weights,
                                       fwd_weights, dec_weights, highest)
    loss_pallas = jax.block_until_ready(loss_pallas)

    loss_ref = naomi_forward_ref(data, ground_truth, back_weights,
                                 fwd_weights, dec_weights, highest)
    loss_ref = jax.block_until_ready(loss_ref)

    np.testing.assert_allclose(np.asarray(loss_pallas), np.asarray(loss_ref),
                               rtol=1e-2, atol=1e-3)
    print("KERNEL_OK")
</pallas_src>

<mosaic_0001>
module attributes {stable_mosaic.version = 11 : i64} {
  func.func @kernel(%arg0: i32, %arg1: memref<80x128xf32, #tpu.memory_space<vmem>>, %arg2: memref<80x128xf32, #tpu.memory_space<vmem>>, %arg3: memref<80x4xf32, #tpu.memory_space<vmem>>, %arg4: memref<128x384xf32, #tpu.memory_space<vmem>>, %arg5: memref<128x384xf32, #tpu.memory_space<vmem>>, %arg6: memref<1x384xf32, #tpu.memory_space<vmem>>, %arg7: memref<1x128xf32, #tpu.memory_space<vmem>>, %arg8: memref<128x384xf32, #tpu.memory_space<vmem>>, %arg9: memref<128x384xf32, #tpu.memory_space<vmem>>, %arg10: memref<1x384xf32, #tpu.memory_space<vmem>>, %arg11: memref<1x128xf32, #tpu.memory_space<vmem>>, %arg12: memref<128x384xf32, #tpu.memory_space<vmem>>, %arg13: memref<128x384xf32, #tpu.memory_space<vmem>>, %arg14: memref<1x384xf32, #tpu.memory_space<vmem>>, %arg15: memref<1x128xf32, #tpu.memory_space<vmem>>, %arg16: memref<128x384xf32, #tpu.memory_space<vmem>>, %arg17: memref<128x384xf32, #tpu.memory_space<vmem>>, %arg18: memref<1x384xf32, #tpu.memory_space<vmem>>, %arg19: memref<1x128xf32, #tpu.memory_space<vmem>>, %arg20: memref<128x16xf32, #tpu.memory_space<vmem>>, %arg21: memref<128x16xf32, #tpu.memory_space<vmem>>, %arg22: memref<1x16xf32, #tpu.memory_space<vmem>>, %arg23: memref<16x4xf32, #tpu.memory_space<vmem>>, %arg24: memref<1x4xf32, #tpu.memory_space<vmem>>, %arg25: memref<128x16xf32, #tpu.memory_space<vmem>>, %arg26: memref<128x16xf32, #tpu.memory_space<vmem>>, %arg27: memref<1x16xf32, #tpu.memory_space<vmem>>, %arg28: memref<16x4xf32, #tpu.memory_space<vmem>>, %arg29: memref<1x4xf32, #tpu.memory_space<vmem>>, %arg30: memref<128x16xf32, #tpu.memory_space<vmem>>, %arg31: memref<128x16xf32, #tpu.memory_space<vmem>>, %arg32: memref<1x16xf32, #tpu.memory_space<vmem>>, %arg33: memref<16x4xf32, #tpu.memory_space<vmem>>, %arg34: memref<1x4xf32, #tpu.memory_space<vmem>>, %arg35: memref<1x1xf32, #tpu.memory_space<vmem>>, %arg36: memref<80x384xf32, #tpu.memory_space<vmem>>, %arg37: memref<80x384xf32, #tpu.memory_space<vmem>>, %arg38: memref<80x128xf32, #tpu.memory_space<vmem>>, %arg39: memref<80x128xf32, #tpu.memory_space<vmem>>, %arg40: memref<80x128xf32, #tpu.memory_space<vmem>>, %arg41: memref<88x128xf32, #tpu.memory_space<vmem>>) attributes {dimension_semantics = [#tpu.dimension_semantics<arbitrary>], iteration_bounds = array<i64: 1>, scalar_prefetch = 0 : i64, scratch_operands = 6 : i64, tpu.core_type = #tpu.core_type<tc>, window_params = [{pipeline_mode = #tpu.pipeline_mode<synchronous>, transform_indices = @transform_0, window_bounds = array<i64: 80, 128>}, {pipeline_mode = #tpu.pipeline_mode<synchronous>, transform_indices = @transform_1, window_bounds = array<i64: 80, 128>}, {pipeline_mode = #tpu.pipeline_mode<synchronous>, transform_indices = @transform_2, window_bounds = array<i64: 80, 4>}, {pipeline_mode = #tpu.pipeline_mode<synchronous>, transform_indices = @transform_3, window_bounds = array<i64: 128, 384>}, {pipeline_mode = #tpu.pipeline_mode<synchronous>, transform_indices = @transform_4, window_bounds = array<i64: 128, 384>}, {pipeline_mode = #tpu.pipeline_mode<synchronous>, transform_indices = @transform_5, window_bounds = array<i64: 1, 384>}, {pipeline_mode = #tpu.pipeline_mode<synchronous>, transform_indices = @transform_6, window_bounds = array<i64: 1, 128>}, {pipeline_mode = #tpu.pipeline_mode<synchronous>, transform_indices = @transform_7, window_bounds = array<i64: 128, 384>}, {pipeline_mode = #tpu.pipeline_mode<synchronous>, transform_indices = @transform_8, window_bounds = array<i64: 128, 384>}, {pipeline_mode = #tpu.pipeline_mode<synchronous>, transform_indices = @transform_9, window_bounds = array<i64: 1, 384>}, {pipeline_mode = #tpu.pipeline_mode<synchronous>, transform_indices = @transform_10, window_bounds = array<i64: 1, 128>}, {pipeline_mode = #tpu.pipeline_mode<synchronous>, transform_indices = @transform_11, window_bounds = array<i64: 128, 384>}, {pipeline_mode = #tpu.pipeline_mode<synchronous>, transform_indices = @transform_12, window_bounds = array<i64: 128, 384>}, {pipeline_mode = #tpu.pipeline_mode<synchronous>, transform_indices = @transform_13, window_bounds = array<i64: 1, 384>}, {pipeline_mode = #tpu.pipeline_mode<synchronous>, transform_indices = @transform_14, window_bounds = array<i64: 1, 128>}, {pipeline_mode = #tpu.pipeline_mode<synchronous>, transform_indices = @transform_15, window_bounds = array<i64: 128, 384>}, {pipeline_mode = #tpu.pipeline_mode<synchronous>, transform_indices = @transform_16, window_bounds = array<i64: 128, 384>}, {pipeline_mode = #tpu.pipeline_mode<synchronous>, transform_indices = @transform_17, window_bounds = array<i64: 1, 384>}, {pipeline_mode = #tpu.pipeline_mode<synchronous>, transform_indices = @transform_18, window_bounds = array<i64: 1, 128>}, {pipeline_mode = #tpu.pipeline_mode<synchronous>, transform_indices = @transform_19, window_bounds = array<i64: 128, 16>}, {pipeline_mode = #tpu.pipeline_mode<synchronous>, transform_indices = @transform_20, window_bounds = array<i64: 128, 16>}, {pipeline_mode = #tpu.pipeline_mode<synchronous>, transform_indices = @transform_21, window_bounds = array<i64: 1, 16>}, {pipeline_mode = #tpu.pipeline_mode<synchronous>, transform_indices = @transform_22, window_bounds = array<i64: 16, 4>}, {pipeline_mode = #tpu.pipeline_mode<synchronous>, transform_indices = @transform_23, window_bounds = array<i64: 1, 4>}, {pipeline_mode = #tpu.pipeline_mode<synchronous>, transform_indices = @transform_24, window_bounds = array<i64: 128, 16>}, {pipeline_mode = #tpu.pipeline_mode<synchronous>, transform_indices = @transform_25, window_bounds = array<i64: 128, 16>}, {pipeline_mode = #tpu.pipeline_mode<synchronous>, transform_indices = @transform_26, window_bounds = array<i64: 1, 16>}, {pipeline_mode = #tpu.pipeline_mode<synchronous>, transform_indices = @transform_27, window_bounds = array<i64: 16, 4>}, {pipeline_mode = #tpu.pipeline_mode<synchronous>, transform_indices = @transform_28, window_bounds = array<i64: 1, 4>}, {pipeline_mode = #tpu.pipeline_mode<synchronous>, transform_indices = @transform_29, window_bounds = array<i64: 128, 16>}, {pipeline_mode = #tpu.pipeline_mode<synchronous>, transform_indices = @transform_30, window_bounds = array<i64: 128, 16>}, {pipeline_mode = #tpu.pipeline_mode<synchronous>, transform_indices = @transform_31, window_bounds = array<i64: 1, 16>}, {pipeline_mode = #tpu.pipeline_mode<synchronous>, transform_indices = @transform_32, window_bounds = array<i64: 16, 4>}, {pipeline_mode = #tpu.pipeline_mode<synchronous>, transform_indices = @transform_33, window_bounds = array<i64: 1, 4>}, {pipeline_mode = #tpu.pipeline_mode<synchronous>, transform_indices = @transform_34, window_bounds = array<i64: 1, 1>}]} {
    %cst = arith.constant 0.000000e+00 : f32
    %0 = vector.broadcast %cst : f32 to vector<8x128xf32>
    %c0 = arith.constant 0 : index
    %c0_0 = arith.constant 0 : index
    %1 = vector.load %arg1[%c0, %c0_0] : memref<80x128xf32, #tpu.memory_space<vmem>>, vector<80x128xf32>
    %c0_1 = arith.constant 0 : index
    %c0_2 = arith.constant 0 : index
    %2 = vector.load %arg4[%c0_1, %c0_2] : memref<128x384xf32, #tpu.memory_space<vmem>>, vector<128x384xf32>
    %cst_3 = arith.constant dense<0.000000e+00> : vector<80x384xf32>
    %3 = tpu.matmul %1, %2, %cst_3 {dimension_numbers = #tpu.dot_dimension_numbers<[1], [0], [0], [1], [0, 0, 1, 1], [], []>} : vector<80x128xf32>, vector<128x384xf32>, vector<80x384xf32> -> vector<80x384xf32>
    %c0_4 = arith.constant 0 : index
    %c0_5 = arith.constant 0 : index
    %4 = vector.load %arg6[%c0_4, %c0_5] : memref<1x384xf32, #tpu.memory_space<vmem>>, vector<1x384xf32>
    %5 = vector.broadcast %4 : vector<1x384xf32> to vector<80x384xf32>
    %6 = arith.addf %3, %5 : vector<80x384xf32>
    %c0_6 = arith.constant 0 : index
    %c0_7 = arith.constant 0 : index
    %7 = vector.load %arg36[%c0_6, %c0_7] : memref<80x384xf32, #tpu.memory_space<vmem>>, vector<80x384xf32>
    tpu.vector_store %arg36[%c0_6, %c0_7], %6 {strides = array<i32>} : memref<80x384xf32, #tpu.memory_space<vmem>>, vector<80x384xf32>,
    %c0_8 = arith.constant 0 : index
    %c0_9 = arith.constant 0 : index
    %8 = vector.load %arg2[%c0_8, %c0_9] : memref<80x128xf32, #tpu.memory_space<vmem>>, vector<80x128xf32>
    %c0_10 = arith.constant 0 : index
    %c0_11 = arith.constant 0 : index
    %9 = vector.load %arg8[%c0_10, %c0_11] : memref<128x384xf32, #tpu.memory_space<vmem>>, vector<128x384xf32>
    %cst_12 = arith.constant dense<0.000000e+00> : vector<80x384xf32>
    %10 = tpu.matmul %8, %9, %cst_12 {dimension_numbers = #tpu.dot_dimension_numbers<[1], [0], [0], [1], [0, 0, 1, 1], [], []>} : vector<80x128xf32>, vector<128x384xf32>, vector<80x384xf32> -> vector<80x384xf32>
    %c0_13 = arith.constant 0 : index
    %c0_14 = arith.constant 0 : index
    %11 = vector.load %arg10[%c0_13, %c0_14] : memref<1x384xf32, #tpu.memory_space<vmem>>, vector<1x384xf32>
    %12 = vector.broadcast %11 : vector<1x384xf32> to vector<80x384xf32>
    %13 = arith.addf %10, %12 : vector<80x384xf32>
    %c0_15 = arith.constant 0 : index
    %c0_16 = arith.constant 0 : index
    %14 = vector.load %arg37[%c0_15, %c0_16] : memref<80x384xf32, #tpu.memory_space<vmem>>, vector<80x384xf32>
    tpu.vector_store %arg37[%c0_15, %c0_16], %13 {strides = array<i32>} : memref<80x384xf32, #tpu.memory_space<vmem>>, vector<80x384xf32>,
    %c0_17 = arith.constant 0 : index
    %c0_18 = arith.constant 0 : index
    %15 = vector.load %arg5[%c0_17, %c0_18] : memref<128x384xf32, #tpu.memory_space<vmem>>, vector<128x384xf32>
    %c0_19 = arith.constant 0 : index
    %c0_20 = arith.constant 0 : index
    %16 = vector.load %arg9[%c0_19, %c0_20] : memref<128x384xf32, #tpu.memory_space<vmem>>, vector<128x384xf32>
    %c0_21 = arith.constant 0 : index
    %c0_22 = arith.constant 0 : index
    %17 = vector.load %arg7[%c0_21, %c0_22] : memref<1x128xf32, #tpu.memory_space<vmem>>, vector<1x128xf32>
    %18 = vector.shape_cast %17 : vector<1x128xf32> to vector<1x128xf32>
    %19 = vector.broadcast %18 : vector<1x128xf32> to vector<8x128xf32>
    %c0_23 = arith.constant 0 : index
    %c0_24 = arith.constant 0 : index
    %20 = vector.load %arg11[%c0_23, %c0_24] : memref<1x128xf32, #tpu.memory_space<vmem>>, vector<1x128xf32>
    %21 = vector.shape_cast %20 : vector<1x128xf32> to vector<1x128xf32>
    %22 = vector.broadcast %21 : vector<1x128xf32> to vector<8x128xf32>
    %c0_i32 = arith.constant 0 : i32
    %c8_i32 = arith.constant 8 : i32
    %23 = arith.muli %c0_i32, %c8_i32 : i32
    %24 = tpu.assume_multiple %23, 8 : i32
    %25 = arith.index_cast %24 : i32 to index
    %c0_25 = arith.constant 0 : index
    %26 = vector.load %arg36[%25, %c0_25] : memref<80x384xf32, #tpu.memory_space<vmem>>, vector<8x384xf32>
    %27 = arith.index_cast %24 : i32 to index
    %c0_26 = arith.constant 0 : index
    %28 = vector.load %arg37[%27, %c0_26] : memref<80x384xf32, #tpu.memory_space<vmem>>, vector<8x384xf32>
    %cst_27 = arith.constant dense<0.000000e+00> : vector<8x384xf32>
    %29 = tpu.matmul %0, %15, %cst_27 {dimension_numbers = #tpu.dot_dimension_numbers<[1], [0], [0], [1], [0, 0, 1, 1], [], []>} : vector<8x128xf32>, vector<128x384xf32>, vector<8x384xf32> -> vector<8x384xf32>
    %cst_28 = arith.constant dense<0.000000e+00> : vector<8x384xf32>
    %30 = tpu.matmul %0, %16, %cst_28 {dimension_numbers = #tpu.dot_dimension_numbers<[1], [0], [0], [1], [0, 0, 1, 1], [], []>} : vector<8x128xf32>, vector<128x384xf32>, vector<8x384xf32> -> vector<8x384xf32>
    %31 = vector.extract_strided_slice %26 {offsets = [0, 0], sizes = [8, 256], strides = [1, 1]} : vector<8x384xf32> to vector<8x256xf32>
    %32 = vector.extract_strided_slice %29 {offsets = [0, 0], sizes = [8, 256], strides = [1, 1]} : vector<8x384xf32> to vector<8x256xf32>
    %33 = arith.addf %31, %32 : vector<8x256xf32>
    %34 = arith.negf %33 : vector<8x256xf32>
    %35 = math.exp %34 : vector<8x256xf32>
    %cst_29 = arith.constant 1.000000e+00 : f32
    %36 = vector.broadcast %cst_29 : f32 to vector<8x256xf32>
    %37 = arith.addf %36, %35 : vector<8x256xf32>
    %38 = arith.divf %36, %37 : vector<8x256xf32>
    %39 = vector.extract_strided_slice %38 {offsets = [0, 0], sizes = [8, 128], strides = [1, 1]} : vector<8x256xf32> to vector<8x128xf32>
    %40 = vector.extract_strided_slice %38 {offsets = [0, 128], sizes = [8, 128], strides = [1, 1]} : vector<8x256xf32> to vector<8x128xf32>
    %41 = vector.extract_strided_slice %26 {offsets = [0, 256], sizes = [8, 128], strides = [1, 1]} : vector<8x384xf32> to vector<8x128xf32>
    %42 = vector.extract_strided_slice %29 {offsets = [0, 256], sizes = [8, 128], strides = [1, 1]} : vector<8x384xf32> to vector<8x128xf32>
    %43 = arith.addf %42, %19 : vector<8x128xf32>
    %44 = arith.mulf %39, %43 : vector<8x128xf32>
    %45 = arith.addf %41, %44 : vector<8x128xf32>
    %46 = math.tanh %45 : vector<8x128xf32>
    %cst_30 = arith.constant 1.000000e+00 : f32
    %47 = vector.broadcast %cst_30 : f32 to vector<8x128xf32>
    %48 = arith.subf %47, %40 : vector<8x128xf32>
    %49 = arith.mulf %48, %46 : vector<8x128xf32>
    %50 = arith.mulf %40, %0 : vector<8x128xf32>
    %51 = arith.addf %49, %50 : vector<8x128xf32>
    %52 = vector.extract_strided_slice %28 {offsets = [0, 0], sizes = [8, 256], strides = [1, 1]} : vector<8x384xf32> to vector<8x256xf32>
    %53 = vector.extract_strided_slice %30 {offsets = [0, 0], sizes = [8, 256], strides = [1, 1]} : vector<8x384xf32> to vector<8x256xf32>
    %54 = arith.addf %52, %53 : vector<8x256xf32>
    %55 = arith.negf %54 : vector<8x256xf32>
    %56 = math.exp %55 : vector<8x256xf32>
    %cst_31 = arith.constant 1.000000e+00 : f32
    %57 = vector.broadcast %cst_31 : f32 to vector<8x256xf32>
    %58 = arith.addf %57, %56 : vector<8x256xf32>
    %59 = arith.divf %57, %58 : vector<8x256xf32>
    %60 = vector.extract_strided_slice %59 {offsets = [0, 0], sizes = [8, 128], strides = [1, 1]} : vector<8x256xf32> to vector<8x128xf32>
    %61 = vector.extract_strided_slice %59 {offsets = [0, 128], sizes = [8, 128], strides = [1, 1]} : vector<8x256xf32> to vector<8x128xf32>
    %62 = vector.extract_strided_slice %28 {offsets = [0, 256], sizes = [8, 128], strides = [1, 1]} : vector<8x384xf32> to vector<8x128xf32>
    %63 = vector.extract_strided_slice %30 {offsets = [0, 256], sizes = [8, 128], strides = [1, 1]} : vector<8x384xf32> to vector<8x128xf32>
    %64 = arith.addf %63, %22 : vector<8x128xf32>
    %65 = arith.mulf %60, %64 : vector<8x128xf32>
    %66 = arith.addf %62, %65 : vector<8x128xf32>
    %67 = math.tanh %66 : vector<8x128xf32>
    %cst_32 = arith.constant 1.000000e+00 : f32
    %68 = vector.broadcast %cst_32 : f32 to vector<8x128xf32>
    %69 = arith.subf %68, %61 : vector<8x128xf32>
    %70 = arith.mulf %69, %67 : vector<8x128xf32>
    %71 = arith.mulf %61, %0 : vector<8x128xf32>
    %72 = arith.addf %70, %71 : vector<8x128xf32>
    %73 = arith.index_cast %24 : i32 to index
    %c0_33 = arith.constant 0 : index
    %74 = vector.load %arg38[%73, %c0_33] : memref<80x128xf32, #tpu.memory_space<vmem>>, vector<8x128xf32>
    tpu.vector_store %arg38[%73, %c0_33], %51 {strides = array<i32>} : memref<80x128xf32, #tpu.memory_space<vmem>>, vector<8x128xf32>,
    %75 = arith.index_cast %24 : i32 to index
    %c0_34 = arith.constant 0 : index
    %76 = vector.load %arg39[%75, %c0_34] : memref<80x128xf32, #tpu.memory_space<vmem>>, vector<8x128xf32>
    tpu.vector_store %arg39[%75, %c0_34], %72 {strides = array<i32>} : memref<80x128xf32, #tpu.memory_space<vmem>>, vector<8x128xf32>,
    %c1_i32 = arith.constant 1 : i32
    %c8_i32_35 = arith.constant 8 : i32
    %77 = arith.muli %c1_i32, %c8_i32_35 : i32
    %78 = tpu.assume_multiple %77, 8 : i32
    %79 = arith.index_cast %78 : i32 to index
    %c0_36 = arith.constant 0 : index
    %80 = vector.load %arg36[%79, %c0_36] : memref<80x384xf32, #tpu.memory_space<vmem>>, vector<8x384xf32>
    %81 = arith.index_cast %78 : i32 to index
    %c0_37 = arith.constant 0 : index
    %82 = vector.load %arg37[%81, %c0_37] : memref<80x384xf32, #tpu.memory_space<vmem>>, vector<8x384xf32>
    %cst_38 = arith.constant dense<0.000000e+00> : vector<8x384xf32>
    %83 = tpu.matmul %51, %15, %cst_38 {dimension_numbers = #tpu.dot_dimension_numbers<[1], [0], [0], [1], [0, 0, 1, 1], [], []>} : vector<8x128xf32>, vector<128x384xf32>, vector<8x384xf32> -> vector<8x384xf32>
    %cst_39 = arith.constant dense<0.000000e+00> : vector<8x384xf32>
    %84 = tpu.matmul %72, %16, %cst_39 {dimension_numbers = #tpu.dot_dimension_numbers<[1], [0], [0], [1], [0, 0, 1, 1], [], []>} : vector<8x128xf32>, vector<128x384xf32>, vector<8x384xf32> -> vector<8x384xf32>
    %85 = vector.extract_strided_slice %80 {offsets = [0, 0], sizes = [8, 256], strides = [1, 1]} : vector<8x384xf32> to vector<8x256xf32>
    %86 = vector.extract_strided_slice %83 {offsets = [0, 0], sizes = [8, 256], strides = [1, 1]} : vector<8x384xf32> to vector<8x256xf32>
    %87 = arith.addf %85, %86 : vector<8x256xf32>
    %88 = arith.negf %87 : vector<8x256xf32>
    %89 = math.exp %88 : vector<8x256xf32>
    %cst_40 = arith.constant 1.000000e+00 : f32
    %90 = vector.broadcast %cst_40 : f32 to vector<8x256xf32>
    %91 = arith.addf %90, %89 : vector<8x256xf32>
    %92 = arith.divf %90, %91 : vector<8x256xf32>
    %93 = vector.extract_strided_slice %92 {offsets = [0, 0], sizes = [8, 128], strides = [1, 1]} : vector<8x256xf32> to vector<8x128xf32>
    %94 = vector.extract_strided_slice %92 {offsets = [0, 128], sizes = [8, 128], strides = [1, 1]} : vector<8x256xf32> to vector<8x128xf32>
    %95 = vector.extract_strided_slice %80 {offsets = [0, 256], sizes = [8, 128], strides = [1, 1]} : vector<8x384xf32> to vector<8x128xf32>
    %96 = vector.extract_strided_slice %83 {offsets = [0, 256], sizes = [8, 128], strides = [1, 1]} : vector<8x384xf32> to vector<8x128xf32>
    %97 = arith.addf %96, %19 : vector<8x128xf32>
    %98 = arith.mulf %93, %97 : vector<8x128xf32>
    %99 = arith.addf %95, %98 : vector<8x128xf32>
    %100 = math.tanh %99 : vector<8x128xf32>
    %cst_41 = arith.constant 1.000000e+00 : f32
    %101 = vector.broadcast %cst_41 : f32 to vector<8x128xf32>
    %102 = arith.subf %101, %94 : vector<8x128xf32>
    %103 = arith.mulf %102, %100 : vector<8x128xf32>
    %104 = arith.mulf %94, %51 : vector<8x128xf32>
    %105 = arith.addf %103, %104 : vector<8x128xf32>
    %106 = vector.extract_strided_slice %82 {offsets = [0, 0], sizes = [8, 256], strides = [1, 1]} : vector<8x384xf32> to vector<8x256xf32>
    %107 = vector.extract_strided_slice %84 {offsets = [0, 0], sizes = [8, 256], strides = [1, 1]} : vector<8x384xf32> to vector<8x256xf32>
    %108 = arith.addf %106, %107 : vector<8x256xf32>
    %109 = arith.negf %108 : vector<8x256xf32>
    %110 = math.exp %109 : vector<8x256xf32>
    %cst_42 = arith.constant 1.000000e+00 : f32
    %111 = vector.broadcast %cst_42 : f32 to vector<8x256xf32>
    %112 = arith.addf %111, %110 : vector<8x256xf32>
    %113 = arith.divf %111, %112 : vector<8x256xf32>
    %114 = vector.extract_strided_slice %113 {offsets = [0, 0], sizes = [8, 128], strides = [1, 1]} : vector<8x256xf32> to vector<8x128xf32>
    %115 = vector.extract_strided_slice %113 {offsets = [0, 128], sizes = [8, 128], strides = [1, 1]} : vector<8x256xf32> to vector<8x128xf32>
    %116 = vector.extract_strided_slice %82 {offsets = [0, 256], sizes = [8, 128], strides = [1, 1]} : vector<8x384xf32> to vector<8x128xf32>
    %117 = vector.extract_strided_slice %84 {offsets = [0, 256], sizes = [8, 128], strides = [1, 1]} : vector<8x384xf32> to vector<8x128xf32>
    %118 = arith.addf %117, %22 : vector<8x128xf32>
    %119 = arith.mulf %114, %118 : vector<8x128xf32>
    %120 = arith.addf %116, %119 : vector<8x128xf32>
    %121 = math.tanh %120 : vector<8x128xf32>
    %cst_43 = arith.constant 1.000000e+00 : f32
    %122 = vector.broadcast %cst_43 : f32 to vector<8x128xf32>
    %123 = arith.subf %122, %115 : vector<8x128xf32>
    %124 = arith.mulf %123, %121 : vector<8x128xf32>
    %125 = arith.mulf %115, %72 : vector<8x128xf32>
    %126 = arith.addf %124, %125 : vector<8x128xf32>
    %127 = arith.index_cast %78 : i32 to index
    %c0_44 = arith.constant 0 : index
    %128 = vector.load %arg38[%127, %c0_44] : memref<80x128xf32, #tpu.memory_space<vmem>>, vector<8x128xf32>
    tpu.vector_store %arg38[%127, %c0_44], %105 {strides = array<i32>} : memref<80x128xf32, #tpu.memory_space<vmem>>, vector<8x128xf32>,
    %129 = arith.index_cast %78 : i32 to index
    %c0_45 = arith.constant 0 : index
    %130 = vector.load %arg39[%129, %c0_45] : memref<80x128xf32, #tpu.memory_space<vmem>>, vector<8x128xf32>
    tpu.vector_store %arg39[%129, %c0_45], %126 {strides = array<i32>} : memref<80x128xf32, #tpu.memory_space<vmem>>, vector<8x128xf32>,
    %c2_i32 = arith.constant 2 : i32
    %c8_i32_46 = arith.constant 8 : i32
    %131 = arith.muli %c2_i32, %c8_i32_46 : i32
    %132 = tpu.assume_multiple %131, 8 : i32
    %133 = arith.index_cast %132 : i32 to index
    %c0_47 = arith.constant 0 : index
    %134 = vector.load %arg36[%133, %c0_47] : memref<80x384xf32, #tpu.memory_space<vmem>>, vector<8x384xf32>
    %135 = arith.index_cast %132 : i32 to index
    %c0_48 = arith.constant 0 : index
    %136 = vector.load %arg37[%135, %c0_48] : memref<80x384xf32, #tpu.memory_space<vmem>>, vector<8x384xf32>
    %cst_49 = arith.constant dense<0.000000e+00> : vector<8x384xf32>
    %137 = tpu.matmul %105, %15, %cst_49 {dimension_numbers = #tpu.dot_dimension_numbers<[1], [0], [0], [1], [0, 0, 1, 1], [], []>} : vector<8x128xf32>, vector<128x384xf32>, vector<8x384xf32> -> vector<8x384xf32>
    %cst_50 = arith.constant dense<0.000000e+00> : vector<8x384xf32>
    %138 = tpu.matmul %126, %16, %cst_50 {dimension_numbers = #tpu.dot_dimension_numbers<[1], [0], [0], [1], [0, 0, 1, 1], [], []>} : vector<8x128xf32>, vector<128x384xf32>, vector<8x384xf32> -> vector<8x384xf32>
    %139 = vector.extract_strided_slice %134 {offsets = [0, 0], sizes = [8, 256], strides = [1, 1]} : vector<8x384xf32> to vector<8x256xf32>
    %140 = vector.extract_strided_slice %137 {offsets = [0, 0], sizes = [8, 256], strides = [1, 1]} : vector<8x384xf32> to vector<8x256xf32>
    %141 = arith.addf %139, %140 : vector<8x256xf32>
    %142 = arith.negf %141 : vector<8x256xf32>
    %143 = math.exp %142 : vector<8x256xf32>
    %cst_51 = arith.constant 1.000000e+00 : f32
    %144 = vector.broadcast %cst_51 : f32 to vector<8x256xf32>
    %145 = arith.addf %144, %143 : vector<8x256xf32>
    %146 = arith.divf %144, %145 : vector<8x256xf32>
    %147 = vector.extract_strided_slice %146 {offsets = [0, 0], sizes = [8, 128], strides = [1, 1]} : vector<8x256xf32> to vector<8x128xf32>
    %148 = vector.extract_strided_slice %146 {offsets = [0, 128], sizes = [8, 128], strides = [1, 1]} : vector<8x256xf32> to vector<8x128xf32>
    %149 = vector.extract_strided_slice %134 {offsets = [0, 256], sizes = [8, 128], strides = [1, 1]} : vector<8x384xf32> to vector<8x128xf32>
    %150 = vector.extract_strided_slice %137 {offsets = [0, 256], sizes = [8, 128], strides = [1, 1]} : vector<8x384xf32> to vector<8x128xf32>
    %151 = arith.addf %150, %19 : vector<8x128xf32>
    %152 = arith.mulf %147, %151 : vector<8x128xf32>
    %153 = arith.addf %149, %152 : vector<8x128xf32>
    %154 = math.tanh %153 : vector<8x128xf32>
    %cst_52 = arith.constant 1.000000e+00 : f32
    %155 = vector.broadcast %cst_52 : f32 to vector<8x128xf32>
    %156 = arith.subf %155, %148 : vector<8x128xf32>
    %157 = arith.mulf %156, %154 : vector<8x128xf32>
    %158 = arith.mulf %148, %105 : vector<8x128xf32>
    %159 = arith.addf %157, %158 : vector<8x128xf32>
    %160 = vector.extract_strided_slice %136 {offsets = [0, 0], sizes = [8, 256], strides = [1, 1]} : vector<8x384xf32> to vector<8x256xf32>
    %161 = vector.extract_strided_slice %138 {offsets = [0, 0], sizes = [8, 256], strides = [1, 1]} : vector<8x384xf32> to vector<8x256xf32>
    %162 = arith.addf %160, %161 : vector<8x256xf32>
    %163 = arith.negf %162 : vector<8x256xf32>
    %164 = math.exp %163 : vector<8x256xf32>
    %cst_53 = arith.constant 1.000000e+00 : f32
    %165 = vector.broadcast %cst_53 : f32 to vector<8x256xf32>
    %166 = arith.addf %165, %164 : vector<8x256xf32>
    %167 = arith.divf %165, %166 : vector<8x256xf32>
    %168 = vector.extract_strided_slice %167 {offsets = [0, 0], sizes = [8, 128], strides = [1, 1]} : vector<8x256xf32> to vector<8x128xf32>
    %169 = vector.extract_strided_slice %167 {offsets = [0, 128], sizes = [8, 128], strides = [1, 1]} : vector<8x256xf32> to vector<8x128xf32>
    %170 = vector.extract_strided_slice %136 {offsets = [0, 256], sizes = [8, 128], strides = [1, 1]} : vector<8x384xf32> to vector<8x128xf32>
    %171 = vector.extract_strided_slice %138 {offsets = [0, 256], sizes = [8, 128], strides = [1, 1]} : vector<8x384xf32> to vector<8x128xf32>
    %172 = arith.addf %171, %22 : vector<8x128xf32>
    %173 = arith.mulf %168, %172 : vector<8x128xf32>
    %174 = arith.addf %170, %173 : vector<8x128xf32>
    %175 = math.tanh %174 : vector<8x128xf32>
    %cst_54 = arith.constant 1.000000e+00 : f32
    %176 = vector.broadcast %cst_54 : f32 to vector<8x128xf32>
    %177 = arith.subf %176, %169 : vector<8x128xf32>
    %178 = arith.mulf %177, %175 : vector<8x128xf32>
    %179 = arith.mulf %169, %126 : vector<8x128xf32>
    %180 = arith.addf %178, %179 : vector<8x128xf32>
    %181 = arith.index_cast %132 : i32 to index
    %c0_55 = arith.constant 0 : index
    %182 = vector.load %arg38[%181, %c0_55] : memref<80x128xf32, #tpu.memory_space<vmem>>, vector<8x128xf32>
    tpu.vector_store %arg38[%181, %c0_55], %159 {strides = array<i32>} : memref<80x128xf32, #tpu.memory_space<vmem>>, vector<8x128xf32>,
    %183 = arith.index_cast %132 : i32 to index
    %c0_56 = arith.constant 0 : index
    %184 = vector.load %arg39[%183, %c0_56] : memref<80x128xf32, #tpu.memory_space<vmem>>, vector<8x128xf32>
    tpu.vector_store %arg39[%183, %c0_56], %180 {strides = array<i32>} : memref<80x128xf32, #tpu.memory_space<vmem>>, vector<8x128xf32>,
    %c3_i32 = arith.constant 3 : i32
    %c8_i32_57 = arith.constant 8 : i32
    %185 = arith.muli %c3_i32, %c8_i32_57 : i32
    %186 = tpu.assume_multiple %185, 8 : i32
    %187 = arith.index_cast %186 : i32 to index
    %c0_58 = arith.constant 0 : index
    %188 = vector.load %arg36[%187, %c0_58] : memref<80x384xf32, #tpu.memory_space<vmem>>, vector<8x384xf32>
    %189 = arith.index_cast %186 : i32 to index
    %c0_59 = arith.constant 0 : index
    %190 = vector.load %arg37[%189, %c0_59] : memref<80x384xf32, #tpu.memory_space<vmem>>, vector<8x384xf32>
    %cst_60 = arith.constant dense<0.000000e+00> : vector<8x384xf32>
    %191 = tpu.matmul %159, %15, %cst_60 {dimension_numbers = #tpu.dot_dimension_numbers<[1], [0], [0], [1], [0, 0, 1, 1], [], []>} : vector<8x128xf32>, vector<128x384xf32>, vector<8x384xf32> -> vector<8x384xf32>
    %cst_61 = arith.constant dense<0.000000e+00> : vector<8x384xf32>
    %192 = tpu.matmul %180, %16, %cst_61 {dimension_numbers = #tpu.dot_dimension_numbers<[1], [0], [0], [1], [0, 0, 1, 1], [], []>} : vector<8x128xf32>, vector<128x384xf32>, vector<8x384xf32> -> vector<8x384xf32>
    %193 = vector.extract_strided_slice %188 {offsets = [0, 0], sizes = [8, 256], strides = [1, 1]} : vector<8x384xf32> to vector<8x256xf32>
    %194 = vector.extract_strided_slice %191 {offsets = [0, 0], sizes = [8, 256], strides = [1, 1]} : vector<8x384xf32> to vector<8x256xf32>
    %195 = arith.addf %193, %194 : vector<8x256xf32>
    %196 = arith.negf %195 : vector<8x256xf32>
    %197 = math.exp %196 : vector<8x256xf32>
    %cst_62 = arith.constant 1.000000e+00 : f32
    %198 = vector.broadcast %cst_62 : f32 to vector<8x256xf32>
    %199 = arith.addf %198, %197 : vector<8x256xf32>
    %200 = arith.divf %198, %199 : vector<8x256xf32>
    %201 = vector.extract_strided_slice %200 {offsets = [0, 0], sizes = [8, 128], strides = [1, 1]} : vector<8x256xf32> to vector<8x128xf32>
    %202 = vector.extract_strided_slice %200 {offsets = [0, 128], sizes = [8, 128], strides = [1, 1]} : vector<8x256xf32> to vector<8x128xf32>
    %203 = vector.extract_strided_slice %188 {offsets = [0, 256], sizes = [8, 128], strides = [1, 1]} : vector<8x384xf32> to vector<8x128xf32>
    %204 = vector.extract_strided_slice %191 {offsets = [0, 256], sizes = [8, 128], strides = [1, 1]} : vector<8x384xf32> to vector<8x128xf32>
    %205 = arith.addf %204, %19 : vector<8x128xf32>
    %206 = arith.mulf %201, %205 : vector<8x128xf32>
    %207 = arith.addf %203, %206 : vector<8x128xf32>
    %208 = math.tanh %207 : vector<8x128xf32>
    %cst_63 = arith.constant 1.000000e+00 : f32
    %209 = vector.broadcast %cst_63 : f32 to vector<8x128xf32>
    %210 = arith.subf %209, %202 : vector<8x128xf32>
    %211 = arith.mulf %210, %208 : vector<8x128xf32>
    %212 = arith.mulf %202, %159 : vector<8x128xf32>
    %213 = arith.addf %211, %212 : vector<8x128xf32>
    %214 = vector.extract_strided_slice %190 {offsets = [0, 0], sizes = [8, 256], strides = [1, 1]} : vector<8x384xf32> to vector<8x256xf32>
    %215 = vector.extract_strided_slice %192 {offsets = [0, 0], sizes = [8, 256], strides = [1, 1]} : vector<8x384xf32> to vector<8x256xf32>
    %216 = arith.addf %214, %215 : vector<8x256xf32>
    %217 = arith.negf %216 : vector<8x256xf32>
    %218 = math.exp %217 : vector<8x256xf32>
    %cst_64 = arith.constant 1.000000e+00 : f32
    %219 = vector.broadcast %cst_64 : f32 to vector<8x256xf32>
    %220 = arith.addf %219, %218 : vector<8x256xf32>
    %221 = arith.divf %219, %220 : vector<8x256xf32>
    %222 = vector.extract_strided_slice %221 {offsets = [0, 0], sizes = [8, 128], strides = [1, 1]} : vector<8x256xf32> to vector<8x128xf32>
    %223 = vector.extract_strided_slice %221 {offsets = [0, 128], sizes = [8, 128], strides = [1, 1]} : vector<8x256xf32> to vector<8x128xf32>
    %224 = vector.extract_strided_slice %190 {offsets = [0, 256], sizes = [8, 128], strides = [1, 1]} : vector<8x384xf32> to vector<8x128xf32>
    %225 = vector.extract_strided_slice %192 {offsets = [0, 256], sizes = [8, 128], strides = [1, 1]} : vector<8x384xf32> to vector<8x128xf32>
    %226 = arith.addf %225, %22 : vector<8x128xf32>
    %227 = arith.mulf %222, %226 : vector<8x128xf32>
    %228 = arith.addf %224, %227 : vector<8x128xf32>
    %229 = math.tanh %228 : vector<8x128xf32>
    %cst_65 = arith.constant 1.000000e+00 : f32
    %230 = vector.broadcast %cst_65 : f32 to vector<8x128xf32>
    %231 = arith.subf %230, %223 : vector<8x128xf32>
    %232 = arith.mulf %231, %229 : vector<8x128xf32>
    %233 = arith.mulf %223, %180 : vector<8x128xf32>
    %234 = arith.addf %232, %233 : vector<8x128xf32>
    %235 = arith.index_cast %186 : i32 to index
    %c0_66 = arith.constant 0 : index
    %236 = vector.load %arg38[%235, %c0_66] : memref<80x128xf32, #tpu.memory_space<vmem>>, vector<8x128xf32>
    tpu.vector_store %arg38[%235, %c0_66], %213 {strides = array<i32>} : memref<80x128xf32, #tpu.memory_space<vmem>>, vector<8x128xf32>,
    %237 = arith.index_cast %186 : i32 to index
    %c0_67 = arith.constant 0 : index
    %238 = vector.load %arg39[%237, %c0_67] : memref<80x128xf32, #tpu.memory_space<vmem>>, vector<8x128xf32>
    tpu.vector_store %arg39[%237, %c0_67], %234 {strides = array<i32>} : memref<80x128xf32, #tpu.memory_space<vmem>>, vector<8x128xf32>,
    %c4_i32 = arith.constant 4 : i32
    %c8_i32_68 = arith.constant 8 : i32
    %239 = arith.muli %c4_i32, %c8_i32_68 : i32
    %240 = tpu.assume_multiple %239, 8 : i32
    %241 = arith.index_cast %240 : i32 to index
    %c0_69 = arith.constant 0 : index
    %242 = vector.load %arg36[%241, %c0_69] : memref<80x384xf32, #tpu.memory_space<vmem>>, vector<8x384xf32>
    %243 = arith.index_cast %240 : i32 to index
    %c0_70 = arith.constant 0 : index
    %244 = vector.load %arg37[%243, %c0_70] : memref<80x384xf32, #tpu.memory_space<vmem>>, vector<8x384xf32>
    %cst_71 = arith.constant dense<0.000000e+00> : vector<8x384xf32>
    %245 = tpu.matmul %213, %15, %cst_71 {dimension_numbers = #tpu.dot_dimension_numbers<[1], [0], [0], [1], [0, 0, 1, 1], [], []>} : vector<8x128xf32>, vector<128x384xf32>, vector<8x384xf32> -> vector<8x384xf32>
    %cst_72 = arith.constant dense<0.000000e+00> : vector<8x384xf32>
    %246 = tpu.matmul %234, %16, %cst_72 {dimension_numbers = #tpu.dot_dimension_numbers<[1], [0], [0], [1], [0, 0, 1, 1], [], []>} : vector<8x128xf32>, vector<128x384xf32>, vector<8x384xf32> -> vector<8x384xf32>
    %247 = vector.extract_strided_slice %242 {offsets = [0, 0], sizes = [8, 256], strides = [1, 1]} : vector<8x384xf32> to vector<8x256xf32>
    %248 = vector.extract_strided_slice %245 {offsets = [0, 0], sizes = [8, 256], strides = [1, 1]} : vector<8x384xf32> to vector<8x256xf32>
    %249 = arith.addf %247, %248 : vector<8x256xf32>
    %250 = arith.negf %249 : vector<8x256xf32>
    %251 = math.exp %250 : vector<8x256xf32>
    %cst_73 = arith.constant 1.000000e+00 : f32
    %252 = vector.broadcast %cst_73 : f32 to vector<8x256xf32>
    %253 = arith.addf %252, %251 : vector<8x256xf32>
    %254 = arith.divf %252, %253 : vector<8x256xf32>
    %255 = vector.extract_strided_slice %254 {offsets = [0, 0], sizes = [8, 128], strides = [1, 1]} : vector<8x256xf32> to vector<8x128xf32>
    %256 = vector.extract_strided_slice %254 {offsets = [0, 128], sizes = [8, 128], strides = [1, 1]} : vector<8x256xf32> to vector<8x128xf32>
    %257 = vector.extract_strided_slice %242 {offsets = [0, 256], sizes = [8, 128], strides = [1, 1]} : vector<8x384xf32> to vector<8x128xf32>
    %258 = vector.extract_strided_slice %245 {offsets = [0, 256], sizes = [8, 128], strides = [1, 1]} : vector<8x384xf32> to vector<8x128xf32>
    %259 = arith.addf %258, %19 : vector<8x128xf32>
    %260 = arith.mulf %255, %259 : vector<8x128xf32>
    %261 = arith.addf %257, %260 : vector<8x128xf32>
    %262 = math.tanh %261 : vector<8x128xf32>
    %cst_74 = arith.constant 1.000000e+00 : f32
    %263 = vector.broadcast %cst_74 : f32 to vector<8x128xf32>
    %264 = arith.subf %263, %256 : vector<8x128xf32>
    %265 = arith.mulf %264, %262 : vector<8x128xf32>
    %266 = arith.mulf %256, %213 : vector<8x128xf32>
    %267 = arith.addf %265, %266 : vector<8x128xf32>
    %268 = vector.extract_strided_slice %244 {offsets = [0, 0], sizes = [8, 256], strides = [1, 1]} : vector<8x384xf32> to vector<8x256xf32>
    %269 = vector.extract_strided_slice %246 {offsets = [0, 0], sizes = [8, 256], strides = [1, 1]} : vector<8x384xf32> to vector<8x256xf32>
    %270 = arith.addf %268, %269 : vector<8x256xf32>
    %271 = arith.negf %270 : vector<8x256xf32>
    %272 = math.exp %271 : vector<8x256xf32>
    %cst_75 = arith.constant 1.000000e+00 : f32
    %273 = vector.broadcast %cst_75 : f32 to vector<8x256xf32>
    %274 = arith.addf %273, %272 : vector<8x256xf32>
    %275 = arith.divf %273, %274 : vector<8x256xf32>
    %276 = vector.extract_strided_slice %275 {offsets = [0, 0], sizes = [8, 128], strides = [1, 1]} : vector<8x256xf32> to vector<8x128xf32>
    %277 = vector.extract_strided_slice %275 {offsets = [0, 128], sizes = [8, 128], strides = [1, 1]} : vector<8x256xf32> to vector<8x128xf32>
    %278 = vector.extract_strided_slice %244 {offsets = [0, 256], sizes = [8, 128], strides = [1, 1]} : vector<8x384xf32> to vector<8x128xf32>
    %279 = vector.extract_strided_slice %246 {offsets = [0, 256], sizes = [8, 128], strides = [1, 1]} : vector<8x384xf32> to vector<8x128xf32>
    %280 = arith.addf %279, %22 : vector<8x128xf32>
    %281 = arith.mulf %276, %280 : vector<8x128xf32>
    %282 = arith.addf %278, %281 : vector<8x128xf32>
    %283 = math.tanh %282 : vector<8x128xf32>
    %cst_76 = arith.constant 1.000000e+00 : f32
    %284 = vector.broadcast %cst_76 : f32 to vector<8x128xf32>
    %285 = arith.subf %284, %277 : vector<8x128xf32>
    %286 = arith.mulf %285, %283 : vector<8x128xf32>
    %287 = arith.mulf %277, %234 : vector<8x128xf32>
    %288 = arith.addf %286, %287 : vector<8x128xf32>
    %289 = arith.index_cast %240 : i32 to index
    %c0_77 = arith.constant 0 : index
    %290 = vector.load %arg38[%289, %c0_77] : memref<80x128xf32, #tpu.memory_space<vmem>>, vector<8x128xf32>
    tpu.vector_store %arg38[%289, %c0_77], %267 {strides = array<i32>} : memref<80x128xf32, #tpu.memory_space<vmem>>, vector<8x128xf32>,
    %291 = arith.index_cast %240 : i32 to index
    %c0_78 = arith.constant 0 : index
    %292 = vector.load %arg39[%291, %c0_78] : memref<80x128xf32, #tpu.memory_space<vmem>>, vector<8x128xf32>
    tpu.vector_store %arg39[%291, %c0_78], %288 {strides = array<i32>} : memref<80x128xf32, #tpu.memory_space<vmem>>, vector<8x128xf32>,
    %c5_i32 = arith.constant 5 : i32
    %c8_i32_79 = arith.constant 8 : i32
    %293 = arith.muli %c5_i32, %c8_i32_79 : i32
    %294 = tpu.assume_multiple %293, 8 : i32
    %295 = arith.index_cast %294 : i32 to index
    %c0_80 = arith.constant 0 : index
    %296 = vector.load %arg36[%295, %c0_80] : memref<80x384xf32, #tpu.memory_space<vmem>>, vector<8x384xf32>
    %297 = arith.index_cast %294 : i32 to index
    %c0_81 = arith.constant 0 : index
    %298 = vector.load %arg37[%297, %c0_81] : memref<80x384xf32, #tpu.memory_space<vmem>>, vector<8x384xf32>
    %cst_82 = arith.constant dense<0.000000e+00> : vector<8x384xf32>
    %299 = tpu.matmul %267, %15, %cst_82 {dimension_numbers = #tpu.dot_dimension_numbers<[1], [0], [0], [1], [0, 0, 1, 1], [], []>} : vector<8x128xf32>, vector<128x384xf32>, vector<8x384xf32> -> vector<8x384xf32>
    %cst_83 = arith.constant dense<0.000000e+00> : vector<8x384xf32>
    %300 = tpu.matmul %288, %16, %cst_83 {dimension_numbers = #tpu.dot_dimension_numbers<[1], [0], [0], [1], [0, 0, 1, 1], [], []>} : vector<8x128xf32>, vector<128x384xf32>, vector<8x384xf32> -> vector<8x384xf32>
    %301 = vector.extract_strided_slice %296 {offsets = [0, 0], sizes = [8, 256], strides = [1, 1]} : vector<8x384xf32> to vector<8x256xf32>
    %302 = vector.extract_strided_slice %299 {offsets = [0, 0], sizes = [8, 256], strides = [1, 1]} : vector<8x384xf32> to vector<8x256xf32>
    %303 = arith.addf %301, %302 : vector<8x256xf32>
    %304 = arith.negf %303 : vector<8x256xf32>
    %305 = math.exp %304 : vector<8x256xf32>
    %cst_84 = arith.constant 1.000000e+00 : f32
    %306 = vector.broadcast %cst_84 : f32 to vector<8x256xf32>
    %307 = arith.addf %306, %305 : vector<8x256xf32>
    %308 = arith.divf %306, %307 : vector<8x256xf32>
    %309 = vector.extract_strided_slice %308 {offsets = [0, 0], sizes = [8, 128], strides = [1, 1]} : vector<8x256xf32> to vector<8x128xf32>
    %310 = vector.extract_strided_slice %308 {offsets = [0, 128], sizes = [8, 128], strides = [1, 1]} : vector<8x256xf32> to vector<8x128xf32>
    %311 = vector.extract_strided_slice %296 {offsets = [0, 256], sizes = [8, 128], strides = [1, 1]} : vector<8x384xf32> to vector<8x128xf32>
    %312 = vector.extract_strided_slice %299 {offsets = [0, 256], sizes = [8, 128], strides = [1, 1]} : vector<8x384xf32> to vector<8x128xf32>
    %313 = arith.addf %312, %19 : vector<8x128xf32>
    %314 = arith.mulf %309, %313 : vector<8x128xf32>
    %315 = arith.addf %311, %314 : vector<8x128xf32>
    %316 = math.tanh %315 : vector<8x128xf32>
    %cst_85 = arith.constant 1.000000e+00 : f32
    %317 = vector.broadcast %cst_85 : f32 to vector<8x128xf32>
    %318 = arith.subf %317, %310 : vector<8x128xf32>
    %319 = arith.mulf %318, %316 : vector<8x128xf32>
    %320 = arith.mulf %310, %267 : vector<8x128xf32>
    %321 = arith.addf %319, %320 : vector<8x128xf32>
    %322 = vector.extract_strided_slice %298 {offsets = [0, 0], sizes = [8, 256], strides = [1, 1]} : vector<8x384xf32> to vector<8x256xf32>
    %323 = vector.extract_strided_slice %300 {offsets = [0, 0], sizes = [8, 256], strides = [1, 1]} : vector<8x384xf32> to vector<8x256xf32>
    %324 = arith.addf %322, %323 : vector<8x256xf32>
    %325 = arith.negf %324 : vector<8x256xf32>
    %326 = math.exp %325 : vector<8x256xf32>
    %cst_86 = arith.constant 1.000000e+00 : f32
    %327 = vector.broadcast %cst_86 : f32 to vector<8x256xf32>
    %328 = arith.addf %327, %326 : vector<8x256xf32>
    %329 = arith.divf %327, %328 : vector<8x256xf32>
    %330 = vector.extract_strided_slice %329 {offsets = [0, 0], sizes = [8, 128], strides = [1, 1]} : vector<8x256xf32> to vector<8x128xf32>
    %331 = vector.extract_strided_slice %329 {offsets = [0, 128], sizes = [8, 128], strides = [1, 1]} : vector<8x256xf32> to vector<8x128xf32>
    %332 = vector.extract_strided_slice %298 {offsets = [0, 256], sizes = [8, 128], strides = [1, 1]} : vector<8x384xf32> to vector<8x128xf32>
    %333 = vector.extract_strided_slice %300 {offsets = [0, 256], sizes = [8, 128], strides = [1, 1]} : vector<8x384xf32> to vector<8x128xf32>
    %334 = arith.addf %333, %22 : vector<8x128xf32>
    %335 = arith.mulf %330, %334 : vector<8x128xf32>
    %336 = arith.addf %332, %335 : vector<8x128xf32>
    %337 = math.tanh %336 : vector<8x128xf32>
    %cst_87 = arith.constant 1.000000e+00 : f32
    %338 = vector.broadcast %cst_87 : f32 to vector<8x128xf32>
    %339 = arith.subf %338, %331 : vector<8x128xf32>
    %340 = arith.mulf %339, %337 : vector<8x128xf32>
    %341 = arith.mulf %331, %288 : vector<8x128xf32>
    %342 = arith.addf %340, %341 : vector<8x128xf32>
    %343 = arith.index_cast %294 : i32 to index
    %c0_88 = arith.constant 0 : index
    %344 = vector.load %arg38[%343, %c0_88] : memref<80x128xf32, #tpu.memory_space<vmem>>, vector<8x128xf32>
    tpu.vector_store %arg38[%343, %c0_88], %321 {strides = array<i32>} : memref<80x128xf32, #tpu.memory_space<vmem>>, vector<8x128xf32>,
    %345 = arith.index_cast %294 : i32 to index
    %c0_89 = arith.constant 0 : index
    %346 = vector.load %arg39[%345, %c0_89] : memref<80x128xf32, #tpu.memory_space<vmem>>, vector<8x128xf32>
    tpu.vector_store %arg39[%345, %c0_89], %342 {strides = array<i32>} : memref<80x128xf32, #tpu.memory_space<vmem>>, vector<8x128xf32>,
    %c6_i32 = arith.constant 6 : i32
    %c8_i32_90 = arith.constant 8 : i32
    %347 = arith.muli %c6_i32, %c8_i32_90 : i32
    %348 = tpu.assume_multiple %347, 8 : i32
    %349 = arith.index_cast %348 : i32 to index
    %c0_91 = arith.constant 0 : index
    %350 = vector.load %arg36[%349, %c0_91] : memref<80x384xf32, #tpu.memory_space<vmem>>, vector<8x384xf32>
    %351 = arith.index_cast %348 : i32 to index
    %c0_92 = arith.constant 0 : index
    %352 = vector.load %arg37[%351, %c0_92] : memref<80x384xf32, #tpu.memory_space<vmem>>, vector<8x384xf32>
    %cst_93 = arith.constant dense<0.000000e+00> : vector<8x384xf32>
    %353 = tpu.matmul %321, %15, %cst_93 {dimension_numbers = #tpu.dot_dimension_numbers<[1], [0], [0], [1], [0, 0, 1, 1], [], []>} : vector<8x128xf32>, vector<128x384xf32>, vector<8x384xf32> -> vector<8x384xf32>
    %cst_94 = arith.constant dense<0.000000e+00> : vector<8x384xf32>
    %354 = tpu.matmul %342, %16, %cst_94 {dimension_numbers = #tpu.dot_dimension_numbers<[1], [0], [0], [1], [0, 0, 1, 1], [], []>} : vector<8x128xf32>, vector<128x384xf32>, vector<8x384xf32> -> vector<8x384xf32>
    %355 = vector.extract_strided_slice %350 {offsets = [0, 0], sizes = [8, 256], strides = [1, 1]} : vector<8x384xf32> to vector<8x256xf32>
    %356 = vector.extract_strided_slice %353 {offsets = [0, 0], sizes = [8, 256], strides = [1, 1]} : vector<8x384xf32> to vector<8x256xf32>
    %357 = arith.addf %355, %356 : vector<8x256xf32>
    %358 = arith.negf %357 : vector<8x256xf32>
    %359 = math.exp %358 : vector<8x256xf32>
    %cst_95 = arith.constant 1.000000e+00 : f32
    %360 = vector.broadcast %cst_95 : f32 to vector<8x256xf32>
    %361 = arith.addf %360, %359 : vector<8x256xf32>
    %362 = arith.divf %360, %361 : vector<8x256xf32>
    %363 = vector.extract_strided_slice %362 {offsets = [0, 0], sizes = [8, 128], strides = [1, 1]} : vector<8x256xf32> to vector<8x128xf32>
    %364 = vector.extract_strided_slice %362 {offsets = [0, 128], sizes = [8, 128], strides = [1, 1]} : vector<8x256xf32> to vector<8x128xf32>
    %365 = vector.extract_strided_slice %350 {offsets = [0, 256], sizes = [8, 128], strides = [1, 1]} : vector<8x384xf32> to vector<8x128xf32>
    %366 = vector.extract_strided_slice %353 {offsets = [0, 256], sizes = [8, 128], strides = [1, 1]} : vector<8x384xf32> to vector<8x128xf32>
    %367 = arith.addf %366, %19 : vector<8x128xf32>
    %368 = arith.mulf %363, %367 : vector<8x128xf32>
    %369 = arith.addf %365, %368 : vector<8x128xf32>
    %370 = math.tanh %369 : vector<8x128xf32>
    %cst_96 = arith.constant 1.000000e+00 : f32
    %371 = vector.broadcast %cst_96 : f32 to vector<8x128xf32>
    %372 = arith.subf %371, %364 : vector<8x128xf32>
    %373 = arith.mulf %372, %370 : vector<8x128xf32>
    %374 = arith.mulf %364, %321 : vector<8x128xf32>
    %375 = arith.addf %373, %374 : vector<8x128xf32>
    %376 = vector.extract_strided_slice %352 {offsets = [0, 0], sizes = [8, 256], strides = [1, 1]} : vector<8x384xf32> to vector<8x256xf32>
    %377 = vector.extract_strided_slice %354 {offsets = [0, 0], sizes = [8, 256], strides = [1, 1]} : vector<8x384xf32> to vector<8x256xf32>
    %378 = arith.addf %376, %377 : vector<8x256xf32>
    %379 = arith.negf %378 : vector<8x256xf32>
    %380 = math.exp %379 : vector<8x256xf32>
    %cst_97 = arith.constant 1.000000e+00 : f32
    %381 = vector.broadcast %cst_97 : f32 to vector<8x256xf32>
    %382 = arith.addf %381, %380 : vector<8x256xf32>
    %383 = arith.divf %381, %382 : vector<8x256xf32>
    %384 = vector.extract_strided_slice %383 {offsets = [0, 0], sizes = [8, 128], strides = [1, 1]} : vector<8x256xf32> to vector<8x128xf32>
    %385 = vector.extract_strided_slice %383 {offsets = [0, 128], sizes = [8, 128], strides = [1, 1]} : vector<8x256xf32> to vector<8x128xf32>
    %386 = vector.extract_strided_slice %352 {offsets = [0, 256], sizes = [8, 128], strides = [1, 1]} : vector<8x384xf32> to vector<8x128xf32>
    %387 = vector.extract_strided_slice %354 {offsets = [0, 256], sizes = [8, 128], strides = [1, 1]} : vector<8x384xf32> to vector<8x128xf32>
    %388 = arith.addf %387, %22 : vector<8x128xf32>
    %389 = arith.mulf %384, %388 : vector<8x128xf32>
    %390 = arith.addf %386, %389 : vector<8x128xf32>
    %391 = math.tanh %390 : vector<8x128xf32>
    %cst_98 = arith.constant 1.000000e+00 : f32
    %392 = vector.broadcast %cst_98 : f32 to vector<8x128xf32>
    %393 = arith.subf %392, %385 : vector<8x128xf32>
    %394 = arith.mulf %393, %391 : vector<8x128xf32>
    %395 = arith.mulf %385, %342 : vector<8x128xf32>
    %396 = arith.addf %394, %395 : vector<8x128xf32>
    %397 = arith.index_cast %348 : i32 to index
    %c0_99 = arith.constant 0 : index
    %398 = vector.load %arg38[%397, %c0_99] : memref<80x128xf32, #tpu.memory_space<vmem>>, vector<8x128xf32>
    tpu.vector_store %arg38[%397, %c0_99], %375 {strides = array<i32>} : memref<80x128xf32, #tpu.memory_space<vmem>>, vector<8x128xf32>,
    %399 = arith.index_cast %348 : i32 to index
    %c0_100 = arith.constant 0 : index
    %400 = vector.load %arg39[%399, %c0_100] : memref<80x128xf32, #tpu.memory_space<vmem>>, vector<8x128xf32>
    tpu.vector_store %arg39[%399, %c0_100], %396 {strides = array<i32>} : memref<80x128xf32, #tpu.memory_space<vmem>>, vector<8x128xf32>,
    %c7_i32 = arith.constant 7 : i32
    %c8_i32_101 = arith.constant 8 : i32
    %401 = arith.muli %c7_i32, %c8_i32_101 : i32
    %402 = tpu.assume_multiple %401, 8 : i32
    %403 = arith.index_cast %402 : i32 to index
    %c0_102 = arith.constant 0 : index
    %404 = vector.load %arg36[%403, %c0_102] : memref<80x384xf32, #tpu.memory_space<vmem>>, vector<8x384xf32>
    %405 = arith.index_cast %402 : i32 to index
    %c0_103 = arith.constant 0 : index
    %406 = vector.load %arg37[%405, %c0_103] : memref<80x384xf32, #tpu.memory_space<vmem>>, vector<8x384xf32>
    %cst_104 = arith.constant dense<0.000000e+00> : vector<8x384xf32>
    %407 = tpu.matmul %375, %15, %cst_104 {dimension_numbers = #tpu.dot_dimension_numbers<[1], [0], [0], [1], [0, 0, 1, 1], [], []>} : vector<8x128xf32>, vector<128x384xf32>, vector<8x384xf32> -> vector<8x384xf32>
    %cst_105 = arith.constant dense<0.000000e+00> : vector<8x384xf32>
    %408 = tpu.matmul %396, %16, %cst_105 {dimension_numbers = #tpu.dot_dimension_numbers<[1], [0], [0], [1], [0, 0, 1, 1], [], []>} : vector<8x128xf32>, vector<128x384xf32>, vector<8x384xf32> -> vector<8x384xf32>
    %409 = vector.extract_strided_slice %404 {offsets = [0, 0], sizes = [8, 256], strides = [1, 1]} : vector<8x384xf32> to vector<8x256xf32>
    %410 = vector.extract_strided_slice %407 {offsets = [0, 0], sizes = [8, 256], strides = [1, 1]} : vector<8x384xf32> to vector<8x256xf32>
    %411 = arith.addf %409, %410 : vector<8x256xf32>
    %412 = arith.negf %411 : vector<8x256xf32>
    %413 = math.exp %412 : vector<8x256xf32>
    %cst_106 = arith.constant 1.000000e+00 : f32
    %414 = vector.broadcast %cst_106 : f32 to vector<8x256xf32>
    %415 = arith.addf %414, %413 : vector<8x256xf32>
    %416 = arith.divf %414, %415 : vector<8x256xf32>
    %417 = vector.extract_strided_slice %416 {offsets = [0, 0], sizes = [8, 128], strides = [1, 1]} : vector<8x256xf32> to vector<8x128xf32>
    %418 = vector.extract_strided_slice %416 {offsets = [0, 128], sizes = [8, 128], strides = [1, 1]} : vector<8x256xf32> to vector<8x128xf32>
    %419 = vector.extract_strided_slice %404 {offsets = [0, 256], sizes = [8, 128], strides = [1, 1]} : vector<8x384xf32> to vector<8x128xf32>
    %420 = vector.extract_strided_slice %407 {offsets = [0, 256], sizes = [8, 128], strides = [1, 1]} : vector<8x384xf32> to vector<8x128xf32>
    %421 = arith.addf %420, %19 : vector<8x128xf32>
    %422 = arith.mulf %417, %421 : vector<8x128xf32>
    %423 = arith.addf %419, %422 : vector<8x128xf32>
    %424 = math.tanh %423 : vector<8x128xf32>
    %cst_107 = arith.constant 1.000000e+00 : f32
    %425 = vector.broadcast %cst_107 : f32 to vector<8x128xf32>
    %426 = arith.subf %425, %418 : vector<8x128xf32>
    %427 = arith.mulf %426, %424 : vector<8x128xf32>
    %428 = arith.mulf %418, %375 : vector<8x128xf32>
    %429 = arith.addf %427, %428 : vector<8x128xf32>
    %430 = vector.extract_strided_slice %406 {offsets = [0, 0], sizes = [8, 256], strides = [1, 1]} : vector<8x384xf32> to vector<8x256xf32>
    %431 = vector.extract_strided_slice %408 {offsets = [0, 0], sizes = [8, 256], strides = [1, 1]} : vector<8x384xf32> to vector<8x256xf32>
    %432 = arith.addf %430, %431 : vector<8x256xf32>
    %433 = arith.negf %432 : vector<8x256xf32>
    %434 = math.exp %433 : vector<8x256xf32>
    %cst_108 = arith.constant 1.000000e+00 : f32
    %435 = vector.broadcast %cst_108 : f32 to vector<8x256xf32>
    %436 = arith.addf %435, %434 : vector<8x256xf32>
    %437 = arith.divf %435, %436 : vector<8x256xf32>
    %438 = vector.extract_strided_slice %437 {offsets = [0, 0], sizes = [8, 128], strides = [1, 1]} : vector<8x256xf32> to vector<8x128xf32>
    %439 = vector.extract_strided_slice %437 {offsets = [0, 128], sizes = [8, 128], strides = [1, 1]} : vector<8x256xf32> to vector<8x128xf32>
    %440 = vector.extract_strided_slice %406 {offsets = [0, 256], sizes = [8, 128], strides = [1, 1]} : vector<8x384xf32> to vector<8x128xf32>
    %441 = vector.extract_strided_slice %408 {offsets = [0, 256], sizes = [8, 128], strides = [1, 1]} : vector<8x384xf32> to vector<8x128xf32>
    %442 = arith.addf %441, %22 : vector<8x128xf32>
    %443 = arith.mulf %438, %442 : vector<8x128xf32>
    %444 = arith.addf %440, %443 : vector<8x128xf32>
    %445 = math.tanh %444 : vector<8x128xf32>
    %cst_109 = arith.constant 1.000000e+00 : f32
    %446 = vector.broadcast %cst_109 : f32 to vector<8x128xf32>
    %447 = arith.subf %446, %439 : vector<8x128xf32>
    %448 = arith.mulf %447, %445 : vector<8x128xf32>
    %449 = arith.mulf %439, %396 : vector<8x128xf32>
    %450 = arith.addf %448, %449 : vector<8x128xf32>
    %451 = arith.index_cast %402 : i32 to index
    %c0_110 = arith.constant 0 : index
    %452 = vector.load %arg38[%451, %c0_110] : memref<80x128xf32, #tpu.memory_space<vmem>>, vector<8x128xf32>
    tpu.vector_store %arg38[%451, %c0_110], %429 {strides = array<i32>} : memref<80x128xf32, #tpu.memory_space<vmem>>, vector<8x128xf32>,
    %453 = arith.index_cast %402 : i32 to index
    %c0_111 = arith.constant 0 : index
    %454 = vector.load %arg39[%453, %c0_111] : memref<80x128xf32, #tpu.memory_space<vmem>>, vector<8x128xf32>
    tpu.vector_store %arg39[%453, %c0_111], %450 {strides = array<i32>} : memref<80x128xf32, #tpu.memory_space<vmem>>, vector<8x128xf32>,
    %c8_i32_112 = arith.constant 8 : i32
    %c8_i32_113 = arith.constant 8 : i32
    %455 = arith.muli %c8_i32_112, %c8_i32_113 : i32
    %456 = tpu.assume_multiple %455, 8 : i32
    %457 = arith.index_cast %456 : i32 to index
    %c0_114 = arith.constant 0 : index
    %458 = vector.load %arg36[%457, %c0_114] : memref<80x384xf32, #tpu.memory_space<vmem>>, vector<8x384xf32>
    %459 = arith.index_cast %456 : i32 to index
    %c0_115 = arith.constant 0 : index
    %460 = vector.load %arg37[%459, %c0_115] : memref<80x384xf32, #tpu.memory_space<vmem>>, vector<8x384xf32>
    %cst_116 = arith.constant dense<0.000000e+00> : vector<8x384xf32>
    %461 = tpu.matmul %429, %15, %cst_116 {dimension_numbers = #tpu.dot_dimension_numbers<[1], [0], [0], [1], [0, 0, 1, 1], [], []>} : vector<8x128xf32>, vector<128x384xf32>, vector<8x384xf32> -> vector<8x384xf32>
    %cst_117 = arith.constant dense<0.000000e+00> : vector<8x384xf32>
    %462 = tpu.matmul %450, %16, %cst_117 {dimension_numbers = #tpu.dot_dimension_numbers<[1], [0], [0], [1], [0, 0, 1, 1], [], []>} : vector<8x128xf32>, vector<128x384xf32>, vector<8x384xf32> -> vector<8x384xf32>
    %463 = vector.extract_strided_slice %458 {offsets = [0, 0], sizes = [8, 256], strides = [1, 1]} : vector<8x384xf32> to vector<8x256xf32>
    %464 = vector.extract_strided_slice %461 {offsets = [0, 0], sizes = [8, 256], strides = [1, 1]} : vector<8x384xf32> to vector<8x256xf32>
    %465 = arith.addf %463, %464 : vector<8x256xf32>
    %466 = arith.negf %465 : vector<8x256xf32>
    %467 = math.exp %466 : vector<8x256xf32>
    %cst_118 = arith.constant 1.000000e+00 : f32
    %468 = vector.broadcast %cst_118 : f32 to vector<8x256xf32>
    %469 = arith.addf %468, %467 : vector<8x256xf32>
    %470 = arith.divf %468, %469 : vector<8x256xf32>
    %471 = vector.extract_strided_slice %470 {offsets = [0, 0], sizes = [8, 128], strides = [1, 1]} : vector<8x256xf32> to vector<8x128xf32>
    %472 = vector.extract_strided_slice %470 {offsets = [0, 128], sizes = [8, 128], strides = [1, 1]} : vector<8x256xf32> to vector<8x128xf32>
    %473 = vector.extract_strided_slice %458 {offsets = [0, 256], sizes = [8, 128], strides = [1, 1]} : vector<8x384xf32> to vector<8x128xf32>
    %474 = vector.extract_strided_slice %461 {offsets = [0, 256], sizes = [8, 128], strides = [1, 1]} : vector<8x384xf32> to vector<8x128xf32>
    %475 = arith.addf %474, %19 : vector<8x128xf32>
    %476 = arith.mulf %471, %475 : vector<8x128xf32>
    %477 = arith.addf %473, %476 : vector<8x128xf32>
    %478 = math.tanh %477 : vector<8x128xf32>
    %cst_119 = arith.constant 1.000000e+00 : f32
    %479 = vector.broadcast %cst_119 : f32 to vector<8x128xf32>
    %480 = arith.subf %479, %472 : vector<8x128xf32>
    %481 = arith.mulf %480, %478 : vector<8x128xf32>
    %482 = arith.mulf %472, %429 : vector<8x128xf32>
    %483 = arith.addf %481, %482 : vector<8x128xf32>
    %484 = vector.extract_strided_slice %460 {offsets = [0, 0], sizes = [8, 256], strides = [1, 1]} : vector<8x384xf32> to vector<8x256xf32>
    %485 = vector.extract_strided_slice %462 {offsets = [0, 0], sizes = [8, 256], strides = [1, 1]} : vector<8x384xf32> to vector<8x256xf32>
    %486 = arith.addf %484, %485 : vector<8x256xf32>
    %487 = arith.negf %486 : vector<8x256xf32>
    %488 = math.exp %487 : vector<8x256xf32>
    %cst_120 = arith.constant 1.000000e+00 : f32
    %489 = vector.broadcast %cst_120 : f32 to vector<8x256xf32>
    %490 = arith.addf %489, %488 : vector<8x256xf32>
    %491 = arith.divf %489, %490 : vector<8x256xf32>
    %492 = vector.extract_strided_slice %491 {offsets = [0, 0], sizes = [8, 128], strides = [1, 1]} : vector<8x256xf32> to vector<8x128xf32>
    %493 = vector.extract_strided_slice %491 {offsets = [0, 128], sizes = [8, 128], strides = [1, 1]} : vector<8x256xf32> to vector<8x128xf32>
    %494 = vector.extract_strided_slice %460 {offsets = [0, 256], sizes = [8, 128], strides = [1, 1]} : vector<8x384xf32> to vector<8x128xf32>
    %495 = vector.extract_strided_slice %462 {offsets = [0, 256], sizes = [8, 128], strides = [1, 1]} : vector<8x384xf32> to vector<8x128xf32>
    %496 = arith.addf %495, %22 : vector<8x128xf32>
    %497 = arith.mulf %492, %496 : vector<8x128xf32>
    %498 = arith.addf %494, %497 : vector<8x128xf32>
    %499 = math.tanh %498 : vector<8x128xf32>
    %cst_121 = arith.constant 1.000000e+00 : f32
    %500 = vector.broadcast %cst_121 : f32 to vector<8x128xf32>
    %501 = arith.subf %500, %493 : vector<8x128xf32>
    %502 = arith.mulf %501, %499 : vector<8x128xf32>
    %503 = arith.mulf %493, %450 : vector<8x128xf32>
    %504 = arith.addf %502, %503 : vector<8x128xf32>
    %505 = arith.index_cast %456 : i32 to index
    %c0_122 = arith.constant 0 : index
    %506 = vector.load %arg38[%505, %c0_122] : memref<80x128xf32, #tpu.memory_space<vmem>>, vector<8x128xf32>
    tpu.vector_store %arg38[%505, %c0_122], %483 {strides = array<i32>} : memref<80x128xf32, #tpu.memory_space<vmem>>, vector<8x128xf32>,
    %507 = arith.index_cast %456 : i32 to index
    %c0_123 = arith.constant 0 : index
    %508 = vector.load %arg39[%507, %c0_123] : memref<80x128xf32, #tpu.memory_space<vmem>>, vector<8x128xf32>
    tpu.vector_store %arg39[%507, %c0_123], %504 {strides = array<i32>} : memref<80x128xf32, #tpu.memory_space<vmem>>, vector<8x128xf32>,
    %c9_i32 = arith.constant 9 : i32
    %c8_i32_124 = arith.constant 8 : i32
    %509 = arith.muli %c9_i32, %c8_i32_124 : i32
    %510 = tpu.assume_multiple %509, 8 : i32
    %511 = arith.index_cast %510 : i32 to index
    %c0_125 = arith.constant 0 : index
    %512 = vector.load %arg36[%511, %c0_125] : memref<80x384xf32, #tpu.memory_space<vmem>>, vector<8x384xf32>
    %513 = arith.index_cast %510 : i32 to index
    %c0_126 = arith.constant 0 : index
    %514 = vector.load %arg37[%513, %c0_126] : memref<80x384xf32, #tpu.memory_space<vmem>>, vector<8x384xf32>
    %cst_127 = arith.constant dense<0.000000e+00> : vector<8x384xf32>
    %515 = tpu.matmul %483, %15, %cst_127 {dimension_numbers = #tpu.dot_dimension_numbers<[1], [0], [0], [1], [0, 0, 1, 1], [], []>} : vector<8x128xf32>, vector<128x384xf32>, vector<8x384xf32> -> vector<8x384xf32>
    %cst_128 = arith.constant dense<0.000000e+00> : vector<8x384xf32>
    %516 = tpu.matmul %504, %16, %cst_128 {dimension_numbers = #tpu.dot_dimension_numbers<[1], [0], [0], [1], [0, 0, 1, 1], [], []>} : vector<8x128xf32>, vector<128x384xf32>, vector<8x384xf32> -> vector<8x384xf32>
    %517 = vector.extract_strided_slice %512 {offsets = [0, 0], sizes = [8, 256], strides = [1, 1]} : vector<8x384xf32> to vector<8x256xf32>
    %518 = vector.extract_strided_slice %515 {offsets = [0, 0], sizes = [8, 256], strides = [1, 1]} : vector<8x384xf32> to vector<8x256xf32>
    %519 = arith.addf %517, %518 : vector<8x256xf32>
    %520 = arith.negf %519 : vector<8x256xf32>
    %521 = math.exp %520 : vector<8x256xf32>
    %cst_129 = arith.constant 1.000000e+00 : f32
    %522 = vector.broadcast %cst_129 : f32 to vector<8x256xf32>
    %523 = arith.addf %522, %521 : vector<8x256xf32>
    %524 = arith.divf %522, %523 : vector<8x256xf32>
    %525 = vector.extract_strided_slice %524 {offsets = [0, 0], sizes = [8, 128], strides = [1, 1]} : vector<8x256xf32> to vector<8x128xf32>
    %526 = vector.extract_strided_slice %524 {offsets = [0, 128], sizes = [8, 128], strides = [1, 1]} : vector<8x256xf32> to vector<8x128xf32>
    %527 = vector.extract_strided_slice %512 {offsets = [0, 256], sizes = [8, 128], strides = [1, 1]} : vector<8x384xf32> to vector<8x128xf32>
    %528 = vector.extract_strided_slice %515 {offsets = [0, 256], sizes = [8, 128], strides = [1, 1]} : vector<8x384xf32> to vector<8x128xf32>
    %529 = arith.addf %528, %19 : vector<8x128xf32>
    %530 = arith.mulf %525, %529 : vector<8x128xf32>
    %531 = arith.addf %527, %530 : vector<8x128xf32>
    %532 = math.tanh %531 : vector<8x128xf32>
    %cst_130 = arith.constant 1.000000e+00 : f32
    %533 = vector.broadcast %cst_130 : f32 to vector<8x128xf32>
    %534 = arith.subf %533, %526 : vector<8x128xf32>
    %535 = arith.mulf %534, %532 : vector<8x128xf32>
    %536 = arith.mulf %526, %483 : vector<8x128xf32>
    %537 = arith.addf %535, %536 : vector<8x128xf32>
    %538 = vector.extract_strided_slice %514 {offsets = [0, 0], sizes = [8, 256], strides = [1, 1]} : vector<8x384xf32> to vector<8x256xf32>
    %539 = vector.extract_strided_slice %516 {offsets = [0, 0], sizes = [8, 256], strides = [1, 1]} : vector<8x384xf32> to vector<8x256xf32>
    %540 = arith.addf %538, %539 : vector<8x256xf32>
    %541 = arith.negf %540 : vector<8x256xf32>
    %542 = math.exp %541 : vector<8x256xf32>
    %cst_131 = arith.constant 1.000000e+00 : f32
    %543 = vector.broadcast %cst_131 : f32 to vector<8x256xf32>
    %544 = arith.addf %543, %542 : vector<8x256xf32>
    %545 = arith.divf %543, %544 : vector<8x256xf32>
    %546 = vector.extract_strided_slice %545 {offsets = [0, 0], sizes = [8, 128], strides = [1, 1]} : vector<8x256xf32> to vector<8x128xf32>
    %547 = vector.extract_strided_slice %545 {offsets = [0, 128], sizes = [8, 128], strides = [1, 1]} : vector<8x256xf32> to vector<8x128xf32>
    %548 = vector.extract_strided_slice %514 {offsets = [0, 256], sizes = [8, 128], strides = [1, 1]} : vector<8x384xf32> to vector<8x128xf32>
    %549 = vector.extract_strided_slice %516 {offsets = [0, 256], sizes = [8, 128], strides = [1, 1]} : vector<8x384xf32> to vector<8x128xf32>
    %550 = arith.addf %549, %22 : vector<8x128xf32>
    %551 = arith.mulf %546, %550 : vector<8x128xf32>
    %552 = arith.addf %548, %551 : vector<8x128xf32>
    %553 = math.tanh %552 : vector<8x128xf32>
    %cst_132 = arith.constant 1.000000e+00 : f32
    %554 = vector.broadcast %cst_132 : f32 to vector<8x128xf32>
    %555 = arith.subf %554, %547 : vector<8x128xf32>
    %556 = arith.mulf %555, %553 : vector<8x128xf32>
    %557 = arith.mulf %547, %504 : vector<8x128xf32>
    %558 = arith.addf %556, %557 : vector<8x128xf32>
    %559 = arith.index_cast %510 : i32 to index
    %c0_133 = arith.constant 0 : index
    %560 = vector.load %arg38[%559, %c0_133] : memref<80x128xf32, #tpu.memory_space<vmem>>, vector<8x128xf32>
    tpu.vector_store %arg38[%559, %c0_133], %537 {strides = array<i32>} : memref<80x128xf32, #tpu.memory_space<vmem>>, vector<8x128xf32>,
    %561 = arith.index_cast %510 : i32 to index
    %c0_134 = arith.constant 0 : index
    %562 = vector.load %arg39[%561, %c0_134] : memref<80x128xf32, #tpu.memory_space<vmem>>, vector<8x128xf32>
    tpu.vector_store %arg39[%561, %c0_134], %558 {strides = array<i32>} : memref<80x128xf32, #tpu.memory_space<vmem>>, vector<8x128xf32>,
    %c10_i32 = arith.constant 10 : i32
    %c0_135 = arith.constant 0 : index
    %c0_136 = arith.constant 0 : index
    %563 = vector.load %arg38[%c0_135, %c0_136] : memref<80x128xf32, #tpu.memory_space<vmem>>, vector<80x128xf32>
    %c0_137 = arith.constant 0 : index
    %c0_138 = arith.constant 0 : index
    %564 = vector.load %arg12[%c0_137, %c0_138] : memref<128x384xf32, #tpu.memory_space<vmem>>, vector<128x384xf32>
    %cst_139 = arith.constant dense<0.000000e+00> : vector<80x384xf32>
    %565 = tpu.matmul %563, %564, %cst_139 {dimension_numbers = #tpu.dot_dimension_numbers<[1], [0], [0], [1], [0, 0, 1, 1], [], []>} : vector<80x128xf32>, vector<128x384xf32>, vector<80x384xf32> -> vector<80x384xf32>
    %c0_140 = arith.constant 0 : index
    %c0_141 = arith.constant 0 : index
    %566 = vector.load %arg14[%c0_140, %c0_141] : memref<1x384xf32, #tpu.memory_space<vmem>>, vector<1x384xf32>
    %567 = vector.broadcast %566 : vector<1x384xf32> to vector<80x384xf32>
    %568 = arith.addf %565, %567 : vector<80x384xf32>
    %c0_142 = arith.constant 0 : index
    %c0_143 = arith.constant 0 : index
    %569 = vector.load %arg36[%c0_142, %c0_143] : memref<80x384xf32, #tpu.memory_space<vmem>>, vector<80x384xf32>
    tpu.vector_store %arg36[%c0_142, %c0_143], %568 {strides = array<i32>} : memref<80x384xf32, #tpu.memory_space<vmem>>, vector<80x384xf32>,
    %c0_144 = arith.constant 0 : index
    %c0_145 = arith.constant 0 : index
    %570 = vector.load %arg39[%c0_144, %c0_145] : memref<80x128xf32, #tpu.memory_space<vmem>>, vector<80x128xf32>
    %c0_146 = arith.constant 0 : index
    %c0_147 = arith.constant 0 : index
    %571 = vector.load %arg16[%c0_146, %c0_147] : memref<128x384xf32, #tpu.memory_space<vmem>>, vector<128x384xf32>
    %cst_148 = arith.constant dense<0.000000e+00> : vector<80x384xf32>
    %572 = tpu.matmul %570, %571, %cst_148 {dimension_numbers = #tpu.dot_dimension_numbers<[1], [0], [0], [1], [0, 0, 1, 1], [], []>} : vector<80x128xf32>, vector<128x384xf32>, vector<80x384xf32> -> vector<80x384xf32>
    %c0_149 = arith.constant 0 : index
    %c0_150 = arith.constant 0 : index
    %573 = vector.load %arg18[%c0_149, %c0_150] : memref<1x384xf32, #tpu.memory_space<vmem>>, vector<1x384xf32>
    %574 = vector.broadcast %573 : vector<1x384xf32> to vector<80x384xf32>
    %575 = arith.addf %572, %574 : vector<80x384xf32>
    %c0_151 = arith.constant 0 : index
    %c0_152 = arith.constant 0 : index
    %576 = vector.load %arg37[%c0_151, %c0_152] : memref<80x384xf32, #tpu.memory_space<vmem>>, vector<80x384xf32>
    tpu.vector_store %arg37[%c0_151, %c0_152], %575 {strides = array<i32>} : memref<80x384xf32, #tpu.memory_space<vmem>>, vector<80x384xf32>,
    %c0_153 = arith.constant 0 : index
    %c0_154 = arith.constant 0 : index
    %577 = vector.load %arg13[%c0_153, %c0_154] : memref<128x384xf32, #tpu.memory_space<vmem>>, vector<128x384xf32>
    %c0_155 = arith.constant 0 : index
    %c0_156 = arith.constant 0 : index
    %578 = vector.load %arg17[%c0_155, %c0_156] : memref<128x384xf32, #tpu.memory_space<vmem>>, vector<128x384xf32>
    %c0_157 = arith.constant 0 : index
    %c0_158 = arith.constant 0 : index
    %579 = vector.load %arg15[%c0_157, %c0_158] : memref<1x128xf32, #tpu.memory_space<vmem>>, vector<1x128xf32>
    %580 = vector.shape_cast %579 : vector<1x128xf32> to vector<1x128xf32>
    %581 = vector.broadcast %580 : vector<1x128xf32> to vector<8x128xf32>
    %c0_159 = arith.constant 0 : index
    %c0_160 = arith.constant 0 : index
    %582 = vector.load %arg19[%c0_159, %c0_160] : memref<1x128xf32, #tpu.memory_space<vmem>>, vector<1x128xf32>
    %583 = vector.shape_cast %582 : vector<1x128xf32> to vector<1x128xf32>
    %584 = vector.broadcast %583 : vector<1x128xf32> to vector<8x128xf32>
    %c0_i32_161 = arith.constant 0 : i32
    %c8_i32_162 = arith.constant 8 : i32
    %585 = arith.muli %c0_i32_161, %c8_i32_162 : i32
    %586 = tpu.assume_multiple %585, 8 : i32
    %587 = arith.index_cast %586 : i32 to index
    %c0_163 = arith.constant 0 : index
    %588 = vector.load %arg36[%587, %c0_163] : memref<80x384xf32, #tpu.memory_space<vmem>>, vector<8x384xf32>
    %589 = arith.index_cast %586 : i32 to index
    %c0_164 = arith.constant 0 : index
    %590 = vector.load %arg37[%589, %c0_164] : memref<80x384xf32, #tpu.memory_space<vmem>>, vector<8x384xf32>
    %cst_165 = arith.constant dense<0.000000e+00> : vector<8x384xf32>
    %591 = tpu.matmul %0, %577, %cst_165 {dimension_numbers = #tpu.dot_dimension_numbers<[1], [0], [0], [1], [0, 0, 1, 1], [], []>} : vector<8x128xf32>, vector<128x384xf32>, vector<8x384xf32> -> vector<8x384xf32>
    %cst_166 = arith.constant dense<0.000000e+00> : vector<8x384xf32>
    %592 = tpu.matmul %0, %578, %cst_166 {dimension_numbers = #tpu.dot_dimension_numbers<[1], [0], [0], [1], [0, 0, 1, 1], [], []>} : vector<8x128xf32>, vector<128x384xf32>, vector<8x384xf32> -> vector<8x384xf32>
    %593 = vector.extract_strided_slice %588 {offsets = [0, 0], sizes = [8, 256], strides = [1, 1]} : vector<8x384xf32> to vector<8x256xf32>
    %594 = vector.extract_strided_slice %591 {offsets = [0, 0], sizes = [8, 256], strides = [1, 1]} : vector<8x384xf32> to vector<8x256xf32>
    %595 = arith.addf %593, %594 : vector<8x256xf32>
    %596 = arith.negf %595 : vector<8x256xf32>
    %597 = math.exp %596 : vector<8x256xf32>
    %cst_167 = arith.constant 1.000000e+00 : f32
    %598 = vector.broadcast %cst_167 : f32 to vector<8x256xf32>
    %599 = arith.addf %598, %597 : vector<8x256xf32>
    %600 = arith.divf %598, %599 : vector<8x256xf32>
    %601 = vector.extract_strided_slice %600 {offsets = [0, 0], sizes = [8, 128], strides = [1, 1]} : vector<8x256xf32> to vector<8x128xf32>
    %602 = vector.extract_strided_slice %600 {offsets = [0, 128], sizes = [8, 128], strides = [1, 1]} : vector<8x256xf32> to vector<8x128xf32>
    %603 = vector.extract_strided_slice %588 {offsets = [0, 256], sizes = [8, 128], strides = [1, 1]} : vector<8x384xf32> to vector<8x128xf32>
    %604 = vector.extract_strided_slice %591 {offsets = [0, 256], sizes = [8, 128], strides = [1, 1]} : vector<8x384xf32> to vector<8x128xf32>
    %605 = arith.addf %604, %581 : vector<8x128xf32>
    %606 = arith.mulf %601, %605 : vector<8x128xf32>
    %607 = arith.addf %603, %606 : vector<8x128xf32>
    %608 = math.tanh %607 : vector<8x128xf32>
    %cst_168 = arith.constant 1.000000e+00 : f32
    %609 = vector.broadcast %cst_168 : f32 to vector<8x128xf32>
    %610 = arith.subf %609, %602 : vector<8x128xf32>
    %611 = arith.mulf %610, %608 : vector<8x128xf32>
    %612 = arith.mulf %602, %0 : vector<8x128xf32>
    %613 = arith.addf %611, %612 : vector<8x128xf32>
    %614 = vector.extract_strided_slice %590 {offsets = [0, 0], sizes = [8, 256], strides = [1, 1]} : vector<8x384xf32> to vector<8x256xf32>
    %615 = vector.extract_strided_slice %592 {offsets = [0, 0], sizes = [8, 256], strides = [1, 1]} : vector<8x384xf32> to vector<8x256xf32>
    %616 = arith.addf %614, %615 : vector<8x256xf32>
    %617 = arith.negf %616 : vector<8x256xf32>
    %618 = math.exp %617 : vector<8x256xf32>
    %cst_169 = arith.constant 1.000000e+00 : f32
    %619 = vector.broadcast %cst_169 : f32 to vector<8x256xf32>
    %620 = arith.addf %619, %618 : vector<8x256xf32>
    %621 = arith.divf %619, %620 : vector<8x256xf32>
    %622 = vector.extract_strided_slice %621 {offsets = [0, 0], sizes = [8, 128], strides = [1, 1]} : vector<8x256xf32> to vector<8x128xf32>
    %623 = vector.extract_strided_slice %621 {offsets = [0, 128], sizes = [8, 128], strides = [1, 1]} : vector<8x256xf32> to vector<8x128xf32>
    %624 = vector.extract_strided_slice %590 {offsets = [0, 256], sizes = [8, 128], strides = [1, 1]} : vector<8x384xf32> to vector<8x128xf32>
    %625 = vector.extract_strided_slice %592 {offsets = [0, 256], sizes = [8, 128], strides = [1, 1]} : vector<8x384xf32> to vector<8x128xf32>
    %626 = arith.addf %625, %584 : vector<8x128xf32>
    %627 = arith.mulf %622, %626 : vector<8x128xf32>
    %628 = arith.addf %624, %627 : vector<8x128xf32>
    %629 = math.tanh %628 : vector<8x128xf32>
    %cst_170 = arith.constant 1.000000e+00 : f32
    %630 = vector.broadcast %cst_170 : f32 to vector<8x128xf32>
    %631 = arith.subf %630, %623 : vector<8x128xf32>
    %632 = arith.mulf %631, %629 : vector<8x128xf32>
    %633 = arith.mulf %623, %0 : vector<8x128xf32>
    %634 = arith.addf %632, %633 : vector<8x128xf32>
    %635 = arith.index_cast %586 : i32 to index
    %c0_171 = arith.constant 0 : index
    %636 = vector.load %arg40[%635, %c0_171] : memref<80x128xf32, #tpu.memory_space<vmem>>, vector<8x128xf32>
    tpu.vector_store %arg40[%635, %c0_171], %613 {strides = array<i32>} : memref<80x128xf32, #tpu.memory_space<vmem>>, vector<8x128xf32>,
    %c9_i32_172 = arith.constant 9 : i32
    %637 = arith.subi %c9_i32_172, %c0_i32_161 : i32
    %c8_i32_173 = arith.constant 8 : i32
    %638 = arith.muli %637, %c8_i32_173 : i32
    %639 = tpu.assume_multiple %638, 8 : i32
    %640 = arith.index_cast %639 : i32 to index
    %c0_174 = arith.constant 0 : index
    %641 = vector.load %arg41[%640, %c0_174] : memref<88x128xf32, #tpu.memory_space<vmem>>, vector<8x128xf32>
    tpu.vector_store %arg41[%640, %c0_174], %634 {strides = array<i32>} : memref<88x128xf32, #tpu.memory_space<vmem>>, vector<8x128xf32>,
    %c1_i32_175 = arith.constant 1 : i32
    %c8_i32_176 = arith.constant 8 : i32
    %642 = arith.muli %c1_i32_175, %c8_i32_176 : i32
    %643 = tpu.assume_multiple %642, 8 : i32
    %644 = arith.index_cast %643 : i32 to index
    %c0_177 = arith.constant 0 : index
    %645 = vector.load %arg36[%644, %c0_177] : memref<80x384xf32, #tpu.memory_space<vmem>>, vector<8x384xf32>
    %646 = arith.index_cast %643 : i32 to index
    %c0_178 = arith.constant 0 : index
    %647 = vector.load %arg37[%646, %c0_178] : memref<80x384xf32, #tpu.memory_space<vmem>>, vector<8x384xf32>
    %cst_179 = arith.constant dense<0.000000e+00> : vector<8x384xf32>
    %648 = tpu.matmul %613, %577, %cst_179 {dimension_numbers = #tpu.dot_dimension_numbers<[1], [0], [0], [1], [0, 0, 1, 1], [], []>} : vector<8x128xf32>, vector<128x384xf32>, vector<8x384xf32> -> vector<8x384xf32>
    %cst_180 = arith.constant dense<0.000000e+00> : vector<8x384xf32>
    %649 = tpu.matmul %634, %578, %cst_180 {dimension_numbers = #tpu.dot_dimension_numbers<[1], [0], [0], [1], [0, 0, 1, 1], [], []>} : vector<8x128xf32>, vector<128x384xf32>, vector<8x384xf32> -> vector<8x384xf32>
    %650 = vector.extract_strided_slice %645 {offsets = [0, 0], sizes = [8, 256], strides = [1, 1]} : vector<8x384xf32> to vector<8x256xf32>
    %651 = vector.extract_strided_slice %648 {offsets = [0, 0], sizes = [8, 256], strides = [1, 1]} : vector<8x384xf32> to vector<8x256xf32>
    %652 = arith.addf %650, %651 : vector<8x256xf32>
    %653 = arith.negf %652 : vector<8x256xf32>
    %654 = math.exp %653 : vector<8x256xf32>
    %cst_181 = arith.constant 1.000000e+00 : f32
    %655 = vector.broadcast %cst_181 : f32 to vector<8x256xf32>
    %656 = arith.addf %655, %654 : vector<8x256xf32>
    %657 = arith.divf %655, %656 : vector<8x256xf32>
    %658 = vector.extract_strided_slice %657 {offsets = [0, 0], sizes = [8, 128], strides = [1, 1]} : vector<8x256xf32> to vector<8x128xf32>
    %659 = vector.extract_strided_slice %657 {offsets = [0, 128], sizes = [8, 128], strides = [1, 1]} : vector<8x256xf32> to vector<8x128xf32>
    %660 = vector.extract_strided_slice %645 {offsets = [0, 256], sizes = [8, 128], strides = [1, 1]} : vector<8x384xf32> to vector<8x128xf32>
    %661 = vector.extract_strided_slice %648 {offsets = [0, 256], sizes = [8, 128], strides = [1, 1]} : vector<8x384xf32> to vector<8x128xf32>
    %662 = arith.addf %661, %581 : vector<8x128xf32>
    %663 = arith.mulf %658, %662 : vector<8x128xf32>
    %664 = arith.addf %660, %663 : vector<8x128xf32>
    %665 = math.tanh %664 : vector<8x128xf32>
    %cst_182 = arith.constant 1.000000e+00 : f32
    %666 = vector.broadcast %cst_182 : f32 to vector<8x128xf32>
    %667 = arith.subf %666, %659 : vector<8x128xf32>
    %668 = arith.mulf %667, %665 : vector<8x128xf32>
    %669 = arith.mulf %659, %613 : vector<8x128xf32>
    %670 = arith.addf %668, %669 : vector<8x128xf32>
    %671 = vector.extract_strided_slice %647 {offsets = [0, 0], sizes = [8, 256], strides = [1, 1]} : vector<8x384xf32> to vector<8x256xf32>
    %672 = vector.extract_strided_slice %649 {offsets = [0, 0], sizes = [8, 256], strides = [1, 1]} : vector<8x384xf32> to vector<8x256xf32>
    %673 = arith.addf %671, %672 : vector<8x256xf32>
    %674 = arith.negf %673 : vector<8x256xf32>
    %675 = math.exp %674 : vector<8x256xf32>
    %cst_183 = arith.constant 1.000000e+00 : f32
    %676 = vector.broadcast %cst_183 : f32 to vector<8x256xf32>
    %677 = arith.addf %676, %675 : vector<8x256xf32>
    %678 = arith.divf %676, %677 : vector<8x256xf32>
    %679 = vector.extract_strided_slice %678 {offsets = [0, 0], sizes = [8, 128], strides = [1, 1]} : vector<8x256xf32> to vector<8x128xf32>
    %680 = vector.extract_strided_slice %678 {offsets = [0, 128], sizes = [8, 128], strides = [1, 1]} : vector<8x256xf32> to vector<8x128xf32>
    %681 = vector.extract_strided_slice %647 {offsets = [0, 256], sizes = [8, 128], strides = [1, 1]} : vector<8x384xf32> to vector<8x128xf32>
    %682 = vector.extract_strided_slice %649 {offsets = [0, 256], sizes = [8, 128], strides = [1, 1]} : vector<8x384xf32> to vector<8x128xf32>
    %683 = arith.addf %682, %584 : vector<8x128xf32>
    %684 = arith.mulf %679, %683 : vector<8x128xf32>
    %685 = arith.addf %681, %684 : vector<8x128xf32>
    %686 = math.tanh %685 : vector<8x128xf32>
    %cst_184 = arith.constant 1.000000e+00 : f32
    %687 = vector.broadcast %cst_184 : f32 to vector<8x128xf32>
    %688 = arith.subf %687, %680 : vector<8x128xf32>
    %689 = arith.mulf %688, %686 : vector<8x128xf32>
    %690 = arith.mulf %680, %634 : vector<8x128xf32>
    %691 = arith.addf %689, %690 : vector<8x128xf32>
    %692 = arith.index_cast %643 : i32 to index
    %c0_185 = arith.constant 0 : index
    %693 = vector.load %arg40[%692, %c0_185] : memref<80x128xf32, #tpu.memory_space<vmem>>, vector<8x128xf32>
    tpu.vector_store %arg40[%692, %c0_185], %670 {strides = array<i32>} : memref<80x128xf32, #tpu.memory_space<vmem>>, vector<8x128xf32>,
    %c9_i32_186 = arith.constant 9 : i32
    %694 = arith.subi %c9_i32_186, %c1_i32_175 : i32
    %c8_i32_187 = arith.constant 8 : i32
    %695 = arith.muli %694, %c8_i32_187 : i32
    %696 = tpu.assume_multiple %695, 8 : i32
    %697 = arith.index_cast %696 : i32 to index
    %c0_188 = arith.constant 0 : index
    %698 = vector.load %arg41[%697, %c0_188] : memref<88x128xf32, #tpu.memory_space<vmem>>, vector<8x128xf32>
    tpu.vector_store %arg41[%697, %c0_188], %691 {strides = array<i32>} : memref<88x128xf32, #tpu.memory_space<vmem>>, vector<8x128xf32>,
    %c2_i32_189 = arith.constant 2 : i32
    %c8_i32_190 = arith.constant 8 : i32
    %699 = arith.muli %c2_i32_189, %c8_i32_190 : i32
    %700 = tpu.assume_multiple %699, 8 : i32
    %701 = arith.index_cast %700 : i32 to index
    %c0_191 = arith.constant 0 : index
    %702 = vector.load %arg36[%701, %c0_191] : memref<80x384xf32, #tpu.memory_space<vmem>>, vector<8x384xf32>
    %703 = arith.index_cast %700 : i32 to index
    %c0_192 = arith.constant 0 : index
    %704 = vector.load %arg37[%703, %c0_192] : memref<80x384xf32, #tpu.memory_space<vmem>>, vector<8x384xf32>
    %cst_193 = arith.constant dense<0.000000e+00> : vector<8x384xf32>
    %705 = tpu.matmul %670, %577, %cst_193 {dimension_numbers = #tpu.dot_dimension_numbers<[1], [0], [0], [1], [0, 0, 1, 1], [], []>} : vector<8x128xf32>, vector<128x384xf32>, vector<8x384xf32> -> vector<8x384xf32>
    %cst_194 = arith.constant dense<0.000000e+00> : vector<8x384xf32>
    %706 = tpu.matmul %691, %578, %cst_194 {dimension_numbers = #tpu.dot_dimension_numbers<[1], [0], [0], [1], [0, 0, 1, 1], [], []>} : vector<8x128xf32>, vector<128x384xf32>, vector<8x384xf32> -> vector<8x384xf32>
    %707 = vector.extract_strided_slice %702 {offsets = [0, 0], sizes = [8, 256], strides = [1, 1]} : vector<8x384xf32> to vector<8x256xf32>
    %708 = vector.extract_strided_slice %705 {offsets = [0, 0], sizes = [8, 256], strides = [1, 1]} : vector<8x384xf32> to vector<8x256xf32>
    %709 = arith.addf %707, %708 : vector<8x256xf32>
    %710 = arith.negf %709 : vector<8x256xf32>
    %711 = math.exp %710 : vector<8x256xf32>
    %cst_195 = arith.constant 1.000000e+00 : f32
    %712 = vector.broadcast %cst_195 : f32 to vector<8x256xf32>
    %713 = arith.addf %712, %711 : vector<8x256xf32>
    %714 = arith.divf %712, %713 : vector<8x256xf32>
    %715 = vector.extract_strided_slice %714 {offsets = [0, 0], sizes = [8, 128], strides = [1, 1]} : vector<8x256xf32> to vector<8x128xf32>
    %716 = vector.extract_strided_slice %714 {offsets = [0, 128], sizes = [8, 128], strides = [1, 1]} : vector<8x256xf32> to vector<8x128xf32>
    %717 = vector.extract_strided_slice %702 {offsets = [0, 256], sizes = [8, 128], strides = [1, 1]} : vector<8x384xf32> to vector<8x128xf32>
    %718 = vector.extract_strided_slice %705 {offsets = [0, 256], sizes = [8, 128], strides = [1, 1]} : vector<8x384xf32> to vector<8x128xf32>
    %719 = arith.addf %718, %581 : vector<8x128xf32>
    %720 = arith.mulf %715, %719 : vector<8x128xf32>
    %721 = arith.addf %717, %720 : vector<8x128xf32>
    %722 = math.tanh %721 : vector<8x128xf32>
    %cst_196 = arith.constant 1.000000e+00 : f32
    %723 = vector.broadcast %cst_196 : f32 to vector<8x128xf32>
    %724 = arith.subf %723, %716 : vector<8x128xf32>
    %725 = arith.mulf %724, %722 : vector<8x128xf32>
    %726 = arith.mulf %716, %670 : vector<8x128xf32>
    %727 = arith.addf %725, %726 : vector<8x128xf32>
    %728 = vector.extract_strided_slice %704 {offsets = [0, 0], sizes = [8, 256], strides = [1, 1]} : vector<8x384xf32> to vector<8x256xf32>
    %729 = vector.extract_strided_slice %706 {offsets = [0, 0], sizes = [8, 256], strides = [1, 1]} : vector<8x384xf32> to vector<8x256xf32>
    %730 = arith.addf %728, %729 : vector<8x256xf32>
    %731 = arith.negf %730 : vector<8x256xf32>
    %732 = math.exp %731 : vector<8x256xf32>
    %cst_197 = arith.constant 1.000000e+00 : f32
    %733 = vector.broadcast %cst_197 : f32 to vector<8x256xf32>
    %734 = arith.addf %733, %732 : vector<8x256xf32>
    %735 = arith.divf %733, %734 : vector<8x256xf32>
    %736 = vector.extract_strided_slice %735 {offsets = [0, 0], sizes = [8, 128], strides = [1, 1]} : vector<8x256xf32> to vector<8x128xf32>
    %737 = vector.extract_strided_slice %735 {offsets = [0, 128], sizes = [8, 128], strides = [1, 1]} : vector<8x256xf32> to vector<8x128xf32>
    %738 = vector.extract_strided_slice %704 {offsets = [0, 256], sizes = [8, 128], strides = [1, 1]} : vector<8x384xf32> to vector<8x128xf32>
    %739 = vector.extract_strided_slice %706 {offsets = [0, 256], sizes = [8, 128], strides = [1, 1]} : vector<8x384xf32> to vector<8x128xf32>
    %740 = arith.addf %739, %584 : vector<8x128xf32>
    %741 = arith.mulf %736, %740 : vector<8x128xf32>
    %742 = arith.addf %738, %741 : vector<8x128xf32>
    %743 = math.tanh %742 : vector<8x128xf32>
    %cst_198 = arith.constant 1.000000e+00 : f32
    %744 = vector.broadcast %cst_198 : f32 to vector<8x128xf32>
    %745 = arith.subf %744, %737 : vector<8x128xf32>
    %746 = arith.mulf %745, %743 : vector<8x128xf32>
    %747 = arith.mulf %737, %691 : vector<8x128xf32>
    %748 = arith.addf %746, %747 : vector<8x128xf32>
    %749 = arith.index_cast %700 : i32 to index
    %c0_199 = arith.constant 0 : index
    %750 = vector.load %arg40[%749, %c0_199] : memref<80x128xf32, #tpu.memory_space<vmem>>, vector<8x128xf32>
    tpu.vector_store %arg40[%749, %c0_199], %727 {strides = array<i32>} : memref<80x128xf32, #tpu.memory_space<vmem>>, vector<8x128xf32>,
    %c9_i32_200 = arith.constant 9 : i32
    %751 = arith.subi %c9_i32_200, %c2_i32_189 : i32
    %c8_i32_201 = arith.constant 8 : i32
    %752 = arith.muli %751, %c8_i32_201 : i32
    %753 = tpu.assume_multiple %752, 8 : i32
    %754 = arith.index_cast %753 : i32 to index
    %c0_202 = arith.constant 0 : index
    %755 = vector.load %arg41[%754, %c0_202] : memref<88x128xf32, #tpu.memory_space<vmem>>, vector<8x128xf32>
    tpu.vector_store %arg41[%754, %c0_202], %748 {strides = array<i32>} : memref<88x128xf32, #tpu.memory_space<vmem>>, vector<8x128xf32>,
    %c3_i32_203 = arith.constant 3 : i32
    %c8_i32_204 = arith.constant 8 : i32
    %756 = arith.muli %c3_i32_203, %c8_i32_204 : i32
    %757 = tpu.assume_multiple %756, 8 : i32
    %758 = arith.index_cast %757 : i32 to index
    %c0_205 = arith.constant 0 : index
    %759 = vector.load %arg36[%758, %c0_205] : memref<80x384xf32, #tpu.memory_space<vmem>>, vector<8x384xf32>
    %760 = arith.index_cast %757 : i32 to index
    %c0_206 = arith.constant 0 : index
    %761 = vector.load %arg37[%760, %c0_206] : memref<80x384xf32, #tpu.memory_space<vmem>>, vector<8x384xf32>
    %cst_207 = arith.constant dense<0.000000e+00> : vector<8x384xf32>
    %762 = tpu.matmul %727, %577, %cst_207 {dimension_numbers = #tpu.dot_dimension_numbers<[1], [0], [0], [1], [0, 0, 1, 1], [], []>} : vector<8x128xf32>, vector<128x384xf32>, vector<8x384xf32> -> vector<8x384xf32>
    %cst_208 = arith.constant dense<0.000000e+00> : vector<8x384xf32>
    %763 = tpu.matmul %748, %578, %cst_208 {dimension_numbers = #tpu.dot_dimension_numbers<[1], [0], [0], [1], [0, 0, 1, 1], [], []>} : vector<8x128xf32>, vector<128x384xf32>, vector<8x384xf32> -> vector<8x384xf32>
    %764 = vector.extract_strided_slice %759 {offsets = [0, 0], sizes = [8, 256], strides = [1, 1]} : vector<8x384xf32> to vector<8x256xf32>
    %765 = vector.extract_strided_slice %762 {offsets = [0, 0], sizes = [8, 256], strides = [1, 1]} : vector<8x384xf32> to vector<8x256xf32>
    %766 = arith.addf %764, %765 : vector<8x256xf32>
    %767 = arith.negf %766 : vector<8x256xf32>
    %768 = math.exp %767 : vector<8x256xf32>
    %cst_209 = arith.constant 1.000000e+00 : f32
    %769 = vector.broadcast %cst_209 : f32 to vector<8x256xf32>
    %770 = arith.addf %769, %768 : vector<8x256xf32>
    %771 = arith.divf %769, %770 : vector<8x256xf32>
    %772 = vector.extract_strided_slice %771 {offsets = [0, 0], sizes = [8, 128], strides = [1, 1]} : vector<8x256xf32> to vector<8x128xf32>
    %773 = vector.extract_strided_slice %771 {offsets = [0, 128], sizes = [8, 128], strides = [1, 1]} : vector<8x256xf32> to vector<8x128xf32>
    %774 = vector.extract_strided_slice %759 {offsets = [0, 256], sizes = [8, 128], strides = [1, 1]} : vector<8x384xf32> to vector<8x128xf32>
    %775 = vector.extract_strided_slice %762 {offsets = [0, 256], sizes = [8, 128], strides = [1, 1]} : vector<8x384xf32> to vector<8x128xf32>
    %776 = arith.addf %775, %581 : vector<8x128xf32>
    %777 = arith.mulf %772, %776 : vector<8x128xf32>
    %778 = arith.addf %774, %777 : vector<8x128xf32>
    %779 = math.tanh %778 : vector<8x128xf32>
    %cst_210 = arith.constant 1.000000e+00 : f32
    %780 = vector.broadcast %cst_210 : f32 to vector<8x128xf32>
    %781 = arith.subf %780, %773 : vector<8x128xf32>
    %782 = arith.mulf %781, %779 : vector<8x128xf32>
    %783 = arith.mulf %773, %727 : vector<8x128xf32>
    %784 = arith.addf %782, %783 : vector<8x128xf32>
    %785 = vector.extract_strided_slice %761 {offsets = [0, 0], sizes = [8, 256], strides = [1, 1]} : vector<8x384xf32> to vector<8x256xf32>
    %786 = vector.extract_strided_slice %763 {offsets = [0, 0], sizes = [8, 256], strides = [1, 1]} : vector<8x384xf32> to vector<8x256xf32>
    %787 = arith.addf %785, %786 : vector<8x256xf32>
    %788 = arith.negf %787 : vector<8x256xf32>
    %789 = math.exp %788 : vector<8x256xf32>
    %cst_211 = arith.constant 1.000000e+00 : f32
    %790 = vector.broadcast %cst_211 : f32 to vector<8x256xf32>
    %791 = arith.addf %790, %789 : vector<8x256xf32>
    %792 = arith.divf %790, %791 : vector<8x256xf32>
    %793 = vector.extract_strided_slice %792 {offsets = [0, 0], sizes = [8, 128], strides = [1, 1]} : vector<8x256xf32> to vector<8x128xf32>
    %794 = vector.extract_strided_slice %792 {offsets = [0, 128], sizes = [8, 128], strides = [1, 1]} : vector<8x256xf32> to vector<8x128xf32>
    %795 = vector.extract_strided_slice %761 {offsets = [0, 256], sizes = [8, 128], strides = [1, 1]} : vector<8x384xf32> to vector<8x128xf32>
    %796 = vector.extract_strided_slice %763 {offsets = [0, 256], sizes = [8, 128], strides = [1, 1]} : vector<8x384xf32> to vector<8x128xf32>
    %797 = arith.addf %796, %584 : vector<8x128xf32>
    %798 = arith.mulf %793, %797 : vector<8x128xf32>
    %799 = arith.addf %795, %798 : vector<8x128xf32>
    %800 = math.tanh %799 : vector<8x128xf32>
    %cst_212 = arith.constant 1.000000e+00 : f32
    %801 = vector.broadcast %cst_212 : f32 to vector<8x128xf32>
    %802 = arith.subf %801, %794 : vector<8x128xf32>
    %803 = arith.mulf %802, %800 : vector<8x128xf32>
    %804 = arith.mulf %794, %748 : vector<8x128xf32>
    %805 = arith.addf %803, %804 : vector<8x128xf32>
    %806 = arith.index_cast %757 : i32 to index
    %c0_213 = arith.constant 0 : index
    %807 = vector.load %arg40[%806, %c0_213] : memref<80x128xf32, #tpu.memory_space<vmem>>, vector<8x128xf32>
    tpu.vector_store %arg40[%806, %c0_213], %784 {strides = array<i32>} : memref<80x128xf32, #tpu.memory_space<vmem>>, vector<8x128xf32>,
    %c9_i32_214 = arith.constant 9 : i32
    %808 = arith.subi %c9_i32_214, %c3_i32_203 : i32
    %c8_i32_215 = arith.constant 8 : i32
    %809 = arith.muli %808, %c8_i32_215 : i32
    %810 = tpu.assume_multiple %809, 8 : i32
    %811 = arith.index_cast %810 : i32 to index
    %c0_216 = arith.constant 0 : index
    %812 = vector.load %arg41[%811, %c0_216] : memref<88x128xf32, #tpu.memory_space<vmem>>, vector<8x128xf32>
    tpu.vector_store %arg41[%811, %c0_216], %805 {strides = array<i32>} : memref<88x128xf32, #tpu.memory_space<vmem>>, vector<8x128xf32>,
    %c4_i32_217 = arith.constant 4 : i32
    %c8_i32_218 = arith.constant 8 : i32
    %813 = arith.muli %c4_i32_217, %c8_i32_218 : i32
    %814 = tpu.assume_multiple %813, 8 : i32
    %815 = arith.index_cast %814 : i32 to index
    %c0_219 = arith.constant 0 : index
    %816 = vector.load %arg36[%815, %c0_219] : memref<80x384xf32, #tpu.memory_space<vmem>>, vector<8x384xf32>
    %817 = arith.index_cast %814 : i32 to index
    %c0_220 = arith.constant 0 : index
    %818 = vector.load %arg37[%817, %c0_220] : memref<80x384xf32, #tpu.memory_space<vmem>>, vector<8x384xf32>
    %cst_221 = arith.constant dense<0.000000e+00> : vector<8x384xf32>
    %819 = tpu.matmul %784, %577, %cst_221 {dimension_numbers = #tpu.dot_dimension_numbers<[1], [0], [0], [1], [0, 0, 1, 1], [], []>} : vector<8x128xf32>, vector<128x384xf32>, vector<8x384xf32> -> vector<8x384xf32>
    %cst_222 = arith.constant dense<0.000000e+00> : vector<8x384xf32>
    %820 = tpu.matmul %805, %578, %cst_222 {dimension_numbers = #tpu.dot_dimension_numbers<[1], [0], [0], [1], [0, 0, 1, 1], [], []>} : vector<8x128xf32>, vector<128x384xf32>, vector<8x384xf32> -> vector<8x384xf32>
    %821 = vector.extract_strided_slice %816 {offsets = [0, 0], sizes = [8, 256], strides = [1, 1]} : vector<8x384xf32> to vector<8x256xf32>
    %822 = vector.extract_strided_slice %819 {offsets = [0, 0], sizes = [8, 256], strides = [1, 1]} : vector<8x384xf32> to vector<8x256xf32>
    %823 = arith.addf %821, %822 : vector<8x256xf32>
    %824 = arith.negf %823 : vector<8x256xf32>
    %825 = math.exp %824 : vector<8x256xf32>
    %cst_223 = arith.constant 1.000000e+00 : f32
    %826 = vector.broadcast %cst_223 : f32 to vector<8x256xf32>
    %827 = arith.addf %826, %825 : vector<8x256xf32>
    %828 = arith.divf %826, %827 : vector<8x256xf32>
    %829 = vector.extract_strided_slice %828 {offsets = [0, 0], sizes = [8, 128], strides = [1, 1]} : vector<8x256xf32> to vector<8x128xf32>
    %830 = vector.extract_strided_slice %828 {offsets = [0, 128], sizes = [8, 128], strides = [1, 1]} : vector<8x256xf32> to vector<8x128xf32>
    %831 = vector.extract_strided_slice %816 {offsets = [0, 256], sizes = [8, 128], strides = [1, 1]} : vector<8x384xf32> to vector<8x128xf32>
    %832 = vector.extract_strided_slice %819 {offsets = [0, 256], sizes = [8, 128], strides = [1, 1]} : vector<8x384xf32> to vector<8x128xf32>
    %833 = arith.addf %832, %581 : vector<8x128xf32>
    %834 = arith.mulf %829, %833 : vector<8x128xf32>
    %835 = arith.addf %831, %834 : vector<8x128xf32>
    %836 = math.tanh %835 : vector<8x128xf32>
    %cst_224 = arith.constant 1.000000e+00 : f32
    %837 = vector.broadcast %cst_224 : f32 to vector<8x128xf32>
    %838 = arith.subf %837, %830 : vector<8x128xf32>
    %839 = arith.mulf %838, %836 : vector<8x128xf32>
    %840 = arith.mulf %830, %784 : vector<8x128xf32>
    %841 = arith.addf %839, %840 : vector<8x128xf32>
    %842 = vector.extract_strided_slice %818 {offsets = [0, 0], sizes = [8, 256], strides = [1, 1]} : vector<8x384xf32> to vector<8x256xf32>
    %843 = vector.extract_strided_slice %820 {offsets = [0, 0], sizes = [8, 256], strides = [1, 1]} : vector<8x384xf32> to vector<8x256xf32>
    %844 = arith.addf %842, %843 : vector<8x256xf32>
    %845 = arith.negf %844 : vector<8x256xf32>
    %846 = math.exp %845 : vector<8x256xf32>
    %cst_225 = arith.constant 1.000000e+00 : f32
    %847 = vector.broadcast %cst_225 : f32 to vector<8x256xf32>
    %848 = arith.addf %847, %846 : vector<8x256xf32>
    %849 = arith.divf %847, %848 : vector<8x256xf32>
    %850 = vector.extract_strided_slice %849 {offsets = [0, 0], sizes = [8, 128], strides = [1, 1]} : vector<8x256xf32> to vector<8x128xf32>
    %851 = vector.extract_strided_slice %849 {offsets = [0, 128], sizes = [8, 128], strides = [1, 1]} : vector<8x256xf32> to vector<8x128xf32>
    %852 = vector.extract_strided_slice %818 {offsets = [0, 256], sizes = [8, 128], strides = [1, 1]} : vector<8x384xf32> to vector<8x128xf32>
    %853 = vector.extract_strided_slice %820 {offsets = [0, 256], sizes = [8, 128], strides = [1, 1]} : vector<8x384xf32> to vector<8x128xf32>
    %854 = arith.addf %853, %584 : vector<8x128xf32>
    %855 = arith.mulf %850, %854 : vector<8x128xf32>
    %856 = arith.addf %852, %855 : vector<8x128xf32>
    %857 = math.tanh %856 : vector<8x128xf32>
    %cst_226 = arith.constant 1.000000e+00 : f32
    %858 = vector.broadcast %cst_226 : f32 to vector<8x128xf32>
    %859 = arith.subf %858, %851 : vector<8x128xf32>
    %860 = arith.mulf %859, %857 : vector<8x128xf32>
    %861 = arith.mulf %851, %805 : vector<8x128xf32>
    %862 = arith.addf %860, %861 : vector<8x128xf32>
    %863 = arith.index_cast %814 : i32 to index
    %c0_227 = arith.constant 0 : index
    %864 = vector.load %arg40[%863, %c0_227] : memref<80x128xf32, #tpu.memory_space<vmem>>, vector<8x128xf32>
    tpu.vector_store %arg40[%863, %c0_227], %841 {strides = array<i32>} : memref<80x128xf32, #tpu.memory_space<vmem>>, vector<8x128xf32>,
    %c9_i32_228 = arith.constant 9 : i32
    %865 = arith.subi %c9_i32_228, %c4_i32_217 : i32
    %c8_i32_229 = arith.constant 8 : i32
    %866 = arith.muli %865, %c8_i32_229 : i32
    %867 = tpu.assume_multiple %866, 8 : i32
    %868 = arith.index_cast %867 : i32 to index
    %c0_230 = arith.constant 0 : index
    %869 = vector.load %arg41[%868, %c0_230] : memref<88x128xf32, #tpu.memory_space<vmem>>, vector<8x128xf32>
    tpu.vector_store %arg41[%868, %c0_230], %862 {strides = array<i32>} : memref<88x128xf32, #tpu.memory_space<vmem>>, vector<8x128xf32>,
    %c5_i32_231 = arith.constant 5 : i32
    %c8_i32_232 = arith.constant 8 : i32
    %870 = arith.muli %c5_i32_231, %c8_i32_232 : i32
    %871 = tpu.assume_multiple %870, 8 : i32
    %872 = arith.index_cast %871 : i32 to index
    %c0_233 = arith.constant 0 : index
    %873 = vector.load %arg36[%872, %c0_233] : memref<80x384xf32, #tpu.memory_space<vmem>>, vector<8x384xf32>
    %874 = arith.index_cast %871 : i32 to index
    %c0_234 = arith.constant 0 : index
    %875 = vector.load %arg37[%874, %c0_234] : memref<80x384xf32, #tpu.memory_space<vmem>>, vector<8x384xf32>
    %cst_235 = arith.constant dense<0.000000e+00> : vector<8x384xf32>
    %876 = tpu.matmul %841, %577, %cst_235 {dimension_numbers = #tpu.dot_dimension_numbers<[1], [0], [0], [1], [0, 0, 1, 1], [], []>} : vector<8x128xf32>, vector<128x384xf32>, vector<8x384xf32> -> vector<8x384xf32>
    %cst_236 = arith.constant dense<0.000000e+00> : vector<8x384xf32>
    %877 = tpu.matmul %862, %578, %cst_236 {dimension_numbers = #tpu.dot_dimension_numbers<[1], [0], [0], [1], [0, 0, 1, 1], [], []>} : vector<8x128xf32>, vector<128x384xf32>, vector<8x384xf32> -> vector<8x384xf32>
    %878 = vector.extract_strided_slice %873 {offsets = [0, 0], sizes = [8, 256], strides = [1, 1]} : vector<8x384xf32> to vector<8x256xf32>
    %879 = vector.extract_strided_slice %876 {offsets = [0, 0], sizes = [8, 256], strides = [1, 1]} : vector<8x384xf32> to vector<8x256xf32>
    %880 = arith.addf %878, %879 : vector<8x256xf32>
    %881 = arith.negf %880 : vector<8x256xf32>
    %882 = math.exp %881 : vector<8x256xf32>
    %cst_237 = arith.constant 1.000000e+00 : f32
    %883 = vector.broadcast %cst_237 : f32 to vector<8x256xf32>
    %884 = arith.addf %883, %882 : vector<8x256xf32>
    %885 = arith.divf %883, %884 : vector<8x256xf32>
    %886 = vector.extract_strided_slice %885 {offsets = [0, 0], sizes = [8, 128], strides = [1, 1]} : vector<8x256xf32> to vector<8x128xf32>
    %887 = vector.extract_strided_slice %885 {offsets = [0, 128], sizes = [8, 128], strides = [1, 1]} : vector<8x256xf32> to vector<8x128xf32>
    %888 = vector.extract_strided_slice %873 {offsets = [0, 256], sizes = [8, 128], strides = [1, 1]} : vector<8x384xf32> to vector<8x128xf32>
    %889 = vector.extract_strided_slice %876 {offsets = [0, 256], sizes = [8, 128], strides = [1, 1]} : vector<8x384xf32> to vector<8x128xf32>
    %890 = arith.addf %889, %581 : vector<8x128xf32>
    %891 = arith.mulf %886, %890 : vector<8x128xf32>
    %892 = arith.addf %888, %891 : vector<8x128xf32>
    %893 = math.tanh %892 : vector<8x128xf32>
    %cst_238 = arith.constant 1.000000e+00 : f32
    %894 = vector.broadcast %cst_238 : f32 to vector<8x128xf32>
    %895 = arith.subf %894, %887 : vector<8x128xf32>
    %896 = arith.mulf %895, %893 : vector<8x128xf32>
    %897 = arith.mulf %887, %841 : vector<8x128xf32>
    %898 = arith.addf %896, %897 : vector<8x128xf32>
    %899 = vector.extract_strided_slice %875 {offsets = [0, 0], sizes = [8, 256], strides = [1, 1]} : vector<8x384xf32> to vector<8x256xf32>
    %900 = vector.extract_strided_slice %877 {offsets = [0, 0], sizes = [8, 256], strides = [1, 1]} : vector<8x384xf32> to vector<8x256xf32>
    %901 = arith.addf %899, %900 : vector<8x256xf32>
    %902 = arith.negf %901 : vector<8x256xf32>
    %903 = math.exp %902 : vector<8x256xf32>
    %cst_239 = arith.constant 1.000000e+00 : f32
    %904 = vector.broadcast %cst_239 : f32 to vector<8x256xf32>
    %905 = arith.addf %904, %903 : vector<8x256xf32>
    %906 = arith.divf %904, %905 : vector<8x256xf32>
    %907 = vector.extract_strided_slice %906 {offsets = [0, 0], sizes = [8, 128], strides = [1, 1]} : vector<8x256xf32> to vector<8x128xf32>
    %908 = vector.extract_strided_slice %906 {offsets = [0, 128], sizes = [8, 128], strides = [1, 1]} : vector<8x256xf32> to vector<8x128xf32>
    %909 = vector.extract_strided_slice %875 {offsets = [0, 256], sizes = [8, 128], strides = [1, 1]} : vector<8x384xf32> to vector<8x128xf32>
    %910 = vector.extract_strided_slice %877 {offsets = [0, 256], sizes = [8, 128], strides = [1, 1]} : vector<8x384xf32> to vector<8x128xf32>
    %911 = arith.addf %910, %584 : vector<8x128xf32>
    %912 = arith.mulf %907, %911 : vector<8x128xf32>
    %913 = arith.addf %909, %912 : vector<8x128xf32>
    %914 = math.tanh %913 : vector<8x128xf32>
    %cst_240 = arith.constant 1.000000e+00 : f32
    %915 = vector.broadcast %cst_240 : f32 to vector<8x128xf32>
    %916 = arith.subf %915, %908 : vector<8x128xf32>
    %917 = arith.mulf %916, %914 : vector<8x128xf32>
    %918 = arith.mulf %908, %862 : vector<8x128xf32>
    %919 = arith.addf %917, %918 : vector<8x128xf32>
    %920 = arith.index_cast %871 : i32 to index
    %c0_241 = arith.constant 0 : index
    %921 = vector.load %arg40[%920, %c0_241] : memref<80x128xf32, #tpu.memory_space<vmem>>, vector<8x128xf32>
    tpu.vector_store %arg40[%920, %c0_241], %898 {strides = array<i32>} : memref<80x128xf32, #tpu.memory_space<vmem>>, vector<8x128xf32>,
    %c9_i32_242 = arith.constant 9 : i32
    %922 = arith.subi %c9_i32_242, %c5_i32_231 : i32
    %c8_i32_243 = arith.constant 8 : i32
    %923 = arith.muli %922, %c8_i32_243 : i32
    %924 = tpu.assume_multiple %923, 8 : i32
    %925 = arith.index_cast %924 : i32 to index
    %c0_244 = arith.constant 0 : index
    %926 = vector.load %arg41[%925, %c0_244] : memref<88x128xf32, #tpu.memory_space<vmem>>, vector<8x128xf32>
    tpu.vector_store %arg41[%925, %c0_244], %919 {strides = array<i32>} : memref<88x128xf32, #tpu.memory_space<vmem>>, vector<8x128xf32>,
    %c6_i32_245 = arith.constant 6 : i32
    %c8_i32_246 = arith.constant 8 : i32
    %927 = arith.muli %c6_i32_245, %c8_i32_246 : i32
    %928 = tpu.assume_multiple %927, 8 : i32
    %929 = arith.index_cast %928 : i32 to index
    %c0_247 = arith.constant 0 : index
    %930 = vector.load %arg36[%929, %c0_247] : memref<80x384xf32, #tpu.memory_space<vmem>>, vector<8x384xf32>
    %931 = arith.index_cast %928 : i32 to index
    %c0_248 = arith.constant 0 : index
    %932 = vector.load %arg37[%931, %c0_248] : memref<80x384xf32, #tpu.memory_space<vmem>>, vector<8x384xf32>
    %cst_249 = arith.constant dense<0.000000e+00> : vector<8x384xf32>
    %933 = tpu.matmul %898, %577, %cst_249 {dimension_numbers = #tpu.dot_dimension_numbers<[1], [0], [0], [1], [0, 0, 1, 1], [], []>} : vector<8x128xf32>, vector<128x384xf32>, vector<8x384xf32> -> vector<8x384xf32>
    %cst_250 = arith.constant dense<0.000000e+00> : vector<8x384xf32>
    %934 = tpu.matmul %919, %578, %cst_250 {dimension_numbers = #tpu.dot_dimension_numbers<[1], [0], [0], [1], [0, 0, 1, 1], [], []>} : vector<8x128xf32>, vector<128x384xf32>, vector<8x384xf32> -> vector<8x384xf32>
    %935 = vector.extract_strided_slice %930 {offsets = [0, 0], sizes = [8, 256], strides = [1, 1]} : vector<8x384xf32> to vector<8x256xf32>
    %936 = vector.extract_strided_slice %933 {offsets = [0, 0], sizes = [8, 256], strides = [1, 1]} : vector<8x384xf32> to vector<8x256xf32>
    %937 = arith.addf %935, %936 : vector<8x256xf32>
    %938 = arith.negf %937 : vector<8x256xf32>
    %939 = math.exp %938 : vector<8x256xf32>
    %cst_251 = arith.constant 1.000000e+00 : f32
    %940 = vector.broadcast %cst_251 : f32 to vector<8x256xf32>
    %941 = arith.addf %940, %939 : vector<8x256xf32>
    %942 = arith.divf %940, %941 : vector<8x256xf32>
    %943 = vector.extract_strided_slice %942 {offsets = [0, 0], sizes = [8, 128], strides = [1, 1]} : vector<8x256xf32> to vector<8x128xf32>
    %944 = vector.extract_strided_slice %942 {offsets = [0, 128], sizes = [8, 128], strides = [1, 1]} : vector<8x256xf32> to vector<8x128xf32>
    %945 = vector.extract_strided_slice %930 {offsets = [0, 256], sizes = [8, 128], strides = [1, 1]} : vector<8x384xf32> to vector<8x128xf32>
    %946 = vector.extract_strided_slice %933 {offsets = [0, 256], sizes = [8, 128], strides = [1, 1]} : vector<8x384xf32> to vector<8x128xf32>
    %947 = arith.addf %946, %581 : vector<8x128xf32>
    %948 = arith.mulf %943, %947 : vector<8x128xf32>
    %949 = arith.addf %945, %948 : vector<8x128xf32>
    %950 = math.tanh %949 : vector<8x128xf32>
    %cst_252 = arith.constant 1.000000e+00 : f32
    %951 = vector.broadcast %cst_252 : f32 to vector<8x128xf32>
    %952 = arith.subf %951, %944 : vector<8x128xf32>
    %953 = arith.mulf %952, %950 : vector<8x128xf32>
    %954 = arith.mulf %944, %898 : vector<8x128xf32>
    %955 = arith.addf %953, %954 : vector<8x128xf32>
    %956 = vector.extract_strided_slice %932 {offsets = [0, 0], sizes = [8, 256], strides = [1, 1]} : vector<8x384xf32> to vector<8x256xf32>
    %957 = vector.extract_strided_slice %934 {offsets = [0, 0], sizes = [8, 256], strides = [1, 1]} : vector<8x384xf32> to vector<8x256xf32>
    %958 = arith.addf %956, %957 : vector<8x256xf32>
    %959 = arith.negf %958 : vector<8x256xf32>
    %960 = math.exp %959 : vector<8x256xf32>
    %cst_253 = arith.constant 1.000000e+00 : f32
    %961 = vector.broadcast %cst_253 : f32 to vector<8x256xf32>
    %962 = arith.addf %961, %960 : vector<8x256xf32>
    %963 = arith.divf %961, %962 : vector<8x256xf32>
    %964 = vector.extract_strided_slice %963 {offsets = [0, 0], sizes = [8, 128], strides = [1, 1]} : vector<8x256xf32> to vector<8x128xf32>
    %965 = vector.extract_strided_slice %963 {offsets = [0, 128], sizes = [8, 128], strides = [1, 1]} : vector<8x256xf32> to vector<8x128xf32>
    %966 = vector.extract_strided_slice %932 {offsets = [0, 256], sizes = [8, 128], strides = [1, 1]} : vector<8x384xf32> to vector<8x128xf32>
    %967 = vector.extract_strided_slice %934 {offsets = [0, 256], sizes = [8, 128], strides = [1, 1]} : vector<8x384xf32> to vector<8x128xf32>
    %968 = arith.addf %967, %584 : vector<8x128xf32>
    %969 = arith.mulf %964, %968 : vector<8x128xf32>
    %970 = arith.addf %966, %969 : vector<8x128xf32>
    %971 = math.tanh %970 : vector<8x128xf32>
    %cst_254 = arith.constant 1.000000e+00 : f32
    %972 = vector.broadcast %cst_254 : f32 to vector<8x128xf32>
    %973 = arith.subf %972, %965 : vector<8x128xf32>
    %974 = arith.mulf %973, %971 : vector<8x128xf32>
    %975 = arith.mulf %965, %919 : vector<8x128xf32>
    %976 = arith.addf %974, %975 : vector<8x128xf32>
    %977 = arith.index_cast %928 : i32 to index
    %c0_255 = arith.constant 0 : index
    %978 = vector.load %arg40[%977, %c0_255] : memref<80x128xf32, #tpu.memory_space<vmem>>, vector<8x128xf32>
    tpu.vector_store %arg40[%977, %c0_255], %955 {strides = array<i32>} : memref<80x128xf32, #tpu.memory_space<vmem>>, vector<8x128xf32>,
    %c9_i32_256 = arith.constant 9 : i32
    %979 = arith.subi %c9_i32_256, %c6_i32_245 : i32
    %c8_i32_257 = arith.constant 8 : i32
    %980 = arith.muli %979, %c8_i32_257 : i32
    %981 = tpu.assume_multiple %980, 8 : i32
    %982 = arith.index_cast %981 : i32 to index
    %c0_258 = arith.constant 0 : index
    %983 = vector.load %arg41[%982, %c0_258] : memref<88x128xf32, #tpu.memory_space<vmem>>, vector<8x128xf32>
    tpu.vector_store %arg41[%982, %c0_258], %976 {strides = array<i32>} : memref<88x128xf32, #tpu.memory_space<vmem>>, vector<8x128xf32>,
    %c7_i32_259 = arith.constant 7 : i32
    %c8_i32_260 = arith.constant 8 : i32
    %984 = arith.muli %c7_i32_259, %c8_i32_260 : i32
    %985 = tpu.assume_multiple %984, 8 : i32
    %986 = arith.index_cast %985 : i32 to index
    %c0_261 = arith.constant 0 : index
    %987 = vector.load %arg36[%986, %c0_261] : memref<80x384xf32, #tpu.memory_space<vmem>>, vector<8x384xf32>
    %988 = arith.index_cast %985 : i32 to index
    %c0_262 = arith.constant 0 : index
    %989 = vector.load %arg37[%988, %c0_262] : memref<80x384xf32, #tpu.memory_space<vmem>>, vector<8x384xf32>
    %cst_263 = arith.constant dense<0.000000e+00> : vector<8x384xf32>
    %990 = tpu.matmul %955, %577, %cst_263 {dimension_numbers = #tpu.dot_dimension_numbers<[1], [0], [0], [1], [0, 0, 1, 1], [], []>} : vector<8x128xf32>, vector<128x384xf32>, vector<8x384xf32> -> vector<8x384xf32>
    %cst_264 = arith.constant dense<0.000000e+00> : vector<8x384xf32>
    %991 = tpu.matmul %976, %578, %cst_264 {dimension_numbers = #tpu.dot_dimension_numbers<[1], [0], [0], [1], [0, 0, 1, 1], [], []>} : vector<8x128xf32>, vector<128x384xf32>, vector<8x384xf32> -> vector<8x384xf32>
    %992 = vector.extract_strided_slice %987 {offsets = [0, 0], sizes = [8, 256], strides = [1, 1]} : vector<8x384xf32> to vector<8x256xf32>
    %993 = vector.extract_strided_slice %990 {offsets = [0, 0], sizes = [8, 256], strides = [1, 1]} : vector<8x384xf32> to vector<8x256xf32>
    %994 = arith.addf %992, %993 : vector<8x256xf32>
    %995 = arith.negf %994 : vector<8x256xf32>
    %996 = math.exp %995 : vector<8x256xf32>
    %cst_265 = arith.constant 1.000000e+00 : f32
    %997 = vector.broadcast %cst_265 : f32 to vector<8x256xf32>
    %998 = arith.addf %997, %996 : vector<8x256xf32>
    %999 = arith.divf %997, %998 : vector<8x256xf32>
    %1000 = vector.extract_strided_slice %999 {offsets = [0, 0], sizes = [8, 128], strides = [1, 1]} : vector<8x256xf32> to vector<8x128xf32>
    %1001 = vector.extract_strided_slice %999 {offsets = [0, 128], sizes = [8, 128], strides = [1, 1]} : vector<8x256xf32> to vector<8x128xf32>
    %1002 = vector.extract_strided_slice %987 {offsets = [0, 256], sizes = [8, 128], strides = [1, 1]} : vector<8x384xf32> to vector<8x128xf32>
    %1003 = vector.extract_strided_slice %990 {offsets = [0, 256], sizes = [8, 128], strides = [1, 1]} : vector<8x384xf32> to vector<8x128xf32>
    %1004 = arith.addf %1003, %581 : vector<8x128xf32>
    %1005 = arith.mulf %1000, %1004 : vector<8x128xf32>
    %1006 = arith.addf %1002, %1005 : vector<8x128xf32>
    %1007 = math.tanh %1006 : vector<8x128xf32>
    %cst_266 = arith.constant 1.000000e+00 : f32
    %1008 = vector.broadcast %cst_266 : f32 to vector<8x128xf32>
    %1009 = arith.subf %1008, %1001 : vector<8x128xf32>
    %1010 = arith.mulf %1009, %1007 : vector<8x128xf32>
    %1011 = arith.mulf %1001, %955 : vector<8x128xf32>
    %1012 = arith.addf %1010, %1011 : vector<8x128xf32>
    %1013 = vector.extract_strided_slice %989 {offsets = [0, 0], sizes = [8, 256], strides = [1, 1]} : vector<8x384xf32> to vector<8x256xf32>
    %1014 = vector.extract_strided_slice %991 {offsets = [0, 0], sizes = [8, 256], strides = [1, 1]} : vector<8x384xf32> to vector<8x256xf32>
    %1015 = arith.addf %1013, %1014 : vector<8x256xf32>
    %1016 = arith.negf %1015 : vector<8x256xf32>
    %1017 = math.exp %1016 : vector<8x256xf32>
    %cst_267 = arith.constant 1.000000e+00 : f32
    %1018 = vector.broadcast %cst_267 : f32 to vector<8x256xf32>
    %1019 = arith.addf %1018, %1017 : vector<8x256xf32>
    %1020 = arith.divf %1018, %1019 : vector<8x256xf32>
    %1021 = vector.extract_strided_slice %1020 {offsets = [0, 0], sizes = [8, 128], strides = [1, 1]} : vector<8x256xf32> to vector<8x128xf32>
    %1022 = vector.extract_strided_slice %1020 {offsets = [0, 128], sizes = [8, 128], strides = [1, 1]} : vector<8x256xf32> to vector<8x128xf32>
    %1023 = vector.extract_strided_slice %989 {offsets = [0, 256], sizes = [8, 128], strides = [1, 1]} : vector<8x384xf32> to vector<8x128xf32>
    %1024 = vector.extract_strided_slice %991 {offsets = [0, 256], sizes = [8, 128], strides = [1, 1]} : vector<8x384xf32> to vector<8x128xf32>
    %1025 = arith.addf %1024, %584 : vector<8x128xf32>
    %1026 = arith.mulf %1021, %1025 : vector<8x128xf32>
    %1027 = arith.addf %1023, %1026 : vector<8x128xf32>
    %1028 = math.tanh %1027 : vector<8x128xf32>
    %cst_268 = arith.constant 1.000000e+00 : f32
    %1029 = vector.broadcast %cst_268 : f32 to vector<8x128xf32>
    %1030 = arith.subf %1029, %1022 : vector<8x128xf32>
    %1031 = arith.mulf %1030, %1028 : vector<8x128xf32>
    %1032 = arith.mulf %1022, %976 : vector<8x128xf32>
    %1033 = arith.addf %1031, %1032 : vector<8x128xf32>
    %1034 = arith.index_cast %985 : i32 to index
    %c0_269 = arith.constant 0 : index
    %1035 = vector.load %arg40[%1034, %c0_269] : memref<80x128xf32, #tpu.memory_space<vmem>>, vector<8x128xf32>
    tpu.vector_store %arg40[%1034, %c0_269], %1012 {strides = array<i32>} : memref<80x128xf32, #tpu.memory_space<vmem>>, vector<8x128xf32>,
    %c9_i32_270 = arith.constant 9 : i32
    %1036 = arith.subi %c9_i32_270, %c7_i32_259 : i32
    %c8_i32_271 = arith.constant 8 : i32
    %1037 = arith.muli %1036, %c8_i32_271 : i32
    %1038 = tpu.assume_multiple %1037, 8 : i32
    %1039 = arith.index_cast %1038 : i32 to index
    %c0_272 = arith.constant 0 : index
    %1040 = vector.load %arg41[%1039, %c0_272] : memref<88x128xf32, #tpu.memory_space<vmem>>, vector<8x128xf32>
    tpu.vector_store %arg41[%1039, %c0_272], %1033 {strides = array<i32>} : memref<88x128xf32, #tpu.memory_space<vmem>>, vector<8x128xf32>,
    %c8_i32_273 = arith.constant 8 : i32
    %c8_i32_274 = arith.constant 8 : i32
    %1041 = arith.muli %c8_i32_273, %c8_i32_274 : i32
    %1042 = tpu.assume_multiple %1041, 8 : i32
    %1043 = arith.index_cast %1042 : i32 to index
    %c0_275 = arith.constant 0 : index
    %1044 = vector.load %arg36[%1043, %c0_275] : memref<80x384xf32, #tpu.memory_space<vmem>>, vector<8x384xf32>
    %1045 = arith.index_cast %1042 : i32 to index
    %c0_276 = arith.constant 0 : index
    %1046 = vector.load %arg37[%1045, %c0_276] : memref<80x384xf32, #tpu.memory_space<vmem>>, vector<8x384xf32>
    %cst_277 = arith.constant dense<0.000000e+00> : vector<8x384xf32>
    %1047 = tpu.matmul %1012, %577, %cst_277 {dimension_numbers = #tpu.dot_dimension_numbers<[1], [0], [0], [1], [0, 0, 1, 1], [], []>} : vector<8x128xf32>, vector<128x384xf32>, vector<8x384xf32> -> vector<8x384xf32>
    %cst_278 = arith.constant dense<0.000000e+00> : vector<8x384xf32>
    %1048 = tpu.matmul %1033, %578, %cst_278 {dimension_numbers = #tpu.dot_dimension_numbers<[1], [0], [0], [1], [0, 0, 1, 1], [], []>} : vector<8x128xf32>, vector<128x384xf32>, vector<8x384xf32> -> vector<8x384xf32>
    %1049 = vector.extract_strided_slice %1044 {offsets = [0, 0], sizes = [8, 256], strides = [1, 1]} : vector<8x384xf32> to vector<8x256xf32>
    %1050 = vector.extract_strided_slice %1047 {offsets = [0, 0], sizes = [8, 256], strides = [1, 1]} : vector<8x384xf32> to vector<8x256xf32>
    %1051 = arith.addf %1049, %1050 : vector<8x256xf32>
    %1052 = arith.negf %1051 : vector<8x256xf32>
    %1053 = math.exp %1052 : vector<8x256xf32>
    %cst_279 = arith.constant 1.000000e+00 : f32
    %1054 = vector.broadcast %cst_279 : f32 to vector<8x256xf32>
    %1055 = arith.addf %1054, %1053 : vector<8x256xf32>
    %1056 = arith.divf %1054, %1055 : vector<8x256xf32>
    %1057 = vector.extract_strided_slice %1056 {offsets = [0, 0], sizes = [8, 128], strides = [1, 1]} : vector<8x256xf32> to vector<8x128xf32>
    %1058 = vector.extract_strided_slice %1056 {offsets = [0, 128], sizes = [8, 128], strides = [1, 1]} : vector<8x256xf32> to vector<8x128xf32>
    %1059 = vector.extract_strided_slice %1044 {offsets = [0, 256], sizes = [8, 128], strides = [1, 1]} : vector<8x384xf32> to vector<8x128xf32>
    %1060 = vector.extract_strided_slice %1047 {offsets = [0, 256], sizes = [8, 128], strides = [1, 1]} : vector<8x384xf32> to vector<8x128xf32>
    %1061 = arith.addf %1060, %581 : vector<8x128xf32>
    %1062 = arith.mulf %1057, %1061 : vector<8x128xf32>
    %1063 = arith.addf %1059, %1062 : vector<8x128xf32>
    %1064 = math.tanh %1063 : vector<8x128xf32>
    %cst_280 = arith.constant 1.000000e+00 : f32
    %1065 = vector.broadcast %cst_280 : f32 to vector<8x128xf32>
    %1066 = arith.subf %1065, %1058 : vector<8x128xf32>
    %1067 = arith.mulf %1066, %1064 : vector<8x128xf32>
    %1068 = arith.mulf %1058, %1012 : vector<8x128xf32>
    %1069 = arith.addf %1067, %1068 : vector<8x128xf32>
    %1070 = vector.extract_strided_slice %1046 {offsets = [0, 0], sizes = [8, 256], strides = [1, 1]} : vector<8x384xf32> to vector<8x256xf32>
    %1071 = vector.extract_strided_slice %1048 {offsets = [0, 0], sizes = [8, 256], strides = [1, 1]} : vector<8x384xf32> to vector<8x256xf32>
    %1072 = arith.addf %1070, %1071 : vector<8x256xf32>
    %1073 = arith.negf %1072 : vector<8x256xf32>
    %1074 = math.exp %1073 : vector<8x256xf32>
    %cst_281 = arith.constant 1.000000e+00 : f32
    %1075 = vector.broadcast %cst_281 : f32 to vector<8x256xf32>
    %1076 = arith.addf %1075, %1074 : vector<8x256xf32>
    %1077 = arith.divf %1075, %1076 : vector<8x256xf32>
    %1078 = vector.extract_strided_slice %1077 {offsets = [0, 0], sizes = [8, 128], strides = [1, 1]} : vector<8x256xf32> to vector<8x128xf32>
    %1079 = vector.extract_strided_slice %1077 {offsets = [0, 128], sizes = [8, 128], strides = [1, 1]} : vector<8x256xf32> to vector<8x128xf32>
    %1080 = vector.extract_strided_slice %1046 {offsets = [0, 256], sizes = [8, 128], strides = [1, 1]} : vector<8x384xf32> to vector<8x128xf32>
    %1081 = vector.extract_strided_slice %1048 {offsets = [0, 256], sizes = [8, 128], strides = [1, 1]} : vector<8x384xf32> to vector<8x128xf32>
    %1082 = arith.addf %1081, %584 : vector<8x128xf32>
    %1083 = arith.mulf %1078, %1082 : vector<8x128xf32>
    %1084 = arith.addf %1080, %1083 : vector<8x128xf32>
    %1085 = math.tanh %1084 : vector<8x128xf32>
    %cst_282 = arith.constant 1.000000e+00 : f32
    %1086 = vector.broadcast %cst_282 : f32 to vector<8x128xf32>
    %1087 = arith.subf %1086, %1079 : vector<8x128xf32>
    %1088 = arith.mulf %1087, %1085 : vector<8x128xf32>
    %1089 = arith.mulf %1079, %1033 : vector<8x128xf32>
    %1090 = arith.addf %1088, %1089 : vector<8x128xf32>
    %1091 = arith.index_cast %1042 : i32 to index
    %c0_283 = arith.constant 0 : index
    %1092 = vector.load %arg40[%1091, %c0_283] : memref<80x128xf32, #tpu.memory_space<vmem>>, vector<8x128xf32>
    tpu.vector_store %arg40[%1091, %c0_283], %1069 {strides = array<i32>} : memref<80x128xf32, #tpu.memory_space<vmem>>, vector<8x128xf32>,
    %c9_i32_284 = arith.constant 9 : i32
    %1093 = arith.subi %c9_i32_284, %c8_i32_273 : i32
    %c8_i32_285 = arith.constant 8 : i32
    %1094 = arith.muli %1093, %c8_i32_285 : i32
    %1095 = tpu.assume_multiple %1094, 8 : i32
    %1096 = arith.index_cast %1095 : i32 to index
    %c0_286 = arith.constant 0 : index
    %1097 = vector.load %arg41[%1096, %c0_286] : memref<88x128xf32, #tpu.memory_space<vmem>>, vector<8x128xf32>
    tpu.vector_store %arg41[%1096, %c0_286], %1090 {strides = array<i32>} : memref<88x128xf32, #tpu.memory_space<vmem>>, vector<8x128xf32>,
    %c9_i32_287 = arith.constant 9 : i32
    %c8_i32_288 = arith.constant 8 : i32
    %1098 = arith.muli %c9_i32_287, %c8_i32_288 : i32
    %1099 = tpu.assume_multiple %1098, 8 : i32
    %1100 = arith.index_cast %1099 : i32 to index
    %c0_289 = arith.constant 0 : index
    %1101 = vector.load %arg36[%1100, %c0_289] : memref<80x384xf32, #tpu.memory_space<vmem>>, vector<8x384xf32>
    %1102 = arith.index_cast %1099 : i32 to index
    %c0_290 = arith.constant 0 : index
    %1103 = vector.load %arg37[%1102, %c0_290] : memref<80x384xf32, #tpu.memory_space<vmem>>, vector<8x384xf32>
    %cst_291 = arith.constant dense<0.000000e+00> : vector<8x384xf32>
    %1104 = tpu.matmul %1069, %577, %cst_291 {dimension_numbers = #tpu.dot_dimension_numbers<[1], [0], [0], [1], [0, 0, 1, 1], [], []>} : vector<8x128xf32>, vector<128x384xf32>, vector<8x384xf32> -> vector<8x384xf32>
    %cst_292 = arith.constant dense<0.000000e+00> : vector<8x384xf32>
    %1105 = tpu.matmul %1090, %578, %cst_292 {dimension_numbers = #tpu.dot_dimension_numbers<[1], [0], [0], [1], [0, 0, 1, 1], [], []>} : vector<8x128xf32>, vector<128x384xf32>, vector<8x384xf32> -> vector<8x384xf32>
    %1106 = vector.extract_strided_slice %1101 {offsets = [0, 0], sizes = [8, 256], strides = [1, 1]} : vector<8x384xf32> to vector<8x256xf32>
    %1107 = vector.extract_strided_slice %1104 {offsets = [0, 0], sizes = [8, 256], strides = [1, 1]} : vector<8x384xf32> to vector<8x256xf32>
    %1108 = arith.addf %1106, %1107 : vector<8x256xf32>
    %1109 = arith.negf %1108 : vector<8x256xf32>
    %1110 = math.exp %1109 : vector<8x256xf32>
    %cst_293 = arith.constant 1.000000e+00 : f32
    %1111 = vector.broadcast %cst_293 : f32 to vector<8x256xf32>
    %1112 = arith.addf %1111, %1110 : vector<8x256xf32>
    %1113 = arith.divf %1111, %1112 : vector<8x256xf32>
    %1114 = vector.extract_strided_slice %1113 {offsets = [0, 0], sizes = [8, 128], strides = [1, 1]} : vector<8x256xf32> to vector<8x128xf32>
    %1115 = vector.extract_strided_slice %1113 {offsets = [0, 128], sizes = [8, 128], strides = [1, 1]} : vector<8x256xf32> to vector<8x128xf32>
    %1116 = vector.extract_strided_slice %1101 {offsets = [0, 256], sizes = [8, 128], strides = [1, 1]} : vector<8x384xf32> to vector<8x128xf32>
    %1117 = vector.extract_strided_slice %1104 {offsets = [0, 256], sizes = [8, 128], strides = [1, 1]} : vector<8x384xf32> to vector<8x128xf32>
    %1118 = arith.addf %1117, %581 : vector<8x128xf32>
    %1119 = arith.mulf %1114, %1118 : vector<8x128xf32>
    %1120 = arith.addf %1116, %1119 : vector<8x128xf32>
    %1121 = math.tanh %1120 : vector<8x128xf32>
    %cst_294 = arith.constant 1.000000e+00 : f32
    %1122 = vector.broadcast %cst_294 : f32 to vector<8x128xf32>
    %1123 = arith.subf %1122, %1115 : vector<8x128xf32>
    %1124 = arith.mulf %1123, %1121 : vector<8x128xf32>
    %1125 = arith.mulf %1115, %1069 : vector<8x128xf32>
    %1126 = arith.addf %1124, %1125 : vector<8x128xf32>
    %1127 = vector.extract_strided_slice %1103 {offsets = [0, 0], sizes = [8, 256], strides = [1, 1]} : vector<8x384xf32> to vector<8x256xf32>
    %1128 = vector.extract_strided_slice %1105 {offsets = [0, 0], sizes = [8, 256], strides = [1, 1]} : vector<8x384xf32> to vector<8x256xf32>
    %1129 = arith.addf %1127, %1128 : vector<8x256xf32>
    %1130 = arith.negf %1129 : vector<8x256xf32>
    %1131 = math.exp %1130 : vector<8x256xf32>
    %cst_295 = arith.constant 1.000000e+00 : f32
    %1132 = vector.broadcast %cst_295 : f32 to vector<8x256xf32>
    %1133 = arith.addf %1132, %1131 : vector<8x256xf32>
    %1134 = arith.divf %1132, %1133 : vector<8x256xf32>
    %1135 = vector.extract_strided_slice %1134 {offsets = [0, 0], sizes = [8, 128], strides = [1, 1]} : vector<8x256xf32> to vector<8x128xf32>
    %1136 = vector.extract_strided_slice %1134 {offsets = [0, 128], sizes = [8, 128], strides = [1, 1]} : vector<8x256xf32> to vector<8x128xf32>
    %1137 = vector.extract_strided_slice %1103 {offsets = [0, 256], sizes = [8, 128], strides = [1, 1]} : vector<8x384xf32> to vector<8x128xf32>
    %1138 = vector.extract_strided_slice %1105 {offsets = [0, 256], sizes = [8, 128], strides = [1, 1]} : vector<8x384xf32> to vector<8x128xf32>
    %1139 = arith.addf %1138, %584 : vector<8x128xf32>
    %1140 = arith.mulf %1135, %1139 : vector<8x128xf32>
    %1141 = arith.addf %1137, %1140 : vector<8x128xf32>
    %1142 = math.tanh %1141 : vector<8x128xf32>
    %cst_296 = arith.constant 1.000000e+00 : f32
    %1143 = vector.broadcast %cst_296 : f32 to vector<8x128xf32>
    %1144 = arith.subf %1143, %1136 : vector<8x128xf32>
    %1145 = arith.mulf %1144, %1142 : vector<8x128xf32>
    %1146 = arith.mulf %1136, %1090 : vector<8x128xf32>
    %1147 = arith.addf %1145, %1146 : vector<8x128xf32>
    %1148 = arith.index_cast %1099 : i32 to index
    %c0_297 = arith.constant 0 : index
    %1149 = vector.load %arg40[%1148, %c0_297] : memref<80x128xf32, #tpu.memory_space<vmem>>, vector<8x128xf32>
    tpu.vector_store %arg40[%1148, %c0_297], %1126 {strides = array<i32>} : memref<80x128xf32, #tpu.memory_space<vmem>>, vector<8x128xf32>,
    %c9_i32_298 = arith.constant 9 : i32
    %1150 = arith.subi %c9_i32_298, %c9_i32_287 : i32
    %c8_i32_299 = arith.constant 8 : i32
    %1151 = arith.muli %1150, %c8_i32_299 : i32
    %1152 = tpu.assume_multiple %1151, 8 : i32
    %1153 = arith.index_cast %1152 : i32 to index
    %c0_300 = arith.constant 0 : index
    %1154 = vector.load %arg41[%1153, %c0_300] : memref<88x128xf32, #tpu.memory_space<vmem>>, vector<8x128xf32>
    tpu.vector_store %arg41[%1153, %c0_300], %1147 {strides = array<i32>} : memref<88x128xf32, #tpu.memory_space<vmem>>, vector<8x128xf32>,
    %c10_i32_301 = arith.constant 10 : i32
    %cst_302 = arith.constant 0.000000e+00 : f32
    %1155 = vector.broadcast %cst_302 : f32 to vector<8x128xf32>
    %c80 = arith.constant 80 : index
    %c0_303 = arith.constant 0 : index
    %1156 = vector.load %arg41[%c80, %c0_303] : memref<88x128xf32, #tpu.memory_space<vmem>>, vector<8x128xf32>
    tpu.vector_store %arg41[%c80, %c0_303], %1155 {strides = array<i32>} : memref<88x128xf32, #tpu.memory_space<vmem>>, vector<8x128xf32>,
    %cst_304 = arith.constant 0.000000e+00 : f32
    %1157 = vector.broadcast %cst_304 : f32 to vector<1x1xf32>
    %c0_305 = arith.constant 0 : index
    %c0_306 = arith.constant 0 : index
    %1158 = vector.load %arg40[%c0_305, %c0_306] : memref<80x128xf32, #tpu.memory_space<vmem>>, vector<72x128xf32>
    %c16 = arith.constant 16 : index
    %c0_307 = arith.constant 0 : index
    %1159 = vector.load %arg41[%c16, %c0_307] : memref<88x128xf32, #tpu.memory_space<vmem>>, vector<72x128xf32>
    %c8 = arith.constant 8 : index
    %c0_308 = arith.constant 0 : index
    %1160 = vector.load %arg3[%c8, %c0_308] : memref<80x4xf32, #tpu.memory_space<vmem>>, vector<72x4xf32>
    %c0_309 = arith.constant 0 : index
    %c0_310 = arith.constant 0 : index
    %1161 = vector.load %arg20[%c0_309, %c0_310] : memref<128x16xf32, #tpu.memory_space<vmem>>, vector<128x16xf32>
    %cst_311 = arith.constant dense<0.000000e+00> : vector<72x16xf32>
    %1162 = tpu.matmul %1158, %1161, %cst_311 {dimension_numbers = #tpu.dot_dimension_numbers<[1], [0], [0], [1], [0, 0, 1, 1], [], []>} : vector<72x128xf32>, vector<128x16xf32>, vector<72x16xf32> -> vector<72x16xf32>
    %c0_312 = arith.constant 0 : index
    %c0_313 = arith.constant 0 : index
    %1163 = vector.load %arg21[%c0_312, %c0_313] : memref<128x16xf32, #tpu.memory_space<vmem>>, vector<128x16xf32>
    %cst_314 = arith.constant dense<0.000000e+00> : vector<72x16xf32>
    %1164 = tpu.matmul %1159, %1163, %cst_314 {dimension_numbers = #tpu.dot_dimension_numbers<[1], [0], [0], [1], [0, 0, 1, 1], [], []>} : vector<72x128xf32>, vector<128x16xf32>, vector<72x16xf32> -> vector<72x16xf32>
    %1165 = arith.addf %1162, %1164 : vector<72x16xf32>
    %c0_315 = arith.constant 0 : index
    %c0_316 = arith.constant 0 : index
    %1166 = vector.load %arg22[%c0_315, %c0_316] : memref<1x16xf32, #tpu.memory_space<vmem>>, vector<1x16xf32>
    %1167 = vector.broadcast %1166 : vector<1x16xf32> to vector<72x16xf32>
    %1168 = arith.addf %1165, %1167 : vector<72x16xf32>
    %cst_317 = arith.constant 0.000000e+00 : f32
    %1169 = vector.broadcast %cst_317 : f32 to vector<72x16xf32>
    %1170 = arith.maximumf %1168, %1169 : vector<72x16xf32>
    %c0_318 = arith.constant 0 : index
    %c0_319 = arith.constant 0 : index
    %1171 = vector.load %arg23[%c0_318, %c0_319] : memref<16x4xf32, #tpu.memory_space<vmem>>, vector<16x4xf32>
    %cst_320 = arith.constant dense<0.000000e+00> : vector<72x4xf32>
    %1172 = tpu.matmul %1170, %1171, %cst_320 {dimension_numbers = #tpu.dot_dimension_numbers<[1], [0], [0], [1], [0, 0, 1, 1], [], []>} : vector<72x16xf32>, vector<16x4xf32>, vector<72x4xf32> -> vector<72x4xf32>
    %c0_321 = arith.constant 0 : index
    %c0_322 = arith.constant 0 : index
    %1173 = vector.load %arg24[%c0_321, %c0_322] : memref<1x4xf32, #tpu.memory_space<vmem>>, vector<1x4xf32>
    %1174 = vector.broadcast %1173 : vector<1x4xf32> to vector<72x4xf32>
    %1175 = arith.addf %1172, %1174 : vector<72x4xf32>
    %1176 = arith.subf %1175, %1160 : vector<72x4xf32>
    %1177 = arith.mulf %1176, %1176 : vector<72x4xf32>
    %1178 = vector.shape_cast %1177 : vector<72x4xf32> to vector<1x72x4xf32>
    %cst_323 = arith.constant dense<0.000000e+00> : vector<1xf32>
    %1179 = vector.multi_reduction <add>, %1178, %cst_323 [1, 2] : vector<1x72x4xf32> to vector<1xf32>
    %1180 = vector.shape_cast %1179 : vector<1xf32> to vector<1x1x1xf32>
    %1181 = vector.extract %1180[0, 0, 0] : f32 from vector<1x1x1xf32>
    %1182 = vector.broadcast %1181 : f32 to vector<1x1xf32>
    %1183 = arith.addf %1157, %1182 : vector<1x1xf32>
    %c0_324 = arith.constant 0 : index
    %c0_325 = arith.constant 0 : index
    %1184 = vector.load %arg40[%c0_324, %c0_325] : memref<80x128xf32, #tpu.memory_space<vmem>>, vector<56x128xf32>
    %c32 = arith.constant 32 : index
    %c0_326 = arith.constant 0 : index
    %1185 = vector.load %arg41[%c32, %c0_326] : memref<88x128xf32, #tpu.memory_space<vmem>>, vector<56x128xf32>
    %c16_327 = arith.constant 16 : index
    %c0_328 = arith.constant 0 : index
    %1186 = vector.load %arg3[%c16_327, %c0_328] : memref<80x4xf32, #tpu.memory_space<vmem>>, vector<56x4xf32>
    %c0_329 = arith.constant 0 : index
    %c0_330 = arith.constant 0 : index
    %1187 = vector.load %arg25[%c0_329, %c0_330] : memref<128x16xf32, #tpu.memory_space<vmem>>, vector<128x16xf32>
    %cst_331 = arith.constant dense<0.000000e+00> : vector<56x16xf32>
    %1188 = tpu.matmul %1184, %1187, %cst_331 {dimension_numbers = #tpu.dot_dimension_numbers<[1], [0], [0], [1], [0, 0, 1, 1], [], []>} : vector<56x128xf32>, vector<128x16xf32>, vector<56x16xf32> -> vector<56x16xf32>
    %c0_332 = arith.constant 0 : index
    %c0_333 = arith.constant 0 : index
    %1189 = vector.load %arg26[%c0_332, %c0_333] : memref<128x16xf32, #tpu.memory_space<vmem>>, vector<128x16xf32>
    %cst_334 = arith.constant dense<0.000000e+00> : vector<56x16xf32>
    %1190 = tpu.matmul %1185, %1189, %cst_334 {dimension_numbers = #tpu.dot_dimension_numbers<[1], [0], [0], [1], [0, 0, 1, 1], [], []>} : vector<56x128xf32>, vector<128x16xf32>, vector<56x16xf32> -> vector<56x16xf32>
    %1191 = arith.addf %1188, %1190 : vector<56x16xf32>
    %c0_335 = arith.constant 0 : index
    %c0_336 = arith.constant 0 : index
    %1192 = vector.load %arg27[%c0_335, %c0_336] : memref<1x16xf32, #tpu.memory_space<vmem>>, vector<1x16xf32>
    %1193 = vector.broadcast %1192 : vector<1x16xf32> to vector<56x16xf32>
    %1194 = arith.addf %1191, %1193 : vector<56x16xf32>
    %cst_337 = arith.constant 0.000000e+00 : f32
    %1195 = vector.broadcast %cst_337 : f32 to vector<56x16xf32>
    %1196 = arith.maximumf %1194, %1195 : vector<56x16xf32>
    %c0_338 = arith.constant 0 : index
    %c0_339 = arith.constant 0 : index
    %1197 = vector.load %arg28[%c0_338, %c0_339] : memref<16x4xf32, #tpu.memory_space<vmem>>, vector<16x4xf32>
    %cst_340 = arith.constant dense<0.000000e+00> : vector<56x4xf32>
    %1198 = tpu.matmul %1196, %1197, %cst_340 {dimension_numbers = #tpu.dot_dimension_numbers<[1], [0], [0], [1], [0, 0, 1, 1], [], []>} : vector<56x16xf32>, vector<16x4xf32>, vector<56x4xf32> -> vector<56x4xf32>
    %c0_341 = arith.constant 0 : index
    %c0_342 = arith.constant 0 : index
    %1199 = vector.load %arg29[%c0_341, %c0_342] : memref<1x4xf32, #tpu.memory_space<vmem>>, vector<1x4xf32>
    %1200 = vector.broadcast %1199 : vector<1x4xf32> to vector<56x4xf32>
    %1201 = arith.addf %1198, %1200 : vector<56x4xf32>
    %1202 = arith.subf %1201, %1186 : vector<56x4xf32>
    %1203 = arith.mulf %1202, %1202 : vector<56x4xf32>
    %1204 = vector.shape_cast %1203 : vector<56x4xf32> to vector<1x56x4xf32>
    %cst_343 = arith.constant dense<0.000000e+00> : vector<1xf32>
    %1205 = vector.multi_reduction <add>, %1204, %cst_343 [1, 2] : vector<1x56x4xf32> to vector<1xf32>
    %1206 = vector.shape_cast %1205 : vector<1xf32> to vector<1x1x1xf32>
    %1207 = vector.extract %1206[0, 0, 0] : f32 from vector<1x1x1xf32>
    %1208 = vector.broadcast %1207 : f32 to vector<1x1xf32>
    %1209 = arith.addf %1183, %1208 : vector<1x1xf32>
    %c0_344 = arith.constant 0 : index
    %c0_345 = arith.constant 0 : index
    %1210 = vector.load %arg40[%c0_344, %c0_345] : memref<80x128xf32, #tpu.memory_space<vmem>>, vector<24x128xf32>
    %c64 = arith.constant 64 : index
    %c0_346 = arith.constant 0 : index
    %1211 = vector.load %arg41[%c64, %c0_346] : memref<88x128xf32, #tpu.memory_space<vmem>>, vector<24x128xf32>
    %c32_347 = arith.constant 32 : index
    %c0_348 = arith.constant 0 : index
    %1212 = vector.load %arg3[%c32_347, %c0_348] : memref<80x4xf32, #tpu.memory_space<vmem>>, vector<24x4xf32>
    %c0_349 = arith.constant 0 : index
    %c0_350 = arith.constant 0 : index
    %1213 = vector.load %arg30[%c0_349, %c0_350] : memref<128x16xf32, #tpu.memory_space<vmem>>, vector<128x16xf32>
    %cst_351 = arith.constant dense<0.000000e+00> : vector<24x16xf32>
    %1214 = tpu.matmul %1210, %1213, %cst_351 {dimension_numbers = #tpu.dot_dimension_numbers<[1], [0], [0], [1], [0, 0, 1, 1], [], []>} : vector<24x128xf32>, vector<128x16xf32>, vector<24x16xf32> -> vector<24x16xf32>
    %c0_352 = arith.constant 0 : index
    %c0_353 = arith.constant 0 : index
    %1215 = vector.load %arg31[%c0_352, %c0_353] : memref<128x16xf32, #tpu.memory_space<vmem>>, vector<128x16xf32>
    %cst_354 = arith.constant dense<0.000000e+00> : vector<24x16xf32>
    %1216 = tpu.matmul %1211, %1215, %cst_354 {dimension_numbers = #tpu.dot_dimension_numbers<[1], [0], [0], [1], [0, 0, 1, 1], [], []>} : vector<24x128xf32>, vector<128x16xf32>, vector<24x16xf32> -> vector<24x16xf32>
    %1217 = arith.addf %1214, %1216 : vector<24x16xf32>
    %c0_355 = arith.constant 0 : index
    %c0_356 = arith.constant 0 : index
    %1218 = vector.load %arg32[%c0_355, %c0_356] : memref<1x16xf32, #tpu.memory_space<vmem>>, vector<1x16xf32>
    %1219 = vector.broadcast %1218 : vector<1x16xf32> to vector<24x16xf32>
    %1220 = arith.addf %1217, %1219 : vector<24x16xf32>
    %cst_357 = arith.constant 0.000000e+00 : f32
    %1221 = vector.broadcast %cst_357 : f32 to vector<24x16xf32>
    %1222 = arith.maximumf %1220, %1221 : vector<24x16xf32>
    %c0_358 = arith.constant 0 : index
    %c0_359 = arith.constant 0 : index
    %1223 = vector.load %arg33[%c0_358, %c0_359] : memref<16x4xf32, #tpu.memory_space<vmem>>, vector<16x4xf32>
    %cst_360 = arith.constant dense<0.000000e+00> : vector<24x4xf32>
    %1224 = tpu.matmul %1222, %1223, %cst_360 {dimension_numbers = #tpu.dot_dimension_numbers<[1], [0], [0], [1], [0, 0, 1, 1], [], []>} : vector<24x16xf32>, vector<16x4xf32>, vector<24x4xf32> -> vector<24x4xf32>
    %c0_361 = arith.constant 0 : index
    %c0_362 = arith.constant 0 : index
    %1225 = vector.load %arg34[%c0_361, %c0_362] : memref<1x4xf32, #tpu.memory_space<vmem>>, vector<1x4xf32>
    %1226 = vector.broadcast %1225 : vector<1x4xf32> to vector<24x4xf32>
    %1227 = arith.addf %1224, %1226 : vector<24x4xf32>
    %1228 = arith.subf %1227, %1212 : vector<24x4xf32>
    %1229 = arith.mulf %1228, %1228 : vector<24x4xf32>
    %1230 = vector.shape_cast %1229 : vector<24x4xf32> to vector<1x24x4xf32>
    %cst_363 = arith.constant dense<0.000000e+00> : vector<1xf32>
    %1231 = vector.multi_reduction <add>, %1230, %cst_363 [1, 2] : vector<1x24x4xf32> to vector<1xf32>
    %1232 = vector.shape_cast %1231 : vector<1xf32> to vector<1x1x1xf32>
    %1233 = vector.extract %1232[0, 0, 0] : f32 from vector<1x1x1xf32>
    %1234 = vector.broadcast %1233 : f32 to vector<1x1xf32>
    %1235 = arith.addf %1209, %1234 : vector<1x1xf32>
    %c0_364 = arith.constant 0 : index
    %c0_365 = arith.constant 0 : index
    %1236 = vector.load %arg35[%c0_364, %c0_365] : memref<1x1xf32, #tpu.memory_space<vmem>>, vector<1x1xf32>
    tpu.vector_store %arg35[%c0_364, %c0_365], %1235 {strides = array<i32>} : memref<1x1xf32, #tpu.memory_space<vmem>>, vector<1x1xf32>,
    return
  }
  func.func @transform_0(%arg0: i32) -> (i32, i32) {
    %c0_i32 = arith.constant 0 : i32
    %c0_i32_0 = arith.constant 0 : i32
    %c0_i32_1 = arith.constant 0 : i32
    return %c0_i32, %c0_i32_0 : i32, i32
  }
  func.func @transform_1(%arg0: i32) -> (i32, i32) {
    %c0_i32 = arith.constant 0 : i32
    %c0_i32_0 = arith.constant 0 : i32
    %c0_i32_1 = arith.constant 0 : i32
    return %c0_i32, %c0_i32_0 : i32, i32
  }
  func.func @transform_2(%arg0: i32) -> (i32, i32) {
    %c0_i32 = arith.constant 0 : i32
    %c0_i32_0 = arith.constant 0 : i32
    %c0_i32_1 = arith.constant 0 : i32
    return %c0_i32, %c0_i32_0 : i32, i32
  }
  func.func @transform_3(%arg0: i32) -> (i32, i32) {
    %c0_i32 = arith.constant 0 : i32
    %c0_i32_0 = arith.constant 0 : i32
    %c0_i32_1 = arith.constant 0 : i32
    return %c0_i32, %c0_i32_0 : i32, i32
  }
  func.func @transform_4(%arg0: i32) -> (i32, i32) {
    %c0_i32 = arith.constant 0 : i32
    %c0_i32_0 = arith.constant 0 : i32
    %c0_i32_1 = arith.constant 0 : i32
    return %c0_i32, %c0_i32_0 : i32, i32
  }
  func.func @transform_5(%arg0: i32) -> (i32, i32) {
    %c0_i32 = arith.constant 0 : i32
    %c0_i32_0 = arith.constant 0 : i32
    %c0_i32_1 = arith.constant 0 : i32
    return %c0_i32, %c0_i32_0 : i32, i32
  }
  func.func @transform_6(%arg0: i32) -> (i32, i32) {
    %c0_i32 = arith.constant 0 : i32
    %c0_i32_0 = arith.constant 0 : i32
    %c0_i32_1 = arith.constant 0 : i32
    return %c0_i32, %c0_i32_0 : i32, i32
  }
  func.func @transform_7(%arg0: i32) -> (i32, i32) {
    %c0_i32 = arith.constant 0 : i32
    %c0_i32_0 = arith.constant 0 : i32
    %c0_i32_1 = arith.constant 0 : i32
    return %c0_i32, %c0_i32_0 : i32, i32
  }
  func.func @transform_8(%arg0: i32) -> (i32, i32) {
    %c0_i32 = arith.constant 0 : i32
    %c0_i32_0 = arith.constant 0 : i32
    %c0_i32_1 = arith.constant 0 : i32
    return %c0_i32, %c0_i32_0 : i32, i32
  }
  func.func @transform_9(%arg0: i32) -> (i32, i32) {
    %c0_i32 = arith.constant 0 : i32
    %c0_i32_0 = arith.constant 0 : i32
    %c0_i32_1 = arith.constant 0 : i32
    return %c0_i32, %c0_i32_0 : i32, i32
  }
  func.func @transform_10(%arg0: i32) -> (i32, i32) {
    %c0_i32 = arith.constant 0 : i32
    %c0_i32_0 = arith.constant 0 : i32
    %c0_i32_1 = arith.constant 0 : i32
    return %c0_i32, %c0_i32_0 : i32, i32
  }
  func.func @transform_11(%arg0: i32) -> (i32, i32) {
    %c0_i32 = arith.constant 0 : i32
    %c0_i32_0 = arith.constant 0 : i32
    %c0_i32_1 = arith.constant 0 : i32
    return %c0_i32, %c0_i32_0 : i32, i32
  }
  func.func @transform_12(%arg0: i32) -> (i32, i32) {
    %c0_i32 = arith.constant 0 : i32
    %c0_i32_0 = arith.constant 0 : i32
    %c0_i32_1 = arith.constant 0 : i32
    return %c0_i32, %c0_i32_0 : i32, i32
  }
  func.func @transform_13(%arg0: i32) -> (i32, i32) {
    %c0_i32 = arith.constant 0 : i32
    %c0_i32_0 = arith.constant 0 : i32
    %c0_i32_1 = arith.constant 0 : i32
    return %c0_i32, %c0_i32_0 : i32, i32
  }
  func.func @transform_14(%arg0: i32) -> (i32, i32) {
    %c0_i32 = arith.constant 0 : i32
    %c0_i32_0 = arith.constant 0 : i32
    %c0_i32_1 = arith.constant 0 : i32
    return %c0_i32, %c0_i32_0 : i32, i32
  }
  func.func @transform_15(%arg0: i32) -> (i32, i32) {
    %c0_i32 = arith.constant 0 : i32
    %c0_i32_0 = arith.constant 0 : i32
    %c0_i32_1 = arith.constant 0 : i32
    return %c0_i32, %c0_i32_0 : i32, i32
  }
  func.func @transform_16(%arg0: i32) -> (i32, i32) {
    %c0_i32 = arith.constant 0 : i32
    %c0_i32_0 = arith.constant 0 : i32
    %c0_i32_1 = arith.constant 0 : i32
    return %c0_i32, %c0_i32_0 : i32, i32
  }
  func.func @transform_17(%arg0: i32) -> (i32, i32) {
    %c0_i32 = arith.constant 0 : i32
    %c0_i32_0 = arith.constant 0 : i32
    %c0_i32_1 = arith.constant 0 : i32
    return %c0_i32, %c0_i32_0 : i32, i32
  }
  func.func @transform_18(%arg0: i32) -> (i32, i32) {
    %c0_i32 = arith.constant 0 : i32
    %c0_i32_0 = arith.constant 0 : i32
    %c0_i32_1 = arith.constant 0 : i32
    return %c0_i32, %c0_i32_0 : i32, i32
  }
  func.func @transform_19(%arg0: i32) -> (i32, i32) {
    %c0_i32 = arith.constant 0 : i32
    %c0_i32_0 = arith.constant 0 : i32
    %c0_i32_1 = arith.constant 0 : i32
    return %c0_i32, %c0_i32_0 : i32, i32
  }
  func.func @transform_20(%arg0: i32) -> (i32, i32) {
    %c0_i32 = arith.constant 0 : i32
    %c0_i32_0 = arith.constant 0 : i32
    %c0_i32_1 = arith.constant 0 : i32
    return %c0_i32, %c0_i32_0 : i32, i32
  }
  func.func @transform_21(%arg0: i32) -> (i32, i32) {
    %c0_i32 = arith.constant 0 : i32
    %c0_i32_0 = arith.constant 0 : i32
    %c0_i32_1 = arith.constant 0 : i32
    return %c0_i32, %c0_i32_0 : i32, i32
  }
  func.func @transform_22(%arg0: i32) -> (i32, i32) {
    %c0_i32 = arith.constant 0 : i32
    %c0_i32_0 = arith.constant 0 : i32
    %c0_i32_1 = arith.constant 0 : i32
    return %c0_i32, %c0_i32_0 : i32, i32
  }
  func.func @transform_23(%arg0: i32) -> (i32, i32) {
    %c0_i32 = arith.constant 0 : i32
    %c0_i32_0 = arith.constant 0 : i32
    %c0_i32_1 = arith.constant 0 : i32
    return %c0_i32, %c0_i32_0 : i32, i32
  }
  func.func @transform_24(%arg0: i32) -> (i32, i32) {
    %c0_i32 = arith.constant 0 : i32
    %c0_i32_0 = arith.constant 0 : i32
    %c0_i32_1 = arith.constant 0 : i32
    return %c0_i32, %c0_i32_0 : i32, i32
  }
  func.func @transform_25(%arg0: i32) -> (i32, i32) {
    %c0_i32 = arith.constant 0 : i32
    %c0_i32_0 = arith.constant 0 : i32
    %c0_i32_1 = arith.constant 0 : i32
    return %c0_i32, %c0_i32_0 : i32, i32
  }
  func.func @transform_26(%arg0: i32) -> (i32, i32) {
    %c0_i32 = arith.constant 0 : i32
    %c0_i32_0 = arith.constant 0 : i32
    %c0_i32_1 = arith.constant 0 : i32
    return %c0_i32, %c0_i32_0 : i32, i32
  }
  func.func @transform_27(%arg0: i32) -> (i32, i32) {
    %c0_i32 = arith.constant 0 : i32
    %c0_i32_0 = arith.constant 0 : i32
    %c0_i32_1 = arith.constant 0 : i32
    return %c0_i32, %c0_i32_0 : i32, i32
  }
  func.func @transform_28(%arg0: i32) -> (i32, i32) {
    %c0_i32 = arith.constant 0 : i32
    %c0_i32_0 = arith.constant 0 : i32
    %c0_i32_1 = arith.constant 0 : i32
    return %c0_i32, %c0_i32_0 : i32, i32
  }
  func.func @transform_29(%arg0: i32) -> (i32, i32) {
    %c0_i32 = arith.constant 0 : i32
    %c0_i32_0 = arith.constant 0 : i32
    %c0_i32_1 = arith.constant 0 : i32
    return %c0_i32, %c0_i32_0 : i32, i32
  }
  func.func @transform_30(%arg0: i32) -> (i32, i32) {
    %c0_i32 = arith.constant 0 : i32
    %c0_i32_0 = arith.constant 0 : i32
    %c0_i32_1 = arith.constant 0 : i32
    return %c0_i32, %c0_i32_0 : i32, i32
  }
  func.func @transform_31(%arg0: i32) -> (i32, i32) {
    %c0_i32 = arith.constant 0 : i32
    %c0_i32_0 = arith.constant 0 : i32
    %c0_i32_1 = arith.constant 0 : i32
    return %c0_i32, %c0_i32_0 : i32, i32
  }
  func.func @transform_32(%arg0: i32) -> (i32, i32) {
    %c0_i32 = arith.constant 0 : i32
    %c0_i32_0 = arith.constant 0 : i32
    %c0_i32_1 = arith.constant 0 : i32
    return %c0_i32, %c0_i32_0 : i32, i32
  }
  func.func @transform_33(%arg0: i32) -> (i32, i32) {
    %c0_i32 = arith.constant 0 : i32
    %c0_i32_0 = arith.constant 0 : i32
    %c0_i32_1 = arith.constant 0 : i32
    return %c0_i32, %c0_i32_0 : i32, i32
  }
  func.func @transform_34(%arg0: i32) -> (i32, i32) {
    %c0_i32 = arith.constant 0 : i32
    %c0_i32_0 = arith.constant 0 : i32
    %c0_i32_1 = arith.constant 0 : i32
    return %c0_i32, %c0_i32_0 : i32, i32
  }
}

</mosaic_0001>

<bundles_post_ra>
// kernel: tpu_custom_call.1
= control target key start
LH: loop header
LB: loop body
LE: loop exit
PB: predicated region body
PF: predicated region fallthrough
CT: control target
= control target key end

     0   :  { %s16468_s6 = smov 1   ;;  %s16469_s10 = smov 2   ;;  %s19526_s0 = inlined_call_operand.smem [shape: u32[35], index: -1, kind: input, shape index: {}] }
   0x1   :  { %s16525_s5 = sld [smem:[%s19526_s0]]   ;;  %s16470_s14 = smov 3  }
   0x2   :  { %s16530_s9 = sld [smem:[%s19526_s0 + %s16468_s6]]   ;;  %s16471_s18 = smov 4  }
   0x3   :  { %s16535_s13 = sld [smem:[%s19526_s0 + %s16469_s10]]   ;;  %s16472_s22 = smov 5  }
   0x4   :  { %s16540_s17 = sld [smem:[%s19526_s0 + %s16470_s14]]   ;;  %s16473_s26 = smov 6  }
   0x5   :  { %s16545_s21 = sld [smem:[%s19526_s0 + %s16471_s18]]   ;;  %s16474_s30 = smov 7  }
   0x6   :  { %s16550_s25 = sld [smem:[%s19526_s0 + %s16472_s22]]   ;;  %s16475_s4 = smov 8  }
   0x7   :  { %s16555_s29 = sld [smem:[%s19526_s0 + %s16473_s26]]   ;;  %s16476_s10 = smov 9  }
   0x8   :  { %s16560_s3 = sld [smem:[%s19526_s0 + %s16474_s30]]   ;;  %s16477_s15 = smov 10  }
   0x9   :  { %19659 = sst [smem:[#allocation30_spill]] %s16535_s13  ;;  %s16478_s20 = smov 11  }
   0xa   :  { %s16565_s8 = sld [smem:[%s19526_s0 + %s16475_s4]]   ;;  %s16479_s26 = smov 12  }
   0xb   :  { %s16570_s14 = sld [smem:[%s19526_s0 + %s16476_s10]]   ;;  %s16480_s1 = smov 13  }
   0xc   :  { %s16575_s19 = sld [smem:[%s19526_s0 + %s16477_s15]]   ;;  %s16481_s7 = smov 14  }
   0xd   :  { %s16580_s24 = sld [smem:[%s19526_s0 + %s16478_s20]]   ;;  %s16482_s15 = smov 15  }
   0xe   :  { %s16585_s30 = sld [smem:[%s19526_s0 + %s16479_s26]]   ;;  %s16483_s22 = smov 16  }
   0xf   :  { %s16590_s6 = sld [smem:[%s19526_s0 + %s16480_s1]]   ;;  %s16484_s28 = smov 17  }
  0x10   :  { %s16595_s12 = sld [smem:[%s19526_s0 + %s16481_s7]]   ;;  %s16485_s7 = smov 18  }
  0x11   :  { %s16600_s20 = sld [smem:[%s19526_s0 + %s16482_s15]]   ;;  %s16486_s15 = smov 19  }
  0x12   :  { %s16605_s27 = sld [smem:[%s19526_s0 + %s16483_s22]]   ;;  %s16487_s22 = smov 20  }
  0x13   :  { %s16610_s4 = sld [smem:[%s19526_s0 + %s16484_s28]]   ;;  %s16488_s28 = smov 21  }
  0x14   :  { %s16615_s13 = sld [smem:[%s19526_s0 + %s16485_s7]]   ;;  %s16489_s7 = smov 22  }
  0x15   :  { %19660 = sst [smem:[#allocation31_spill]] %s16590_s6 }
  0x16   :  { %19661 = sst [smem:[#allocation32_spill]] %s16595_s12 }
  0x17   :  { %s16620_s12 = sld [smem:[%s19526_s0 + %s16486_s15]]   ;;  %s16490_s15 = smov 23  }
  0x18   :  { %s16625_s6 = sld [smem:[%s19526_s0 + %s16487_s22]]   ;;  %s16491_s22 = smov 24  }
  0x19   :  { %19662 = sst [smem:[#allocation33_spill]] %s16610_s4 }
  0x1a   :  { %19663 = sst [smem:[#allocation34_spill]] %s16615_s13 }
  0x1b   :  { %s16630_s4 = sld [smem:[%s19526_s0 + %s16488_s28]]   ;;  %s16492_s28 = smov 25  }
  0x1c   :  { %s16635_s13 = sld [smem:[%s19526_s0 + %s16489_s7]]   ;;  %s16493_s7 = smov 26  }
  0x1d   :  { %19664 = sst [smem:[#allocation35_spill]] %s16620_s12 }
  0x1e   :  { %19665 = sst [smem:[#allocation36_spill]] %s16625_s6 }
  0x1f   :  { %s16640_s12 = sld [smem:[%s19526_s0 + %s16490_s15]]   ;;  %s16494_s15 = smov 27  }
  0x20   :  { %s16645_s6 = sld [smem:[%s19526_s0 + %s16491_s22]]   ;;  %s16495_s22 = smov 28  }
  0x21   :  { %19666 = sst [smem:[#allocation37_spill]] %s16630_s4 }
  0x22   :  { %19667 = sst [smem:[#allocation38_spill]] %s16635_s13 }
  0x23   :  { %s16650_s4 = sld [smem:[%s19526_s0 + %s16492_s28]]   ;;  %s16496_s28 = smov 29  }
  0x24   :  { %s16655_s13 = sld [smem:[%s19526_s0 + %s16493_s7]]   ;;  %s16497_s7 = smov 30  }
  0x25   :  { %19668 = sst [smem:[#allocation39_spill]] %s16640_s12 }
  0x26   :  { %19669 = sst [smem:[#allocation40_spill]] %s16645_s6 }
  0x27   :  { %s16660_s12 = sld [smem:[%s19526_s0 + %s16494_s15]]   ;;  %s16498_s15 = smov 31  }
  0x28   :  { %s16665_s6 = sld [smem:[%s19526_s0 + %s16495_s22]]   ;;  %s16499_s22 = smov 32  }
  0x29   :  { %19670 = sst [smem:[#allocation41_spill]] %s16650_s4 }
  0x2a   :  { %19671 = sst [smem:[#allocation42_spill]] %s16655_s13 }
  0x2b   :  { %s16670_s4 = sld [smem:[%s19526_s0 + %s16496_s28]]   ;;  %s16500_s28 = smov 33  }
  0x2c   :  { %s16675_s13 = sld [smem:[%s19526_s0 + %s16497_s7]]   ;;  %s16501_s7 = smov 34  }
  0x2d   :  { %19672 = sst [smem:[#allocation43_spill]] %s16660_s12 }
  0x2e   :  { %19673 = sst [smem:[#allocation44_spill]] %s16665_s6 }
  0x2f   :  { %s16680_s12 = sld [smem:[%s19526_s0 + %s16498_s15]]  }
  0x30   :  { %s16685_s6 = sld [smem:[%s19526_s0 + %s16499_s22]]  }
  0x31   :  { %19674 = sst [smem:[#allocation45_spill]] %s16670_s4 }
  0x32   :  { %19675 = sst [smem:[#allocation46_spill]] %s16675_s13 }
  0x33   :  { %s16690_s4 = sld [smem:[%s19526_s0 + %s16500_s28]]  }
  0x34   :  { %s16695_s13 = sld [smem:[%s19526_s0 + %s16501_s7]]  }
  0x35   :  { %74 = vsyncpa [#allocation9], 0 }
  0x36   :  { %75 = vsyncpa [#allocation12], 0 }
  0x37   :  { %76 = vsyncpa [#allocation15], 0 }
  0x38   :  { %77 = vsyncpa [#allocation18], 0 }
  0x39   :  { %78 = vsyncpa [#allocation21], 0 }
  0x3a   :  { %79 = vsyncpa [#allocation10], 0  ;;  %s16502_s15 = smov [#allocation11]   ;;  %s16236_s18 = scalar_lea.hbm %s16555_s29, 16 }
  0x3b   :  { %s106_s16 = sshll.u32 %s16502_s15, 4  ;;  %p16237_p0 = scmp.ne.s32.totalorder %s16555_s29, %s16236_s18  ;;  %s107_s16 = int_to_ptr.vmem [resolvable:$true] %s106_s16 }
  0x3c   :  { %p16240_p1 = scmp.lt.u32.totalorder %s16236_s18, %s16555_s29 }
  0x3e   :  { %p16242_p2 = pnand %p16240_p1, %p16237_p0 }
  0x40   :  { %16245 = shalt.err (!%p16242_p2)
}
  0x41   :  { %s16246_s22 = scalar_lea.vmem %s107_s16, 16  ;;  %s16250_s0 = scalar_lea.vmem %s107_s16, 32 }
  0x42   :  { %p16247_p3 = scmp.ne.s32.totalorder %s107_s16, %s16246_s22  ;;  %p16251_p4 = scmp.lt.s32.totalorder %s107_s16, %s107_s16 }
  0x43   :  { %p16252_p5 = scmp.lt.s32.totalorder %s16250_s0, %s16246_s22 }
  0x45   :  { %p16253_p6 = por %p16252_p5, %p16251_p4 }
  0x47   :  { %p16254_p7 = pnand %p16253_p6, %p16247_p3 }
  0x49   :  { %16257 = shalt.err (!%p16254_p7)
}
  0x4a   :  { %109 = dma.hbm_to_vmem [thread:$0]  %s16555_s29, 16, %s107_s16, [#allocation12]  }
  0x4b   :  { %s16503_s23 = smov [#allocation14]   ;;  %s16504_s28 = smov [#allocation17]  }
  0x4c   :  { %s127_s26 = sshll.u32 %s16503_s23, 4  ;;  %s151_s1 = sshll.u32 %s16504_s28, 4  ;;  %s128_s26 = int_to_ptr.vmem [resolvable:$true] %s127_s26  ;;  %s152_s1 = int_to_ptr.vmem [resolvable:$true] %s151_s1 }
  0x4d   :  { %s16258_s2 = scalar_lea.hbm %s16565_s8, 6144 }
  0x4e   :  { %p16259_p8 = scmp.ne.s32.totalorder %s16565_s8, %s16258_s2  ;;  %p16262_p9 = scmp.lt.u32.totalorder %s16258_s2, %s16565_s8 }
  0x50   :  { %p16264_p10 = pnand %p16262_p9, %p16259_p8 }
  0x52   :  { %16267 = shalt.err (!%p16264_p10)
}
  0x53   :  { %s16268_s7 = scalar_lea.vmem %s128_s26, 6144  ;;  %p16273_p12 = scmp.lt.s32.totalorder %s128_s26, %s128_s26 }
  0x54   :  { %p16269_p11 = scmp.ne.s32.totalorder %s128_s26, %s16268_s7  ;;  %p16274_p13 = scmp.lt.s32.totalorder %s16268_s7, %s16268_s7 }
  0x56   :  { %p16275_p0 = por %p16274_p13, %p16273_p12 }
  0x58   :  { %p16276_p1 = pnand %p16275_p0, %p16269_p11 }
  0x5a   :  { %16279 = shalt.err (!%p16276_p1)
}
  0x5b   :  { %s16505_s10 = smov 384   ;;  %s16506_s29 = smov 24  }
  0x5c   :  { %133 = dma.hbm_to_vmem [thread:$0]  %s16565_s8, 6144, %s128_s26, [#allocation15], %s16505_s10, %s16505_s10, %s16506_s29  }
  0x5d   :  { %s16280_s11 = scalar_lea.hbm %s16580_s24, 6144 }
  0x5e   :  { %p16281_p2 = scmp.ne.s32.totalorder %s16580_s24, %s16280_s11  ;;  %p16284_p3 = scmp.lt.u32.totalorder %s16280_s11, %s16580_s24 }
  0x60   :  { %p16286_p4 = pnand %p16284_p3, %p16281_p2 }
  0x62   :  { %16289 = shalt.err (!%p16286_p4)
}
  0x63   :  { %s16290_s15 = scalar_lea.vmem %s152_s1, 6144  ;;  %p16295_p6 = scmp.lt.s32.totalorder %s152_s1, %s152_s1 }
  0x64   :  { %p16291_p5 = scmp.ne.s32.totalorder %s152_s1, %s16290_s15  ;;  %p16296_p7 = scmp.lt.s32.totalorder %s16290_s15, %s16290_s15 }
  0x66   :  { %p16297_p8 = por %p16296_p7, %p16295_p6 }
  0x68   :  { %p16298_p9 = pnand %p16297_p8, %p16291_p5 }
  0x6a   :  { %16301 = shalt.err (!%p16298_p9)
}
  0x6b   :  { %157 = dma.hbm_to_vmem [thread:$0]  %s16580_s24, 6144, %s152_s1, [#allocation18], %s16505_s10, %s16505_s10, %s16506_s29  }
  0x6c   :  { %s16507_s8 = smov [#allocation20]   ;;  %s16508_s18 = smov [#allocation8]  }
  0x6d   :  { %s179_s16 = sshll.u32 %s16507_s8, 4  ;;  %s96_s22 = sshll.u32 %s16508_s18, 4  ;;  %s180_s16 = int_to_ptr.vmem [resolvable:$true] %s179_s16  ;;  %s97_s22 = int_to_ptr.vmem [resolvable:$true] %s96_s22 }
  0x6e   :  { %s16302_s0 = scalar_lea.hbm %s16600_s20, 6144 }
  0x6f   :  { %p16303_p10 = scmp.ne.s32.totalorder %s16600_s20, %s16302_s0  ;;  %p16306_p11 = scmp.lt.u32.totalorder %s16302_s0, %s16600_s20 }
  0x71   :  { %p16308_p12 = pnand %p16306_p11, %p16303_p10 }
  0x73   :  { %16311 = shalt.err (!%p16308_p12)
}
  0x74   :  { %s16312_s23 = scalar_lea.vmem %s180_s16, 6144  ;;  %p16317_p0 = scmp.lt.s32.totalorder %s180_s16, %s180_s16 }
  0x75   :  { %p16313_p13 = scmp.ne.s32.totalorder %s180_s16, %s16312_s23  ;;  %p16318_p1 = scmp.lt.s32.totalorder %s16312_s23, %s16312_s23 }
  0x77   :  { %p16319_p2 = por %p16318_p1, %p16317_p0 }
  0x79   :  { %p16320_p3 = pnand %p16319_p2, %p16313_p13 }
  0x7b   :  { %16323 = shalt.err (!%p16320_p3)
}
  0x7c   :  { %185 = dma.hbm_to_vmem [thread:$0]  %s16600_s20, 6144, %s180_s16, [#allocation21], %s16505_s10, %s16505_s10, %s16506_s29  }
  0x7d   :  { %s16324_s24 = scalar_lea.hbm %s16550_s25, 48 }
  0x7e   :  { %p16325_p4 = scmp.ne.s32.totalorder %s16550_s25, %s16324_s24  ;;  %p16328_p5 = scmp.lt.u32.totalorder %s16324_s24, %s16550_s25 }
  0x80   :  { %p16330_p6 = pnand %p16328_p5, %p16325_p4 }
  0x82   :  { %16333 = shalt.err (!%p16330_p6)
}
  0x83   :  { %s16334_s26 = scalar_lea.vmem %s97_s22, 48  ;;  %s16338_s28 = scalar_lea.vmem %s97_s22, 64 }
  0x84   :  { %p16335_p7 = scmp.ne.s32.totalorder %s97_s22, %s16334_s26  ;;  %p16339_p8 = scmp.lt.s32.totalorder %s97_s22, %s97_s22 }
  0x85   :  { %p16340_p9 = scmp.lt.s32.totalorder %s16338_s28, %s16334_s26 }
  0x87   :  { %p16341_p10 = por %p16340_p9, %p16339_p8 }
  0x89   :  { %p16342_p11 = pnand %p16341_p10, %p16335_p7 }
  0x8b   :  { %16345 = shalt.err (!%p16342_p11)
}
  0x8c   :  { %99 = dma.hbm_to_vmem [thread:$0]  %s16550_s25, 48, %s97_s22, [#allocation9]  }
  0x8d   :  { %s16509_s20 = smov [#allocation13]   ;;  %s16510_s2 = smov [#allocation16]  }
  0x8e   :  { %s115_s1 = sshll.u32 %s16509_s20, 4  ;;  %s142_s7 = sshll.u32 %s16510_s2, 4  ;;  %s116_s1 = int_to_ptr.vmem [resolvable:$true] %s115_s1  ;;  %s143_s7 = int_to_ptr.vmem [resolvable:$true] %s142_s7 }
  0x8f   :  { %s16346_s11 = scalar_lea.hbm %s16560_s3, 6144 }
  0x90   :  { %p16347_p12 = scmp.ne.s32.totalorder %s16560_s3, %s16346_s11  ;;  %p16350_p13 = scmp.lt.u32.totalorder %s16346_s11, %s16560_s3 }
  0x92   :  { %p16352_p0 = pnand %p16350_p13, %p16347_p12 }
  0x94   :  { %16355 = shalt.err (!%p16352_p0)
}
  0x95   :  { %s16356_s15 = scalar_lea.vmem %s116_s1, 6144  ;;  %p16361_p2 = scmp.lt.s32.totalorder %s116_s1, %s116_s1 }
  0x96   :  { %p16357_p1 = scmp.ne.s32.totalorder %s116_s1, %s16356_s15  ;;  %p16362_p3 = scmp.lt.s32.totalorder %s16356_s15, %s16356_s15 }
  0x98   :  { %p16363_p4 = por %p16362_p3, %p16361_p2 }
  0x9a   :  { %p16364_p5 = pnand %p16363_p4, %p16357_p1 }
  0x9c   :  { %16367 = shalt.err (!%p16364_p5)
}
  0x9d   :  { %121 = dma.hbm_to_vmem [thread:$0]  %s16560_s3, 6144, %s116_s1, [#allocation12], %s16505_s10, %s16505_s10, %s16506_s29  }
  0x9e   :  { %s16368_s25 = scalar_lea.hbm %s16575_s19, 16 }
  0x9f   :  { %p16369_p6 = scmp.ne.s32.totalorder %s16575_s19, %s16368_s25  ;;  %p16372_p7 = scmp.lt.u32.totalorder %s16368_s25, %s16575_s19 }
  0xa1   :  { %p16374_p8 = pnand %p16372_p7, %p16369_p6 }
  0xa3   :  { %16377 = shalt.err (!%p16374_p8)
}
  0xa4   :  { %s16378_s8 = scalar_lea.vmem %s143_s7, 16  ;;  %s16382_s16 = scalar_lea.vmem %s143_s7, 32 }
  0xa5   :  { %p16379_p9 = scmp.ne.s32.totalorder %s143_s7, %s16378_s8  ;;  %p16383_p10 = scmp.lt.s32.totalorder %s143_s7, %s143_s7 }
  0xa6   :  { %p16384_p11 = scmp.lt.s32.totalorder %s16382_s16, %s16378_s8 }
  0xa8   :  { %p16385_p12 = por %p16384_p11, %p16383_p10 }
  0xaa   :  { %p16386_p13 = pnand %p16385_p12, %p16379_p9 }
  0xac   :  { %16389 = shalt.err (!%p16386_p13)
}
  0xad   :  { %145 = dma.hbm_to_vmem [thread:$0]  %s16575_s19, 16, %s143_s7, [#allocation15]  }
  0xae   :  { %s16511_s3 = smov [#allocation19]   ;;  %s16512_s22 = smov [#allocation22]  }
  0xaf   :  { %s163_s18 = sshll.u32 %s16511_s3, 4  ;;  %s191_s0 = sshll.u32 %s16512_s22, 4  ;;  %s164_s18 = int_to_ptr.vmem [resolvable:$true] %s163_s18  ;;  %s192_s0 = int_to_ptr.vmem [resolvable:$true] %s191_s0 }
  0xb0   :  { %s16390_s23 = scalar_lea.hbm %s16585_s30, 6144 }
  0xb1   :  { %p16391_p0 = scmp.ne.s32.totalorder %s16585_s30, %s16390_s23  ;;  %p16394_p1 = scmp.lt.u32.totalorder %s16390_s23, %s16585_s30 }
  0xb3   :  { %p16396_p2 = pnand %p16394_p1, %p16391_p0 }
  0xb5   :  { %16399 = shalt.err (!%p16396_p2)
}
  0xb6   :  { %s16400_s24 = scalar_lea.vmem %s164_s18, 6144  ;;  %p16405_p4 = scmp.lt.s32.totalorder %s164_s18, %s164_s18 }
  0xb7   :  { %p16401_p3 = scmp.ne.s32.totalorder %s164_s18, %s16400_s24  ;;  %p16406_p5 = scmp.lt.s32.totalorder %s16400_s24, %s16400_s24 }
  0xb9   :  { %p16407_p6 = por %p16406_p5, %p16405_p4 }
  0xbb   :  { %p16408_p7 = pnand %p16407_p6, %p16401_p3 }
  0xbd   :  { %16411 = shalt.err (!%p16408_p7)
}
  0xbe   :  { %169 = dma.hbm_to_vmem [thread:$0]  %s16585_s30, 6144, %s164_s18, [#allocation18], %s16505_s10, %s16505_s10, %s16506_s29  }
  0xbf   :  { %s16412_s19 = scalar_lea.hbm %s16605_s27, 6144 }
  0xc0   :  { %p16413_p8 = scmp.ne.s32.totalorder %s16605_s27, %s16412_s19  ;;  %p16416_p9 = scmp.lt.u32.totalorder %s16412_s19, %s16605_s27 }
  0xc2   :  { %p16418_p10 = pnand %p16416_p9, %p16413_p8 }
  0xc4   :  { %16421 = shalt.err (!%p16418_p10)
}
  0xc5   :  { %s16422_s26 = scalar_lea.vmem %s192_s0, 6144  ;;  %p16427_p12 = scmp.lt.s32.totalorder %s192_s0, %s192_s0 }
  0xc6   :  { %p16423_p11 = scmp.ne.s32.totalorder %s192_s0, %s16422_s26  ;;  %p16428_p13 = scmp.lt.s32.totalorder %s16422_s26, %s16422_s26 }
  0xc8   :  { %p16429_p0 = por %p16428_p13, %p16427_p12 }
  0xca   :  { %p16430_p1 = pnand %p16429_p0, %p16423_p11 }
  0xcc   :  { %16433 = shalt.err (!%p16430_p1)
}
  0xcd   :  { %197 = dma.hbm_to_vmem [thread:$0]  %s16605_s27, 6144, %s192_s0, [#allocation21], %s16505_s10, %s16505_s10, %s16506_s29  }
  0xce   :  { %16456 = dma.done.wait [#allocation9], 48  }
  0xcf   :  { %16457 = vsyncadd [#allocation9], 4294967248 }
  0xd0   :  { %16458 = dma.done.wait [#allocation12], 6160  }
  0xd1   :  { %16459 = vsyncadd [#allocation12], 4294961136 }
  0xd2   :  { %16460 = dma.done.wait [#allocation15], 6160  }
  0xd3   :  { %16461 = vsyncadd [#allocation15], 4294961136 }
  0xd4   :  { %16462 = dma.done.wait [#allocation18], 12288  }
  0xd5   :  { %16463 = vsyncadd [#allocation18], 4294955008 }
  0xd6   :  { %16464 = dma.done.wait [#allocation21], 12288  }
  0xd7   :  { %16465 = vsyncadd [#allocation21], 4294955008  ;;  %v19538_v0 = vmov 0.0   ;;  %v270_v1 = vld [vmem:[%s16540_s17 + $0x8] sm:$0xff]  ;;  %v273_v2 = vld [vmem:[%s16540_s17 + $0x20] sm:$0xff]  ;;  %vm16515_vm0 = vmmov 0  }
  0xd8   :  { %398 = vmatprep.mubr.f32.mxu0 %v19538_v0  ;;  %v271_v3 = vld [vmem:[%s16540_s17 + $0x10] sm:$0xff]  ;;  %v12978_v4 = vpack.c.bf16 %v273_v2, %v270_v1  ;;  %v274_v5 = vld [vmem:[%s16540_s17 + $0x28] sm:$0xff]  ;;  %v269_v6 = vld [vmem:[%s16540_s17] sm:$0xff]  ;;  %s20016_s30 = sld [smem:[#allocation35_spill]]  ;;  %s20017_s27 = sld [smem:[#allocation41_spill]]  ;;  %vm8939_vm1 = vcmask 130048  }
  0xd9   :  { %v272_v7 = vld [vmem:[%s16540_s17 + $0x18] sm:$0xff]  ;;  %v13010_v8 = vpack.c.bf16 %v274_v5, %v271_v3  ;;  %v279_v11 = vld [vmem:[%s16540_s17 + $0x50] sm:$0xff]  ;;  %v277_v12 = vld [vmem:[%s16540_s17 + $0x40] sm:$0xff]  ;;  %s20027_s10 = sld [smem:[#allocation40_spill]]  ;;  %s20031_s29 = sld [smem:[#allocation46_spill]]  ;;  %vm9095_vm2 = vcmask 31744  }
  0xda   :  { %v12980_v9 = vpack.c.bf16 %v272_v7, %v269_v6  ;;  %v276_v10 = vld [vmem:[%s16540_s17 + $0x38] sm:$0xff]  ;;  %12979 = vmatprep.subr.bf16.mxu0 %v12978_v4  ;;  %v275_v15 = vld [vmem:[%s16540_s17 + $0x30] sm:$0xff]  ;;  %v278_v16 = vld [vmem:[%s16540_s17 + $0x48] sm:$0xff]  ;;  %s20032_s28 = sld [smem:[#allocation38_spill]]  ;;  %s20033_s20 = sld [smem:[#allocation43_spill]]  ;;  %vm9890_vm3 = vcmask 0  }
  0xdb   :  { %v12982_v13 = vpack.c.bf16 %v279_v11, %v276_v10  ;;  %v280_v14 = vld [vmem:[%s16540_s17 + $0x58] sm:$0xff]  ;;  %13011 = vmatprep.subr.bf16.mxu1 %v13010_v8  ;;  %v12984_v18 = vpack.c.bf16 %v278_v16, %v275_v15  ;;  %v282_v19 = vld [vmem:[%s16540_s17 + $0x68] sm:$0xff]  ;;  %v285_v20 = vld [vmem:[%s16540_s17 + $0x80] sm:$0xff]  ;;  %s20034_s1 = sld [smem:[#allocation37_spill]]  ;;  %s20035_s2 = sld [smem:[#allocation42_spill]] }
  0xdc   :  { %12981 = vmatpush1.bf16.msra.mxu0 %v12980_v9  ;;  %v13014_v17 = vpack.c.bf16 %v280_v14, %v277_v12  ;;  %v283_v21 = vld [vmem:[%s16540_s17 + $0x70] sm:$0xff]  ;;  %13013 = vmatpush3.bf16.msra.mxu1 %v13010_v8  ;;  %v12986_v22 = vpack.c.bf16 %v285_v20, %v282_v19  ;;  %v286_v23 = vld [vmem:[%s16540_s17 + $0x88] sm:$0xff]  ;;  %v281_v24 = vld [vmem:[%s16540_s17 + $0x60] sm:$0xff]  ;;  %s20036_s7 = sld [smem:[#allocation45_spill]]  ;;  %s20037_s11 = sld [smem:[#allocation39_spill]] }
  0xdd   :  { %12983 = vmatprep.subr.bf16.mxu0 %v12982_v13  ;;  %v284_v25 = vld [vmem:[%s16540_s17 + $0x78] sm:$0xff]  ;;  %v13018_v26 = vpack.c.bf16 %v286_v23, %v283_v21  ;;  %v291_v28 = vld [vmem:[%s16540_s17 + $0xb0] sm:$0xff]  ;;  %v289_v29 = vld [vmem:[%s16540_s17 + $0xa0] sm:$0xff]  ;;  %s20038_s15 = sld [smem:[#allocation30_spill]]  ;;  %s16516_s25 = smov [#allocation23]  }
  0xde   :  { %13015 = vmatprep.subr.bf16.mxu1 %v13014_v17  ;;  %v288_v27 = vld [vmem:[%s16540_s17 + $0x98] sm:$0xff]  ;;  %v12988_v31 = vpack.c.bf16 %v284_v25, %v281_v24  ;;  %v287_v33 = vld [vmem:[%s16540_s17 + $0x90] sm:$0xff]  ;;  %v290_v34 = vld [vmem:[%s16540_s17 + $0xa8] sm:$0xff]  ;;  %s9898_s8 = sshll.u32 %s16516_s25, 4  ;;  %s9899_s8 = int_to_ptr.vmem [resolvable:$true] %s9898_s8 }
  0xdf   :  { %v292_v30 = vld [vmem:[%s16540_s17 + $0xb8] sm:$0xff]  ;;  %v12990_v32 = vpack.c.bf16 %v291_v28, %v288_v27  ;;  %v294_v36 = vld [vmem:[%s16540_s17 + $0xc8] sm:$0xff]  ;;  %v297_v37 = vld [vmem:[%s16540_s17 + $0xe0] sm:$0xff]  ;;  %v12992_v40 = vpack.c.bf16 %v290_v34, %v287_v33  ;;  %s16434_s3 = scalar_lea.vmem %s9899_s8, 16  ;;  %s16438_s18 = scalar_lea.vmem %s9899_s8, 32 }
  0xe0   :  { %12985 = vmatpush1.bf16.msra.mxu0 %v12984_v18  ;;  %13017 = vmatpush3.bf16.msra.mxu1 %v13014_v17  ;;  %v13022_v35 = vpack.c.bf16 %v292_v30, %v289_v29  ;;  %v295_v38 = vld [vmem:[%s16540_s17 + $0xd0] sm:$0xff]  ;;  %v298_v39 = vld [vmem:[%s16540_s17 + $0xe8] sm:$0xff]  ;;  %v12994_v41 = vpack.c.bf16 %v297_v37, %v294_v36  ;;  %v293_v42 = vld [vmem:[%s16540_s17 + $0xc0] sm:$0xff]  ;;  %p16435_p2 = scmp.ne.s32.totalorder %s9899_s8, %s16434_s3  ;;  %p16439_p3 = scmp.lt.s32.totalorder %s9899_s8, %s9899_s8 }
  0xe1   :  { %12987 = vmatprep.subr.bf16.mxu0 %v12986_v22  ;;  %13019 = vmatprep.subr.bf16.mxu1 %v13018_v26  ;;  %v296_v43 = vld [vmem:[%s16540_s17 + $0xd8] sm:$0xff]  ;;  %v13026_v44 = vpack.c.bf16 %v298_v39, %v295_v38  ;;  %v303_v46 = vld [vmem:[%s16540_s17 + $0x110] sm:$0xff]  ;;  %v301_v47 = vld [vmem:[%s16540_s17 + $0x100] sm:$0xff]  ;;  %p16440_p4 = scmp.lt.s32.totalorder %s16438_s18, %s16434_s3 }
  0xe2   :  { %v300_v45 = vld [vmem:[%s16540_s17 + $0xf8] sm:$0xff]  ;;  %v12996_v49 = vpack.c.bf16 %v296_v43, %v293_v42  ;;  %v16787_v50 = vld [vmem:[%s16525_s5] sm:$0xff]  ;;  %v299_v52 = vld [vmem:[%s16540_s17 + $0xf0] sm:$0xff] }
  0xe3   :  { %v304_v48 = vld [vmem:[%s16540_s17 + $0x118] sm:$0xff]  ;;  %v12998_v51 = vpack.c.bf16 %v303_v46, %v300_v45  ;;  %v302_v53 = vld [vmem:[%s16540_s17 + $0x108] sm:$0xff]  ;;  %v309_v56 = vld [vmem:[%s16540_s17 + $0x140] sm:$0xff]  ;;  %11047 = vmatprep.mubr.f32.mxu1 %v16787_v50  ;;  %p16441_p5 = por %p16440_p4, %p16439_p3 }
  0xe4   :  { %12989 = vmatpush1.bf16.msra.mxu0 %v12988_v31  ;;  %13021 = vmatpush3.bf16.msra.mxu1 %v13018_v26  ;;  %v13030_v54 = vpack.c.bf16 %v304_v48, %v301_v47  ;;  %v306_v55 = vld [vmem:[%s16540_s17 + $0x128] sm:$0xff]  ;;  %v307_v57 = vld [vmem:[%s16540_s17 + $0x130] sm:$0xff]  ;;  %v13000_v59 = vpack.c.bf16 %v302_v53, %v299_v52  ;;  %v305_v61 = vld [vmem:[%s16540_s17 + $0x120] sm:$0xff] }
  0xe5   :  { %12991 = vmatprep.subr.bf16.mxu0 %v12990_v32  ;;  %13023 = vmatprep.subr.bf16.mxu1 %v13022_v35  ;;  %v310_v58 = vld [vmem:[%s16540_s17 + $0x148] sm:$0xff]  ;;  %v13002_v60 = vpack.c.bf16 %v309_v56, %v306_v55  ;;  %v308_v62 = vld [vmem:[%s16540_s17 + $0x138] sm:$0xff]  ;;  %v315_v2 = vld [vmem:[%s16540_s17 + $0x170] sm:$0xff]  ;;  %p16442_p6 = pnand %p16441_p5, %p16435_p2 }
  0xe6   :  { %v13034_v63 = vpack.c.bf16 %v310_v58, %v307_v57  ;;  %v312_v1 = vld [vmem:[%s16540_s17 + $0x158] sm:$0xff]  ;;  %v313_v3 = vld [vmem:[%s16540_s17 + $0x160] sm:$0xff]  ;;  %v13004_v5 = vpack.c.bf16 %v308_v62, %v305_v61  ;;  %v311_v7 = vld [vmem:[%s16540_s17 + $0x150] sm:$0xff] }
  0xe7   :  { %v316_v4 = vld [vmem:[%s16540_s17 + $0x178] sm:$0xff]  ;;  %v13006_v6 = vpack.c.bf16 %v315_v2, %v312_v1  ;;  %v314_v8 = vld [vmem:[%s16540_s17 + $0x168] sm:$0xff]  ;;  %v261_v34 = vld [vmem:[%s16525_s5 + $0x10] sm:$0xff]  ;;  %s19880_s17 = sld [smem:[#allocation32_spill]] }
  0xe8   :  { %12993 = vmatpush1.bf16.msra.mxu0 %v12992_v40  ;;  %13025 = vmatpush3.bf16.msra.mxu1 %v13022_v35  ;;  %v13038_v9 = vpack.c.bf16 %v316_v4, %v313_v3  ;;  %v616_v10 = vld [vmem:[#allocation13 + $0x10] sm:$0xff]  ;;  %v619_v11 = vld [vmem:[#allocation13 + $0x28] sm:$0xff]  ;;  %v618_v13 = vld [vmem:[#allocation13 + $0x20] sm:$0xff]  ;;  %v13008_v14 = vpack.c.bf16 %v314_v8, %v311_v7 }
  0xe9   :  { %12995 = vmatprep.subr.bf16.mxu0 %v12994_v41  ;;  %13027 = vmatprep.subr.bf16.mxu1 %v13026_v44  ;;  %v615_v12 = vld [vmem:[#allocation13 + $0x8] sm:$0xff]  ;;  %v13074_v15 = vpack.c.bf16 %v619_v11, %v616_v10  ;;  %v614_v17 = vld [vmem:[#allocation13] sm:$0xff]  ;;  %v617_v18 = vld [vmem:[#allocation13 + $0x18] sm:$0xff] }
  0xea   :  { %v13042_v16 = vpack.c.bf16 %v618_v13, %v615_v12  ;;  %v621_v19 = vld [vmem:[#allocation13 + $0x38] sm:$0xff]  ;;  %v624_v20 = vld [vmem:[#allocation13 + $0x50] sm:$0xff]  ;;  %v622_v21 = vld [vmem:[#allocation13 + $0x40] sm:$0xff]  ;;  %v13044_v24 = vpack.c.bf16 %v617_v18, %v614_v17 }
  0xeb   :  { %v625_v22 = vld [vmem:[#allocation13 + $0x58] sm:$0xff]  ;;  %v260_v23 = vld [vmem:[%s16525_s5 + $0x8] sm:$0xff]  ;;  %v620_v25 = vld [vmem:[#allocation13 + $0x30] sm:$0xff]  ;;  %v13046_v26 = vpack.c.bf16 %v624_v20, %v621_v19 }
  0xec   :  { %12997 = vmatpush1.bf16.msra.mxu0 %v12996_v49  ;;  %13029 = vmatpush3.bf16.msra.mxu1 %v13026_v44  ;;  %v623_v27 = vld [vmem:[#allocation13 + $0x48] sm:$0xff]  ;;  %v13078_v28 = vpack.c.bf16 %v625_v22, %v622_v21  ;;  %v628_v29 = vld [vmem:[#allocation13 + $0x70] sm:$0xff]  ;;  %v630_v32 = vld [vmem:[#allocation13 + $0x80] sm:$0xff] }
  0xed   :  { %12999 = vmatprep.subr.bf16.mxu0 %v12998_v51  ;;  %13031 = vmatprep.subr.bf16.mxu1 %v13030_v54  ;;  %v631_v30 = vld [vmem:[#allocation13 + $0x88] sm:$0xff]  ;;  %v13048_v33 = vpack.c.bf16 %v623_v27, %v620_v25  ;;  %v626_v35 = vld [vmem:[#allocation13 + $0x60] sm:$0xff]  ;;  %v629_v38 = vld [vmem:[#allocation13 + $0x78] sm:$0xff] }
  0xee   :  { %v627_v31 = vld [vmem:[#allocation13 + $0x68] sm:$0xff]  ;;  %v13082_v36 = vpack.c.bf16 %v631_v30, %v628_v29  ;;  %v634_v39 = vld [vmem:[#allocation13 + $0xa0] sm:$0xff]  ;;  %v637_v40 = vld [vmem:[#allocation13 + $0xb8] sm:$0xff]  ;;  %v13052_v43 = vpack.c.bf16 %v629_v38, %v626_v35 }
  0xef   :  { %v13050_v37 = vpack.c.bf16 %v630_v32, %v627_v31  ;;  %v633_v41 = vld [vmem:[#allocation13 + $0x98] sm:$0xff]  ;;  %v636_v42 = vld [vmem:[#allocation13 + $0xb0] sm:$0xff]  ;;  %v635_v46 = vld [vmem:[#allocation13 + $0xa8] sm:$0xff]  ;;  %v13086_v47 = vpack.c.bf16 %v637_v40, %v634_v39 }
  0xf0   :  { %13001 = vmatpush1.bf16.msra.mxu0 %v13000_v59  ;;  %13033 = vmatpush3.bf16.msra.mxu1 %v13030_v54  ;;  %v262_v44 = vld [vmem:[%s16525_s5 + $0x18] sm:$0xff]  ;;  %v13054_v48 = vpack.c.bf16 %v636_v42, %v633_v41  ;;  %v263_v49 = vld [vmem:[%s16525_s5 + $0x20] sm:$0xff]  ;;  %v643_v51 = vld [vmem:[#allocation13 + $0xe8] sm:$0xff] }
  0xf1   :  { %13003 = vmatprep.subr.bf16.mxu0 %v13002_v60  ;;  %13035 = vmatprep.subr.bf16.mxu1 %v13034_v63  ;;  %v632_v45 = vld [vmem:[#allocation13 + $0x90] sm:$0xff]  ;;  %v639_v52 = vld [vmem:[#allocation13 + $0xc8] sm:$0xff]  ;;  %v642_v53 = vld [vmem:[#allocation13 + $0xe0] sm:$0xff] }
  0xf2   :  { %v264_v54 = vld [vmem:[%s16525_s5 + $0x28] sm:$0xff]  ;;  %v16814_v55 = vld [vmem:[%s16525_s5 + $0x30] sm:$0xff]  ;;  %v13056_v56 = vpack.c.bf16 %v635_v46, %v632_v45  ;;  %v13058_v59 = vpack.c.bf16 %v642_v53, %v639_v52  ;;  %v641_v60 = vld [vmem:[#allocation13 + $0xd8] sm:$0xff] }
  0xf3   :  { %v638_v57 = vld [vmem:[#allocation13 + $0xc0] sm:$0xff]  ;;  %v649_v62 = vld [vmem:[#allocation13 + $0x118] sm:$0xff]  ;;  %v648_v1 = vld [vmem:[#allocation13 + $0x110] sm:$0xff] }
  0xf4   :  { %13005 = vmatpush1.bf16.msra.mxu0 %v13004_v5  ;;  %13037 = vmatpush3.bf16.msra.mxu1 %v13034_v63  ;;  %v646_v61 = vld [vmem:[#allocation13 + $0x100] sm:$0xff]  ;;  %v645_v63 = vld [vmem:[#allocation13 + $0xf8] sm:$0xff]  ;;  %v13060_v4 = vpack.c.bf16 %v641_v60, %v638_v57  ;;  %v644_v5 = vld [vmem:[#allocation13 + $0xf0] sm:$0xff] }
  0xf5   :  { %13007 = vmatprep.subr.bf16.mxu0 %v13006_v6  ;;  %13039 = vmatprep.subr.bf16.mxu1 %v13038_v9  ;;  %v266_v2 = vld [vmem:[%s16525_s5 + $0x38] sm:$0xff]  ;;  %v16820_v3 = vld [vmem:[%s16525_s5 + $0x40] sm:$0xff]  ;;  %v13094_v6 = vpack.c.bf16 %v649_v62, %v646_v61  ;;  %v13062_v7 = vpack.c.bf16 %v648_v1, %v645_v63  ;;  %v647_v8 = vld [vmem:[#allocation13 + $0x108] sm:$0xff] }
  0xf6   :  { %v655_v10 = vld [vmem:[#allocation13 + $0x148] sm:$0xff]  ;;  %v654_v12 = vld [vmem:[#allocation13 + $0x140] sm:$0xff]  ;;  %v653_v18 = vld [vmem:[#allocation13 + $0x138] sm:$0xff] }
  0xf7   :  { %v651_v11 = vld [vmem:[#allocation13 + $0x128] sm:$0xff]  ;;  %v658_v19 = vld [vmem:[#allocation13 + $0x160] sm:$0xff]  ;;  %v661_v20 = vld [vmem:[#allocation13 + $0x178] sm:$0xff] }
  0xf8   :  { %13009 = vmatpush1.bf16.msra.mxu0 %v13008_v14  ;;  %13041 = vmatpush3.bf16.msra.mxu1 %v13038_v9  ;;  %v652_v9 = vld [vmem:[#allocation13 + $0x130] sm:$0xff]  ;;  %v268_v13 = vld [vmem:[%s16525_s5 + $0x48] sm:$0xff]  ;;  %v13064_v14 = vpack.c.bf16 %v647_v8, %v644_v5  ;;  %v13066_v17 = vpack.c.bf16 %v654_v12, %v651_v11  ;;  %v657_v21 = vld [vmem:[#allocation13 + $0x158] sm:$0xff]  ;;  %v13102_v25 = vpack.c.bf16 %v661_v20, %v658_v19  ;;  %s19864_s5 = sld [smem:[#allocation33_spill]] }
  0xf9   :  { %13075 = vmatprep.subr.bf16.mxu0 %v13074_v15  ;;  %13043 = vmatprep.subr.bf16.mxu1 %v13042_v16  ;;  %v13098_v16 = vpack.c.bf16 %v655_v10, %v652_v9  ;;  %v660_v22 = vld [vmem:[#allocation13 + $0x170] sm:$0xff]  ;;  %v659_v27 = vld [vmem:[#allocation13 + $0x168] sm:$0xff]  ;;  %v953_v29 = vld [vmem:[%s16545_s21 + $0x20] sm:$0xff] }
  0xfa   :  { %v951_v32 = vld [vmem:[%s16545_s21 + $0x10] sm:$0xff]  ;;  %v960_v38 = vld [vmem:[%s16545_s21 + $0x58] sm:$0xff]  ;;  %v605_v39 = vld [vmem:[%s16530_s9 + $0x8] sm:$0xff] }
  0xfb   :  { %399 = vmatmul.mubr.f32.vlgmr.msra.gmra.mrb[0].mxu0 %v16787_v50  ;;  %11048 = vmatmul.mubr.f32.vlgmr.msra.gmra.mrb[0].mxu1 %v260_v23  ;;  %v640_v50 = vld [vmem:[#allocation13 + $0xd0] sm:$0xff]  ;;  %v949_v40 = vld [vmem:[%s16545_s21] sm:$0xff]  ;;  %v966_v46 = vld [vmem:[%s16545_s21 + $0x88] sm:$0xff] }
  0xfc   :  { %13077 = vmatpush3.bf16.msra.mxu0 %v13074_v15  ;;  %13045 = vmatpush1.bf16.msra.mxu1 %v13044_v24  ;;  %v13090_v58 = vpack.c.bf16 %v643_v51, %v640_v50  ;;  %v650_v15 = vld [vmem:[#allocation13 + $0x120] sm:$0xff]  ;;  %v656_v24 = vld [vmem:[#allocation13 + $0x150] sm:$0xff] }
  0xfd   :  { %404 = vmatprep.mubr.f32.mxu0 %v19538_v0  ;;  %13047 = vmatprep.subr.bf16.mxu1 %v13046_v26  ;;  %v13070_v26 = vpack.c.bf16 %v660_v22, %v657_v21  ;;  %v13072_v30 = vpack.c.bf16 %v659_v27, %v656_v24  ;;  %v952_v41 = vld [vmem:[%s16545_s21 + $0x18] sm:$0xff]  ;;  %v963_v45 = vld [vmem:[%s16545_s21 + $0x70] sm:$0xff]  ;;  %v958_v51 = vld [vmem:[%s16545_s21 + $0x48] sm:$0xff] }
  0xfe   :  { %13079 = vmatprep.subr.bf16.mxu0 %v13078_v28  ;;  %11050 = vmatprep.mubr.f32.mxu1 %v261_v34  ;;  %v955_v50 = vld [vmem:[%s16545_s21 + $0x30] sm:$0xff]  ;;  %v962_v52 = vld [vmem:[%s16545_s21 + $0x68] sm:$0xff]  ;;  %v965_v53 = vld [vmem:[%s16545_s21 + $0x80] sm:$0xff] }
  0xff   :  { %405 = vmatmul.mubr.f32.gmra.mrb[2].mxu0 %v260_v23  ;;  %11051 = vmatmul.mubr.f32.gmra.mrb[2].mxu1 %v262_v44  ;;  %v13068_v23 = vpack.c.bf16 %v653_v18, %v650_v15  ;;  %v16874_v57 = vpack.c.bf16 %v958_v51, %v955_v50  ;;  %v961_v60 = vld [vmem:[%s16545_s21 + $0x60] sm:$0xff]  ;;  %v964_v61 = vld [vmem:[%s16545_s21 + $0x78] sm:$0xff]  ;;  %v971_v63 = vld [vmem:[%s16545_s21 + $0xb0] sm:$0xff] }
 0x100   :  { %13081 = vmatpush3.bf16.msra.mxu0 %v13078_v28  ;;  %410 = vmatprep.mubr.f32.mxu0 %v19538_v0  ;;  %v950_v28 = vld [vmem:[%s16545_s21 + $0x8] sm:$0xff]  ;;  %v968_v62 = vld [vmem:[%s16545_s21 + $0x98] sm:$0xff]  ;;  %v608_v5 = vld [vmem:[%s16530_s9 + $0x20] sm:$0xff] }
 0x101   :  { %13049 = vmatpush1.bf16.msra.mxu1 %v13048_v33  ;;  %13083 = vmatprep.subr.bf16.mxu0 %v13082_v36  ;;  %v16831_v31 = vpack.c.bf16 %v953_v29, %v950_v28  ;;  %v954_v33 = vld [vmem:[%s16545_s21 + $0x28] sm:$0xff]  ;;  %v977_v11 = vld [vmem:[%s16545_s21 + $0xe0] sm:$0xff]  ;;  %v976_v19 = vld [vmem:[%s16545_s21 + $0xd8] sm:$0xff] }
 0x102   :  { %13051 = vmatprep.subr.bf16.mxu1 %v13050_v37  ;;  %11053 = vmatprep.mubr.f32.mxu1 %v263_v49  ;;  %v16838_v35 = vpack.c.bf16 %v954_v33, %v951_v32  ;;  %v957_v37 = vld [vmem:[%s16545_s21 + $0x40] sm:$0xff]  ;;  %v970_v8 = vld [vmem:[%s16545_s21 + $0xa8] sm:$0xff]  ;;  %v980_v20 = vld [vmem:[%s16545_s21 + $0xf8] sm:$0xff] }
 0x103   :  { %411 = vmatmul.mubr.f32.gmra.mrb[4].mxu0 %v261_v34  ;;  %11054 = vmatmul.mubr.f32.gmra.mrb[4].mxu1 %v264_v54  ;;  %v604_v34 = vld [vmem:[%s16530_s9] sm:$0xff]  ;;  %v16850_v42 = vpack.c.bf16 %v960_v38, %v957_v37  ;;  %v609_v9 = vld [vmem:[%s16530_s9 + $0x28] sm:$0xff]  ;;  %v983_v21 = vld [vmem:[%s16545_s21 + $0x110] sm:$0xff] }
 0x104   :  { %416 = vmatprep.mubr.f32.mxu0 %v19538_v0  ;;  %13085 = vmatpush3.bf16.msra.mxu0 %v13082_v36  ;;  %v19540_v36 = vmov 0.0|0.0   ;;  %v974_v10 = vld [vmem:[%s16545_s21 + $0xc8] sm:$0xff]  ;;  %v973_v18 = vld [vmem:[%s16545_s21 + $0xc0] sm:$0xff]  ;;  %v611_v22 = vld [vmem:[%s16530_s9 + $0x38] sm:$0xff]  ;;  %v16936_v29 = vpack.c.bf16 %v983_v21, %v980_v20 }
 0x105   :  { %13053 = vmatpush1.bf16.msra.mxu1 %v13052_v43  ;;  %13087 = vmatprep.subr.bf16.mxu0 %v13086_v47  ;;  %v956_v43 = vld [vmem:[%s16545_s21 + $0x38] sm:$0xff]  ;;  %v612_v24 = vld [vmem:[%s16530_s9 + $0x40] sm:$0xff]  ;;  %v16931_v27 = vpack.c.bf16 %v976_v19, %v973_v18  ;;  %v613_v28 = vld [vmem:[%s16530_s9 + $0x48] sm:$0xff] }
 0x106   :  { %13055 = vmatprep.subr.bf16.mxu1 %v13054_v48  ;;  %11056 = vmatprep.mubr.f32.mxu1 %v16814_v55  ;;  %v606_v48 = vld [vmem:[%s16530_s9 + $0x10] sm:$0xff]  ;;  %19677 = vst [vmem:[#allocation48_spill] sm:$0xff] %v16936_v29  ;;  %v982_v32 = vld [vmem:[%s16545_s21 + $0x108] sm:$0xff]  ;;  %v993_v38 = vld [vmem:[%s16545_s21 + $0x160] sm:$0xff] }
 0x107   :  { %417 = vmatmul.mubr.f32.gmra.mrb[6].mxu0 %v262_v44  ;;  %11057 = vmatmul.mubr.f32.gmra.mrb[6].mxu1 %v266_v2  ;;  %v959_v44 = vld [vmem:[%s16545_s21 + $0x50] sm:$0xff]  ;;  %v986_v33 = vld [vmem:[%s16545_s21 + $0x128] sm:$0xff] }
 0x108   :  { %422 = vmatprep.mubr.f32.mxu0 %v19538_v0  ;;  %13089 = vmatpush3.bf16.msra.mxu0 %v13086_v47  ;;  %v16857_v47 = vpack.c.bf16 %v952_v41, %v949_v40  ;;  %v998_v41 = vld [vmem:[#allocation14 + $0x8] sm:$0xff]  ;;  %v1013_v18 = vld [vmem:[#allocation14 + $0x80] sm:$0xff]  ;;  %v1011_v21 = vld [vmem:[#allocation14 + $0x70] sm:$0xff] }
 0x109   :  { %13057 = vmatpush1.bf16.msra.mxu1 %v13056_v56  ;;  %13091 = vmatprep.subr.bf16.mxu0 %v13090_v58  ;;  %v972_v56 = vld [vmem:[%s16545_s21 + $0xb8] sm:$0xff]  ;;  %v995_v50 = vld [vmem:[%s16545_s21 + $0x170] sm:$0xff] }
 0x10a   :  { %13059 = vmatprep.subr.bf16.mxu1 %v13058_v59  ;;  %11059 = vmatprep.mubr.f32.mxu1 %v16820_v3  ;;  %v16879_v59 = vpack.c.bf16 %v965_v53, %v962_v52 }
 0x10b   :  { %423 = vmatmul.mubr.f32.gmra.mrb[8].mxu0 %v263_v49  ;;  %11060 = vmatmul.mubr.f32.gmra.mrb[8].mxu1 %v268_v13  ;;  %v16861_v49 = vpack.c.bf16 %v959_v44, %v956_v43  ;;  %v1001_v43 = vld [vmem:[#allocation14 + $0x20] sm:$0xff] }
 0x10c   :  { %428 = vmatprep.mubr.f32.mxu0 %v19538_v0  ;;  %13093 = vmatpush3.bf16.msra.mxu0 %v13090_v58  ;;  %v607_v58 = vld [vmem:[%s16530_s9 + $0x18] sm:$0xff]  ;;  %v16964_v52 = vpack.c.bf16 %v1001_v43, %v998_v41  ;;  %v1018_v43 = vld [vmem:[#allocation14 + $0xa8] sm:$0xff] }
 0x10d   :  { %13061 = vmatpush1.bf16.msra.mxu1 %v13060_v4  ;;  %13095 = vmatprep.subr.bf16.mxu0 %v13094_v6  ;;  %v16892_v4 = vpack.c.bf16 %v964_v61, %v961_v60  ;;  %v999_v61 = vld [vmem:[#allocation14 + $0x10] sm:$0xff] }
 0x10e   :  { %13063 = vmatprep.subr.bf16.mxu1 %v13062_v7  ;;  %743 = vmatprep.mubr.f32.mxu1 %v19538_v0  ;;  %v967_v7 = vld [vmem:[%s16545_s21 + $0x90] sm:$0xff]  ;;  %19682 = vst [vmem:[#allocation53_spill] sm:$0xff] %v16964_v52 }
 0x10f   :  { %429 = vmatmul.mubr.f32.gmra.mrb[10].mxu0 %v264_v54  ;;  %v16869_v54 = vpack.c.bf16 %v966_v46, %v963_v45  ;;  %v16911_v15 = vpack.c.bf16 %v970_v8, %v967_v7  ;;  %v985_v45 = vld [vmem:[%s16545_s21 + $0x120] sm:$0xff]  ;;  %v988_v46 = vld [vmem:[%s16545_s21 + $0x138] sm:$0xff] }
 0x110   :  { %434 = vmatprep.mubr.f32.mxu0 %v19538_v0  ;;  %13097 = vmatpush3.bf16.msra.mxu0 %v13094_v6  ;;  %v16897_v6 = vpack.c.bf16 %v971_v63, %v968_v62  ;;  %v16967_v53 = vpack.c.bf16 %v988_v46, %v985_v45  ;;  %v1002_v62 = vld [vmem:[#allocation14 + $0x28] sm:$0xff]  ;;  %v997_v63 = vld [vmem:[#allocation14] sm:$0xff]  ;;  %v1015_v41 = vld [vmem:[#allocation14 + $0x90] sm:$0xff] }
 0x111   :  { %13065 = vmatpush1.bf16.msra.mxu1 %v13064_v14  ;;  %13099 = vmatprep.subr.bf16.mxu0 %v13098_v16  ;;  %v984_v14 = vld [vmem:[%s16545_s21 + $0x118] sm:$0xff]  ;;  %v16983_v7 = vpack.c.bf16 %v1002_v62, %v999_v61  ;;  %v1022_v45 = vld [vmem:[#allocation14 + $0xc8] sm:$0xff]  ;;  %v1025_v46 = vld [vmem:[#allocation14 + $0xe0] sm:$0xff] }
 0x112   :  { %13067 = vmatprep.subr.bf16.mxu1 %v13066_v17  ;;  %v610_v17 = vld [vmem:[%s16530_s9 + $0x30] sm:$0xff]  ;;  %19683 = vst [vmem:[#allocation54_spill] sm:$0xff] %v16967_v53  ;;  %v17025_v61 = vpack.c.bf16 %v1025_v46, %v1022_v45  ;;  %v1021_v62 = vld [vmem:[#allocation14 + $0xc0] sm:$0xff]  ;;  %s19867_s9 = sld [smem:[#allocation31_spill]] }
 0x113   :  { %435 = vmatmul.mubr.f32.gmra.mrb[12].mxu0 %v16814_v55  ;;  %v969_v55 = vld [vmem:[%s16545_s21 + $0xa0] sm:$0xff]  ;;  %v1043_v45 = vld [vmem:[#allocation14 + $0x170] sm:$0xff] }
 0x114   :  { %440 = vmatprep.mubr.f32.mxu0 %v19538_v0  ;;  %13101 = vmatpush3.bf16.msra.mxu0 %v13098_v16  ;;  %v16886_v1 = vpack.c.bf16 %v972_v56, %v969_v55  ;;  %v16915_v16 = vpack.c.bf16 %v977_v11, %v974_v10  ;;  %v991_v56 = vld [vmem:[%s16545_s21 + $0x150] sm:$0xff]  ;;  %v1008_v10 = vld [vmem:[#allocation14 + $0x58] sm:$0xff] }
 0x115   :  { %13069 = vmatpush1.bf16.msra.mxu1 %v13068_v23  ;;  %13103 = vmatprep.subr.bf16.mxu0 %v13102_v25 }
 0x116   :  { %13071 = vmatprep.subr.bf16.mxu1 %v13070_v26  ;;  %v990_v26 = vld [vmem:[%s16545_s21 + $0x148] sm:$0xff] }
 0x117   :  { %441 = vmatmul.mubr.f32.gmra.mrb[14].mxu0 %v266_v2  ;;  %v975_v2 = vld [vmem:[%s16545_s21 + $0xd0] sm:$0xff] }
 0x118   :  { %446 = vmatprep.mubr.f32.mxu0 %v19538_v0  ;;  %13105 = vmatpush3.bf16.msra.mxu0 %v13102_v25  ;;  %v987_v25 = vld [vmem:[%s16545_s21 + $0x130] sm:$0xff] }
 0x119   :  { %13073 = vmatpush1.bf16.msra.mxu1 %v13072_v30  ;;  %13107 = vmatprep.subr.bf16.mxu0 %v16831_v31  ;;  %v979_v30 = vld [vmem:[%s16545_s21 + $0xf0] sm:$0xff]  ;;  %v16943_v37 = vpack.c.bf16 %v990_v26, %v987_v25  ;;  %v1009_v25 = vld [vmem:[#allocation14 + $0x60] sm:$0xff]  ;;  %v1012_v26 = vld [vmem:[#allocation14 + $0x78] sm:$0xff] }
 0x11a   :  { %13138 = vmatprep.subr.bf16.mxu1 %v19540_v36  ;;  %v16949_v40 = vpack.c.bf16 %v982_v32, %v979_v30  ;;  %v1019_v30 = vld [vmem:[#allocation14 + $0xb0] sm:$0xff] }
 0x11b   :  { %447 = vmatmul.mubr.f32.gmra.mrb[16].mxu0 %v16820_v3  ;;  %v978_v3 = vld [vmem:[%s16545_s21 + $0xe8] sm:$0xff]  ;;  %19678 = vst [vmem:[#allocation49_spill] sm:$0xff] %v16943_v37 }
 0x11c   :  { %744 = vmatmul.mubr.f32.vlgmr.msra.gmra.mrb[10].mxu1 %v604_v34  ;;  %452 = vmatprep.mubr.f32.mxu0 %v19538_v0  ;;  %v16905_v12 = vpack.c.bf16 %v978_v3, %v975_v2  ;;  %19679 = vst [vmem:[#allocation50_spill] sm:$0xff] %v16949_v40  ;;  %v1000_v2 = vld [vmem:[#allocation14 + $0x18] sm:$0xff] }
 0x11d   :  { %749 = vmatprep.mubr.f32.mxu1 %v19538_v0  ;;  %13140 = vmatpush3.bf16.msra.mxu1 %v16838_v35  ;;  %v1004_v3 = vld [vmem:[#allocation14 + $0x38] sm:$0xff]  ;;  %v16987_v8 = vpack.c.bf16 %v1000_v2, %v997_v63 }
 0x11e   :  { %13141 = vmatprep.subr.bf16.mxu1 %v19540_v36  ;;  %v1024_v63 = vld [vmem:[#allocation14 + $0xd8] sm:$0xff] }
 0x11f   :  { %453 = vmatmul.mubr.f32.gmra.mrb[18].mxu0 %v268_v13  ;;  %v981_v13 = vld [vmem:[%s16545_s21 + $0x100] sm:$0xff] }
 0x120   :  { %750 = vmatmul.mubr.f32.gmra.mrb[12].mxu1 %v605_v39  ;;  %11094 = vmatprep.mubr.f32.mxu0 %v604_v34  ;;  %v16924_v23 = vpack.c.bf16 %v984_v14, %v981_v13  ;;  %v989_v34 = vld [vmem:[%s16545_s21 + $0x140] sm:$0xff]  ;;  %v1003_v13 = vld [vmem:[#allocation14 + $0x30] sm:$0xff]  ;;  %v1006_v14 = vld [vmem:[#allocation14 + $0x48] sm:$0xff] }
 0x121   :  { %755 = vmatprep.mubr.f32.mxu1 %v19538_v0  ;;  %13143 = vmatpush3.bf16.msra.mxu1 %v16850_v42  ;;  %v16953_v44 = vpack.c.bf16 %v989_v34, %v986_v33  ;;  %v16998_v20 = vpack.c.bf16 %v1006_v14, %v1003_v13  ;;  %v17011_v33 = vpack.c.bf16 %v1012_v26, %v1009_v25  ;;  %v1017_v34 = vld [vmem:[#allocation14 + $0xa0] sm:$0xff]  ;;  %v1028_v2 = vld [vmem:[#allocation14 + $0xf8] sm:$0xff] }
 0x122   :  { %13144 = vmatprep.subr.bf16.mxu1 %v19540_v36  ;;  %19676 = vst [vmem:[#allocation47_spill] sm:$0xff] %v16924_v23  ;;  %v1032_v13 = vld [vmem:[#allocation14 + $0x118] sm:$0xff] }
 0x123   :  { %11095 = vmatmul.mubr.f32.vlgmr.msra.gmra.mrb[20].mxu0 %v605_v39  ;;  %v996_v39 = vld [vmem:[%s16545_s21 + $0x178] sm:$0xff]  ;;  %19680 = vst [vmem:[#allocation51_spill] sm:$0xff] %v16953_v44 }
 0x124   :  { %756 = vmatmul.mubr.f32.gmra.mrb[14].mxu1 %v606_v48  ;;  %13109 = vmatpush1.bf16.msra.mxu0 %v16857_v47  ;;  %v16960_v51 = vpack.c.bf16 %v996_v39, %v993_v38  ;;  %v1020_v38 = vld [vmem:[#allocation14 + $0xb8] sm:$0xff] }
 0x125   :  { %761 = vmatprep.mubr.f32.mxu1 %v19538_v0  ;;  %13111 = vmatprep.subr.bf16.mxu0 %v16861_v49 }
 0x126   :  { %13146 = vmatpush3.bf16.msra.mxu1 %v16869_v54  ;;  %11097 = vmatprep.mubr.f32.mxu0 %v606_v48  ;;  %v992_v48 = vld [vmem:[%s16545_s21 + $0x158] sm:$0xff]  ;;  %19681 = vst [vmem:[#allocation52_spill] sm:$0xff] %v16960_v51 }
 0x127   :  { %13147 = vmatprep.subr.bf16.mxu1 %v19540_v36  ;;  %11098 = vmatmul.mubr.f32.gmra.mrb[22].mxu0 %v607_v58  ;;  %v16971_v55 = vpack.c.bf16 %v995_v50, %v992_v48  ;;  %v17018_v48 = vpack.c.bf16 %v1020_v38, %v1017_v34  ;;  %v17021_v50 = vpack.c.bf16 %v1018_v43, %v1015_v41  ;;  %v1033_v38 = vld [vmem:[#allocation14 + $0x120] sm:$0xff]  ;;  %v1036_v41 = vld [vmem:[#allocation14 + $0x138] sm:$0xff] }
 0x128   :  { %762 = vmatmul.mubr.f32.gmra.mrb[16].mxu1 %v607_v58  ;;  %13113 = vmatpush1.bf16.msra.mxu0 %v16874_v57  ;;  %v994_v58 = vld [vmem:[%s16545_s21 + $0x168] sm:$0xff]  ;;  %v1040_v43 = vld [vmem:[#allocation14 + $0x158] sm:$0xff]  ;;  %s19883_s21 = sld [smem:[#allocation34_spill]] }
 0x129   :  { %767 = vmatprep.mubr.f32.mxu1 %v19538_v0  ;;  %13115 = vmatprep.subr.bf16.mxu0 %v16879_v59  ;;  %19684 = vst [vmem:[#allocation55_spill] sm:$0xff] %v16971_v55  ;;  %v16978_v60 = vpack.c.bf16 %v994_v58, %v991_v56  ;;  %v1023_v56 = vld [vmem:[#allocation14 + $0xd0] sm:$0xff]  ;;  %v1026_v58 = vld [vmem:[#allocation14 + $0xe8] sm:$0xff] }
 0x12a   :  { %13149 = vmatpush3.bf16.msra.mxu1 %v16886_v1  ;;  %11100 = vmatprep.mubr.f32.mxu0 %v608_v5 }
 0x12b   :  { %13150 = vmatprep.subr.bf16.mxu1 %v19540_v36  ;;  %11101 = vmatmul.mubr.f32.gmra.mrb[24].mxu0 %v609_v9  ;;  %19685 = vst [vmem:[#allocation56_spill] sm:$0xff] %v16978_v60 }
 0x12c   :  { %768 = vmatmul.mubr.f32.gmra.mrb[18].mxu1 %v608_v5  ;;  %13117 = vmatpush1.bf16.msra.mxu0 %v16892_v4  ;;  %v1007_v5 = vld [vmem:[#allocation14 + $0x50] sm:$0xff] }
 0x12d   :  { %773 = vmatprep.mubr.f32.mxu1 %v19538_v0  ;;  %13119 = vmatprep.subr.bf16.mxu0 %v16897_v6  ;;  %v16990_v11 = vpack.c.bf16 %v1007_v5, %v1004_v3  ;;  %v1031_v3 = vld [vmem:[#allocation14 + $0x110] sm:$0xff]  ;;  %v17028_v5 = vpack.c.bf16 %v1026_v58, %v1023_v56  ;;  %v17051_v56 = vpack.c.bf16 %v1036_v41, %v1033_v38  ;;  %v1041_v58 = vld [vmem:[#allocation14 + $0x160] sm:$0xff] }
 0x12e   :  { %13152 = vmatpush3.bf16.msra.mxu1 %v16905_v12  ;;  %11103 = vmatprep.mubr.f32.mxu0 %v610_v17  ;;  %v17035_v14 = vpack.c.bf16 %v1031_v3, %v1028_v2  ;;  %v1039_v2 = vld [vmem:[#allocation14 + $0x150] sm:$0xff]  ;;  %v1042_v3 = vld [vmem:[#allocation14 + $0x168] sm:$0xff] }
 0x12f   :  { %13153 = vmatprep.subr.bf16.mxu1 %v19540_v36  ;;  %11104 = vmatmul.mubr.f32.gmra.mrb[26].mxu0 %v611_v22 }
 0x130   :  { %774 = vmatmul.mubr.f32.gmra.mrb[20].mxu1 %v609_v9  ;;  %13121 = vmatpush1.bf16.msra.mxu0 %v16911_v15  ;;  %v1005_v9 = vld [vmem:[#allocation14 + $0x40] sm:$0xff] }
 0x131   :  { %779 = vmatprep.mubr.f32.mxu1 %v19538_v0  ;;  %13123 = vmatprep.subr.bf16.mxu0 %v16915_v16  ;;  %v16995_v19 = vpack.c.bf16 %v1008_v10, %v1005_v9  ;;  %v17031_v9 = vpack.c.bf16 %v1024_v63, %v1021_v62  ;;  %v1029_v10 = vld [vmem:[#allocation14 + $0x100] sm:$0xff]  ;;  %v1044_v62 = vld [vmem:[#allocation14 + $0x178] sm:$0xff]  ;;  %v17055_v63 = vpack.c.bf16 %v1043_v45, %v1040_v43 }
 0x132   :  { %13155 = vmatpush3.bf16.msra.mxu1 %v16924_v23  ;;  %11106 = vmatprep.mubr.f32.mxu0 %v612_v24  ;;  %v17038_v25 = vpack.c.bf16 %v1032_v13, %v1029_v10  ;;  %v17058_v10 = vpack.c.bf16 %v1044_v62, %v1041_v58  ;;  %v17061_v13 = vpack.c.bf16 %v1042_v3, %v1039_v2 }
 0x133   :  { %13156 = vmatprep.subr.bf16.mxu1 %v19540_v36  ;;  %11107 = vmatmul.mubr.f32.gmra.mrb[28].mxu0 %v613_v28 }
 0x134   :  { %780 = vmatmul.mubr.f32.gmra.mrb[22].mxu1 %v610_v17  ;;  %13125 = vmatpush1.bf16.msra.mxu0 %v16931_v27  ;;  %v1010_v17 = vld [vmem:[#allocation14 + $0x68] sm:$0xff] }
 0x135   :  { %785 = vmatprep.mubr.f32.mxu1 %v19538_v0  ;;  %13127 = vmatprep.subr.bf16.mxu0 %v16936_v29 }
 0x136   :  { %13158 = vmatpush3.bf16.msra.mxu1 %v16943_v37  ;;  %1134 = vmatprep.mubr.f32.mxu0 %v19538_v0 }
 0x137   :  { %13159 = vmatprep.subr.bf16.mxu1 %v19540_v36 }
 0x138   :  { %786 = vmatmul.mubr.f32.gmra.mrb[24].mxu1 %v611_v22  ;;  %13129 = vmatpush1.bf16.msra.mxu0 %v16949_v40  ;;  %v1014_v22 = vld [vmem:[#allocation14 + $0x88] sm:$0xff] }
 0x139   :  { %791 = vmatprep.mubr.f32.mxu1 %v19538_v0  ;;  %13131 = vmatprep.subr.bf16.mxu0 %v16953_v44  ;;  %v17008_v32 = vpack.c.bf16 %v1014_v22, %v1011_v21  ;;  %v1034_v21 = vld [vmem:[#allocation14 + $0x128] sm:$0xff]  ;;  %v1037_v22 = vld [vmem:[#allocation14 + $0x140] sm:$0xff] }
 0x13a   :  { %13161 = vmatpush3.bf16.msra.mxu1 %v16960_v51  ;;  %v17045_v34 = vpack.c.bf16 %v1037_v22, %v1034_v21  ;;  %v317_v22 = vld [vmem:[#allocation8] sm:$0x7] }
 0x13b   :  { %13163 = vmatprep.subr.bf16.mxu1 %v16964_v52 }
 0x13c   :  { %792 = vmatmul.mubr.f32.gmra.mrb[26].mxu1 %v612_v24  ;;  %13133 = vmatpush1.bf16.msra.mxu0 %v16967_v53  ;;  %v17002_v24 = vpack.c.bf16 %v1013_v18, %v1010_v17  ;;  %v1027_v17 = vld [vmem:[#allocation14 + $0xf0] sm:$0xff]  ;;  %v1030_v18 = vld [vmem:[#allocation14 + $0x108] sm:$0xff] }
 0x13d   :  { %797 = vmatprep.mubr.f32.mxu1 %v19538_v0  ;;  %13135 = vmatprep.subr.bf16.mxu0 %v16971_v55  ;;  %v17041_v26 = vpack.c.bf16 %v1030_v18, %v1027_v17  ;;  %v319_v17 = vlaneseq }
 0x13f   :  { %v320_v18 = vshrl.u32 %v319_v17, 7 }
 0x140   :  { %798 = vmatmul.mubr.f32.gmra.mrb[28].mxu1 %v613_v28  ;;  %13137 = vmatpush1.bf16.msra.mxu0 %v16978_v60  ;;  %v1016_v28 = vld [vmem:[#allocation14 + $0x98] sm:$0xff] }
 0x141   :  { %11141 = vmatprep.mubr.msk.f32.mxu1 %vm16515_vm0, %v19538_v0  ;;  %13194 = vmatprep.subr.bf16.mxu0 %v19540_v36  ;;  %v17015_v39 = vpack.c.bf16 %v1019_v30, %v1016_v28  ;;  %v1035_v28 = vld [vmem:[#allocation14 + $0x130] sm:$0xff]  ;;  %v1038_v30 = vld [vmem:[#allocation14 + $0x148] sm:$0xff]  ;;  %v17106_v21 = vsub.s32 2, %v320_v18 }
 0x142   :  { %v17048_v46 = vpack.c.bf16 %v1038_v30, %v1035_v28 }
 0x143   :  { %1135 = vmatmul.mubr.f32.vlgmr.msra.gmra.mrb[0].mxu0 %v19538_v0  ;;  %19686 = vst [vmem:[#allocation57_spill] sm:$0xff] %v17106_v21  ;;  %v17109_v28 = vrot.slane %v317_v22, %v17106_v21 }
 0x144   :  { %11142 = vmatmul.mubr.f32.vlgmr.msra.gmra.mrb[30].mxu1 %v19538_v0  ;;  %13196 = vmatpush3.bf16.msra.mxu0 %v16983_v7 }
 0x145   :  { %13165 = vmatpush1.bf16.msra.mxu1 %v16987_v8  ;;  %13197 = vmatprep.subr.bf16.mxu0 %v19540_v36 }
 0x146   :  { %13167 = vmatprep.subr.bf16.mxu1 %v16990_v11  ;;  %1275 = vmatprep.mubr.f32.mxu1 %v19538_v0 }
 0x147   :  { %11176 = vmatprep.mubr.msk.f32.mxu0 %vm16515_vm0, %v19538_v0 }
 0x148   :  { %13199 = vmatpush3.bf16.msra.mxu0 %v16995_v19 }
 0x149   :  { %13169 = vmatpush1.bf16.msra.mxu1 %v16998_v20  ;;  %13200 = vmatprep.subr.bf16.mxu0 %v19540_v36 }
 0x14a   :  { %13171 = vmatprep.subr.bf16.mxu1 %v17002_v24 }
 0x14c   :  { %13202 = vmatpush3.bf16.msra.mxu0 %v17008_v32 }
 0x14d   :  { %13173 = vmatpush1.bf16.msra.mxu1 %v17011_v33  ;;  %13203 = vmatprep.subr.bf16.mxu0 %v19540_v36 }
 0x14e   :  { %13175 = vmatprep.subr.bf16.mxu1 %v17015_v39 }
 0x150   :  { %13205 = vmatpush3.bf16.msra.mxu0 %v17018_v48 }
 0x151   :  { %13177 = vmatpush1.bf16.msra.mxu1 %v17021_v50  ;;  %13206 = vmatprep.subr.bf16.mxu0 %v19540_v36 }
 0x152   :  { %13179 = vmatprep.subr.bf16.mxu1 %v17025_v61 }
 0x154   :  { %13208 = vmatpush3.bf16.msra.mxu0 %v17028_v5 }
 0x155   :  { %13181 = vmatpush1.bf16.msra.mxu1 %v17031_v9  ;;  %13209 = vmatprep.subr.bf16.mxu0 %v19540_v36 }
 0x156   :  { %13183 = vmatprep.subr.bf16.mxu1 %v17035_v14 }
 0x158   :  { %13211 = vmatpush3.bf16.msra.mxu0 %v17038_v25 }
 0x159   :  { %13185 = vmatpush1.bf16.msra.mxu1 %v17041_v26  ;;  %13212 = vmatprep.subr.bf16.mxu0 %v19540_v36 }
 0x15a   :  { %13187 = vmatprep.subr.bf16.mxu1 %v17045_v34 }
 0x15c   :  { %13214 = vmatpush3.bf16.msra.mxu0 %v17048_v46 }
 0x15d   :  { %13189 = vmatpush1.bf16.msra.mxu1 %v17051_v56  ;;  %13215 = vmatprep.subr.bf16.mxu0 %v19540_v36 }
 0x15e   :  { %13191 = vmatprep.subr.bf16.mxu1 %v17055_v63 }
 0x160   :  { %13217 = vmatpush3.bf16.msra.mxu0 %v17058_v10 }
 0x161   :  { %13193 = vmatpush1.bf16.msra.mxu1 %v17061_v13  ;;  %13219 = vmatprep.subr.bf16.mxu0 %v16831_v31 }
 0x162   :  { %13250 = vmatprep.subr.bf16.mxu1 %v19540_v36 }
 0x163   :  { %11177 = vmatmul.mubr.f32.vlgmr.msra.gmra.mrb[30].mxu0 %v19538_v0 }
 0x164   :  { %1276 = vmatmul.mubr.f32.vlgmr.msra.gmra.mrb[10].mxu1 %v19538_v0  ;;  %13221 = vmatpush1.bf16.msra.mxu0 %v16857_v47 }
 0x165   :  { %13252 = vmatpush3.bf16.msra.mxu1 %v16838_v35  ;;  %13223 = vmatprep.subr.bf16.mxu0 %v16861_v49 }
 0x166   :  { %13253 = vmatprep.subr.bf16.mxu1 %v19540_v36  ;;  %1473 = vmatprep.mubr.f32.mxu0 %v19538_v0 }
 0x167   :  { %11211 = vmatprep.mubr.msk.f32.mxu1 %vm16515_vm0, %v19538_v0 }
 0x168   :  { %13225 = vmatpush1.bf16.msra.mxu0 %v16874_v57 }
 0x169   :  { %13255 = vmatpush3.bf16.msra.mxu1 %v16850_v42  ;;  %13227 = vmatprep.subr.bf16.mxu0 %v16879_v59 }
 0x16a   :  { %13256 = vmatprep.subr.bf16.mxu1 %v19540_v36 }
 0x16c   :  { %13229 = vmatpush1.bf16.msra.mxu0 %v16892_v4 }
 0x16d   :  { %13258 = vmatpush3.bf16.msra.mxu1 %v16869_v54  ;;  %13231 = vmatprep.subr.bf16.mxu0 %v16897_v6 }
 0x16e   :  { %13259 = vmatprep.subr.bf16.mxu1 %v19540_v36 }
 0x170   :  { %13233 = vmatpush1.bf16.msra.mxu0 %v16911_v15 }
 0x171   :  { %13261 = vmatpush3.bf16.msra.mxu1 %v16886_v1  ;;  %13235 = vmatprep.subr.bf16.mxu0 %v16915_v16 }
 0x172   :  { %13262 = vmatprep.subr.bf16.mxu1 %v19540_v36 }
 0x174   :  { %13237 = vmatpush1.bf16.msra.mxu0 %v16931_v27 }
 0x175   :  { %13264 = vmatpush3.bf16.msra.mxu1 %v16905_v12  ;;  %13239 = vmatprep.subr.bf16.mxu0 %v16936_v29 }
 0x176   :  { %13265 = vmatprep.subr.bf16.mxu1 %v19540_v36 }
 0x178   :  { %13241 = vmatpush1.bf16.msra.mxu0 %v16949_v40 }
 0x179   :  { %13267 = vmatpush3.bf16.msra.mxu1 %v16924_v23  ;;  %13243 = vmatprep.subr.bf16.mxu0 %v16953_v44 }
 0x17a   :  { %13268 = vmatprep.subr.bf16.mxu1 %v19540_v36 }
 0x17c   :  { %13245 = vmatpush1.bf16.msra.mxu0 %v16967_v53  ;;  %v17183_v53 = vld [vmem:[#allocation11] ss:$0 sm:$0xff] }
 0x17d   :  { %13270 = vmatpush3.bf16.msra.mxu1 %v16943_v37  ;;  %13247 = vmatprep.subr.bf16.mxu0 %v16971_v55  ;;  %19709 = vst [vmem:[#allocation80_spill] sm:$0xff] %v17183_v53 }
 0x17e   :  { %13271 = vmatprep.subr.bf16.mxu1 %v19540_v36 }
 0x180   :  { %13249 = vmatpush1.bf16.msra.mxu0 %v16978_v60 }
 0x181   :  { %13273 = vmatpush3.bf16.msra.mxu1 %v16960_v51  ;;  %13306 = vmatprep.subr.bf16.mxu0 %v19540_v36 }
 0x182   :  { %13275 = vmatprep.subr.bf16.mxu1 %v16964_v52 }
 0x1ce   :  { %v11049_v30 = vpop.f32.mrb[0].mxu1 }
 0x1cf   :  { %v17112_v38 = vadd.f32 %v11049_v30, %v17109_v28  ;;  %v525_v41 = vpop.f32.mrb[1].mxu1 }
 0x1d1   :  { %19687 = vst [vmem:[#allocation58_spill] sm:$0xff] %v17112_v38 }
 0x1d2   :  { %v11052_v43 = vpop.f32.mrb[2].mxu1 }
 0x1d3   :  { %v17115_v45 = vadd.f32 %v11052_v43, %v17109_v28  ;;  %v535_v58 = vpop.f32.mrb[3].mxu1 }
 0x1d4   :  { %v17118_v62 = vadd.f32 %v535_v58, %v17109_v28 }
 0x1d5   :  { %19688 = vst [vmem:[#allocation59_spill] sm:$0xff] %v17115_v45 }
 0x1d6   :  { %19689 = vst [vmem:[#allocation60_spill] sm:$0xff] %v17118_v62  ;;  %v11055_v2 = vpop.f32.mrb[4].mxu1 }
 0x1d7   :  { %v17121_v3 = vadd.f32 %v11055_v2, %v17109_v28  ;;  %v545_v17 = vpop.f32.mrb[5].mxu1 }
 0x1d8   :  { %v17124_v0 = vadd.f32 %v545_v17, %v17109_v28 }
 0x1d9   :  { %19690 = vst [vmem:[#allocation61_spill] sm:$0xff] %v17121_v3  ;;  %v662_v3 = vld [vmem:[%s16570_s14] sm:$0x7]  ;;  %s20014_s14 = sld [smem:[#allocation36_spill]] }
 0x1da   :  { %19691 = vst [vmem:[#allocation62_spill] sm:$0xff] %v17124_v0  ;;  %v11058_v30 = vpop.f32.mrb[6].mxu1  ;;  %v17140_v17 = vrot.slane %v662_v3, %v17106_v21 }
 0x1db   :  { %v17127_v36 = vadd.f32 %v11058_v30, %v17109_v28  ;;  %v555_v38 = vpop.f32.mrb[7].mxu1 }
 0x1dc   :  { %v17130_v43 = vadd.f32 %v555_v38, %v17109_v28 }
 0x1dd   :  { %19692 = vst [vmem:[#allocation63_spill] sm:$0xff] %v17127_v36 }
 0x1de   :  { %19693 = vst [vmem:[#allocation64_spill] sm:$0xff] %v17130_v43  ;;  %v11061_v45 = vpop.f32.mrb[8].mxu1 }
 0x1df   :  { %v17133_v58 = vadd.f32 %v11061_v45, %v17109_v28  ;;  %v565_v62 = vpop.f32.mrb[9].mxu1 }
 0x1e0   :  { %v17136_v2 = vadd.f32 %v565_v62, %v17109_v28 }
 0x1e1   :  { %19694 = vst [vmem:[#allocation65_spill] sm:$0xff] %v17133_v58 }
 0x1e2   :  { %19695 = vst [vmem:[#allocation66_spill] sm:$0xff] %v17136_v2 }
 0x1f6   :  { %v11096_v0 = vpop.f32.mrb[20].mxu0 }
 0x1f7   :  { %v17143_v30 = vadd.f32 %v11096_v0, %v17140_v17  ;;  %v17145_v36 = vpop.f32.mrb[21].mxu0 }
 0x1f9   :  { %19696 = vst [vmem:[#allocation67_spill] sm:$0xff] %v17143_v30 }
 0x1fa   :  { %v11099_v38 = vpop.f32.mrb[22].mxu0 }
 0x1fb   :  { %v17148_v43 = vadd.f32 %v11099_v38, %v17140_v17  ;;  %v880_v45 = vpop.f32.mrb[23].mxu0 }
 0x1fc   :  { %v17151_v58 = vadd.f32 %v880_v45, %v17140_v17 }
 0x1fd   :  { %19697 = vst [vmem:[#allocation68_spill] sm:$0xff] %v17148_v43 }
 0x1fe   :  { %19698 = vst [vmem:[#allocation69_spill] sm:$0xff] %v17151_v58  ;;  %v11102_v62 = vpop.f32.mrb[24].mxu0 }
 0x1ff   :  { %v17154_v2 = vadd.f32 %v11102_v62, %v17140_v17  ;;  %v890_v21 = vpop.f32.mrb[25].mxu0 }
 0x200   :  { %v17157_v52 = vadd.f32 %v890_v21, %v17140_v17  ;;  %v17173_v21 = vsub.s32 1, %v320_v18 }
 0x201   :  { %19699 = vst [vmem:[#allocation70_spill] sm:$0xff] %v17154_v2  ;;  %v17171_v2 = vsub.s32 0, %v320_v18 }
 0x202   :  { %19700 = vst [vmem:[#allocation71_spill] sm:$0xff] %v17157_v52  ;;  %v11105_v0 = vpop.f32.mrb[26].mxu0  ;;  %19706 = vst [vmem:[#allocation77_spill] sm:$0xff] %v17173_v21 }
 0x203   :  { %v17160_v30 = vadd.f32 %v11105_v0, %v17140_v17  ;;  %v900_v51 = vpop.f32.mrb[27].mxu0  ;;  %19705 = vst [vmem:[#allocation76_spill] sm:$0xff] %v17171_v2  ;;  %v17176_v52 = vrot.slane %v317_v22, %v17171_v2 }
 0x204   :  { %v17163_v38 = vadd.f32 %v900_v51, %v17140_v17 }
 0x205   :  { %19701 = vst [vmem:[#allocation72_spill] sm:$0xff] %v17160_v30  ;;  %19707 = vst [vmem:[#allocation78_spill] sm:$0xff] %v17176_v52  ;;  %v17179_v30 = vrot.slane %v317_v22, %v17173_v21 }
 0x206   :  { %19702 = vst [vmem:[#allocation73_spill] sm:$0xff] %v17163_v38  ;;  %v11108_v43 = vpop.f32.mrb[28].mxu0 }
 0x207   :  { %v17166_v45 = vadd.f32 %v11108_v43, %v17140_v17  ;;  %v910_v58 = vpop.f32.mrb[29].mxu0  ;;  %19708 = vst [vmem:[#allocation79_spill] sm:$0xff] %v17179_v30 }
 0x208   :  { %v17169_v62 = vadd.f32 %v910_v58, %v17140_v17 }
 0x209   :  { %19703 = vst [vmem:[#allocation74_spill] sm:$0xff] %v17166_v45 }
 0x20a   :  { %19704 = vst [vmem:[#allocation75_spill] sm:$0xff] %v17169_v62 }
 0x216   :  { %v1136_v0 = vpop.f32.mrb[0].mxu0 }
 0x217   :  { %v15643_v51 = vadd.f32 %v1136_v0, %v17176_v52  ;;  %v1138_v38 = vpop.f32.mrb[1].mxu0  ;;  %v1207_v43 = vpop.f32.mrb[30].mxu1  ;;  %v526_v0 = vadd.f32 %v525_v41, %v17109_v28 }
 0x218   :  { %v11143_v45 = vpop.f32.mrb[31].mxu1  ;;  %v15644_v58 = vadd.f32 %v1138_v38, %v17179_v30  ;;  %v1366_v22 = vadd.f32 %v17183_v53, %v1207_v43 }
 0x219   :  { %v9965_v60 = vmul.f32 -1.442695, %v15643_v51  ;;  %v17188_v51 = vrot.slane %v662_v3, %v17171_v2 }
 0x21a   :  { %v9966_v62 = vmul.f32 -1.442695, %v15644_v58 }
 0x21b   :  { %15850 = vpow2.f32 %v9965_v60 }
 0x21c   :  { %15852 = vpow2.f32 %v9966_v62 }
 0x225   :  { %v15851_v18 = vpop.eup %15850 }
 0x226   :  { %v1360_v55 = vadd.f32 1.0, %v15851_v18  ;;  %v15853_v37 = vpop.eup %15852 }
 0x227   :  { %v1361_v44 = vadd.f32 1.0, %v15853_v37 }
 0x228   :  { %15854 = vrcp.f32 %v1360_v55  ;;  %v17191_v55 = vrot.slane %v662_v3, %v17173_v21 }
 0x229   :  { %15856 = vrcp.f32 %v1361_v44 }
 0x232   :  { %v15855_v23 = vpop.eup %15854 }
 0x233   :  { %v1367_v45 = vmul.f32 %v15855_v23, %v1366_v22  ;;  %v15857_v44 = vpop.eup %15856 }
 0x234   :  { %v1370_v28 = vsub.f32 1.0, %v15857_v44 }
 0x235   :  { %v1368_v60 = vadd.f32 %v1367_v45, %v526_v0  ;;  %v1372_v0 = vmul.f32 0.0, %v15857_v44 }
 0x236   :  { %v1348_v38 = vpop.f32.mrb[30].mxu0 }
 0x237   :  { %15858 = vtanh.f32 %v1368_v60  ;;  %v1277_v62 = vpop.f32.mrb[10].mxu1  ;;  %v11178_v58 = vpop.f32.mrb[31].mxu0 }
 0x238   :  { %v15663_v37 = vadd.f32 %v1277_v62, %v17188_v51  ;;  %v1279_v18 = vpop.f32.mrb[11].mxu1  ;;  %v19712_v62 = vmov 0.0  }
 0x239   :  { %v15664_v53 = vadd.f32 %v1279_v18, %v17191_v55 }
 0x23a   :  { %v9967_v43 = vmul.f32 -1.442695, %v15663_v37  ;;  %v17210_v37 = vld [vmem:[#allocation16] ss:$0 sm:$0xff] }
 0x23b   :  { %v9968_v23 = vmul.f32 -1.442695, %v15664_v53  ;;  %v19711_v53 = vmov 0.0|0.0  }
 0x23c   :  { %15860 = vpow2.f32 %v9967_v43  ;;  %v1388_v43 = vadd.f32 %v17210_v37, %v1348_v38 }
 0x23d   :  { %15862 = vpow2.f32 %v9968_v23  ;;  %v871_v23 = vadd.f32 %v17145_v36, %v17140_v17 }
 0x241   :  { %v15859_v41 = vpop.eup %15858 }
 0x242   :  { %v1371_v22 = vmul.f32 %v15859_v41, %v1370_v28 }
 0x244   :  { %v17195_v45 = vadd.f32 %v1372_v0, %v1371_v22 }
 0x246   :  { %19710 = vst [vmem:[#allocation81_spill] sm:$0xff] %v17195_v45  ;;  %v15861_v60 = vpop.eup %15860  ;;  %1474 = vmatmul.mubr.f32.vlgmr.msra.gmra.mrb[2].mxu0 %v17195_v45  ;;  %11212 = vmatmul.mubr.f32.vlgmr.msra.gmra.mrb[32].mxu1 %v17195_v45 }
 0x247   :  { %v1382_v3 = vadd.f32 1.0, %v15861_v60  ;;  %13277 = vmatpush1.bf16.msra.mxu1 %v16987_v8  ;;  %13308 = vmatpush3.bf16.msra.mxu0 %v16983_v7  ;;  %v15863_v58 = vpop.eup %15862 }
 0x248   :  { %13279 = vmatprep.subr.bf16.mxu1 %v16990_v11  ;;  %13309 = vmatprep.subr.bf16.mxu0 %v19711_v53  ;;  %v1383_v18 = vadd.f32 1.0, %v15863_v58  ;;  %v19715_v58 = vld [vmem:[#allocation51_spill] sm:$0xff] }
 0x249   :  { %15864 = vrcp.f32 %v1382_v3  ;;  %1614 = vmatprep.mubr.f32.mxu1 %v19712_v62  ;;  %11246 = vmatprep.mubr.msk.f32.mxu0 %vm16515_vm0, %v19712_v62  ;;  %v19714_v3 = vld [vmem:[#allocation47_spill] sm:$0xff] }
 0x24a   :  { %15866 = vrcp.f32 %v1383_v18  ;;  %v19716_v18 = vld [vmem:[#allocation54_spill] sm:$0xff] }
 0x24b   :  { %13281 = vmatpush1.bf16.msra.mxu1 %v16998_v20  ;;  %13311 = vmatpush3.bf16.msra.mxu0 %v16995_v19 }
 0x24c   :  { %13283 = vmatprep.subr.bf16.mxu1 %v17002_v24  ;;  %13312 = vmatprep.subr.bf16.mxu0 %v19711_v53 }
 0x24f   :  { %13285 = vmatpush1.bf16.msra.mxu1 %v17011_v33  ;;  %13314 = vmatpush3.bf16.msra.mxu0 %v17008_v32 }
 0x250   :  { %13287 = vmatprep.subr.bf16.mxu1 %v17015_v39  ;;  %13315 = vmatprep.subr.bf16.mxu0 %v19711_v53 }
 0x253   :  { %v15865_v44 = vpop.eup %15864  ;;  %13289 = vmatpush1.bf16.msra.mxu1 %v17021_v50  ;;  %13317 = vmatpush3.bf16.msra.mxu0 %v17018_v48 }
 0x254   :  { %v1389_v28 = vmul.f32 %v15865_v44, %v1388_v43  ;;  %13291 = vmatprep.subr.bf16.mxu1 %v17025_v61  ;;  %13318 = vmatprep.subr.bf16.mxu0 %v19711_v53  ;;  %v15867_v36 = vpop.eup %15866  ;;  %v19717_v43 = vld [vmem:[#allocation49_spill] sm:$0xff]  ;;  %v19718_v44 = vld [vmem:[#allocation55_spill] sm:$0xff] }
 0x255   :  { %v1392_v17 = vsub.f32 1.0, %v15867_v36  ;;  %v1394_v0 = vmul.f32 0.0, %v15867_v36 }
 0x256   :  { %v1390_v41 = vadd.f32 %v1389_v28, %v871_v23  ;;  %v19719_v23 = vld [vmem:[#allocation56_spill] sm:$0xff] }
 0x257   :  { %13293 = vmatpush1.bf16.msra.mxu1 %v17031_v9  ;;  %13320 = vmatpush3.bf16.msra.mxu0 %v17028_v5  ;;  %v19720_v28 = vld [vmem:[#allocation52_spill] sm:$0xff] }
 0x258   :  { %15868 = vtanh.f32 %v1390_v41  ;;  %13295 = vmatprep.subr.bf16.mxu1 %v17035_v14  ;;  %13321 = vmatprep.subr.bf16.mxu0 %v19711_v53  ;;  %v19721_v41 = vld [vmem:[#allocation53_spill] sm:$0xff] }
 0x25b   :  { %13297 = vmatpush1.bf16.msra.mxu1 %v17041_v26  ;;  %13323 = vmatpush3.bf16.msra.mxu0 %v17038_v25 }
 0x25c   :  { %13299 = vmatprep.subr.bf16.mxu1 %v17045_v34  ;;  %13324 = vmatprep.subr.bf16.mxu0 %v19711_v53 }
 0x25f   :  { %13301 = vmatpush1.bf16.msra.mxu1 %v17051_v56  ;;  %13326 = vmatpush3.bf16.msra.mxu0 %v17048_v46 }
 0x260   :  { %13303 = vmatprep.subr.bf16.mxu1 %v17055_v63  ;;  %13327 = vmatprep.subr.bf16.mxu0 %v19711_v53 }
 0x262   :  { %v15869_v38 = vpop.eup %15868 }
 0x263   :  { %13305 = vmatpush1.bf16.msra.mxu1 %v17061_v13  ;;  %13329 = vmatpush3.bf16.msra.mxu0 %v17058_v10  ;;  %v1393_v22 = vmul.f32 %v15869_v38, %v1392_v17 }
 0x264   :  { %13331 = vmatprep.subr.bf16.mxu0 %v16831_v31  ;;  %13362 = vmatprep.subr.bf16.mxu1 %v19711_v53 }
 0x265   :  { %v17239_v60 = vadd.f32 %v1394_v0, %v1393_v22 }
 0x267   :  { %19713 = vst [vmem:[#allocation82_spill] sm:$0xff] %v17239_v60  ;;  %1615 = vmatmul.mubr.f32.vlgmr.msra.gmra.mrb[12].mxu1 %v17239_v60  ;;  %11247 = vmatmul.mubr.f32.vlgmr.msra.gmra.mrb[32].mxu0 %v17239_v60 }
 0x268   :  { %13333 = vmatpush1.bf16.msra.mxu0 %v16857_v47  ;;  %13364 = vmatpush3.bf16.msra.mxu1 %v16838_v35 }
 0x269   :  { %13335 = vmatprep.subr.bf16.mxu0 %v16861_v49  ;;  %13365 = vmatprep.subr.bf16.mxu1 %v19711_v53 }
 0x26a   :  { %1814 = vmatprep.mubr.f32.mxu0 %v19712_v62  ;;  %11281 = vmatprep.mubr.msk.f32.mxu1 %vm16515_vm0, %v19712_v62 }
 0x26c   :  { %13337 = vmatpush1.bf16.msra.mxu0 %v16874_v57  ;;  %13367 = vmatpush3.bf16.msra.mxu1 %v16850_v42 }
 0x26d   :  { %13339 = vmatprep.subr.bf16.mxu0 %v16879_v59  ;;  %13368 = vmatprep.subr.bf16.mxu1 %v19711_v53 }
 0x270   :  { %13341 = vmatpush1.bf16.msra.mxu0 %v16892_v4  ;;  %13370 = vmatpush3.bf16.msra.mxu1 %v16869_v54 }
 0x271   :  { %13343 = vmatprep.subr.bf16.mxu0 %v16897_v6  ;;  %13371 = vmatprep.subr.bf16.mxu1 %v19711_v53 }
 0x274   :  { %13345 = vmatpush1.bf16.msra.mxu0 %v16911_v15  ;;  %13373 = vmatpush3.bf16.msra.mxu1 %v16886_v1 }
 0x275   :  { %13347 = vmatprep.subr.bf16.mxu0 %v16915_v16  ;;  %13374 = vmatprep.subr.bf16.mxu1 %v19711_v53 }
 0x278   :  { %13349 = vmatpush1.bf16.msra.mxu0 %v16931_v27  ;;  %13376 = vmatpush3.bf16.msra.mxu1 %v16905_v12 }
 0x279   :  { %13351 = vmatprep.subr.bf16.mxu0 %v16936_v29  ;;  %13377 = vmatprep.subr.bf16.mxu1 %v19711_v53  ;;  %v19723_v29 = vld [vmem:[#allocation58_spill] sm:$0xff] }
 0x27c   :  { %13353 = vmatpush1.bf16.msra.mxu0 %v16949_v40  ;;  %13379 = vmatpush3.bf16.msra.mxu1 %v19714_v3 }
 0x27d   :  { %13355 = vmatprep.subr.bf16.mxu0 %v19715_v58  ;;  %13380 = vmatprep.subr.bf16.mxu1 %v19711_v53 }
 0x280   :  { %13357 = vmatpush1.bf16.msra.mxu0 %v19716_v18  ;;  %13382 = vmatpush3.bf16.msra.mxu1 %v19717_v43 }
 0x281   :  { %13359 = vmatprep.subr.bf16.mxu0 %v19718_v44  ;;  %13383 = vmatprep.subr.bf16.mxu1 %v19711_v53 }
 0x284   :  { %13361 = vmatpush1.bf16.msra.mxu0 %v19719_v23  ;;  %13385 = vmatpush3.bf16.msra.mxu1 %v19720_v28 }
 0x285   :  { %13387 = vmatprep.subr.bf16.mxu1 %v19721_v41  ;;  %13418 = vmatprep.subr.bf16.mxu0 %v19711_v53  ;;  %v19722_v41 = vld [vmem:[#allocation80_spill] sm:$0xff] }
 0x319   :  { %v1475_v36 = vpop.f32.mrb[2].mxu0  ;;  %v1546_v17 = vpop.f32.mrb[32].mxu1 }
 0x31a   :  { %v15645_v38 = vadd.f32 %v1475_v36, %v17176_v52  ;;  %v1477_v22 = vpop.f32.mrb[3].mxu0  ;;  %v11213_v0 = vpop.f32.mrb[33].mxu1  ;;  %v1705_v58 = vadd.f32 %v19722_v41, %v1546_v17 }
 0x31b   :  { %v15646_v2 = vadd.f32 %v1477_v22, %v17179_v30 }
 0x31c   :  { %v9969_v21 = vmul.f32 -1.442695, %v15645_v38 }
 0x31d   :  { %v9970_v44 = vmul.f32 -1.442695, %v15646_v2 }
 0x31e   :  { %15870 = vpow2.f32 %v9969_v21 }
 0x31f   :  { %15872 = vpow2.f32 %v9970_v44 }
 0x328   :  { %v15871_v43 = vpop.eup %15870 }
 0x329   :  { %v1699_v23 = vadd.f32 1.0, %v15871_v43  ;;  %v15873_v28 = vpop.eup %15872 }
 0x32a   :  { %v1700_v18 = vadd.f32 1.0, %v15873_v28 }
 0x32b   :  { %15874 = vrcp.f32 %v1699_v23 }
 0x32c   :  { %15876 = vrcp.f32 %v1700_v18 }
 0x335   :  { %v15875_v3 = vpop.eup %15874 }
 0x336   :  { %v1706_v40 = vmul.f32 %v15875_v3, %v1705_v58  ;;  %v15877_v23 = vpop.eup %15876 }
 0x337   :  { %v1709_v30 = vsub.f32 1.0, %v15877_v23  ;;  %v1711_v3 = vmul.f32 %v15877_v23, %v17195_v45 }
 0x338   :  { %v1707_v36 = vadd.f32 %v1706_v40, %v19723_v29 }
 0x33a   :  { %15878 = vtanh.f32 %v1707_v36  ;;  %v1616_v0 = vpop.f32.mrb[12].mxu1  ;;  %v1687_v38 = vpop.f32.mrb[32].mxu0 }
 0x33b   :  { %v15665_v22 = vadd.f32 %v1616_v0, %v17188_v51  ;;  %v1618_v21 = vpop.f32.mrb[13].mxu1  ;;  %v11248_v2 = vpop.f32.mrb[33].mxu0 }
 0x33c   :  { %v15666_v43 = vadd.f32 %v1618_v21, %v17191_v55 }
 0x33d   :  { %v9971_v44 = vmul.f32 -1.442695, %v15665_v22  ;;  %v19725_v22 = vld [vmem:[#allocation67_spill] sm:$0xff] }
 0x33e   :  { %v9972_v28 = vmul.f32 -1.442695, %v15666_v43 }
 0x33f   :  { %15880 = vpow2.f32 %v9971_v44 }
 0x340   :  { %15882 = vpow2.f32 %v9972_v28 }
 0x344   :  { %v15879_v17 = vpop.eup %15878 }
 0x345   :  { %v1710_v41 = vmul.f32 %v15879_v17, %v1709_v30  ;;  %v19727_v17 = vld [vmem:[#allocation48_spill] sm:$0xff] }
 0x347   :  { %v17285_v29 = vadd.f32 %v1711_v3, %v1710_v41  ;;  %v1727_v41 = vadd.f32 %v17210_v37, %v1687_v38  ;;  %v19728_v3 = vld [vmem:[#allocation50_spill] sm:$0xff] }
 0x349   :  { %19724 = vst [vmem:[#allocation58_spill] sm:$0xff] %v17285_v29  ;;  %v15881_v40 = vpop.eup %15880  ;;  %1815 = vmatmul.mubr.f32.vlgmr.msra.gmra.mrb[4].mxu0 %v17285_v29  ;;  %11282 = vmatmul.mubr.f32.vlgmr.msra.gmra.mrb[34].mxu1 %v17285_v29 }
 0x34a   :  { %v1721_v58 = vadd.f32 1.0, %v15881_v40  ;;  %13389 = vmatpush1.bf16.msra.mxu1 %v16987_v8  ;;  %13420 = vmatpush3.bf16.msra.mxu0 %v16983_v7  ;;  %v15883_v30 = vpop.eup %15882  ;;  %v19729_v40 = vld [vmem:[#allocation47_spill] sm:$0xff] }
 0x34b   :  { %13391 = vmatprep.subr.bf16.mxu1 %v16990_v11  ;;  %13421 = vmatprep.subr.bf16.mxu0 %v19711_v53  ;;  %v1722_v18 = vadd.f32 1.0, %v15883_v30  ;;  %v19731_v30 = vld [vmem:[#allocation54_spill] sm:$0xff] }
 0x34c   :  { %15884 = vrcp.f32 %v1721_v58  ;;  %1955 = vmatprep.mubr.f32.mxu1 %v19712_v62  ;;  %11316 = vmatprep.mubr.msk.f32.mxu0 %vm16515_vm0, %v19712_v62  ;;  %v19730_v58 = vld [vmem:[#allocation51_spill] sm:$0xff] }
 0x34d   :  { %15886 = vrcp.f32 %v1722_v18  ;;  %v19732_v18 = vld [vmem:[#allocation49_spill] sm:$0xff] }
 0x34e   :  { %13393 = vmatpush1.bf16.msra.mxu1 %v16998_v20  ;;  %13423 = vmatpush3.bf16.msra.mxu0 %v16995_v19 }
 0x34f   :  { %13395 = vmatprep.subr.bf16.mxu1 %v17002_v24  ;;  %13424 = vmatprep.subr.bf16.mxu0 %v19711_v53 }
 0x352   :  { %13397 = vmatpush1.bf16.msra.mxu1 %v17011_v33  ;;  %13426 = vmatpush3.bf16.msra.mxu0 %v17008_v32 }
 0x353   :  { %13399 = vmatprep.subr.bf16.mxu1 %v17015_v39  ;;  %13427 = vmatprep.subr.bf16.mxu0 %v19711_v53 }
 0x356   :  { %v15885_v36 = vpop.eup %15884  ;;  %13401 = vmatpush1.bf16.msra.mxu1 %v17021_v50  ;;  %13429 = vmatpush3.bf16.msra.mxu0 %v17018_v48 }
 0x357   :  { %v1728_v0 = vmul.f32 %v15885_v36, %v1727_v41  ;;  %13403 = vmatprep.subr.bf16.mxu1 %v17025_v61  ;;  %13430 = vmatprep.subr.bf16.mxu0 %v19711_v53  ;;  %v15887_v38 = vpop.eup %15886  ;;  %v19733_v41 = vld [vmem:[#allocation55_spill] sm:$0xff]  ;;  %v19734_v36 = vld [vmem:[#allocation56_spill] sm:$0xff] }
 0x358   :  { %v1731_v2 = vsub.f32 1.0, %v15887_v38  ;;  %v1733_v23 = vmul.f32 %v15887_v38, %v17239_v60  ;;  %v19737_v60 = vld [vmem:[#allocation79_spill] sm:$0xff] }
 0x359   :  { %v1729_v21 = vadd.f32 %v1728_v0, %v19725_v22  ;;  %v19735_v0 = vld [vmem:[#allocation52_spill] sm:$0xff]  ;;  %v19736_v22 = vld [vmem:[#allocation53_spill] sm:$0xff] }
 0x35a   :  { %13405 = vmatpush1.bf16.msra.mxu1 %v17031_v9  ;;  %13432 = vmatpush3.bf16.msra.mxu0 %v17028_v5 }
 0x35b   :  { %15888 = vtanh.f32 %v1729_v21  ;;  %13407 = vmatprep.subr.bf16.mxu1 %v17035_v14  ;;  %13433 = vmatprep.subr.bf16.mxu0 %v19711_v53 }
 0x35e   :  { %13409 = vmatpush1.bf16.msra.mxu1 %v17041_v26  ;;  %13435 = vmatpush3.bf16.msra.mxu0 %v17038_v25 }
 0x35f   :  { %13411 = vmatprep.subr.bf16.mxu1 %v17045_v34  ;;  %13436 = vmatprep.subr.bf16.mxu0 %v19711_v53 }
 0x362   :  { %13413 = vmatpush1.bf16.msra.mxu1 %v17051_v56  ;;  %13438 = vmatpush3.bf16.msra.mxu0 %v17048_v46 }
 0x363   :  { %13415 = vmatprep.subr.bf16.mxu1 %v17055_v63  ;;  %13439 = vmatprep.subr.bf16.mxu0 %v19711_v53 }
 0x365   :  { %v15889_v44 = vpop.eup %15888 }
 0x366   :  { %13417 = vmatpush1.bf16.msra.mxu1 %v17061_v13  ;;  %13441 = vmatpush3.bf16.msra.mxu0 %v17058_v10  ;;  %v1732_v43 = vmul.f32 %v15889_v44, %v1731_v2 }
 0x367   :  { %13443 = vmatprep.subr.bf16.mxu0 %v16831_v31  ;;  %13474 = vmatprep.subr.bf16.mxu1 %v19711_v53 }
 0x368   :  { %v17327_v28 = vadd.f32 %v1733_v23, %v1732_v43 }
 0x36a   :  { %19726 = vst [vmem:[#allocation67_spill] sm:$0xff] %v17327_v28  ;;  %1956 = vmatmul.mubr.f32.vlgmr.msra.gmra.mrb[14].mxu1 %v17327_v28  ;;  %11317 = vmatmul.mubr.f32.vlgmr.msra.gmra.mrb[34].mxu0 %v17327_v28 }
 0x36b   :  { %13445 = vmatpush1.bf16.msra.mxu0 %v16857_v47  ;;  %13476 = vmatpush3.bf16.msra.mxu1 %v16838_v35 }
 0x36c   :  { %13447 = vmatprep.subr.bf16.mxu0 %v16861_v49  ;;  %13477 = vmatprep.subr.bf16.mxu1 %v19711_v53 }
 0x36d   :  { %2155 = vmatprep.mubr.f32.mxu0 %v19712_v62  ;;  %11351 = vmatprep.mubr.msk.f32.mxu1 %vm16515_vm0, %v19712_v62 }
 0x36f   :  { %13449 = vmatpush1.bf16.msra.mxu0 %v16874_v57  ;;  %13479 = vmatpush3.bf16.msra.mxu1 %v16850_v42 }
 0x370   :  { %13451 = vmatprep.subr.bf16.mxu0 %v16879_v59  ;;  %13480 = vmatprep.subr.bf16.mxu1 %v19711_v53 }
 0x373   :  { %13453 = vmatpush1.bf16.msra.mxu0 %v16892_v4  ;;  %13482 = vmatpush3.bf16.msra.mxu1 %v16869_v54 }
 0x374   :  { %13455 = vmatprep.subr.bf16.mxu0 %v16897_v6  ;;  %13483 = vmatprep.subr.bf16.mxu1 %v19711_v53 }
 0x377   :  { %13457 = vmatpush1.bf16.msra.mxu0 %v16911_v15  ;;  %13485 = vmatpush3.bf16.msra.mxu1 %v16886_v1 }
 0x378   :  { %13459 = vmatprep.subr.bf16.mxu0 %v16915_v16  ;;  %13486 = vmatprep.subr.bf16.mxu1 %v19711_v53 }
 0x37b   :  { %13461 = vmatpush1.bf16.msra.mxu0 %v16931_v27  ;;  %13488 = vmatpush3.bf16.msra.mxu1 %v16905_v12 }
 0x37c   :  { %13463 = vmatprep.subr.bf16.mxu0 %v19727_v17  ;;  %13489 = vmatprep.subr.bf16.mxu1 %v19711_v53  ;;  %v19739_v17 = vld [vmem:[#allocation60_spill] sm:$0xff] }
 0x37f   :  { %13465 = vmatpush1.bf16.msra.mxu0 %v19728_v3  ;;  %13491 = vmatpush3.bf16.msra.mxu1 %v19729_v40 }
 0x380   :  { %13467 = vmatprep.subr.bf16.mxu0 %v19730_v58  ;;  %13492 = vmatprep.subr.bf16.mxu1 %v19711_v53 }
 0x383   :  { %13469 = vmatpush1.bf16.msra.mxu0 %v19731_v30  ;;  %13494 = vmatpush3.bf16.msra.mxu1 %v19732_v18 }
 0x384   :  { %13471 = vmatprep.subr.bf16.mxu0 %v19733_v41  ;;  %13495 = vmatprep.subr.bf16.mxu1 %v19711_v53 }
 0x387   :  { %13473 = vmatpush1.bf16.msra.mxu0 %v19734_v36  ;;  %13497 = vmatpush3.bf16.msra.mxu1 %v19735_v0 }
 0x388   :  { %13499 = vmatprep.subr.bf16.mxu1 %v19736_v22  ;;  %13530 = vmatprep.subr.bf16.mxu0 %v19711_v53  ;;  %v19738_v22 = vld [vmem:[#allocation80_spill] sm:$0xff] }
 0x41c   :  { %v1816_v21 = vpop.f32.mrb[4].mxu0  ;;  %v1887_v38 = vpop.f32.mrb[34].mxu1 }
 0x41d   :  { %v15647_v2 = vadd.f32 %v1816_v21, %v17176_v52  ;;  %v1818_v44 = vpop.f32.mrb[5].mxu0  ;;  %v11283_v43 = vpop.f32.mrb[35].mxu1  ;;  %v2046_v58 = vadd.f32 %v19738_v22, %v1887_v38 }
 0x41e   :  { %v15648_v45 = vadd.f32 %v1818_v44, %v19737_v60 }
 0x41f   :  { %v9973_v23 = vmul.f32 -1.442695, %v15647_v2 }
 0x420   :  { %v9974_v41 = vmul.f32 -1.442695, %v15648_v45 }
 0x421   :  { %15890 = vpow2.f32 %v9973_v23 }
 0x422   :  { %15892 = vpow2.f32 %v9974_v41 }
 0x42b   :  { %v15891_v18 = vpop.eup %15890 }
 0x42c   :  { %v2040_v36 = vadd.f32 1.0, %v15891_v18  ;;  %v15893_v0 = vpop.eup %15892 }
 0x42d   :  { %v2041_v30 = vadd.f32 1.0, %v15893_v0 }
 0x42e   :  { %15894 = vrcp.f32 %v2040_v36 }
 0x42f   :  { %15896 = vrcp.f32 %v2041_v30 }
 0x438   :  { %v15895_v40 = vpop.eup %15894 }
 0x439   :  { %v2047_v3 = vmul.f32 %v15895_v40, %v2046_v58  ;;  %v15897_v36 = vpop.eup %15896 }
 0x43a   :  { %v2050_v60 = vsub.f32 1.0, %v15897_v36  ;;  %v2052_v40 = vmul.f32 %v15897_v36, %v17285_v29 }
 0x43b   :  { %v2048_v21 = vadd.f32 %v2047_v3, %v19739_v17 }
 0x43d   :  { %15898 = vtanh.f32 %v2048_v21  ;;  %v1957_v43 = vpop.f32.mrb[14].mxu1  ;;  %v2028_v2 = vpop.f32.mrb[34].mxu0 }
 0x43e   :  { %v15667_v44 = vadd.f32 %v1957_v43, %v17188_v51  ;;  %v1959_v23 = vpop.f32.mrb[15].mxu1  ;;  %v11318_v45 = vpop.f32.mrb[35].mxu0 }
 0x43f   :  { %v15668_v18 = vadd.f32 %v1959_v23, %v17191_v55 }
 0x440   :  { %v9975_v41 = vmul.f32 -1.442695, %v15667_v44  ;;  %v19741_v44 = vld [vmem:[#allocation69_spill] sm:$0xff] }
 0x441   :  { %v9976_v0 = vmul.f32 -1.442695, %v15668_v18 }
 0x442   :  { %15900 = vpow2.f32 %v9975_v41 }
 0x443   :  { %15902 = vpow2.f32 %v9976_v0 }
 0x447   :  { %v15899_v38 = vpop.eup %15898 }
 0x448   :  { %v2051_v22 = vmul.f32 %v15899_v38, %v2050_v60  ;;  %v19743_v38 = vld [vmem:[#allocation48_spill] sm:$0xff] }
 0x44a   :  { %v17373_v17 = vadd.f32 %v2052_v40, %v2051_v22  ;;  %v2068_v22 = vadd.f32 %v17210_v37, %v2028_v2  ;;  %v19744_v40 = vld [vmem:[#allocation50_spill] sm:$0xff] }
 0x44c   :  { %19740 = vst [vmem:[#allocation60_spill] sm:$0xff] %v17373_v17  ;;  %v15901_v3 = vpop.eup %15900  ;;  %2156 = vmatmul.mubr.f32.vlgmr.msra.gmra.mrb[6].mxu0 %v17373_v17  ;;  %11352 = vmatmul.mubr.f32.vlgmr.msra.gmra.mrb[36].mxu1 %v17373_v17 }
 0x44d   :  { %v2062_v58 = vadd.f32 1.0, %v15901_v3  ;;  %13501 = vmatpush1.bf16.msra.mxu1 %v16987_v8  ;;  %13532 = vmatpush3.bf16.msra.mxu0 %v16983_v7  ;;  %v15903_v60 = vpop.eup %15902  ;;  %v19745_v3 = vld [vmem:[#allocation47_spill] sm:$0xff] }
 0x44e   :  { %13503 = vmatprep.subr.bf16.mxu1 %v16990_v11  ;;  %13533 = vmatprep.subr.bf16.mxu0 %v19711_v53  ;;  %v2063_v30 = vadd.f32 1.0, %v15903_v60  ;;  %v19747_v60 = vld [vmem:[#allocation54_spill] sm:$0xff] }
 0x44f   :  { %15904 = vrcp.f32 %v2062_v58  ;;  %2296 = vmatprep.mubr.f32.mxu1 %v19712_v62  ;;  %11386 = vmatprep.mubr.msk.f32.mxu0 %vm16515_vm0, %v19712_v62  ;;  %v19746_v58 = vld [vmem:[#allocation51_spill] sm:$0xff] }
 0x450   :  { %15906 = vrcp.f32 %v2063_v30  ;;  %v19748_v30 = vld [vmem:[#allocation49_spill] sm:$0xff] }
 0x451   :  { %13505 = vmatpush1.bf16.msra.mxu1 %v16998_v20  ;;  %13535 = vmatpush3.bf16.msra.mxu0 %v16995_v19 }
 0x452   :  { %13507 = vmatprep.subr.bf16.mxu1 %v17002_v24  ;;  %13536 = vmatprep.subr.bf16.mxu0 %v19711_v53 }
 0x455   :  { %13509 = vmatpush1.bf16.msra.mxu1 %v17011_v33  ;;  %13538 = vmatpush3.bf16.msra.mxu0 %v17008_v32 }
 0x456   :  { %13511 = vmatprep.subr.bf16.mxu1 %v17015_v39  ;;  %13539 = vmatprep.subr.bf16.mxu0 %v19711_v53 }
 0x459   :  { %v15905_v21 = vpop.eup %15904  ;;  %13513 = vmatpush1.bf16.msra.mxu1 %v17021_v50  ;;  %13541 = vmatpush3.bf16.msra.mxu0 %v17018_v48 }
 0x45a   :  { %v2069_v43 = vmul.f32 %v15905_v21, %v2068_v22  ;;  %13515 = vmatprep.subr.bf16.mxu1 %v17025_v61  ;;  %13542 = vmatprep.subr.bf16.mxu0 %v19711_v53  ;;  %v15907_v2 = vpop.eup %15906  ;;  %v19749_v22 = vld [vmem:[#allocation55_spill] sm:$0xff]  ;;  %v19750_v21 = vld [vmem:[#allocation56_spill] sm:$0xff] }
 0x45b   :  { %v2072_v45 = vsub.f32 1.0, %v15907_v2  ;;  %v2074_v36 = vmul.f32 %v15907_v2, %v17327_v28  ;;  %v19753_v28 = vld [vmem:[#allocation79_spill] sm:$0xff] }
 0x45c   :  { %v2070_v23 = vadd.f32 %v2069_v43, %v19741_v44  ;;  %v19751_v43 = vld [vmem:[#allocation52_spill] sm:$0xff]  ;;  %v19752_v44 = vld [vmem:[#allocation53_spill] sm:$0xff] }
 0x45d   :  { %13517 = vmatpush1.bf16.msra.mxu1 %v17031_v9  ;;  %13544 = vmatpush3.bf16.msra.mxu0 %v17028_v5 }
 0x45e   :  { %15908 = vtanh.f32 %v2070_v23  ;;  %13519 = vmatprep.subr.bf16.mxu1 %v17035_v14  ;;  %13545 = vmatprep.subr.bf16.mxu0 %v19711_v53 }
 0x461   :  { %13521 = vmatpush1.bf16.msra.mxu1 %v17041_v26  ;;  %13547 = vmatpush3.bf16.msra.mxu0 %v17038_v25 }
 0x462   :  { %13523 = vmatprep.subr.bf16.mxu1 %v17045_v34  ;;  %13548 = vmatprep.subr.bf16.mxu0 %v19711_v53 }
 0x465   :  { %13525 = vmatpush1.bf16.msra.mxu1 %v17051_v56  ;;  %13550 = vmatpush3.bf16.msra.mxu0 %v17048_v46 }
 0x466   :  { %13527 = vmatprep.subr.bf16.mxu1 %v17055_v63  ;;  %13551 = vmatprep.subr.bf16.mxu0 %v19711_v53 }
 0x468   :  { %v15909_v41 = vpop.eup %15908 }
 0x469   :  { %13529 = vmatpush1.bf16.msra.mxu1 %v17061_v13  ;;  %13553 = vmatpush3.bf16.msra.mxu0 %v17058_v10  ;;  %v2073_v18 = vmul.f32 %v15909_v41, %v2072_v45 }
 0x46a   :  { %13555 = vmatprep.subr.bf16.mxu0 %v16831_v31  ;;  %13586 = vmatprep.subr.bf16.mxu1 %v19711_v53 }
 0x46b   :  { %v17415_v0 = vadd.f32 %v2074_v36, %v2073_v18 }
 0x46d   :  { %19742 = vst [vmem:[#allocation69_spill] sm:$0xff] %v17415_v0  ;;  %2297 = vmatmul.mubr.f32.vlgmr.msra.gmra.mrb[16].mxu1 %v17415_v0  ;;  %11387 = vmatmul.mubr.f32.vlgmr.msra.gmra.mrb[36].mxu0 %v17415_v0 }
 0x46e   :  { %13557 = vmatpush1.bf16.msra.mxu0 %v16857_v47  ;;  %13588 = vmatpush3.bf16.msra.mxu1 %v16838_v35 }
 0x46f   :  { %13559 = vmatprep.subr.bf16.mxu0 %v16861_v49  ;;  %13589 = vmatprep.subr.bf16.mxu1 %v19711_v53 }
 0x470   :  { %2496 = vmatprep.mubr.f32.mxu0 %v19712_v62  ;;  %11421 = vmatprep.mubr.msk.f32.mxu1 %vm16515_vm0, %v19712_v62 }
 0x472   :  { %13561 = vmatpush1.bf16.msra.mxu0 %v16874_v57  ;;  %13591 = vmatpush3.bf16.msra.mxu1 %v16850_v42 }
 0x473   :  { %13563 = vmatprep.subr.bf16.mxu0 %v16879_v59  ;;  %13592 = vmatprep.subr.bf16.mxu1 %v19711_v53 }
 0x476   :  { %13565 = vmatpush1.bf16.msra.mxu0 %v16892_v4  ;;  %13594 = vmatpush3.bf16.msra.mxu1 %v16869_v54 }
 0x477   :  { %13567 = vmatprep.subr.bf16.mxu0 %v16897_v6  ;;  %13595 = vmatprep.subr.bf16.mxu1 %v19711_v53 }
 0x47a   :  { %13569 = vmatpush1.bf16.msra.mxu0 %v16911_v15  ;;  %13597 = vmatpush3.bf16.msra.mxu1 %v16886_v1 }
 0x47b   :  { %13571 = vmatprep.subr.bf16.mxu0 %v16915_v16  ;;  %13598 = vmatprep.subr.bf16.mxu1 %v19711_v53 }
 0x47e   :  { %13573 = vmatpush1.bf16.msra.mxu0 %v16931_v27  ;;  %13600 = vmatpush3.bf16.msra.mxu1 %v16905_v12 }
 0x47f   :  { %13575 = vmatprep.subr.bf16.mxu0 %v19743_v38  ;;  %13601 = vmatprep.subr.bf16.mxu1 %v19711_v53  ;;  %v19755_v38 = vld [vmem:[#allocation59_spill] sm:$0xff] }
 0x482   :  { %13577 = vmatpush1.bf16.msra.mxu0 %v19744_v40  ;;  %13603 = vmatpush3.bf16.msra.mxu1 %v19745_v3 }
 0x483   :  { %13579 = vmatprep.subr.bf16.mxu0 %v19746_v58  ;;  %13604 = vmatprep.subr.bf16.mxu1 %v19711_v53 }
 0x486   :  { %13581 = vmatpush1.bf16.msra.mxu0 %v19747_v60  ;;  %13606 = vmatpush3.bf16.msra.mxu1 %v19748_v30 }
 0x487   :  { %13583 = vmatprep.subr.bf16.mxu0 %v19749_v22  ;;  %13607 = vmatprep.subr.bf16.mxu1 %v19711_v53 }
 0x48a   :  { %13585 = vmatpush1.bf16.msra.mxu0 %v19750_v21  ;;  %13609 = vmatpush3.bf16.msra.mxu1 %v19751_v43 }
 0x48b   :  { %13611 = vmatprep.subr.bf16.mxu1 %v19752_v44  ;;  %13642 = vmatprep.subr.bf16.mxu0 %v19711_v53  ;;  %v19754_v44 = vld [vmem:[#allocation80_spill] sm:$0xff] }
 0x51f   :  { %v2157_v23 = vpop.f32.mrb[6].mxu0  ;;  %v2228_v2 = vpop.f32.mrb[36].mxu1 }
 0x520   :  { %v15649_v45 = vadd.f32 %v2157_v23, %v17176_v52  ;;  %v2159_v41 = vpop.f32.mrb[7].mxu0  ;;  %v11353_v18 = vpop.f32.mrb[37].mxu1  ;;  %v2387_v58 = vadd.f32 %v19754_v44, %v2228_v2 }
 0x521   :  { %v15650_v29 = vadd.f32 %v2159_v41, %v19753_v28 }
 0x522   :  { %v9977_v36 = vmul.f32 -1.442695, %v15649_v45 }
 0x523   :  { %v9978_v22 = vmul.f32 -1.442695, %v15650_v29 }
 0x524   :  { %15910 = vpow2.f32 %v9977_v36 }
 0x525   :  { %15912 = vpow2.f32 %v9978_v22 }
 0x52e   :  { %v15911_v30 = vpop.eup %15910 }
 0x52f   :  { %v2381_v21 = vadd.f32 1.0, %v15911_v30  ;;  %v15913_v43 = vpop.eup %15912 }
 0x530   :  { %v2382_v60 = vadd.f32 1.0, %v15913_v43 }
 0x531   :  { %15914 = vrcp.f32 %v2381_v21 }
 0x532   :  { %15916 = vrcp.f32 %v2382_v60 }
 0x53b   :  { %v15915_v3 = vpop.eup %15914 }
 0x53c   :  { %v2388_v40 = vmul.f32 %v15915_v3, %v2387_v58  ;;  %v15917_v21 = vpop.eup %15916 }
 0x53d   :  { %v2391_v28 = vsub.f32 1.0, %v15917_v21  ;;  %v2393_v3 = vmul.f32 %v15917_v21, %v17373_v17 }
 0x53e   :  { %v2389_v23 = vadd.f32 %v2388_v40, %v19755_v38 }
 0x540   :  { %15918 = vtanh.f32 %v2389_v23  ;;  %v2298_v18 = vpop.f32.mrb[16].mxu1  ;;  %v2369_v45 = vpop.f32.mrb[36].mxu0 }
 0x541   :  { %v15669_v41 = vadd.f32 %v2298_v18, %v17188_v51  ;;  %v2300_v36 = vpop.f32.mrb[17].mxu1  ;;  %v11388_v29 = vpop.f32.mrb[37].mxu0 }
 0x542   :  { %v15670_v30 = vadd.f32 %v2300_v36, %v17191_v55 }
 0x543   :  { %v9979_v22 = vmul.f32 -1.442695, %v15669_v41  ;;  %v19757_v41 = vld [vmem:[#allocation68_spill] sm:$0xff] }
 0x544   :  { %v9980_v43 = vmul.f32 -1.442695, %v15670_v30 }
 0x545   :  { %15920 = vpow2.f32 %v9979_v22 }
 0x546   :  { %15922 = vpow2.f32 %v9980_v43 }
 0x54a   :  { %v15919_v2 = vpop.eup %15918 }
 0x54b   :  { %v2392_v44 = vmul.f32 %v15919_v2, %v2391_v28  ;;  %v19759_v2 = vld [vmem:[#allocation48_spill] sm:$0xff] }
 0x54d   :  { %v17461_v38 = vadd.f32 %v2393_v3, %v2392_v44  ;;  %v2409_v44 = vadd.f32 %v17210_v37, %v2369_v45  ;;  %v19760_v3 = vld [vmem:[#allocation50_spill] sm:$0xff] }
 0x54f   :  { %19756 = vst [vmem:[#allocation59_spill] sm:$0xff] %v17461_v38  ;;  %v15921_v40 = vpop.eup %15920  ;;  %2497 = vmatmul.mubr.f32.vlgmr.msra.gmra.mrb[8].mxu0 %v17461_v38  ;;  %11422 = vmatmul.mubr.f32.vlgmr.msra.gmra.mrb[38].mxu1 %v17461_v38 }
 0x550   :  { %v2403_v58 = vadd.f32 1.0, %v15921_v40  ;;  %13613 = vmatpush1.bf16.msra.mxu1 %v16987_v8  ;;  %13644 = vmatpush3.bf16.msra.mxu0 %v16983_v7  ;;  %v15923_v28 = vpop.eup %15922  ;;  %v19761_v40 = vld [vmem:[#allocation47_spill] sm:$0xff] }
 0x551   :  { %13615 = vmatprep.subr.bf16.mxu1 %v16990_v11  ;;  %13645 = vmatprep.subr.bf16.mxu0 %v19711_v53  ;;  %v2404_v60 = vadd.f32 1.0, %v15923_v28  ;;  %v19763_v28 = vld [vmem:[#allocation54_spill] sm:$0xff] }
 0x552   :  { %15924 = vrcp.f32 %v2403_v58  ;;  %2637 = vmatprep.mubr.f32.mxu1 %v19712_v62  ;;  %11456 = vmatprep.mubr.msk.f32.mxu0 %vm16515_vm0, %v19712_v62  ;;  %v19762_v58 = vld [vmem:[#allocation51_spill] sm:$0xff] }
 0x553   :  { %15926 = vrcp.f32 %v2404_v60  ;;  %v19764_v60 = vld [vmem:[#allocation49_spill] sm:$0xff] }
 0x554   :  { %13617 = vmatpush1.bf16.msra.mxu1 %v16998_v20  ;;  %13647 = vmatpush3.bf16.msra.mxu0 %v16995_v19 }
 0x555   :  { %13619 = vmatprep.subr.bf16.mxu1 %v17002_v24  ;;  %13648 = vmatprep.subr.bf16.mxu0 %v19711_v53 }
 0x558   :  { %13621 = vmatpush1.bf16.msra.mxu1 %v17011_v33  ;;  %13650 = vmatpush3.bf16.msra.mxu0 %v17008_v32 }
 0x559   :  { %13623 = vmatprep.subr.bf16.mxu1 %v17015_v39  ;;  %13651 = vmatprep.subr.bf16.mxu0 %v19711_v53 }
 0x55c   :  { %v15925_v23 = vpop.eup %15924  ;;  %13625 = vmatpush1.bf16.msra.mxu1 %v17021_v50  ;;  %13653 = vmatpush3.bf16.msra.mxu0 %v17018_v48 }
 0x55d   :  { %v2410_v18 = vmul.f32 %v15925_v23, %v2409_v44  ;;  %13627 = vmatprep.subr.bf16.mxu1 %v17025_v61  ;;  %13654 = vmatprep.subr.bf16.mxu0 %v19711_v53  ;;  %v15927_v45 = vpop.eup %15926  ;;  %v19765_v44 = vld [vmem:[#allocation55_spill] sm:$0xff]  ;;  %v19766_v23 = vld [vmem:[#allocation56_spill] sm:$0xff] }
 0x55e   :  { %v2413_v29 = vsub.f32 1.0, %v15927_v45  ;;  %v2415_v21 = vmul.f32 %v15927_v45, %v17415_v0  ;;  %v19769_v0 = vld [vmem:[#allocation79_spill] sm:$0xff] }
 0x55f   :  { %v2411_v36 = vadd.f32 %v2410_v18, %v19757_v41  ;;  %v19767_v18 = vld [vmem:[#allocation52_spill] sm:$0xff]  ;;  %v19768_v41 = vld [vmem:[#allocation53_spill] sm:$0xff] }
 0x560   :  { %13629 = vmatpush1.bf16.msra.mxu1 %v17031_v9  ;;  %13656 = vmatpush3.bf16.msra.mxu0 %v17028_v5 }
 0x561   :  { %15928 = vtanh.f32 %v2411_v36  ;;  %13631 = vmatprep.subr.bf16.mxu1 %v17035_v14  ;;  %13657 = vmatprep.subr.bf16.mxu0 %v19711_v53 }
 0x564   :  { %13633 = vmatpush1.bf16.msra.mxu1 %v17041_v26  ;;  %13659 = vmatpush3.bf16.msra.mxu0 %v17038_v25 }
 0x565   :  { %13635 = vmatprep.subr.bf16.mxu1 %v17045_v34  ;;  %13660 = vmatprep.subr.bf16.mxu0 %v19711_v53 }
 0x568   :  { %13637 = vmatpush1.bf16.msra.mxu1 %v17051_v56  ;;  %13662 = vmatpush3.bf16.msra.mxu0 %v17048_v46 }
 0x569   :  { %13639 = vmatprep.subr.bf16.mxu1 %v17055_v63  ;;  %13663 = vmatprep.subr.bf16.mxu0 %v19711_v53 }
 0x56b   :  { %v15929_v22 = vpop.eup %15928 }
 0x56c   :  { %13641 = vmatpush1.bf16.msra.mxu1 %v17061_v13  ;;  %13665 = vmatpush3.bf16.msra.mxu0 %v17058_v10  ;;  %v2414_v30 = vmul.f32 %v15929_v22, %v2413_v29 }
 0x56d   :  { %13667 = vmatprep.subr.bf16.mxu0 %v16831_v31  ;;  %13698 = vmatprep.subr.bf16.mxu1 %v19711_v53 }
 0x56e   :  { %v17503_v43 = vadd.f32 %v2415_v21, %v2414_v30 }
 0x570   :  { %19758 = vst [vmem:[#allocation68_spill] sm:$0xff] %v17503_v43  ;;  %2638 = vmatmul.mubr.f32.vlgmr.msra.gmra.mrb[18].mxu1 %v17503_v43  ;;  %11457 = vmatmul.mubr.f32.vlgmr.msra.gmra.mrb[38].mxu0 %v17503_v43 }
 0x571   :  { %13669 = vmatpush1.bf16.msra.mxu0 %v16857_v47  ;;  %13700 = vmatpush3.bf16.msra.mxu1 %v16838_v35 }
 0x572   :  { %13671 = vmatprep.subr.bf16.mxu0 %v16861_v49  ;;  %13701 = vmatprep.subr.bf16.mxu1 %v19711_v53 }
 0x573   :  { %2837 = vmatprep.mubr.f32.mxu0 %v19712_v62  ;;  %11491 = vmatprep.mubr.msk.f32.mxu1 %vm16515_vm0, %v19712_v62 }
 0x575   :  { %13673 = vmatpush1.bf16.msra.mxu0 %v16874_v57  ;;  %13703 = vmatpush3.bf16.msra.mxu1 %v16850_v42 }
 0x576   :  { %13675 = vmatprep.subr.bf16.mxu0 %v16879_v59  ;;  %13704 = vmatprep.subr.bf16.mxu1 %v19711_v53 }
 0x579   :  { %13677 = vmatpush1.bf16.msra.mxu0 %v16892_v4  ;;  %13706 = vmatpush3.bf16.msra.mxu1 %v16869_v54 }
 0x57a   :  { %13679 = vmatprep.subr.bf16.mxu0 %v16897_v6  ;;  %13707 = vmatprep.subr.bf16.mxu1 %v19711_v53 }
 0x57d   :  { %13681 = vmatpush1.bf16.msra.mxu0 %v16911_v15  ;;  %13709 = vmatpush3.bf16.msra.mxu1 %v16886_v1 }
 0x57e   :  { %13683 = vmatprep.subr.bf16.mxu0 %v16915_v16  ;;  %13710 = vmatprep.subr.bf16.mxu1 %v19711_v53 }
 0x581   :  { %13685 = vmatpush1.bf16.msra.mxu0 %v16931_v27  ;;  %13712 = vmatpush3.bf16.msra.mxu1 %v16905_v12 }
 0x582   :  { %13687 = vmatprep.subr.bf16.mxu0 %v19759_v2  ;;  %13713 = vmatprep.subr.bf16.mxu1 %v19711_v53  ;;  %v19771_v2 = vld [vmem:[#allocation62_spill] sm:$0xff] }
 0x585   :  { %13689 = vmatpush1.bf16.msra.mxu0 %v19760_v3  ;;  %13715 = vmatpush3.bf16.msra.mxu1 %v19761_v40 }
 0x586   :  { %13691 = vmatprep.subr.bf16.mxu0 %v19762_v58  ;;  %13716 = vmatprep.subr.bf16.mxu1 %v19711_v53 }
 0x589   :  { %13693 = vmatpush1.bf16.msra.mxu0 %v19763_v28  ;;  %13718 = vmatpush3.bf16.msra.mxu1 %v19764_v60 }
 0x58a   :  { %13695 = vmatprep.subr.bf16.mxu0 %v19765_v44  ;;  %13719 = vmatprep.subr.bf16.mxu1 %v19711_v53 }
 0x58d   :  { %13697 = vmatpush1.bf16.msra.mxu0 %v19766_v23  ;;  %13721 = vmatpush3.bf16.msra.mxu1 %v19767_v18 }
 0x58e   :  { %13723 = vmatprep.subr.bf16.mxu1 %v19768_v41  ;;  %13754 = vmatprep.subr.bf16.mxu0 %v19711_v53  ;;  %v19770_v41 = vld [vmem:[#allocation80_spill] sm:$0xff] }
 0x622   :  { %v2498_v36 = vpop.f32.mrb[8].mxu0  ;;  %v2569_v45 = vpop.f32.mrb[38].mxu1 }
 0x623   :  { %v15651_v29 = vadd.f32 %v2498_v36, %v17176_v52  ;;  %v2500_v22 = vpop.f32.mrb[9].mxu0  ;;  %v11423_v30 = vpop.f32.mrb[39].mxu1  ;;  %v2728_v58 = vadd.f32 %v19770_v41, %v2569_v45 }
 0x624   :  { %v15652_v17 = vadd.f32 %v2500_v22, %v19769_v0 }
 0x625   :  { %v9981_v21 = vmul.f32 -1.442695, %v15651_v29 }
 0x626   :  { %v9982_v44 = vmul.f32 -1.442695, %v15652_v17 }
 0x627   :  { %15930 = vpow2.f32 %v9981_v21 }
 0x628   :  { %15932 = vpow2.f32 %v9982_v44 }
 0x631   :  { %v15931_v60 = vpop.eup %15930 }
 0x632   :  { %v2722_v23 = vadd.f32 1.0, %v15931_v60  ;;  %v15933_v18 = vpop.eup %15932 }
 0x633   :  { %v2723_v28 = vadd.f32 1.0, %v15933_v18 }
 0x634   :  { %15934 = vrcp.f32 %v2722_v23 }
 0x635   :  { %15936 = vrcp.f32 %v2723_v28 }
 0x63e   :  { %v15935_v40 = vpop.eup %15934 }
 0x63f   :  { %v2729_v3 = vmul.f32 %v15935_v40, %v2728_v58  ;;  %v15937_v23 = vpop.eup %15936 }
 0x640   :  { %v2732_v0 = vsub.f32 1.0, %v15937_v23  ;;  %v2734_v40 = vmul.f32 %v15937_v23, %v17461_v38 }
 0x641   :  { %v2730_v36 = vadd.f32 %v2729_v3, %v19771_v2 }
 0x643   :  { %15938 = vtanh.f32 %v2730_v36  ;;  %v2639_v30 = vpop.f32.mrb[18].mxu1  ;;  %v2710_v29 = vpop.f32.mrb[38].mxu0 }
 0x644   :  { %v15671_v22 = vadd.f32 %v2639_v30, %v17188_v51  ;;  %v2641_v21 = vpop.f32.mrb[19].mxu1  ;;  %v11458_v17 = vpop.f32.mrb[39].mxu0  ;;  %v2750_v36 = vadd.f32 %v17210_v37, %v2710_v29 }
 0x645   :  { %v15672_v60 = vadd.f32 %v2641_v21, %v17191_v55  ;;  %v19773_v21 = vld [vmem:[#allocation71_spill] sm:$0xff] }
 0x646   :  { %v9983_v44 = vmul.f32 -1.442695, %v15671_v22 }
 0x647   :  { %v9984_v18 = vmul.f32 -1.442695, %v15672_v60 }
 0x648   :  { %15940 = vpow2.f32 %v9983_v44 }
 0x649   :  { %15942 = vpow2.f32 %v9984_v18 }
 0x64d   :  { %v15939_v41 = vpop.eup %15938 }
 0x64e   :  { %v2733_v45 = vmul.f32 %v15939_v41, %v2732_v0  ;;  %v19775_v41 = vld [vmem:[#allocation48_spill] sm:$0xff] }
 0x650   :  { %v17549_v2 = vadd.f32 %v2734_v40, %v2733_v45  ;;  %v19776_v45 = vld [vmem:[#allocation50_spill] sm:$0xff]  ;;  %v19777_v40 = vld [vmem:[#allocation47_spill] sm:$0xff] }
 0x652   :  { %19772 = vst [vmem:[#allocation80_spill] sm:$0xff] %v17549_v2  ;;  %v15941_v3 = vpop.eup %15940  ;;  %2838 = vmatmul.mubr.f32.vlgmr.msra.gmra.mrb[10].mxu0 %v17549_v2  ;;  %11492 = vmatmul.mubr.f32.vlgmr.msra.gmra.mrb[40].mxu1 %v17549_v2 }
 0x653   :  { %v2744_v58 = vadd.f32 1.0, %v15941_v3  ;;  %13725 = vmatpush1.bf16.msra.mxu1 %v16987_v8  ;;  %13756 = vmatpush3.bf16.msra.mxu0 %v16983_v7  ;;  %v15943_v0 = vpop.eup %15942  ;;  %v19778_v3 = vld [vmem:[#allocation51_spill] sm:$0xff] }
 0x654   :  { %13727 = vmatprep.subr.bf16.mxu1 %v16990_v11  ;;  %13757 = vmatprep.subr.bf16.mxu0 %v19711_v53  ;;  %v2745_v28 = vadd.f32 1.0, %v15943_v0  ;;  %v19780_v0 = vld [vmem:[#allocation49_spill] sm:$0xff] }
 0x655   :  { %15944 = vrcp.f32 %v2744_v58  ;;  %2978 = vmatprep.mubr.f32.mxu1 %v19712_v62  ;;  %11526 = vmatprep.mubr.msk.f32.mxu0 %vm16515_vm0, %v19712_v62  ;;  %v19779_v58 = vld [vmem:[#allocation54_spill] sm:$0xff] }
 0x656   :  { %15946 = vrcp.f32 %v2745_v28  ;;  %v19781_v28 = vld [vmem:[#allocation55_spill] sm:$0xff] }
 0x657   :  { %13729 = vmatpush1.bf16.msra.mxu1 %v16998_v20  ;;  %13759 = vmatpush3.bf16.msra.mxu0 %v16995_v19 }
 0x658   :  { %13731 = vmatprep.subr.bf16.mxu1 %v17002_v24  ;;  %13760 = vmatprep.subr.bf16.mxu0 %v19711_v53 }
 0x65b   :  { %13733 = vmatpush1.bf16.msra.mxu1 %v17011_v33  ;;  %13762 = vmatpush3.bf16.msra.mxu0 %v17008_v32 }
 0x65c   :  { %13735 = vmatprep.subr.bf16.mxu1 %v17015_v39  ;;  %13763 = vmatprep.subr.bf16.mxu0 %v19711_v53 }
 0x65f   :  { %v15945_v30 = vpop.eup %15944  ;;  %13737 = vmatpush1.bf16.msra.mxu1 %v17021_v50  ;;  %13765 = vmatpush3.bf16.msra.mxu0 %v17018_v48 }
 0x660   :  { %v2751_v22 = vmul.f32 %v15945_v30, %v2750_v36  ;;  %13739 = vmatprep.subr.bf16.mxu1 %v17025_v61  ;;  %13766 = vmatprep.subr.bf16.mxu0 %v19711_v53  ;;  %v15947_v37 = vpop.eup %15946  ;;  %v19782_v36 = vld [vmem:[#allocation56_spill] sm:$0xff] }
 0x661   :  { %v2754_v29 = vsub.f32 1.0, %v15947_v37  ;;  %v2756_v23 = vmul.f32 %v15947_v37, %v17503_v43  ;;  %v19783_v30 = vld [vmem:[#allocation52_spill] sm:$0xff] }
 0x662   :  { %v2752_v17 = vadd.f32 %v2751_v22, %v19773_v21  ;;  %v19784_v22 = vld [vmem:[#allocation53_spill] sm:$0xff] }
 0x663   :  { %13741 = vmatpush1.bf16.msra.mxu1 %v17031_v9  ;;  %13768 = vmatpush3.bf16.msra.mxu0 %v17028_v5 }
 0x664   :  { %15948 = vtanh.f32 %v2752_v17  ;;  %13743 = vmatprep.subr.bf16.mxu1 %v17035_v14  ;;  %13769 = vmatprep.subr.bf16.mxu0 %v19711_v53 }
 0x667   :  { %13745 = vmatpush1.bf16.msra.mxu1 %v17041_v26  ;;  %13771 = vmatpush3.bf16.msra.mxu0 %v17038_v25 }
 0x668   :  { %13747 = vmatprep.subr.bf16.mxu1 %v17045_v34  ;;  %13772 = vmatprep.subr.bf16.mxu0 %v19711_v53 }
 0x66b   :  { %13749 = vmatpush1.bf16.msra.mxu1 %v17051_v56  ;;  %13774 = vmatpush3.bf16.msra.mxu0 %v17048_v46 }
 0x66c   :  { %13751 = vmatprep.subr.bf16.mxu1 %v17055_v63  ;;  %13775 = vmatprep.subr.bf16.mxu0 %v19711_v53 }
 0x66e   :  { %v15949_v44 = vpop.eup %15948 }
 0x66f   :  { %13753 = vmatpush1.bf16.msra.mxu1 %v17061_v13  ;;  %13777 = vmatpush3.bf16.msra.mxu0 %v17058_v10  ;;  %v2755_v60 = vmul.f32 %v15949_v44, %v2754_v29 }
 0x670   :  { %13779 = vmatprep.subr.bf16.mxu0 %v16831_v31  ;;  %13810 = vmatprep.subr.bf16.mxu1 %v19711_v53 }
 0x671   :  { %v17591_v18 = vadd.f32 %v2756_v23, %v2755_v60  ;;  %v19785_v23 = vld [vmem:[#allocation79_spill] sm:$0xff] }
 0x673   :  { %19774 = vst [vmem:[#allocation62_spill] sm:$0xff] %v17591_v18  ;;  %2979 = vmatmul.mubr.f32.vlgmr.msra.gmra.mrb[20].mxu1 %v17591_v18  ;;  %11527 = vmatmul.mubr.f32.vlgmr.msra.gmra.mrb[40].mxu0 %v17591_v18 }
 0x674   :  { %13781 = vmatpush1.bf16.msra.mxu0 %v16857_v47  ;;  %13812 = vmatpush3.bf16.msra.mxu1 %v16838_v35 }
 0x675   :  { %13783 = vmatprep.subr.bf16.mxu0 %v16861_v49  ;;  %13813 = vmatprep.subr.bf16.mxu1 %v19711_v53 }
 0x676   :  { %3178 = vmatprep.mubr.f32.mxu0 %v19712_v62  ;;  %11561 = vmatprep.mubr.msk.f32.mxu1 %vm16515_vm0, %v19712_v62 }
 0x678   :  { %13785 = vmatpush1.bf16.msra.mxu0 %v16874_v57  ;;  %13815 = vmatpush3.bf16.msra.mxu1 %v16850_v42 }
 0x679   :  { %13787 = vmatprep.subr.bf16.mxu0 %v16879_v59  ;;  %13816 = vmatprep.subr.bf16.mxu1 %v19711_v53 }
 0x67c   :  { %13789 = vmatpush1.bf16.msra.mxu0 %v16892_v4  ;;  %13818 = vmatpush3.bf16.msra.mxu1 %v16869_v54 }
 0x67d   :  { %13791 = vmatprep.subr.bf16.mxu0 %v16897_v6  ;;  %13819 = vmatprep.subr.bf16.mxu1 %v19711_v53 }
 0x680   :  { %13793 = vmatpush1.bf16.msra.mxu0 %v16911_v15  ;;  %13821 = vmatpush3.bf16.msra.mxu1 %v16886_v1 }
 0x681   :  { %13795 = vmatprep.subr.bf16.mxu0 %v16915_v16  ;;  %13822 = vmatprep.subr.bf16.mxu1 %v19711_v53 }
 0x684   :  { %13797 = vmatpush1.bf16.msra.mxu0 %v16931_v27  ;;  %13824 = vmatpush3.bf16.msra.mxu1 %v16905_v12 }
 0x685   :  { %13799 = vmatprep.subr.bf16.mxu0 %v19775_v41  ;;  %13825 = vmatprep.subr.bf16.mxu1 %v19711_v53 }
 0x688   :  { %13801 = vmatpush1.bf16.msra.mxu0 %v19776_v45  ;;  %13827 = vmatpush3.bf16.msra.mxu1 %v19777_v40 }
 0x689   :  { %13803 = vmatprep.subr.bf16.mxu0 %v19778_v3  ;;  %13828 = vmatprep.subr.bf16.mxu1 %v19711_v53 }
 0x68c   :  { %13805 = vmatpush1.bf16.msra.mxu0 %v19779_v58  ;;  %13830 = vmatpush3.bf16.msra.mxu1 %v19780_v0 }
 0x68d   :  { %13807 = vmatprep.subr.bf16.mxu0 %v19781_v28  ;;  %13831 = vmatprep.subr.bf16.mxu1 %v19711_v53 }
 0x690   :  { %13809 = vmatpush1.bf16.msra.mxu0 %v19782_v36  ;;  %13833 = vmatpush3.bf16.msra.mxu1 %v19783_v30 }
 0x691   :  { %13835 = vmatprep.subr.bf16.mxu1 %v19784_v22  ;;  %13866 = vmatprep.subr.bf16.mxu0 %v19711_v53  ;;  %v17632_v22 = vld [vmem:[#allocation11] ss:$0 sm:$0xff] }
 0x692   :  { %19786 = vst [vmem:[#allocation71_spill] sm:$0xff] %v17632_v22 }
 0x725   :  { %v2839_v21 = vpop.f32.mrb[10].mxu0  ;;  %v2910_v17 = vpop.f32.mrb[40].mxu1 }
 0x726   :  { %v15653_v37 = vadd.f32 %v2839_v21, %v17176_v52  ;;  %v2841_v29 = vpop.f32.mrb[11].mxu0  ;;  %v11493_v44 = vpop.f32.mrb[41].mxu1  ;;  %v3069_v58 = vadd.f32 %v17632_v22, %v2910_v17  ;;  %v19787_v21 = vld [vmem:[#allocation61_spill] sm:$0xff] }
 0x727   :  { %v15654_v43 = vadd.f32 %v2841_v29, %v19785_v23 }
 0x728   :  { %v9985_v60 = vmul.f32 -1.442695, %v15653_v37 }
 0x729   :  { %v9986_v38 = vmul.f32 -1.442695, %v15654_v43 }
 0x72a   :  { %15950 = vpow2.f32 %v9985_v60 }
 0x72b   :  { %15952 = vpow2.f32 %v9986_v38 }
 0x734   :  { %v15951_v28 = vpop.eup %15950 }
 0x735   :  { %v3063_v36 = vadd.f32 1.0, %v15951_v28  ;;  %v15953_v30 = vpop.eup %15952 }
 0x736   :  { %v3064_v0 = vadd.f32 1.0, %v15953_v30 }
 0x737   :  { %15954 = vrcp.f32 %v3063_v36 }
 0x738   :  { %15956 = vrcp.f32 %v3064_v0 }
 0x741   :  { %v15955_v3 = vpop.eup %15954 }
 0x742   :  { %v3070_v40 = vmul.f32 %v15955_v3, %v3069_v58  ;;  %v15957_v30 = vpop.eup %15956 }
 0x743   :  { %v3073_v52 = vsub.f32 1.0, %v15957_v30  ;;  %v3075_v3 = vmul.f32 %v15957_v30, %v17549_v2 }
 0x744   :  { %v3071_v44 = vadd.f32 %v3070_v40, %v19787_v21 }
 0x746   :  { %15958 = vtanh.f32 %v3071_v44  ;;  %v2980_v37 = vpop.f32.mrb[20].mxu1  ;;  %v3051_v29 = vpop.f32.mrb[40].mxu0 }
 0x747   :  { %v15673_v43 = vadd.f32 %v2980_v37, %v17188_v51  ;;  %v2982_v38 = vpop.f32.mrb[21].mxu1  ;;  %v11528_v60 = vpop.f32.mrb[41].mxu0 }
 0x748   :  { %v15674_v36 = vadd.f32 %v2982_v38, %v17191_v55 }
 0x749   :  { %v9987_v28 = vmul.f32 -1.442695, %v15673_v43  ;;  %v19789_v43 = vld [vmem:[#allocation70_spill] sm:$0xff] }
 0x74a   :  { %v9988_v23 = vmul.f32 -1.442695, %v15674_v36 }
 0x74b   :  { %15960 = vpow2.f32 %v9987_v28 }
 0x74c   :  { %15962 = vpow2.f32 %v9988_v23  ;;  %v17658_v23 = vld [vmem:[#allocation16] ss:$0 sm:$0xff] }
 0x74d   :  { %v3091_v21 = vadd.f32 %v17658_v23, %v3051_v29 }
 0x750   :  { %v15959_v17 = vpop.eup %15958 }
 0x751   :  { %v3074_v22 = vmul.f32 %v15959_v17, %v3073_v52 }
 0x753   :  { %v17639_v40 = vadd.f32 %v3075_v3, %v3074_v22  ;;  %v19791_v3 = vld [vmem:[#allocation47_spill] sm:$0xff] }
 0x755   :  { %19788 = vst [vmem:[#allocation61_spill] sm:$0xff] %v17639_v40  ;;  %v15961_v58 = vpop.eup %15960  ;;  %3179 = vmatmul.mubr.f32.vlgmr.msra.gmra.mrb[12].mxu0 %v17639_v40  ;;  %11562 = vmatmul.mubr.f32.vlgmr.msra.gmra.mrb[42].mxu1 %v17639_v40 }
 0x756   :  { %v3085_v0 = vadd.f32 1.0, %v15961_v58  ;;  %13837 = vmatpush1.bf16.msra.mxu1 %v16987_v8  ;;  %13868 = vmatpush3.bf16.msra.mxu0 %v16983_v7  ;;  %v15963_v52 = vpop.eup %15962  ;;  %v19792_v58 = vld [vmem:[#allocation51_spill] sm:$0xff] }
 0x757   :  { %13839 = vmatprep.subr.bf16.mxu1 %v16990_v11  ;;  %13869 = vmatprep.subr.bf16.mxu0 %v19711_v53  ;;  %v3086_v22 = vadd.f32 1.0, %v15963_v52  ;;  %v19794_v52 = vld [vmem:[#allocation49_spill] sm:$0xff] }
 0x758   :  { %15964 = vrcp.f32 %v3085_v0  ;;  %3319 = vmatprep.mubr.f32.mxu1 %v19712_v62  ;;  %11596 = vmatprep.mubr.msk.f32.mxu0 %vm16515_vm0, %v19712_v62  ;;  %v19793_v0 = vld [vmem:[#allocation54_spill] sm:$0xff] }
 0x759   :  { %15966 = vrcp.f32 %v3086_v22  ;;  %v19795_v22 = vld [vmem:[#allocation55_spill] sm:$0xff] }
 0x75a   :  { %13841 = vmatpush1.bf16.msra.mxu1 %v16998_v20  ;;  %13871 = vmatpush3.bf16.msra.mxu0 %v16995_v19 }
 0x75b   :  { %13843 = vmatprep.subr.bf16.mxu1 %v17002_v24  ;;  %13872 = vmatprep.subr.bf16.mxu0 %v19711_v53 }
 0x75e   :  { %13845 = vmatpush1.bf16.msra.mxu1 %v17011_v33  ;;  %13874 = vmatpush3.bf16.msra.mxu0 %v17008_v32 }
 0x75f   :  { %13847 = vmatprep.subr.bf16.mxu1 %v17015_v39  ;;  %13875 = vmatprep.subr.bf16.mxu0 %v19711_v53 }
 0x762   :  { %v15965_v44 = vpop.eup %15964  ;;  %13849 = vmatpush1.bf16.msra.mxu1 %v17021_v50  ;;  %13877 = vmatpush3.bf16.msra.mxu0 %v17018_v48 }
 0x763   :  { %v3092_v37 = vmul.f32 %v15965_v44, %v3091_v21  ;;  %13851 = vmatprep.subr.bf16.mxu1 %v17025_v61  ;;  %13878 = vmatprep.subr.bf16.mxu0 %v19711_v53  ;;  %v15967_v29 = vpop.eup %15966  ;;  %v19796_v21 = vld [vmem:[#allocation56_spill] sm:$0xff] }
 0x764   :  { %v3095_v60 = vsub.f32 1.0, %v15967_v29  ;;  %v3097_v30 = vmul.f32 %v15967_v29, %v17591_v18  ;;  %v19797_v44 = vld [vmem:[#allocation52_spill] sm:$0xff]  ;;  %v19799_v29 = vld [vmem:[#allocation78_spill] sm:$0xff]  ;;  %v19800_v18 = vld [vmem:[#allocation79_spill] sm:$0xff] }
 0x765   :  { %v3093_v38 = vadd.f32 %v3092_v37, %v19789_v43  ;;  %v19798_v37 = vld [vmem:[#allocation53_spill] sm:$0xff] }
 0x766   :  { %13853 = vmatpush1.bf16.msra.mxu1 %v17031_v9  ;;  %13880 = vmatpush3.bf16.msra.mxu0 %v17028_v5 }
 0x767   :  { %15968 = vtanh.f32 %v3093_v38  ;;  %13855 = vmatprep.subr.bf16.mxu1 %v17035_v14  ;;  %13881 = vmatprep.subr.bf16.mxu0 %v19711_v53 }
 0x76a   :  { %13857 = vmatpush1.bf16.msra.mxu1 %v17041_v26  ;;  %13883 = vmatpush3.bf16.msra.mxu0 %v17038_v25 }
 0x76b   :  { %13859 = vmatprep.subr.bf16.mxu1 %v17045_v34  ;;  %13884 = vmatprep.subr.bf16.mxu0 %v19711_v53 }
 0x76e   :  { %13861 = vmatpush1.bf16.msra.mxu1 %v17051_v56  ;;  %13886 = vmatpush3.bf16.msra.mxu0 %v17048_v46 }
 0x76f   :  { %13863 = vmatprep.subr.bf16.mxu1 %v17055_v63  ;;  %13887 = vmatprep.subr.bf16.mxu0 %v19711_v53 }
 0x771   :  { %v15969_v28 = vpop.eup %15968 }
 0x772   :  { %13865 = vmatpush1.bf16.msra.mxu1 %v17061_v13  ;;  %13889 = vmatpush3.bf16.msra.mxu0 %v17058_v10  ;;  %v3096_v36 = vmul.f32 %v15969_v28, %v3095_v60 }
 0x773   :  { %13891 = vmatprep.subr.bf16.mxu0 %v16831_v31  ;;  %13922 = vmatprep.subr.bf16.mxu1 %v19711_v53 }
 0x774   :  { %v17683_v17 = vadd.f32 %v3097_v30, %v3096_v36 }
 0x776   :  { %19790 = vst [vmem:[#allocation70_spill] sm:$0xff] %v17683_v17  ;;  %3320 = vmatmul.mubr.f32.vlgmr.msra.gmra.mrb[22].mxu1 %v17683_v17  ;;  %11597 = vmatmul.mubr.f32.vlgmr.msra.gmra.mrb[42].mxu0 %v17683_v17 }
 0x777   :  { %13893 = vmatpush1.bf16.msra.mxu0 %v16857_v47  ;;  %13924 = vmatpush3.bf16.msra.mxu1 %v16838_v35 }
 0x778   :  { %13895 = vmatprep.subr.bf16.mxu0 %v16861_v49  ;;  %13925 = vmatprep.subr.bf16.mxu1 %v19711_v53 }
 0x779   :  { %3519 = vmatprep.mubr.f32.mxu0 %v19712_v62  ;;  %11631 = vmatprep.mubr.msk.f32.mxu1 %vm16515_vm0, %v19712_v62 }
 0x77b   :  { %13897 = vmatpush1.bf16.msra.mxu0 %v16874_v57  ;;  %13927 = vmatpush3.bf16.msra.mxu1 %v16850_v42 }
 0x77c   :  { %13899 = vmatprep.subr.bf16.mxu0 %v16879_v59  ;;  %13928 = vmatprep.subr.bf16.mxu1 %v19711_v53 }
 0x77f   :  { %13901 = vmatpush1.bf16.msra.mxu0 %v16892_v4  ;;  %13930 = vmatpush3.bf16.msra.mxu1 %v16869_v54 }
 0x780   :  { %13903 = vmatprep.subr.bf16.mxu0 %v16897_v6  ;;  %13931 = vmatprep.subr.bf16.mxu1 %v19711_v53 }
 0x783   :  { %13905 = vmatpush1.bf16.msra.mxu0 %v16911_v15  ;;  %13933 = vmatpush3.bf16.msra.mxu1 %v16886_v1 }
 0x784   :  { %13907 = vmatprep.subr.bf16.mxu0 %v16915_v16  ;;  %13934 = vmatprep.subr.bf16.mxu1 %v19711_v53 }
 0x787   :  { %13909 = vmatpush1.bf16.msra.mxu0 %v16931_v27  ;;  %13936 = vmatpush3.bf16.msra.mxu1 %v16905_v12 }
 0x788   :  { %13911 = vmatprep.subr.bf16.mxu0 %v19775_v41  ;;  %13937 = vmatprep.subr.bf16.mxu1 %v19711_v53  ;;  %v19802_v41 = vld [vmem:[#allocation64_spill] sm:$0xff] }
 0x78b   :  { %13913 = vmatpush1.bf16.msra.mxu0 %v19776_v45  ;;  %13939 = vmatpush3.bf16.msra.mxu1 %v19791_v3 }
 0x78c   :  { %13915 = vmatprep.subr.bf16.mxu0 %v19792_v58  ;;  %13940 = vmatprep.subr.bf16.mxu1 %v19711_v53 }
 0x78f   :  { %13917 = vmatpush1.bf16.msra.mxu0 %v19793_v0  ;;  %13942 = vmatpush3.bf16.msra.mxu1 %v19794_v52 }
 0x790   :  { %13919 = vmatprep.subr.bf16.mxu0 %v19795_v22  ;;  %13943 = vmatprep.subr.bf16.mxu1 %v19711_v53 }
 0x793   :  { %13921 = vmatpush1.bf16.msra.mxu0 %v19796_v21  ;;  %13945 = vmatpush3.bf16.msra.mxu1 %v19797_v44 }
 0x794   :  { %13947 = vmatprep.subr.bf16.mxu1 %v19798_v37  ;;  %13978 = vmatprep.subr.bf16.mxu0 %v19711_v53  ;;  %v19801_v37 = vld [vmem:[#allocation71_spill] sm:$0xff] }
 0x828   :  { %v3180_v43 = vpop.f32.mrb[12].mxu0  ;;  %v3251_v38 = vpop.f32.mrb[42].mxu1 }
 0x829   :  { %v15655_v60 = vadd.f32 %v3180_v43, %v19799_v29  ;;  %v3182_v28 = vpop.f32.mrb[13].mxu0  ;;  %v11563_v36 = vpop.f32.mrb[43].mxu1  ;;  %v3410_v58 = vadd.f32 %v19801_v37, %v3251_v38 }
 0x82a   :  { %v15656_v2 = vadd.f32 %v3182_v28, %v19800_v18 }
 0x82b   :  { %v9989_v30 = vmul.f32 -1.442695, %v15655_v60 }
 0x82c   :  { %v9990_v22 = vmul.f32 -1.442695, %v15656_v2 }
 0x82d   :  { %15970 = vpow2.f32 %v9989_v30 }
 0x82e   :  { %15972 = vpow2.f32 %v9990_v22 }
 0x837   :  { %v15971_v52 = vpop.eup %15970 }
 0x838   :  { %v3404_v21 = vadd.f32 1.0, %v15971_v52  ;;  %v15973_v44 = vpop.eup %15972 }
 0x839   :  { %v3405_v0 = vadd.f32 1.0, %v15973_v44 }
 0x83a   :  { %15974 = vrcp.f32 %v3404_v21 }
 0x83b   :  { %15976 = vrcp.f32 %v3405_v0 }
 0x844   :  { %v15975_v3 = vpop.eup %15974 }
 0x845   :  { %v3411_v45 = vmul.f32 %v15975_v3, %v3410_v58  ;;  %v15977_v21 = vpop.eup %15976 }
 0x846   :  { %v3414_v18 = vsub.f32 1.0, %v15977_v21  ;;  %v3416_v3 = vmul.f32 %v15977_v21, %v17639_v40 }
 0x847   :  { %v3412_v43 = vadd.f32 %v3411_v45, %v19802_v41 }
 0x849   :  { %15978 = vtanh.f32 %v3412_v43  ;;  %v3321_v36 = vpop.f32.mrb[22].mxu1  ;;  %v3392_v60 = vpop.f32.mrb[42].mxu0 }
 0x84a   :  { %v15675_v28 = vadd.f32 %v3321_v36, %v17188_v51  ;;  %v3323_v30 = vpop.f32.mrb[23].mxu1  ;;  %v11598_v2 = vpop.f32.mrb[43].mxu0 }
 0x84b   :  { %v15676_v52 = vadd.f32 %v3323_v30, %v17191_v55 }
 0x84c   :  { %v9991_v22 = vmul.f32 -1.442695, %v15675_v28  ;;  %v19803_v28 = vld [vmem:[#allocation73_spill] sm:$0xff] }
 0x84d   :  { %v9992_v44 = vmul.f32 -1.442695, %v15676_v52 }
 0x84e   :  { %15980 = vpow2.f32 %v9991_v22 }
 0x84f   :  { %15982 = vpow2.f32 %v9992_v44 }
 0x853   :  { %v15979_v38 = vpop.eup %15978 }
 0x854   :  { %v3415_v37 = vmul.f32 %v15979_v38, %v3414_v18  ;;  %v19804_v38 = vld [vmem:[#allocation48_spill] sm:$0xff] }
 0x856   :  { %v17729_v41 = vadd.f32 %v3416_v3, %v3415_v37  ;;  %v3432_v37 = vadd.f32 %v17658_v23, %v3392_v60  ;;  %v19805_v3 = vld [vmem:[#allocation50_spill] sm:$0xff] }
 0x858   :  { %v15981_v45 = vpop.eup %15980  ;;  %3520 = vmatmul.mubr.f32.vlgmr.msra.gmra.mrb[14].mxu0 %v17729_v41  ;;  %11632 = vmatmul.mubr.f32.vlgmr.msra.gmra.mrb[44].mxu1 %v17729_v41 }
 0x859   :  { %v3426_v58 = vadd.f32 1.0, %v15981_v45  ;;  %13949 = vmatpush1.bf16.msra.mxu1 %v16987_v8  ;;  %13980 = vmatpush3.bf16.msra.mxu0 %v16983_v7  ;;  %v15983_v18 = vpop.eup %15982  ;;  %v19806_v45 = vld [vmem:[#allocation47_spill] sm:$0xff] }
 0x85a   :  { %13951 = vmatprep.subr.bf16.mxu1 %v16990_v11  ;;  %13981 = vmatprep.subr.bf16.mxu0 %v19711_v53  ;;  %v3427_v0 = vadd.f32 1.0, %v15983_v18  ;;  %v19808_v18 = vld [vmem:[#allocation54_spill] sm:$0xff] }
 0x85b   :  { %15984 = vrcp.f32 %v3426_v58  ;;  %3660 = vmatprep.mubr.f32.mxu1 %v19712_v62  ;;  %11666 = vmatprep.mubr.msk.f32.mxu0 %vm16515_vm0, %v19712_v62  ;;  %v19807_v58 = vld [vmem:[#allocation51_spill] sm:$0xff] }
 0x85c   :  { %15986 = vrcp.f32 %v3427_v0  ;;  %v19809_v0 = vld [vmem:[#allocation49_spill] sm:$0xff] }
 0x85d   :  { %13953 = vmatpush1.bf16.msra.mxu1 %v16998_v20  ;;  %13983 = vmatpush3.bf16.msra.mxu0 %v16995_v19 }
 0x85e   :  { %13955 = vmatprep.subr.bf16.mxu1 %v17002_v24  ;;  %13984 = vmatprep.subr.bf16.mxu0 %v19711_v53 }
 0x861   :  { %13957 = vmatpush1.bf16.msra.mxu1 %v17011_v33  ;;  %13986 = vmatpush3.bf16.msra.mxu0 %v17008_v32 }
 0x862   :  { %13959 = vmatprep.subr.bf16.mxu1 %v17015_v39  ;;  %13987 = vmatprep.subr.bf16.mxu0 %v19711_v53 }
 0x865   :  { %v15985_v43 = vpop.eup %15984  ;;  %13961 = vmatpush1.bf16.msra.mxu1 %v17021_v50  ;;  %13989 = vmatpush3.bf16.msra.mxu0 %v17018_v48 }
 0x866   :  { %v3433_v36 = vmul.f32 %v15985_v43, %v3432_v37  ;;  %13963 = vmatprep.subr.bf16.mxu1 %v17025_v61  ;;  %13990 = vmatprep.subr.bf16.mxu0 %v19711_v53  ;;  %v15987_v60 = vpop.eup %15986  ;;  %v19810_v37 = vld [vmem:[#allocation55_spill] sm:$0xff]  ;;  %v19811_v43 = vld [vmem:[#allocation56_spill] sm:$0xff] }
 0x867   :  { %v3436_v2 = vsub.f32 1.0, %v15987_v60  ;;  %v3438_v21 = vmul.f32 %v15987_v60, %v17683_v17  ;;  %v19814_v17 = vld [vmem:[#allocation79_spill] sm:$0xff] }
 0x868   :  { %v3434_v30 = vadd.f32 %v3433_v36, %v19803_v28  ;;  %v19812_v36 = vld [vmem:[#allocation52_spill] sm:$0xff]  ;;  %v19813_v28 = vld [vmem:[#allocation53_spill] sm:$0xff] }
 0x869   :  { %13965 = vmatpush1.bf16.msra.mxu1 %v17031_v9  ;;  %13992 = vmatpush3.bf16.msra.mxu0 %v17028_v5 }
 0x86a   :  { %15988 = vtanh.f32 %v3434_v30  ;;  %13967 = vmatprep.subr.bf16.mxu1 %v17035_v14  ;;  %13993 = vmatprep.subr.bf16.mxu0 %v19711_v53 }
 0x86d   :  { %13969 = vmatpush1.bf16.msra.mxu1 %v17041_v26  ;;  %13995 = vmatpush3.bf16.msra.mxu0 %v17038_v25 }
 0x86e   :  { %13971 = vmatprep.subr.bf16.mxu1 %v17045_v34  ;;  %13996 = vmatprep.subr.bf16.mxu0 %v19711_v53 }
 0x871   :  { %13973 = vmatpush1.bf16.msra.mxu1 %v17051_v56  ;;  %13998 = vmatpush3.bf16.msra.mxu0 %v17048_v46 }
 0x872   :  { %13975 = vmatprep.subr.bf16.mxu1 %v17055_v63  ;;  %13999 = vmatprep.subr.bf16.mxu0 %v19711_v53 }
 0x874   :  { %v15989_v22 = vpop.eup %15988 }
 0x875   :  { %13977 = vmatpush1.bf16.msra.mxu1 %v17061_v13  ;;  %14001 = vmatpush3.bf16.msra.mxu0 %v17058_v10  ;;  %v3437_v52 = vmul.f32 %v15989_v22, %v3436_v2 }
 0x876   :  { %14003 = vmatprep.subr.bf16.mxu0 %v16831_v31  ;;  %14034 = vmatprep.subr.bf16.mxu1 %v19711_v53 }
 0x877   :  { %v17771_v44 = vadd.f32 %v3438_v21, %v3437_v52 }
 0x879   :  { %3661 = vmatmul.mubr.f32.vlgmr.msra.gmra.mrb[24].mxu1 %v17771_v44  ;;  %11667 = vmatmul.mubr.f32.vlgmr.msra.gmra.mrb[44].mxu0 %v17771_v44 }
 0x87a   :  { %14005 = vmatpush1.bf16.msra.mxu0 %v16857_v47  ;;  %14036 = vmatpush3.bf16.msra.mxu1 %v16838_v35 }
 0x87b   :  { %14007 = vmatprep.subr.bf16.mxu0 %v16861_v49  ;;  %14037 = vmatprep.subr.bf16.mxu1 %v19711_v53 }
 0x87c   :  { %3860 = vmatprep.mubr.f32.mxu0 %v19712_v62  ;;  %11701 = vmatprep.mubr.msk.f32.mxu1 %vm16515_vm0, %v19712_v62 }
 0x87e   :  { %14009 = vmatpush1.bf16.msra.mxu0 %v16874_v57  ;;  %14039 = vmatpush3.bf16.msra.mxu1 %v16850_v42 }
 0x87f   :  { %14011 = vmatprep.subr.bf16.mxu0 %v16879_v59  ;;  %14040 = vmatprep.subr.bf16.mxu1 %v19711_v53 }
 0x882   :  { %14013 = vmatpush1.bf16.msra.mxu0 %v16892_v4  ;;  %14042 = vmatpush3.bf16.msra.mxu1 %v16869_v54 }
 0x883   :  { %14015 = vmatprep.subr.bf16.mxu0 %v16897_v6  ;;  %14043 = vmatprep.subr.bf16.mxu1 %v19711_v53 }
 0x886   :  { %14017 = vmatpush1.bf16.msra.mxu0 %v16911_v15  ;;  %14045 = vmatpush3.bf16.msra.mxu1 %v16886_v1 }
 0x887   :  { %14019 = vmatprep.subr.bf16.mxu0 %v16915_v16  ;;  %14046 = vmatprep.subr.bf16.mxu1 %v19711_v53 }
 0x88a   :  { %14021 = vmatpush1.bf16.msra.mxu0 %v16931_v27  ;;  %14048 = vmatpush3.bf16.msra.mxu1 %v16905_v12 }
 0x88b   :  { %14023 = vmatprep.subr.bf16.mxu0 %v19804_v38  ;;  %14049 = vmatprep.subr.bf16.mxu1 %v19711_v53  ;;  %v19816_v38 = vld [vmem:[#allocation63_spill] sm:$0xff] }
 0x88e   :  { %14025 = vmatpush1.bf16.msra.mxu0 %v19805_v3  ;;  %14051 = vmatpush3.bf16.msra.mxu1 %v19806_v45 }
 0x88f   :  { %14027 = vmatprep.subr.bf16.mxu0 %v19807_v58  ;;  %14052 = vmatprep.subr.bf16.mxu1 %v19711_v53 }
 0x892   :  { %14029 = vmatpush1.bf16.msra.mxu0 %v19808_v18  ;;  %14054 = vmatpush3.bf16.msra.mxu1 %v19809_v0 }
 0x893   :  { %14031 = vmatprep.subr.bf16.mxu0 %v19810_v37  ;;  %14055 = vmatprep.subr.bf16.mxu1 %v19711_v53 }
 0x896   :  { %14033 = vmatpush1.bf16.msra.mxu0 %v19811_v43  ;;  %14057 = vmatpush3.bf16.msra.mxu1 %v19812_v36 }
 0x897   :  { %14059 = vmatprep.subr.bf16.mxu1 %v19813_v28  ;;  %14090 = vmatprep.subr.bf16.mxu0 %v19711_v53  ;;  %v19815_v28 = vld [vmem:[#allocation71_spill] sm:$0xff] }
 0x92b   :  { %v3521_v30 = vpop.f32.mrb[14].mxu0  ;;  %v3592_v60 = vpop.f32.mrb[44].mxu1 }
 0x92c   :  { %v15657_v2 = vadd.f32 %v3521_v30, %v19799_v29  ;;  %v3523_v22 = vpop.f32.mrb[15].mxu0  ;;  %v11633_v52 = vpop.f32.mrb[45].mxu1  ;;  %v3751_v58 = vadd.f32 %v19815_v28, %v3592_v60 }
 0x92d   :  { %v15658_v40 = vadd.f32 %v3523_v22, %v19814_v17 }
 0x92e   :  { %v9993_v21 = vmul.f32 -1.442695, %v15657_v2 }
 0x92f   :  { %v9994_v37 = vmul.f32 -1.442695, %v15658_v40 }
 0x930   :  { %15990 = vpow2.f32 %v9993_v21 }
 0x931   :  { %15992 = vpow2.f32 %v9994_v37 }
 0x93a   :  { %v15991_v0 = vpop.eup %15990 }
 0x93b   :  { %v3745_v43 = vadd.f32 1.0, %v15991_v0  ;;  %v15993_v36 = vpop.eup %15992 }
 0x93c   :  { %v3746_v18 = vadd.f32 1.0, %v15993_v36 }
 0x93d   :  { %15994 = vrcp.f32 %v3745_v43 }
 0x93e   :  { %15996 = vrcp.f32 %v3746_v18 }
 0x947   :  { %v15995_v45 = vpop.eup %15994 }
 0x948   :  { %v3752_v3 = vmul.f32 %v15995_v45, %v3751_v58  ;;  %v15997_v43 = vpop.eup %15996 }
 0x949   :  { %v3755_v17 = vsub.f32 1.0, %v15997_v43  ;;  %v3757_v45 = vmul.f32 %v15997_v43, %v17729_v41 }
 0x94a   :  { %v3753_v30 = vadd.f32 %v3752_v3, %v19816_v38 }
 0x94c   :  { %15998 = vtanh.f32 %v3753_v30  ;;  %v3662_v52 = vpop.f32.mrb[24].mxu1  ;;  %v3733_v2 = vpop.f32.mrb[44].mxu0 }
 0x94d   :  { %v15677_v22 = vadd.f32 %v3662_v52, %v17188_v51  ;;  %v3664_v21 = vpop.f32.mrb[25].mxu1  ;;  %v11668_v40 = vpop.f32.mrb[45].mxu0 }
 0x94e   :  { %v15678_v0 = vadd.f32 %v3664_v21, %v17191_v55 }
 0x94f   :  { %v9995_v37 = vmul.f32 -1.442695, %v15677_v22  ;;  %v19817_v22 = vld [vmem:[#allocation72_spill] sm:$0xff] }
 0x950   :  { %v9996_v36 = vmul.f32 -1.442695, %v15678_v0 }
 0x951   :  { %16000 = vpow2.f32 %v9995_v37 }
 0x952   :  { %16002 = vpow2.f32 %v9996_v36 }
 0x956   :  { %v15999_v60 = vpop.eup %15998 }
 0x957   :  { %v3756_v28 = vmul.f32 %v15999_v60, %v3755_v17 }
 0x959   :  { %v17817_v38 = vadd.f32 %v3757_v45, %v3756_v28  ;;  %v3773_v28 = vadd.f32 %v17658_v23, %v3733_v2  ;;  %v19828_v45 = vld [vmem:[#allocation79_spill] sm:$0xff] }
 0x95b   :  { %v16001_v3 = vpop.eup %16000  ;;  %3861 = vmatmul.mubr.f32.vlgmr.msra.gmra.mrb[16].mxu0 %v17817_v38  ;;  %11702 = vmatmul.mubr.f32.vlgmr.msra.gmra.mrb[46].mxu1 %v17817_v38 }
 0x95c   :  { %v3767_v58 = vadd.f32 1.0, %v16001_v3  ;;  %14061 = vmatpush1.bf16.msra.mxu1 %v16987_v8  ;;  %14092 = vmatpush3.bf16.msra.mxu0 %v16983_v7  ;;  %v16003_v17 = vpop.eup %16002 }
 0x95d   :  { %14063 = vmatprep.subr.bf16.mxu1 %v16990_v11  ;;  %14093 = vmatprep.subr.bf16.mxu0 %v19711_v53  ;;  %v3768_v18 = vadd.f32 1.0, %v16003_v17 }
 0x95e   :  { %16004 = vrcp.f32 %v3767_v58  ;;  %4001 = vmatprep.mubr.f32.mxu1 %v19712_v62  ;;  %11736 = vmatprep.mubr.msk.f32.mxu0 %vm16515_vm0, %v19712_v62 }
 0x95f   :  { %16006 = vrcp.f32 %v3768_v18 }
 0x960   :  { %14065 = vmatpush1.bf16.msra.mxu1 %v16998_v20  ;;  %14095 = vmatpush3.bf16.msra.mxu0 %v16995_v19 }
 0x961   :  { %14067 = vmatprep.subr.bf16.mxu1 %v17002_v24  ;;  %14096 = vmatprep.subr.bf16.mxu0 %v19711_v53 }
 0x964   :  { %14069 = vmatpush1.bf16.msra.mxu1 %v17011_v33  ;;  %14098 = vmatpush3.bf16.msra.mxu0 %v17008_v32 }
 0x965   :  { %14071 = vmatprep.subr.bf16.mxu1 %v17015_v39  ;;  %14099 = vmatprep.subr.bf16.mxu0 %v19711_v53 }
 0x968   :  { %v16005_v30 = vpop.eup %16004  ;;  %14073 = vmatpush1.bf16.msra.mxu1 %v17021_v50  ;;  %14101 = vmatpush3.bf16.msra.mxu0 %v17018_v48 }
 0x969   :  { %v3774_v52 = vmul.f32 %v16005_v30, %v3773_v28  ;;  %14075 = vmatprep.subr.bf16.mxu1 %v17025_v61  ;;  %14102 = vmatprep.subr.bf16.mxu0 %v19711_v53  ;;  %v16007_v2 = vpop.eup %16006 }
 0x96a   :  { %v3777_v40 = vsub.f32 1.0, %v16007_v2  ;;  %v3779_v43 = vmul.f32 %v16007_v2, %v17771_v44 }
 0x96b   :  { %v3775_v21 = vadd.f32 %v3774_v52, %v19817_v22  ;;  %v19829_v52 = vld [vmem:[#allocation71_spill] sm:$0xff] }
 0x96c   :  { %14077 = vmatpush1.bf16.msra.mxu1 %v17031_v9  ;;  %14104 = vmatpush3.bf16.msra.mxu0 %v17028_v5 }
 0x96d   :  { %16008 = vtanh.f32 %v3775_v21  ;;  %14079 = vmatprep.subr.bf16.mxu1 %v17035_v14  ;;  %14105 = vmatprep.subr.bf16.mxu0 %v19711_v53 }
 0x970   :  { %14081 = vmatpush1.bf16.msra.mxu1 %v17041_v26  ;;  %14107 = vmatpush3.bf16.msra.mxu0 %v17038_v25 }
 0x971   :  { %14083 = vmatprep.subr.bf16.mxu1 %v17045_v34  ;;  %14108 = vmatprep.subr.bf16.mxu0 %v19711_v53 }
 0x974   :  { %14085 = vmatpush1.bf16.msra.mxu1 %v17051_v56  ;;  %14110 = vmatpush3.bf16.msra.mxu0 %v17048_v46 }
 0x975   :  { %14087 = vmatprep.subr.bf16.mxu1 %v17055_v63  ;;  %14111 = vmatprep.subr.bf16.mxu0 %v19711_v53 }
 0x977   :  { %v16009_v37 = vpop.eup %16008 }
 0x978   :  { %14089 = vmatpush1.bf16.msra.mxu1 %v17061_v13  ;;  %14113 = vmatpush3.bf16.msra.mxu0 %v17058_v10  ;;  %v3778_v0 = vmul.f32 %v16009_v37, %v3777_v40  ;;  %v19830_v40 = vld [vmem:[#allocation66_spill] sm:$0xff] }
 0x979   :  { %14115 = vmatprep.subr.bf16.mxu0 %v16831_v31  ;;  %14146 = vmatprep.subr.bf16.mxu1 %v19711_v53  ;;  %v19818_v31 = vld [vmem:[#allocation48_spill] sm:$0xff] }
 0x97a   :  { %v17859_v36 = vadd.f32 %v3779_v43, %v3778_v0 }
 0x97c   :  { %4002 = vmatmul.mubr.f32.vlgmr.msra.gmra.mrb[26].mxu1 %v17859_v36  ;;  %11737 = vmatmul.mubr.f32.vlgmr.msra.gmra.mrb[46].mxu0 %v17859_v36 }
 0x97d   :  { %14117 = vmatpush1.bf16.msra.mxu0 %v16857_v47  ;;  %14148 = vmatpush3.bf16.msra.mxu1 %v16838_v35  ;;  %v19819_v35 = vld [vmem:[#allocation50_spill] sm:$0xff]  ;;  %v19821_v47 = vld [vmem:[#allocation51_spill] sm:$0xff] }
 0x97e   :  { %14119 = vmatprep.subr.bf16.mxu0 %v16861_v49  ;;  %14149 = vmatprep.subr.bf16.mxu1 %v19711_v53  ;;  %v19822_v49 = vld [vmem:[#allocation54_spill] sm:$0xff] }
 0x97f   :  { %4201 = vmatprep.mubr.f32.mxu0 %v19712_v62  ;;  %11771 = vmatprep.mubr.msk.f32.mxu1 %vm16515_vm0, %v19712_v62 }
 0x981   :  { %14121 = vmatpush1.bf16.msra.mxu0 %v16874_v57  ;;  %14151 = vmatpush3.bf16.msra.mxu1 %v16850_v42  ;;  %v19820_v42 = vld [vmem:[#allocation47_spill] sm:$0xff] }
 0x982   :  { %14123 = vmatprep.subr.bf16.mxu0 %v16879_v59  ;;  %14152 = vmatprep.subr.bf16.mxu1 %v19711_v53  ;;  %v19824_v57 = vld [vmem:[#allocation55_spill] sm:$0xff]  ;;  %v19825_v59 = vld [vmem:[#allocation56_spill] sm:$0xff] }
 0x985   :  { %14125 = vmatpush1.bf16.msra.mxu0 %v16892_v4  ;;  %14154 = vmatpush3.bf16.msra.mxu1 %v16869_v54  ;;  %v19823_v54 = vld [vmem:[#allocation49_spill] sm:$0xff] }
 0x986   :  { %14127 = vmatprep.subr.bf16.mxu0 %v16897_v6  ;;  %14155 = vmatprep.subr.bf16.mxu1 %v19711_v53  ;;  %v19827_v4 = vld [vmem:[#allocation53_spill] sm:$0xff] }
 0x989   :  { %14129 = vmatpush1.bf16.msra.mxu0 %v16911_v15  ;;  %14157 = vmatpush3.bf16.msra.mxu1 %v16886_v1  ;;  %v19826_v1 = vld [vmem:[#allocation52_spill] sm:$0xff] }
 0x98a   :  { %14131 = vmatprep.subr.bf16.mxu0 %v16915_v16  ;;  %14158 = vmatprep.subr.bf16.mxu1 %v19711_v53 }
 0x98d   :  { %14133 = vmatpush1.bf16.msra.mxu0 %v16931_v27  ;;  %14160 = vmatpush3.bf16.msra.mxu1 %v16905_v12 }
 0x98e   :  { %14135 = vmatprep.subr.bf16.mxu0 %v19818_v31  ;;  %14161 = vmatprep.subr.bf16.mxu1 %v19711_v53 }
 0x991   :  { %14137 = vmatpush1.bf16.msra.mxu0 %v19819_v35  ;;  %14163 = vmatpush3.bf16.msra.mxu1 %v19820_v42 }
 0x992   :  { %14139 = vmatprep.subr.bf16.mxu0 %v19821_v47  ;;  %14164 = vmatprep.subr.bf16.mxu1 %v19711_v53 }
 0x995   :  { %14141 = vmatpush1.bf16.msra.mxu0 %v19822_v49  ;;  %14166 = vmatpush3.bf16.msra.mxu1 %v19823_v54 }
 0x996   :  { %14143 = vmatprep.subr.bf16.mxu0 %v19824_v57  ;;  %14167 = vmatprep.subr.bf16.mxu1 %v19711_v53 }
 0x999   :  { %14145 = vmatpush1.bf16.msra.mxu0 %v19825_v59  ;;  %14169 = vmatpush3.bf16.msra.mxu1 %v19826_v1 }
 0x99a   :  { %14171 = vmatprep.subr.bf16.mxu1 %v19827_v4  ;;  %14202 = vmatprep.subr.bf16.mxu0 %v19711_v53 }
 0xa2e   :  { %v3862_v6 = vpop.f32.mrb[16].mxu0  ;;  %v3933_v12 = vpop.f32.mrb[46].mxu1 }
 0xa2f   :  { %v15659_v15 = vadd.f32 %v3862_v6, %v19799_v29  ;;  %v3864_v16 = vpop.f32.mrb[17].mxu0  ;;  %v11703_v27 = vpop.f32.mrb[47].mxu1  ;;  %v4092_v22 = vadd.f32 %v19829_v52, %v3933_v12 }
 0xa30   :  { %v15660_v3 = vadd.f32 %v3864_v16, %v19828_v45 }
 0xa31   :  { %v9997_v60 = vmul.f32 -1.442695, %v15659_v15 }
 0xa32   :  { %v9998_v58 = vmul.f32 -1.442695, %v15660_v3  ;;  %v4488_v3 = vld [vmem:[#allocation17 + $0x58] sm:$0xff] }
 0xa33   :  { %16010 = vpow2.f32 %v9997_v60 }
 0xa34   :  { %16012 = vpow2.f32 %v9998_v58 }
 0xa3d   :  { %v16011_v17 = vpop.eup %16010 }
 0xa3e   :  { %v4086_v18 = vadd.f32 1.0, %v16011_v17  ;;  %v16013_v28 = vpop.eup %16012 }
 0xa3f   :  { %v4087_v30 = vadd.f32 1.0, %v16013_v28  ;;  %v4486_v28 = vld [vmem:[#allocation17 + $0x48] sm:$0xff] }
 0xa40   :  { %16014 = vrcp.f32 %v4086_v18  ;;  %v4483_v18 = vld [vmem:[#allocation17 + $0x30] sm:$0xff] }
 0xa41   :  { %16016 = vrcp.f32 %v4087_v30  ;;  %v4490_v30 = vld [vmem:[#allocation17 + $0x68] sm:$0xff] }
 0xa4a   :  { %v16015_v21 = vpop.eup %16014 }
 0xa4b   :  { %v4093_v2 = vmul.f32 %v16015_v21, %v4092_v22  ;;  %v16017_v54 = vpop.eup %16016  ;;  %v4493_v22 = vld [vmem:[#allocation17 + $0x80] sm:$0xff]  ;;  %v4491_v21 = vld [vmem:[#allocation17 + $0x70] sm:$0xff] }
 0xa4c   :  { %v4096_v59 = vsub.f32 1.0, %v16017_v54  ;;  %v4098_v6 = vmul.f32 %v16017_v54, %v17817_v38 }
 0xa4d   :  { %v4094_v37 = vadd.f32 %v4093_v2, %v19830_v40  ;;  %v19832_v2 = vld [vmem:[#allocation81_spill] sm:$0xff]  ;;  %v14234_v40 = vpack.c.bf16 %v4493_v22, %v4490_v30 }
 0xa4e   :  { %v4519_v22 = vld [vmem:[#allocation17 + $0x150] sm:$0xff] }
 0xa4f   :  { %16018 = vtanh.f32 %v4094_v37  ;;  %v4003_v0 = vpop.f32.mrb[26].mxu1  ;;  %v4074_v43 = vpop.f32.mrb[46].mxu0 }
 0xa50   :  { %v15679_v31 = vadd.f32 %v4003_v0, %v17188_v51  ;;  %v4005_v35 = vpop.f32.mrb[27].mxu1  ;;  %v11738_v42 = vpop.f32.mrb[47].mxu0  ;;  %v4489_v0 = vld [vmem:[#allocation17 + $0x60] sm:$0xff] }
 0xa51   :  { %v15680_v49 = vadd.f32 %v4005_v35, %v17191_v55  ;;  %v4499_v35 = vld [vmem:[#allocation17 + $0xb0] sm:$0xff]  ;;  %v4497_v42 = vld [vmem:[#allocation17 + $0xa0] sm:$0xff] }
 0xa52   :  { %v9999_v47 = vmul.f32 -1.442695, %v15679_v31  ;;  %v4496_v31 = vld [vmem:[#allocation17 + $0x98] sm:$0xff] }
 0xa53   :  { %v10000_v57 = vmul.f32 -1.442695, %v15680_v49  ;;  %v14238_v54 = vpack.c.bf16 %v4499_v35, %v4496_v31  ;;  %v4826_v31 = vld [vmem:[#allocation20 + $0x20] sm:$0xff]  ;;  %v4824_v35 = vld [vmem:[#allocation20 + $0x10] sm:$0xff] }
 0xa54   :  { %16020 = vpow2.f32 %v9999_v47  ;;  %v4500_v47 = vld [vmem:[#allocation17 + $0xb8] sm:$0xff] }
 0xa55   :  { %16022 = vpow2.f32 %v10000_v57  ;;  %v14270_v57 = vpack.c.bf16 %v4500_v47, %v4497_v42  ;;  %v4827_v47 = vld [vmem:[#allocation20 + $0x28] sm:$0xff] }
 0xa59   :  { %v16019_v1 = vpop.eup %16018 }
 0xa5a   :  { %v4097_v4 = vmul.f32 %v16019_v1, %v4096_v59  ;;  %v4495_v59 = vld [vmem:[#allocation17 + $0x90] sm:$0xff]  ;;  %v4498_v1 = vld [vmem:[#allocation17 + $0xa8] sm:$0xff] }
 0xa5c   :  { %v17905_v12 = vadd.f32 %v4098_v6, %v4097_v4  ;;  %v4502_v4 = vld [vmem:[#allocation17 + $0xc8] sm:$0xff]  ;;  %v4505_v6 = vld [vmem:[#allocation17 + $0xe0] sm:$0xff] }
 0xa5e   :  { %v16021_v15 = vpop.eup %16020  ;;  %4202 = vmatmul.mubr.f32.vlgmr.msra.gmra.mrb[18].mxu0 %v17905_v12  ;;  %11772 = vmatmul.mubr.f32.vlgmr.msra.gmra.mrb[48].mxu1 %v17905_v12 }
 0xa5f   :  { %v4108_v16 = vadd.f32 1.0, %v16021_v15  ;;  %14173 = vmatpush1.bf16.msra.mxu1 %v16987_v8  ;;  %14204 = vmatpush3.bf16.msra.mxu0 %v16983_v7  ;;  %v16023_v8 = vpop.eup %16022  ;;  %v4503_v15 = vld [vmem:[#allocation17 + $0xd0] sm:$0xff] }
 0xa60   :  { %14175 = vmatprep.subr.bf16.mxu1 %v16990_v11  ;;  %14205 = vmatprep.subr.bf16.mxu0 %v19711_v53  ;;  %v4109_v7 = vadd.f32 1.0, %v16023_v8  ;;  %v4114_v11 = vadd.f32 %v17658_v23, %v4074_v43  ;;  %v4487_v23 = vld [vmem:[#allocation17 + $0x50] sm:$0xff]  ;;  %v4492_v43 = vld [vmem:[#allocation17 + $0x78] sm:$0xff]  ;;  %v14240_v8 = vpack.c.bf16 %v4498_v1, %v4495_v59  ;;  %v4830_v1 = vld [vmem:[#allocation20 + $0x40] sm:$0xff] }
 0xa61   :  { %16024 = vrcp.f32 %v4108_v16  ;;  %4342 = vmatprep.mubr.f32.mxu1 %v19712_v62  ;;  %11806 = vmatprep.mubr.msk.f32.mxu0 %vm16515_vm0, %v19712_v62  ;;  %v14236_v49 = vpack.c.bf16 %v4492_v43, %v4489_v0  ;;  %v4506_v16 = vld [vmem:[#allocation17 + $0xe8] sm:$0xff]  ;;  %v19837_v43 = vld [vmem:[#allocation61_spill] sm:$0xff] }
 0xa62   :  { %16026 = vrcp.f32 %v4109_v7  ;;  %v14242_v7 = vpack.c.bf16 %v4505_v6, %v4502_v4  ;;  %v19836_v0 = vld [vmem:[#allocation80_spill] sm:$0xff]  ;;  %v4833_v6 = vld [vmem:[#allocation20 + $0x58] sm:$0xff] }
 0xa63   :  { %14177 = vmatpush1.bf16.msra.mxu1 %v16998_v20  ;;  %14207 = vmatpush3.bf16.msra.mxu0 %v16995_v19  ;;  %v19831_v20 = vld [vmem:[#allocation75_spill] sm:$0xff] }
 0xa64   :  { %14179 = vmatprep.subr.bf16.mxu1 %v17002_v24  ;;  %14208 = vmatprep.subr.bf16.mxu0 %v19711_v53 }
 0xa67   :  { %14181 = vmatpush1.bf16.msra.mxu1 %v17011_v33  ;;  %14210 = vmatpush3.bf16.msra.mxu0 %v17008_v32  ;;  %v4478_v32 = vld [vmem:[#allocation17 + $0x8] sm:$0xff]  ;;  %v4481_v33 = vld [vmem:[#allocation17 + $0x20] sm:$0xff] }
 0xa68   :  { %14183 = vmatprep.subr.bf16.mxu1 %v17015_v39  ;;  %14211 = vmatprep.subr.bf16.mxu0 %v19711_v53  ;;  %v4479_v39 = vld [vmem:[#allocation17 + $0x10] sm:$0xff] }
 0xa6b   :  { %v16025_v27 = vpop.eup %16024  ;;  %14185 = vmatpush1.bf16.msra.mxu1 %v17021_v50  ;;  %14213 = vmatpush3.bf16.msra.mxu0 %v17018_v48  ;;  %v4482_v48 = vld [vmem:[#allocation17 + $0x28] sm:$0xff] }
 0xa6c   :  { %v4115_v19 = vmul.f32 %v16025_v27, %v4114_v11  ;;  %14187 = vmatprep.subr.bf16.mxu1 %v17025_v61  ;;  %14214 = vmatprep.subr.bf16.mxu0 %v19711_v53  ;;  %v16027_v50 = vpop.eup %16026  ;;  %v14226_v61 = vpack.c.bf16 %v4481_v33, %v4478_v32  ;;  %v14274_v11 = vpack.c.bf16 %v4506_v16, %v4503_v15  ;;  %v4501_v27 = vld [vmem:[#allocation17 + $0xc0] sm:$0xff]  ;;  %v4512_v33 = vld [vmem:[#allocation17 + $0x118] sm:$0xff]  ;;  %v4828_v15 = vld [vmem:[#allocation20 + $0x30] sm:$0xff] }
 0xa6d   :  { %v4509_v32 = vld [vmem:[#allocation17 + $0x100] sm:$0xff]  ;;  %v4831_v16 = vld [vmem:[#allocation20 + $0x48] sm:$0xff] }
 0xa6e   :  { %v4116_v24 = vadd.f32 %v4115_v19, %v19831_v20  ;;  %v4504_v19 = vld [vmem:[#allocation17 + $0xd8] sm:$0xff] }
 0xa6f   :  { %14189 = vmatpush1.bf16.msra.mxu1 %v17031_v9  ;;  %14216 = vmatpush3.bf16.msra.mxu0 %v17028_v5  ;;  %v14258_v5 = vpack.c.bf16 %v4482_v48, %v4479_v39  ;;  %v4118_v9 = vsub.f32 1.0, %v16027_v50  ;;  %v4508_v20 = vld [vmem:[#allocation17 + $0xf8] sm:$0xff]  ;;  %v14244_v39 = vpack.c.bf16 %v4504_v19, %v4501_v27  ;;  %v4838_v27 = vld [vmem:[#allocation20 + $0x80] sm:$0xff]  ;;  %v4836_v19 = vld [vmem:[#allocation20 + $0x70] sm:$0xff] }
 0xa70   :  { %16028 = vtanh.f32 %v4116_v24  ;;  %14191 = vmatprep.subr.bf16.mxu1 %v17035_v14  ;;  %14217 = vmatprep.subr.bf16.mxu0 %v19711_v53  ;;  %v4477_v14 = vld [vmem:[#allocation17] sm:$0xff]  ;;  %v4511_v24 = vld [vmem:[#allocation17 + $0x110] sm:$0xff] }
 0xa71   :  { %v14246_v48 = vpack.c.bf16 %v4511_v24, %v4508_v20  ;;  %v4839_v24 = vld [vmem:[#allocation20 + $0x88] sm:$0xff] }
 0xa73   :  { %14193 = vmatpush1.bf16.msra.mxu1 %v17041_v26  ;;  %14219 = vmatpush3.bf16.msra.mxu0 %v17038_v25  ;;  %v4480_v25 = vld [vmem:[#allocation17 + $0x18] sm:$0xff] }
 0xa74   :  { %14195 = vmatprep.subr.bf16.mxu1 %v17045_v34  ;;  %14220 = vmatprep.subr.bf16.mxu0 %v19711_v53  ;;  %v4484_v34 = vld [vmem:[#allocation17 + $0x38] sm:$0xff] }
 0xa75   :  { %v14230_v17 = vpack.c.bf16 %v4487_v23, %v4484_v34 }
 0xa77   :  { %14197 = vmatpush1.bf16.msra.mxu1 %v17051_v56  ;;  %14222 = vmatpush3.bf16.msra.mxu0 %v17048_v46  ;;  %v4120_v56 = vmul.f32 %v16027_v50, %v17859_v36  ;;  %v4485_v46 = vld [vmem:[#allocation17 + $0x40] sm:$0xff]  ;;  %v14278_v50 = vpack.c.bf16 %v4512_v33, %v4509_v32  ;;  %v4837_v33 = vld [vmem:[#allocation20 + $0x78] sm:$0xff] }
 0xa78   :  { %14199 = vmatprep.subr.bf16.mxu1 %v17055_v63  ;;  %14223 = vmatprep.subr.bf16.mxu0 %v19711_v53  ;;  %v14228_v63 = vpack.c.bf16 %v4480_v25, %v4477_v14  ;;  %v14262_v52 = vpack.c.bf16 %v4488_v3, %v4485_v46  ;;  %v4517_v14 = vld [vmem:[#allocation17 + $0x140] sm:$0xff]  ;;  %v4515_v25 = vld [vmem:[#allocation17 + $0x130] sm:$0xff]  ;;  %v4516_v46 = vld [vmem:[#allocation17 + $0x138] sm:$0xff] }
 0xa79   :  { %v4520_v3 = vld [vmem:[#allocation17 + $0x158] sm:$0xff]  ;;  %v4834_v32 = vld [vmem:[#allocation20 + $0x60] sm:$0xff] }
 0xa7a   :  { %v16029_v26 = vpop.eup %16028 }
 0xa7b   :  { %14201 = vmatpush1.bf16.msra.mxu1 %v17061_v13  ;;  %14225 = vmatpush3.bf16.msra.mxu0 %v17058_v10  ;;  %v4119_v60 = vmul.f32 %v16029_v26, %v4118_v9  ;;  %v4494_v13 = vld [vmem:[#allocation17 + $0x88] sm:$0xff]  ;;  %v14232_v10 = vpack.c.bf16 %v4486_v28, %v4483_v18  ;;  %v4524_v18 = vld [vmem:[#allocation17 + $0x178] sm:$0xff] }
 0xa7c   :  { %14227 = vmatprep.subr.bf16.mxu0 %v14226_v61  ;;  %14259 = vmatprep.subr.bf16.mxu1 %v14258_v5  ;;  %v14266_v37 = vpack.c.bf16 %v4494_v13, %v4491_v21  ;;  %v4507_v61 = vld [vmem:[#allocation17 + $0xf0] sm:$0xff]  ;;  %v4514_v9 = vld [vmem:[#allocation17 + $0x128] sm:$0xff] }
 0xa7d   :  { %v17945_v58 = vadd.f32 %v4120_v56, %v4119_v60  ;;  %v4518_v26 = vld [vmem:[#allocation17 + $0x148] sm:$0xff]  ;;  %v14250_v23 = vpack.c.bf16 %v4517_v14, %v4514_v9  ;;  %v4513_v56 = vld [vmem:[#allocation17 + $0x120] sm:$0xff]  ;;  %v4845_v14 = vld [vmem:[#allocation20 + $0xb8] sm:$0xff] }
 0xa7e   :  { %v14282_v60 = vpack.c.bf16 %v4518_v26, %v4515_v25  ;;  %v14252_v28 = vpack.c.bf16 %v4516_v46, %v4513_v56  ;;  %v4522_v21 = vld [vmem:[#allocation17 + $0x168] sm:$0xff]  ;;  %v4840_v25 = vld [vmem:[#allocation20 + $0x90] sm:$0xff]  ;;  %v4850_v56 = vld [vmem:[#allocation20 + $0xe0] sm:$0xff] }
 0xa7f   :  { %4343 = vmatmul.mubr.f32.vlgmr.msra.gmra.mrb[28].mxu1 %v17945_v58  ;;  %11807 = vmatmul.mubr.f32.vlgmr.msra.gmra.mrb[48].mxu0 %v17945_v58  ;;  %v14256_v13 = vpack.c.bf16 %v4522_v21, %v4519_v22  ;;  %v4843_v26 = vld [vmem:[#allocation20 + $0xa8] sm:$0xff]  ;;  %v4848_v46 = vld [vmem:[#allocation20 + $0xd0] sm:$0xff]  ;;  %v4854_v21 = vld [vmem:[#allocation20 + $0x100] sm:$0xff] }
 0xa80   :  { %14229 = vmatpush1.bf16.msra.mxu0 %v14228_v63  ;;  %14261 = vmatpush3.bf16.msra.mxu1 %v14258_v5  ;;  %v4510_v5 = vld [vmem:[#allocation17 + $0x108] sm:$0xff]  ;;  %v4523_v63 = vld [vmem:[#allocation17 + $0x170] sm:$0xff] }
 0xa81   :  { %11841 = vmatprep.mubr.f32.mxu1 %v19832_v2  ;;  %14231 = vmatprep.subr.bf16.mxu0 %v14230_v17  ;;  %v14248_v34 = vpack.c.bf16 %v4510_v5, %v4507_v61  ;;  %v4521_v17 = vld [vmem:[#allocation17 + $0x160] sm:$0xff]  ;;  %v14254_v30 = vpack.c.bf16 %v4523_v63, %v4520_v3  ;;  %v4844_v61 = vld [vmem:[#allocation20 + $0xb0] sm:$0xff]  ;;  %v4851_v63 = vld [vmem:[#allocation20 + $0xe8] sm:$0xff] }
 0xa82   :  { %14263 = vmatprep.subr.bf16.mxu1 %v14262_v52  ;;  %4606 = vmatprep.mubr.f32.mxu0 %v19712_v62  ;;  %v4842_v5 = vld [vmem:[#allocation20 + $0xa0] sm:$0xff]  ;;  %v4856_v22 = vld [vmem:[#allocation20 + $0x110] sm:$0xff] }
 0xa84   :  { %14233 = vmatpush1.bf16.msra.mxu0 %v14232_v10  ;;  %14265 = vmatpush3.bf16.msra.mxu1 %v14262_v52  ;;  %v14286_v52 = vpack.c.bf16 %v4524_v18, %v4521_v17  ;;  %v19833_v10 = vld [vmem:[#allocation58_spill] sm:$0xff] }
 0xa85   :  { %14235 = vmatprep.subr.bf16.mxu0 %v14234_v40  ;;  %14267 = vmatprep.subr.bf16.mxu1 %v14266_v37  ;;  %v19834_v40 = vld [vmem:[#allocation60_spill] sm:$0xff]  ;;  %v4846_v17 = vld [vmem:[#allocation20 + $0xc0] sm:$0xff]  ;;  %v4849_v18 = vld [vmem:[#allocation20 + $0xd8] sm:$0xff] }
 0xa88   :  { %14237 = vmatpush1.bf16.msra.mxu0 %v14236_v49  ;;  %14269 = vmatpush3.bf16.msra.mxu1 %v14266_v37  ;;  %v19835_v37 = vld [vmem:[#allocation59_spill] sm:$0xff] }
 0xa89   :  { %14239 = vmatprep.subr.bf16.mxu0 %v14238_v54  ;;  %14271 = vmatprep.subr.bf16.mxu1 %v14270_v57  ;;  %v4822_v49 = vld [vmem:[#allocation20] sm:$0xff]  ;;  %v4825_v54 = vld [vmem:[#allocation20 + $0x18] sm:$0xff] }
 0xa8a   :  { %v14292_v59 = vpack.c.bf16 %v4825_v54, %v4822_v49  ;;  %v4858_v49 = vld [vmem:[#allocation20 + $0x120] sm:$0xff]  ;;  %v4861_v54 = vld [vmem:[#allocation20 + $0x138] sm:$0xff] }
 0xa8c   :  { %14241 = vmatpush1.bf16.msra.mxu0 %v14240_v8  ;;  %14273 = vmatpush3.bf16.msra.mxu1 %v14270_v57  ;;  %v14322_v57 = vpack.c.bf16 %v4827_v47, %v4824_v35  ;;  %v14326_v8 = vpack.c.bf16 %v4833_v6, %v4830_v1  ;;  %v4860_v35 = vld [vmem:[#allocation20 + $0x130] sm:$0xff]  ;;  %v4863_v47 = vld [vmem:[#allocation20 + $0x148] sm:$0xff]  ;;  %v4866_v1 = vld [vmem:[#allocation20 + $0x160] sm:$0xff] }
 0xa8d   :  { %14243 = vmatprep.subr.bf16.mxu0 %v14242_v7  ;;  %14275 = vmatprep.subr.bf16.mxu1 %v14274_v11  ;;  %v14296_v7 = vpack.c.bf16 %v4831_v16, %v4828_v15  ;;  %v4869_v6 = vld [vmem:[#allocation20 + $0x178] sm:$0xff]  ;;  %v4864_v15 = vld [vmem:[#allocation20 + $0x150] sm:$0xff]  ;;  %v4867_v16 = vld [vmem:[#allocation20 + $0x168] sm:$0xff] }
 0xa90   :  { %14245 = vmatpush1.bf16.msra.mxu0 %v14244_v39  ;;  %14277 = vmatpush3.bf16.msra.mxu1 %v14274_v11  ;;  %v4835_v11 = vld [vmem:[#allocation20 + $0x68] sm:$0xff]  ;;  %v14330_v39 = vpack.c.bf16 %v4839_v24, %v4836_v19 }
 0xa91   :  { %14247 = vmatprep.subr.bf16.mxu0 %v14246_v48  ;;  %14279 = vmatprep.subr.bf16.mxu1 %v14278_v50  ;;  %v14298_v20 = vpack.c.bf16 %v4838_v27, %v4835_v11  ;;  %v14300_v48 = vpack.c.bf16 %v4837_v33, %v4834_v32  ;;  %v5158_v11 = vld [vmem:[#allocation19 + $0x8] sm:$0xff]  ;;  %v5161_v27 = vld [vmem:[#allocation19 + $0x20] sm:$0xff] }
 0xa92   :  { %v17977_v19 = vpack.c.bf16 %v5161_v27, %v5158_v11 }
 0xa94   :  { %14249 = vmatpush1.bf16.msra.mxu0 %v14248_v34  ;;  %14281 = vmatpush3.bf16.msra.mxu1 %v14278_v50  ;;  %v4841_v50 = vld [vmem:[#allocation20 + $0x98] sm:$0xff]  ;;  %v14334_v34 = vpack.c.bf16 %v4845_v14, %v4842_v5 }
 0xa95   :  { %14251 = vmatprep.subr.bf16.mxu0 %v14250_v23  ;;  %14283 = vmatprep.subr.bf16.mxu1 %v14282_v60  ;;  %v14302_v9 = vpack.c.bf16 %v4844_v61, %v4841_v50  ;;  %v14304_v23 = vpack.c.bf16 %v4843_v26, %v4840_v25  ;;  %v16232_v26 = vld [vmem:[#allocation11] ss:$0 sm:$0xff] }
 0xa98   :  { %14253 = vmatpush1.bf16.msra.mxu0 %v14252_v28  ;;  %14285 = vmatpush3.bf16.msra.mxu1 %v14282_v60  ;;  %v4847_v60 = vld [vmem:[#allocation20 + $0xc8] sm:$0xff]  ;;  %v14338_v28 = vpack.c.bf16 %v4851_v63, %v4848_v46 }
 0xa99   :  { %14255 = vmatprep.subr.bf16.mxu0 %v14254_v30  ;;  %14287 = vmatprep.subr.bf16.mxu1 %v14286_v52  ;;  %v14306_v3 = vpack.c.bf16 %v4850_v56, %v4847_v60  ;;  %v14308_v30 = vpack.c.bf16 %v4849_v18, %v4846_v17  ;;  %v19838_v56 = vld [vmem:[#allocation65_spill] sm:$0xff] }
 0xa9c   :  { %14257 = vmatpush1.bf16.msra.mxu0 %v14256_v13  ;;  %14289 = vmatpush3.bf16.msra.mxu1 %v14286_v52  ;;  %v4853_v52 = vld [vmem:[#allocation20 + $0xf8] sm:$0xff] }
 0xa9d   :  { %14323 = vmatprep.subr.bf16.mxu0 %v14322_v57  ;;  %v14310_v13 = vpack.c.bf16 %v4856_v22, %v4853_v52 }
 0xa9f   :  { %4607 = vmatmul.mubr.f32.vlgmr.msra.gmra.mrb[50].mxu0 %v19832_v2  ;;  %11842 = vmatmul.mubr.f32.vlgmr.msra.gmra.mrb[50].mxu1 %v19833_v10  ;;  %v4823_v2 = vld [vmem:[#allocation20 + $0x8] sm:$0xff] }
 0xaa0   :  { %11844 = vmatprep.mubr.f32.mxu1 %v19834_v40  ;;  %4612 = vmatprep.mubr.f32.mxu0 %v19712_v62  ;;  %v14290_v42 = vpack.c.bf16 %v4826_v31, %v4823_v2  ;;  %v4859_v2 = vld [vmem:[#allocation20 + $0x128] sm:$0xff]  ;;  %v4862_v31 = vld [vmem:[#allocation20 + $0x140] sm:$0xff] }
 0xaa1   :  { %14325 = vmatpush3.bf16.msra.mxu0 %v14322_v57  ;;  %v14346_v57 = vpack.c.bf16 %v4863_v47, %v4860_v35  ;;  %v5167_v35 = vld [vmem:[#allocation19 + $0x50] sm:$0xff] }
 0xaa2   :  { %14291 = vmatprep.subr.bf16.mxu1 %v14290_v42  ;;  %14327 = vmatprep.subr.bf16.mxu0 %v14326_v8  ;;  %v14314_v42 = vpack.c.bf16 %v4862_v31, %v4859_v2  ;;  %v5162_v2 = vld [vmem:[#allocation19 + $0x28] sm:$0xff]  ;;  %v5164_v31 = vld [vmem:[#allocation19 + $0x38] sm:$0xff] }
 0xaa3   :  { %4613 = vmatmul.mubr.f32.gmra.mrb[52].mxu0 %v19833_v10  ;;  %11845 = vmatmul.mubr.f32.gmra.mrb[52].mxu1 %v19835_v37  ;;  %v4857_v10 = vld [vmem:[#allocation20 + $0x118] sm:$0xff] }
 0xaa4   :  { %11847 = vmatprep.mubr.f32.mxu1 %v19836_v0  ;;  %4618 = vmatprep.mubr.f32.mxu0 %v19712_v62 }
 0xaa5   :  { %14293 = vmatpush1.bf16.msra.mxu1 %v14292_v59  ;;  %14329 = vmatpush3.bf16.msra.mxu0 %v14326_v8  ;;  %v14316_v59 = vpack.c.bf16 %v4861_v54, %v4858_v49  ;;  %v14350_v8 = vpack.c.bf16 %v4869_v6, %v4866_v1  ;;  %v5166_v54 = vld [vmem:[#allocation19 + $0x48] sm:$0xff]  ;;  %v19841_v6 = vld [vmem:[#allocation69_spill] sm:$0xff] }
 0xaa6   :  { %14331 = vmatprep.subr.bf16.mxu0 %v14330_v39  ;;  %v5170_v1 = vld [vmem:[#allocation19 + $0x68] sm:$0xff] }
 0xaa7   :  { %4619 = vmatmul.mubr.f32.gmra.mrb[54].mxu0 %v19834_v40  ;;  %11848 = vmatmul.mubr.f32.gmra.mrb[54].mxu1 %v19837_v43  ;;  %v4852_v40 = vld [vmem:[#allocation20 + $0xf0] sm:$0xff] }
 0xaa8   :  { %11850 = vmatprep.mubr.f32.mxu1 %v17729_v41  ;;  %4624 = vmatprep.mubr.f32.mxu0 %v19712_v62 }
 0xaa9   :  { %14333 = vmatpush3.bf16.msra.mxu0 %v14330_v39 }
 0xaaa   :  { %14335 = vmatprep.subr.bf16.mxu0 %v14334_v34 }
 0xaab   :  { %4625 = vmatmul.mubr.f32.gmra.mrb[56].mxu0 %v19835_v37  ;;  %11851 = vmatmul.mubr.f32.gmra.mrb[56].mxu1 %v17817_v38  ;;  %v4855_v37 = vld [vmem:[#allocation20 + $0x108] sm:$0xff] }
 0xaac   :  { %11853 = vmatprep.mubr.f32.mxu1 %v17905_v12  ;;  %4630 = vmatprep.mubr.f32.mxu0 %v19712_v62 }
 0xaad   :  { %14337 = vmatpush3.bf16.msra.mxu0 %v14334_v34 }
 0xaae   :  { %14339 = vmatprep.subr.bf16.mxu0 %v14338_v28 }
 0xaaf   :  { %4631 = vmatmul.mubr.f32.gmra.mrb[58].mxu0 %v19836_v0  ;;  %v14342_v0 = vpack.c.bf16 %v4857_v10, %v4854_v21 }
 0xab0   :  { %4636 = vmatprep.mubr.f32.mxu0 %v19712_v62 }
 0xab1   :  { %14341 = vmatpush3.bf16.msra.mxu0 %v14338_v28 }
 0xab2   :  { %14343 = vmatprep.subr.bf16.mxu0 %v14342_v0 }
 0xab3   :  { %4637 = vmatmul.mubr.f32.gmra.mrb[60].mxu0 %v19837_v43  ;;  %v14312_v43 = vpack.c.bf16 %v4855_v37, %v4852_v40  ;;  %v5157_v37 = vld [vmem:[#allocation19] sm:$0xff] }
 0xab4   :  { %4642 = vmatprep.mubr.f32.mxu0 %v19712_v62 }
 0xab5   :  { %14345 = vmatpush3.bf16.msra.mxu0 %v14342_v0  ;;  %v5160_v0 = vld [vmem:[#allocation19 + $0x18] sm:$0xff] }
 0xab6   :  { %14347 = vmatprep.subr.bf16.mxu0 %v14346_v57  ;;  %v17991_v47 = vpack.c.bf16 %v5160_v0, %v5157_v37 }
 0xab7   :  { %4643 = vmatmul.mubr.f32.gmra.mrb[62].mxu0 %v17729_v41  ;;  %v4829_v41 = vld [vmem:[#allocation20 + $0x38] sm:$0xff] }
 0xab8   :  { %4648 = vmatprep.mubr.f32.mxu0 %v19712_v62 }
 0xab9   :  { %14349 = vmatpush3.bf16.msra.mxu0 %v14346_v57  ;;  %v17995_v57 = vpack.c.bf16 %v5167_v35, %v5164_v31  ;;  %v5190_v31 = vld [vmem:[#allocation19 + $0x108] sm:$0xff] }
 0xaba   :  { %14351 = vmatprep.subr.bf16.mxu0 %v14350_v8 }
 0xabb   :  { %4649 = vmatmul.mubr.f32.gmra.mrb[64].mxu0 %v17817_v38  ;;  %v4832_v38 = vld [vmem:[#allocation20 + $0x50] sm:$0xff] }
 0xabc   :  { %4654 = vmatprep.mubr.f32.mxu0 %v19712_v62  ;;  %v14294_v4 = vpack.c.bf16 %v4832_v38, %v4829_v41  ;;  %v4865_v41 = vld [vmem:[#allocation20 + $0x158] sm:$0xff]  ;;  %v4868_v38 = vld [vmem:[#allocation20 + $0x170] sm:$0xff] }
 0xabd   :  { %14353 = vmatpush3.bf16.msra.mxu0 %v14350_v8  ;;  %v5169_v8 = vld [vmem:[#allocation19 + $0x60] sm:$0xff] }
 0xabe   :  { %14295 = vmatprep.subr.bf16.mxu1 %v14294_v4  ;;  %v14318_v4 = vpack.c.bf16 %v4868_v38, %v4865_v41  ;;  %14355 = vmatprep.subr.bf16.mxu0 %v17977_v19  ;;  %v5168_v41 = vld [vmem:[#allocation19 + $0x58] sm:$0xff]  ;;  %v19840_v38 = vld [vmem:[#allocation67_spill] sm:$0xff] }
 0xabf   :  { %4655 = vmatmul.mubr.f32.gmra.mrb[66].mxu0 %v17905_v12  ;;  %14297 = vmatpush1.bf16.msra.mxu1 %v14296_v7  ;;  %v14320_v7 = vpack.c.bf16 %v4867_v16, %v4864_v15 }
 0xac0   :  { %4660 = vmatprep.mubr.f32.mxu0 %v19712_v62  ;;  %14299 = vmatprep.subr.bf16.mxu1 %v14298_v20 }
 0xac3   :  { %14301 = vmatpush1.bf16.msra.mxu1 %v14300_v48 }
 0xac4   :  { %14303 = vmatprep.subr.bf16.mxu1 %v14302_v9 }
 0xac7   :  { %14305 = vmatpush1.bf16.msra.mxu1 %v14304_v23 }
 0xac8   :  { %14307 = vmatprep.subr.bf16.mxu1 %v14306_v3 }
 0xacb   :  { %14309 = vmatpush1.bf16.msra.mxu1 %v14308_v30 }
 0xacc   :  { %14311 = vmatprep.subr.bf16.mxu1 %v14310_v13 }
 0xacf   :  { %14313 = vmatpush1.bf16.msra.mxu1 %v14312_v43  ;;  %v5159_v43 = vld [vmem:[#allocation19 + $0x10] sm:$0xff] }
 0xad0   :  { %14315 = vmatprep.subr.bf16.mxu1 %v14314_v42  ;;  %v19839_v42 = vld [vmem:[#allocation82_spill] sm:$0xff]  ;;  %v17993_v49 = vpack.c.bf16 %v5162_v2, %v5159_v43 }
 0xad3   :  { %14317 = vmatpush1.bf16.msra.mxu1 %v14316_v59  ;;  %v5165_v59 = vld [vmem:[#allocation19 + $0x40] sm:$0xff] }
 0xad4   :  { %14319 = vmatprep.subr.bf16.mxu1 %v14318_v4  ;;  %v5173_v4 = vld [vmem:[#allocation19 + $0x80] sm:$0xff]  ;;  %v18005_v16 = vpack.c.bf16 %v5168_v41, %v5165_v59 }
 0xad5   :  { %v18009_v27 = vpack.c.bf16 %v5173_v4, %v5170_v1  ;;  %v5193_v4 = vld [vmem:[#allocation19 + $0x120] sm:$0xff] }
 0xad7   :  { %14321 = vmatpush1.bf16.msra.mxu1 %v14320_v7  ;;  %v5172_v7 = vld [vmem:[#allocation19 + $0x78] sm:$0xff] }
 0xad8   :  { %14386 = vmatprep.subr.bf16.mxu1 %v19711_v53 }
 0xb31   :  { %v4203_v20 = vpop.f32.mrb[18].mxu0  ;;  %v4274_v24 = vpop.f32.mrb[48].mxu1 }
 0xb32   :  { %v15661_v32 = vadd.f32 %v4203_v20, %v19799_v29  ;;  %v4205_v33 = vpop.f32.mrb[19].mxu0  ;;  %v11773_v39 = vpop.f32.mrb[49].mxu1  ;;  %v4433_v34 = vadd.f32 %v16232_v26, %v4274_v24  ;;  %v5171_v20 = vld [vmem:[#allocation19 + $0x70] sm:$0xff]  ;;  %v5174_v24 = vld [vmem:[#allocation19 + $0x88] sm:$0xff] }
 0xb33   :  { %v15662_v50 = vadd.f32 %v4205_v33, %v19828_v45  ;;  %v5176_v33 = vld [vmem:[#allocation19 + $0x98] sm:$0xff]  ;;  %v5179_v39 = vld [vmem:[#allocation19 + $0xb0] sm:$0xff]  ;;  %v5182_v26 = vld [vmem:[#allocation19 + $0xc8] sm:$0xff] }
 0xb34   :  { %v10001_v48 = vmul.f32 -1.442695, %v15661_v32  ;;  %v19842_v32 = vld [vmem:[#allocation68_spill] sm:$0xff] }
 0xb35   :  { %v10002_v61 = vmul.f32 -1.442695, %v15662_v50  ;;  %v18015_v50 = vpack.c.bf16 %v5172_v7, %v5169_v8  ;;  %v5200_v7 = vld [vmem:[#allocation19 + $0x158] sm:$0xff] }
 0xb36   :  { %16030 = vpow2.f32 %v10001_v48  ;;  %v19843_v48 = vld [vmem:[#allocation62_spill] sm:$0xff] }
 0xb37   :  { %16032 = vpow2.f32 %v10002_v61 }
 0xb40   :  { %v16031_v5 = vpop.eup %16030 }
 0xb41   :  { %v4427_v9 = vadd.f32 1.0, %v16031_v5  ;;  %v16033_v14 = vpop.eup %16032  ;;  %v18019_v5 = vpack.c.bf16 %v5174_v24, %v5171_v20  ;;  %v5195_v24 = vld [vmem:[#allocation19 + $0x130] sm:$0xff] }
 0xb42   :  { %v4428_v25 = vadd.f32 1.0, %v16033_v14  ;;  %v5178_v14 = vld [vmem:[#allocation19 + $0xa8] sm:$0xff] }
 0xb43   :  { %16034 = vrcp.f32 %v4427_v9  ;;  %v5175_v9 = vld [vmem:[#allocation19 + $0x90] sm:$0xff] }
 0xb44   :  { %16036 = vrcp.f32 %v4428_v25  ;;  %v18023_v25 = vpack.c.bf16 %v5179_v39, %v5176_v33 }
 0xb4d   :  { %v16035_v23 = vpop.eup %16034 }
 0xb4e   :  { %v4434_v60 = vmul.f32 %v16035_v23, %v4433_v34  ;;  %v16037_v30 = vpop.eup %16036  ;;  %v5185_v34 = vld [vmem:[#allocation19 + $0xe0] sm:$0xff]  ;;  %v16233_v23 = vld [vmem:[#allocation16] ss:$0 sm:$0xff] }
 0xb4f   :  { %v4437_v22 = vsub.f32 1.0, %v16037_v30  ;;  %v4439_v10 = vmul.f32 %v16037_v30, %v17905_v12  ;;  %v5163_v12 = vld [vmem:[#allocation19 + $0x30] sm:$0xff] }
 0xb50   :  { %v4435_v29 = vadd.f32 %v4434_v60, %v19838_v56  ;;  %v18001_v15 = vpack.c.bf16 %v5166_v54, %v5163_v12  ;;  %v19844_v56 = vld [vmem:[#allocation70_spill] sm:$0xff] }
 0xb51   :  { %v5189_v12 = vld [vmem:[#allocation19 + $0x100] sm:$0xff]  ;;  %v5192_v54 = vld [vmem:[#allocation19 + $0x118] sm:$0xff] }
 0xb52   :  { %16038 = vtanh.f32 %v4435_v29  ;;  %v4344_v46 = vpop.f32.mrb[28].mxu1  ;;  %v17984_v3 = vpop.f32.mrb[48].mxu0  ;;  %v5177_v29 = vld [vmem:[#allocation19 + $0xa0] sm:$0xff]  ;;  %v18072_v8 = vpack.c.bf16 %v5192_v54, %v5189_v12  ;;  %v5215_v54 = vld [vmem:[#allocation22 + $0x50] sm:$0xff] }
 0xb53   :  { %v15681_v45 = vadd.f32 %v4344_v46, %v17188_v51  ;;  %v4346_v63 = vpop.f32.mrb[29].mxu1  ;;  %v11808_v17 = vpop.f32.mrb[49].mxu0  ;;  %v4455_v60 = vadd.f32 %v16233_v23, %v17984_v3  ;;  %v5180_v46 = vld [vmem:[#allocation19 + $0xb8] sm:$0xff]  ;;  %v18034_v3 = vpack.c.bf16 %v5185_v34, %v5182_v26  ;;  %v5202_v26 = vld [vmem:[#allocation19 + $0x168] sm:$0xff] }
 0xb54   :  { %v15682_v28 = vadd.f32 %v4346_v63, %v17191_v55  ;;  %v18030_v63 = vpack.c.bf16 %v5178_v14, %v5175_v9  ;;  %v18038_v30 = vpack.c.bf16 %v5180_v46, %v5177_v29  ;;  %19853 = vst [vmem:[#allocation47_spill] sm:$0xff] %v18072_v8  ;;  %v5199_v14 = vld [vmem:[#allocation19 + $0x150] sm:$0xff] }
 0xb55   :  { %v10003_v18 = vmul.f32 -1.442695, %v15681_v45 }
 0xb56   :  { %v10004_v52 = vmul.f32 -1.442695, %v15682_v28  ;;  %v5184_v28 = vld [vmem:[#allocation19 + $0xd8] sm:$0xff] }
 0xb57   :  { %16040 = vpow2.f32 %v10003_v18  ;;  %v5181_v18 = vld [vmem:[#allocation19 + $0xc0] sm:$0xff] }
 0xb58   :  { %16042 = vpow2.f32 %v10004_v52  ;;  %v5188_v52 = vld [vmem:[#allocation19 + $0xf8] sm:$0xff]  ;;  %v18047_v0 = vpack.c.bf16 %v5184_v28, %v5181_v18  ;;  %v5209_v18 = vld [vmem:[#allocation22 + $0x20] sm:$0xff] }
 0xb5c   :  { %v16039_v21 = vpop.eup %16038 }
 0xb5d   :  { %v4438_v13 = vmul.f32 %v16039_v21, %v4437_v22  ;;  %v5191_v22 = vld [vmem:[#allocation19 + $0x110] sm:$0xff]  ;;  %v19845_v21 = vld [vmem:[#allocation74_spill] sm:$0xff] }
 0xb5e   :  { %v18053_v2 = vpack.c.bf16 %v5191_v22, %v5188_v52 }
 0xb5f   :  { %v4440_v40 = vadd.f32 %v4439_v10, %v4438_v13  ;;  %v5183_v10 = vld [vmem:[#allocation19 + $0xd0] sm:$0xff] }
 0xb60   :  { %19847 = vst [vmem:[#allocation64_spill] sm:$0xff] %v18053_v2 }
 0xb61   :  { %v16041_v51 = vpop.eup %16040  ;;  %4661 = vmatmul.mubr.f32.gmra.mrb[68].mxu0 %v4440_v40  ;;  %11854 = vmatmul.mubr.f32.gmra.mrb[58].mxu1 %v4440_v40  ;;  %v5186_v40 = vld [vmem:[#allocation19 + $0xe8] sm:$0xff] }
 0xb62   :  { %v4449_v55 = vadd.f32 1.0, %v16041_v51  ;;  %11888 = vmatprep.mubr.f32.mxu0 %v19839_v42  ;;  %4951 = vmatprep.mubr.f32.mxu1 %v19712_v62  ;;  %v16043_v11 = vpop.eup %16042  ;;  %v5187_v51 = vld [vmem:[#allocation19 + $0xf0] sm:$0xff]  ;;  %v18056_v35 = vpack.c.bf16 %v5186_v40, %v5183_v10 }
 0xb63   :  { %v4450_v61 = vadd.f32 1.0, %v16043_v11  ;;  %v18064_v41 = vpack.c.bf16 %v5190_v31, %v5187_v51  ;;  %v5203_v11 = vld [vmem:[#allocation19 + $0x170] sm:$0xff]  ;;  %v5213_v51 = vld [vmem:[#allocation22 + $0x40] sm:$0xff]  ;;  %v5216_v31 = vld [vmem:[#allocation22 + $0x58] sm:$0xff] }
 0xb64   :  { %16044 = vrcp.f32 %v4449_v55  ;;  %19848 = vst [vmem:[#allocation73_spill] sm:$0xff] %v18056_v35  ;;  %v5194_v55 = vld [vmem:[#allocation19 + $0x128] sm:$0xff]  ;;  %v18121_v12 = vpack.c.bf16 %v5216_v31, %v5213_v51  ;;  %v5223_v31 = vld [vmem:[#allocation22 + $0x90] sm:$0xff] }
 0xb65   :  { %4952 = vmatmul.mubr.f32.vlgmr.msra.gmra.mrb[60].mxu1 %v19839_v42  ;;  %11889 = vmatmul.mubr.f32.vlgmr.msra.gmra.mrb[70].mxu0 %v19840_v38  ;;  %16046 = vrcp.f32 %v4450_v61  ;;  %v5197_v42 = vld [vmem:[#allocation19 + $0x140] sm:$0xff]  ;;  %19850 = vst [vmem:[#allocation72_spill] sm:$0xff] %v18064_v41  ;;  %v18085_v61 = vpack.c.bf16 %v5203_v11, %v5200_v7  ;;  %v5211_v11 = vld [vmem:[#allocation22 + $0x30] sm:$0xff] }
 0xb66   :  { %11891 = vmatprep.mubr.f32.mxu0 %v19841_v6  ;;  %14357 = vmatpush1.bf16.msra.mxu0 %v17991_v47  ;;  %v18069_v1 = vpack.c.bf16 %v5197_v42, %v5194_v55  ;;  %v5208_v55 = vld [vmem:[#allocation22 + $0x18] sm:$0xff] }
 0xb67   :  { %14388 = vmatpush3.bf16.msra.mxu1 %v17993_v49  ;;  %4957 = vmatprep.mubr.f32.mxu1 %v19712_v62  ;;  %19857 = vst [vmem:[#allocation55_spill] sm:$0xff] %v18085_v61  ;;  %v5212_v42 = vld [vmem:[#allocation22 + $0x38] sm:$0xff] }
 0xb68   :  { %14359 = vmatprep.subr.bf16.mxu0 %v17995_v57  ;;  %14389 = vmatprep.subr.bf16.mxu1 %v19711_v53  ;;  %19852 = vst [vmem:[#allocation50_spill] sm:$0xff] %v18069_v1  ;;  %v18130_v7 = vpack.c.bf16 %v5215_v54, %v5212_v42  ;;  %v5233_v54 = vld [vmem:[#allocation22 + $0xe0] sm:$0xff] }
 0xb69   :  { %4958 = vmatmul.mubr.f32.gmra.mrb[62].mxu1 %v19840_v38  ;;  %11892 = vmatmul.mubr.f32.gmra.mrb[72].mxu0 %v19842_v32 }
 0xb6a   :  { %11894 = vmatprep.mubr.f32.mxu0 %v19843_v48  ;;  %14361 = vmatpush1.bf16.msra.mxu0 %v18001_v15 }
 0xb6b   :  { %14391 = vmatpush3.bf16.msra.mxu1 %v18005_v16  ;;  %4963 = vmatprep.mubr.f32.mxu1 %v19712_v62 }
 0xb6c   :  { %14363 = vmatprep.subr.bf16.mxu0 %v18009_v27  ;;  %14392 = vmatprep.subr.bf16.mxu1 %v19711_v53 }
 0xb6d   :  { %4964 = vmatmul.mubr.f32.gmra.mrb[64].mxu1 %v19841_v6  ;;  %11895 = vmatmul.mubr.f32.gmra.mrb[74].mxu0 %v19844_v56  ;;  %v5196_v6 = vld [vmem:[#allocation19 + $0x138] sm:$0xff] }
 0xb6e   :  { %v16045_v45 = vpop.eup %16044  ;;  %11897 = vmatprep.mubr.f32.mxu0 %v17771_v44  ;;  %14365 = vmatpush1.bf16.msra.mxu0 %v18015_v50  ;;  %v18080_v39 = vpack.c.bf16 %v5196_v6, %v5193_v4  ;;  %v5222_v4 = vld [vmem:[#allocation22 + $0x88] sm:$0xff] }
 0xb6f   :  { %v4456_v17 = vmul.f32 %v16045_v45, %v4455_v60  ;;  %4969 = vmatprep.mubr.f32.mxu1 %v19712_v62  ;;  %14394 = vmatpush3.bf16.msra.mxu1 %v18019_v5  ;;  %v16047_v20 = vpop.eup %16046  ;;  %v5201_v60 = vld [vmem:[#allocation19 + $0x160] sm:$0xff] }
 0xb70   :  { %14367 = vmatprep.subr.bf16.mxu0 %v18023_v25  ;;  %14395 = vmatprep.subr.bf16.mxu1 %v19711_v53  ;;  %19855 = vst [vmem:[#allocation54_spill] sm:$0xff] %v18080_v39  ;;  %v4459_v9 = vsub.f32 1.0, %v16047_v20  ;;  %v4461_v45 = vmul.f32 %v16047_v20, %v17945_v58  ;;  %v5214_v20 = vld [vmem:[#allocation22 + $0x48] sm:$0xff] }
 0xb71   :  { %v4457_v13 = vadd.f32 %v4456_v17, %v19845_v21  ;;  %4970 = vmatmul.mubr.f32.gmra.mrb[66].mxu1 %v19842_v32  ;;  %11898 = vmatmul.mubr.f32.gmra.mrb[76].mxu0 %v17859_v36  ;;  %v5198_v32 = vld [vmem:[#allocation19 + $0x148] sm:$0xff]  ;;  %v5207_v21 = vld [vmem:[#allocation22 + $0x10] sm:$0xff] }
 0xb72   :  { %v18043_v37 = vpop.f32.mrb[50].mxu1  ;;  %11900 = vmatprep.mubr.f32.mxu0 %v17945_v58  ;;  %14369 = vmatpush1.bf16.msra.mxu0 %v18030_v63  ;;  %v18088_v34 = vpack.c.bf16 %v5198_v32, %v5195_v24  ;;  %v5206_v17 = vld [vmem:[#allocation22 + $0x8] sm:$0xff] }
 0xb73   :  { %19846 = vst [vmem:[#allocation78_spill] sm:$0xff] %v18043_v37  ;;  %16048 = vtanh.f32 %v4457_v13  ;;  %v18049_v43 = vpop.f32.mrb[51].mxu1  ;;  %4975 = vmatprep.mubr.f32.mxu1 %v19712_v62  ;;  %14371 = vmatprep.subr.bf16.mxu0 %v18034_v3  ;;  %v5210_v13 = vld [vmem:[#allocation22 + $0x28] sm:$0xff]  ;;  %v18107_v10 = vpack.c.bf16 %v5209_v18, %v5206_v17  ;;  %v5227_v18 = vld [vmem:[#allocation22 + $0xb0] sm:$0xff] }
 0xb74   :  { %14397 = vmatpush3.bf16.msra.mxu1 %v18038_v30  ;;  %19858 = vst [vmem:[#allocation56_spill] sm:$0xff] %v18088_v34  ;;  %v18112_v40 = vpack.c.bf16 %v5210_v13, %v5207_v21  ;;  %v5218_v24 = vld [vmem:[#allocation22 + $0x68] sm:$0xff] }
 0xb75   :  { %4976 = vmatmul.mubr.f32.gmra.mrb[68].mxu1 %v19843_v48  ;;  %14398 = vmatprep.subr.bf16.mxu1 %v19711_v53  ;;  %19863 = vst [vmem:[#allocation66_spill] sm:$0xff] %v18107_v10  ;;  %v5234_v21 = vld [vmem:[#allocation22 + $0xe8] sm:$0xff] }
 0xb76   :  { %v18060_v59 = vpop.f32.mrb[52].mxu1  ;;  %14373 = vmatpush1.bf16.msra.mxu0 %v18047_v0  ;;  %4981 = vmatprep.mubr.f32.mxu1 %v19712_v62 }
 0xb77   :  { %19849 = vst [vmem:[#allocation63_spill] sm:$0xff] %v18060_v59  ;;  %v18066_v38 = vpop.f32.mrb[53].mxu1  ;;  %14375 = vmatprep.subr.bf16.mxu0 %v18053_v2 }
 0xb78   :  { %19851 = vst [vmem:[#allocation48_spill] sm:$0xff] %v18066_v38  ;;  %14400 = vmatpush3.bf16.msra.mxu1 %v18056_v35 }
 0xb79   :  { %4982 = vmatmul.mubr.f32.gmra.mrb[70].mxu1 %v19844_v56  ;;  %14401 = vmatprep.subr.bf16.mxu1 %v19711_v53  ;;  %v5204_v56 = vld [vmem:[#allocation19 + $0x178] sm:$0xff] }
 0xb7a   :  { %v18076_v33 = vpop.f32.mrb[54].mxu1  ;;  %14377 = vmatpush1.bf16.msra.mxu0 %v18064_v41  ;;  %4987 = vmatprep.mubr.f32.mxu1 %v19712_v62  ;;  %v18103_v22 = vpack.c.bf16 %v5204_v56, %v5201_v60  ;;  %v5217_v56 = vld [vmem:[#allocation22 + $0x60] sm:$0xff] }
 0xb7b   :  { %19854 = vst [vmem:[#allocation51_spill] sm:$0xff] %v18076_v33  ;;  %v18082_v48 = vpop.f32.mrb[55].mxu1  ;;  %14379 = vmatprep.subr.bf16.mxu0 %v18069_v1 }
 0xb7c   :  { %19856 = vst [vmem:[#allocation49_spill] sm:$0xff] %v18082_v48  ;;  %14403 = vmatpush3.bf16.msra.mxu1 %v18072_v8  ;;  %19862 = vst [vmem:[#allocation71_spill] sm:$0xff] %v18103_v22 }
 0xb7d   :  { %v16049_v23 = vpop.eup %16048  ;;  %4988 = vmatmul.mubr.f32.gmra.mrb[72].mxu1 %v17771_v44  ;;  %14404 = vmatprep.subr.bf16.mxu1 %v19711_v53  ;;  %v18100_v44 = vpack.c.bf16 %v5202_v26, %v5199_v14  ;;  %v5225_v14 = vld [vmem:[#allocation22 + $0xa0] sm:$0xff]  ;;  %v5228_v26 = vld [vmem:[#allocation22 + $0xb8] sm:$0xff] }
 0xb7e   :  { %v18092_v29 = vpop.f32.mrb[56].mxu1  ;;  %14381 = vmatpush1.bf16.msra.mxu0 %v18080_v39  ;;  %4993 = vmatprep.mubr.f32.mxu1 %v19712_v62  ;;  %v4460_v46 = vmul.f32 %v16049_v23, %v4459_v9  ;;  %v5221_v9 = vld [vmem:[#allocation22 + $0x80] sm:$0xff]  ;;  %v18138_v23 = vpack.c.bf16 %v5214_v20, %v5211_v11  ;;  %v18145_v17 = vpack.c.bf16 %v5228_v26, %v5225_v14  ;;  %v5236_v14 = vld [vmem:[#allocation22 + $0xf8] sm:$0xff] }
 0xb7f   :  { %19859 = vst [vmem:[#allocation52_spill] sm:$0xff] %v18092_v29  ;;  %v18097_v28 = vpop.f32.mrb[57].mxu1  ;;  %14383 = vmatprep.subr.bf16.mxu0 %v18085_v61  ;;  %19861 = vst [vmem:[#allocation79_spill] sm:$0xff] %v18100_v44  ;;  %v18142_v60 = vpack.c.bf16 %v5221_v9, %v5218_v24  ;;  %v5229_v24 = vld [vmem:[#allocation22 + $0xc0] sm:$0xff]  ;;  %v5232_v9 = vld [vmem:[#allocation22 + $0xd8] sm:$0xff] }
 0xb80   :  { %19860 = vst [vmem:[#allocation53_spill] sm:$0xff] %v18097_v28  ;;  %v4462_v52 = vadd.f32 %v4461_v45, %v4460_v46  ;;  %14406 = vmatpush3.bf16.msra.mxu1 %v18088_v34  ;;  %v5220_v46 = vld [vmem:[#allocation22 + $0x78] sm:$0xff] }
 0xb81   :  { %4994 = vmatmul.mubr.f32.gmra.mrb[74].mxu1 %v17859_v36  ;;  %14407 = vmatprep.subr.bf16.mxu1 %v19711_v53  ;;  %v5205_v36 = vld [vmem:[#allocation22] sm:$0xff]  ;;  %v5224_v45 = vld [vmem:[#allocation22 + $0x98] sm:$0xff]  ;;  %v18149_v13 = vpack.c.bf16 %v5220_v46, %v5217_v56  ;;  %v5239_v56 = vld [vmem:[#allocation22 + $0x110] sm:$0xff] }
 0xb82   :  { %11901 = vmatmul.mubr.f32.gmra.mrb[78].mxu0 %v4462_v52  ;;  %4999 = vmatprep.mubr.f32.mxu1 %v19712_v62  ;;  %v18128_v6 = vpack.c.bf16 %v5208_v55, %v5205_v36  ;;  %v18152_v51 = vpack.c.bf16 %v5227_v18, %v5224_v45  ;;  %v5226_v36 = vld [vmem:[#allocation22 + $0xa8] sm:$0xff]  ;;  %v5243_v46 = vld [vmem:[#allocation22 + $0x130] sm:$0xff]  ;;  %v18169_v18 = vpack.c.bf16 %v5232_v9, %v5229_v24 }
 0xb83   :  { %14385 = vmatpush1.bf16.msra.mxu0 %v18100_v44  ;;  %5337 = vmatprep.mubr.f32.mxu0 %v19712_v62  ;;  %v5230_v55 = vld [vmem:[#allocation22 + $0xc8] sm:$0xff]  ;;  %v18159_v11 = vpack.c.bf16 %v5226_v36, %v5223_v31 }
 0xb84   :  { %14409 = vmatpush3.bf16.msra.mxu1 %v18103_v22  ;;  %14442 = vmatprep.subr.bf16.mxu0 %v19711_v53  ;;  %v18162_v20 = vpack.c.bf16 %v5233_v54, %v5230_v55  ;;  %v5246_v45 = vld [vmem:[#allocation22 + $0x148] sm:$0xff]  ;;  %v5245_v54 = vld [vmem:[#allocation22 + $0x140] sm:$0xff] }
 0xb85   :  { %5000 = vmatmul.mubr.f32.gmra.mrb[76].mxu1 %v17945_v58  ;;  %14411 = vmatprep.subr.bf16.mxu1 %v18107_v10  ;;  %v5219_v58 = vld [vmem:[#allocation22 + $0x70] sm:$0xff]  ;;  %v5238_v31 = vld [vmem:[#allocation22 + $0x108] sm:$0xff]  ;;  %v18175_v55 = vpack.c.bf16 %v5246_v45, %v5243_v46  ;;  %v5248_v46 = vld [vmem:[#allocation22 + $0x158] sm:$0xff] }
 0xb86   :  { %5338 = vmatmul.mubr.f32.vlgmr.msra.gmra.mrb[50].mxu0 %v19712_v62  ;;  %5005 = vmatprep.mubr.f32.mxu1 %v19712_v62  ;;  %v18133_v32 = vpack.c.bf16 %v5222_v4, %v5219_v58  ;;  %v5237_v58 = vld [vmem:[#allocation22 + $0x100] sm:$0xff]  ;;  %v5240_v4 = vld [vmem:[#allocation22 + $0x118] sm:$0xff]  ;;  %v5242_v36 = vld [vmem:[#allocation22 + $0x128] sm:$0xff] }
 0xb87   :  { %14444 = vmatpush3.bf16.msra.mxu0 %v18112_v40  ;;  %11970 = vmatprep.mubr.msk.f32.mxu0 %vm16515_vm0, %v19712_v62  ;;  %v18165_v26 = vpack.c.bf16 %v5240_v4, %v5237_v58  ;;  %v5249_v58 = vld [vmem:[#allocation22 + $0x160] sm:$0xff]  ;;  %v5252_v4 = vld [vmem:[#allocation22 + $0x178] sm:$0xff]  ;;  %v18182_v9 = vpack.c.bf16 %v5245_v54, %v5242_v36  ;;  %v5251_v45 = vld [vmem:[#allocation22 + $0x170] sm:$0xff] }
 0xb88   :  { %14445 = vmatprep.subr.bf16.mxu0 %v19711_v53  ;;  %v18185_v29 = vpack.c.bf16 %v5252_v4, %v5249_v58  ;;  %v5250_v36 = vld [vmem:[#allocation22 + $0x168] sm:$0xff]  ;;  %v4870_v58 = vld [vmem:[%s19864_s5] sm:$0x7] }
 0xb89   :  { %5006 = vmatmul.mubr.f32.gmra.mrb[78].mxu1 %v4462_v52  ;;  %v5231_v52 = vld [vmem:[#allocation22 + $0xd0] sm:$0xff] }
 0xb8a   :  { %11935 = vmatprep.mubr.msk.f32.mxu1 %vm16515_vm0, %v19712_v62  ;;  %v18155_v42 = vpack.c.bf16 %v5234_v21, %v5231_v52  ;;  %v18172_v52 = vpack.c.bf16 %v5239_v56, %v5236_v14  ;;  %v5235_v21 = vld [vmem:[#allocation22 + $0xf0] sm:$0xff]  ;;  %v5241_v14 = vld [vmem:[#allocation22 + $0x120] sm:$0xff]  ;;  %v5244_v56 = vld [vmem:[#allocation22 + $0x138] sm:$0xff] }
 0xb8b   :  { %14447 = vmatpush3.bf16.msra.mxu0 %v18121_v12  ;;  %v18179_v24 = vpack.c.bf16 %v5238_v31, %v5235_v21  ;;  %v18189_v28 = vpack.c.bf16 %v5244_v56, %v5241_v14  ;;  %v18192_v21 = vpack.c.bf16 %v5251_v45, %v5248_v46  ;;  %v5247_v31 = vld [vmem:[#allocation22 + $0x150] sm:$0xff] }
 0xb8c   :  { %14448 = vmatprep.subr.bf16.mxu0 %v19711_v53  ;;  %v18197_v54 = vpack.c.bf16 %v5250_v36, %v5247_v31  ;;  %v19866_v45 = vld [vmem:[#allocation57_spill] sm:$0xff] }
 0xb8d   :  { %11936 = vmatmul.mubr.f32.vlgmr.msra.gmra.mrb[80].mxu1 %v19712_v62  ;;  %v18243_v31 = vrot.slane %v4870_v58, %v19866_v45 }
 0xb8e   :  { %14413 = vmatpush1.bf16.msra.mxu1 %v18128_v6  ;;  %5478 = vmatprep.mubr.f32.mxu1 %v19712_v62 }
 0xb8f   :  { %14415 = vmatprep.subr.bf16.mxu1 %v18130_v7  ;;  %14450 = vmatpush3.bf16.msra.mxu0 %v18133_v32 }
 0xb90   :  { %14451 = vmatprep.subr.bf16.mxu0 %v19711_v53 }
 0xb92   :  { %14417 = vmatpush1.bf16.msra.mxu1 %v18138_v23 }
 0xb93   :  { %14419 = vmatprep.subr.bf16.mxu1 %v18142_v60  ;;  %14453 = vmatpush3.bf16.msra.mxu0 %v18145_v17 }
 0xb94   :  { %14454 = vmatprep.subr.bf16.mxu0 %v19711_v53 }
 0xb96   :  { %14421 = vmatpush1.bf16.msra.mxu1 %v18149_v13 }
 0xb97   :  { %14423 = vmatprep.subr.bf16.mxu1 %v18152_v51  ;;  %14456 = vmatpush3.bf16.msra.mxu0 %v18155_v42 }
 0xb98   :  { %14457 = vmatprep.subr.bf16.mxu0 %v19711_v53 }
 0xb9a   :  { %14425 = vmatpush1.bf16.msra.mxu1 %v18159_v11 }
 0xb9b   :  { %14427 = vmatprep.subr.bf16.mxu1 %v18162_v20  ;;  %14459 = vmatpush3.bf16.msra.mxu0 %v18165_v26 }
 0xb9c   :  { %14460 = vmatprep.subr.bf16.mxu0 %v19711_v53 }
 0xb9e   :  { %14429 = vmatpush1.bf16.msra.mxu1 %v18169_v18 }
 0xb9f   :  { %14431 = vmatprep.subr.bf16.mxu1 %v18172_v52  ;;  %14462 = vmatpush3.bf16.msra.mxu0 %v18175_v55 }
 0xba0   :  { %14463 = vmatprep.subr.bf16.mxu0 %v19711_v53 }
 0xba2   :  { %14433 = vmatpush1.bf16.msra.mxu1 %v18179_v24 }
 0xba3   :  { %14435 = vmatprep.subr.bf16.mxu1 %v18182_v9  ;;  %14465 = vmatpush3.bf16.msra.mxu0 %v18185_v29 }
 0xba4   :  { %14467 = vmatprep.subr.bf16.mxu0 %v17977_v19 }
 0xba6   :  { %14437 = vmatpush1.bf16.msra.mxu1 %v18189_v28  ;;  %11971 = vmatmul.mubr.f32.vlgmr.msra.gmra.mrb[80].mxu0 %v19712_v62 }
 0xba7   :  { %14439 = vmatprep.subr.bf16.mxu1 %v18192_v21  ;;  %14469 = vmatpush1.bf16.msra.mxu0 %v17991_v47 }
 0xba8   :  { %14471 = vmatprep.subr.bf16.mxu0 %v17995_v57  ;;  %5672 = vmatprep.mubr.f32.mxu0 %v19712_v62 }
 0xbaa   :  { %14441 = vmatpush1.bf16.msra.mxu1 %v18197_v54 }
 0xbab   :  { %14498 = vmatprep.subr.bf16.mxu1 %v19711_v53  ;;  %14473 = vmatpush1.bf16.msra.mxu0 %v18001_v15 }
 0xbac   :  { %14475 = vmatprep.subr.bf16.mxu0 %v18009_v27 }
 0xbad   :  { %5479 = vmatmul.mubr.f32.vlgmr.msra.gmra.mrb[60].mxu1 %v19712_v62 }
 0xbae   :  { %14500 = vmatpush3.bf16.msra.mxu1 %v17993_v49  ;;  %12005 = vmatprep.mubr.msk.f32.mxu1 %vm16515_vm0, %v19712_v62 }
 0xbaf   :  { %14501 = vmatprep.subr.bf16.mxu1 %v19711_v53  ;;  %14477 = vmatpush1.bf16.msra.mxu0 %v18015_v50 }
 0xbb0   :  { %14479 = vmatprep.subr.bf16.mxu0 %v18023_v25 }
 0xbb2   :  { %14503 = vmatpush3.bf16.msra.mxu1 %v18005_v16 }
 0xbb3   :  { %14504 = vmatprep.subr.bf16.mxu1 %v19711_v53  ;;  %14481 = vmatpush1.bf16.msra.mxu0 %v18030_v63 }
 0xbb4   :  { %14483 = vmatprep.subr.bf16.mxu0 %v18034_v3 }
 0xbb6   :  { %14506 = vmatpush3.bf16.msra.mxu1 %v18019_v5 }
 0xbb7   :  { %14507 = vmatprep.subr.bf16.mxu1 %v19711_v53  ;;  %14485 = vmatpush1.bf16.msra.mxu0 %v18047_v0 }
 0xbb8   :  { %14487 = vmatprep.subr.bf16.mxu0 %v18053_v2  ;;  %v18281_v2 = vld [vmem:[%s19880_s17] ss:$0 sm:$0xff] }
 0xbb9   :  { %19881 = vst [vmem:[#allocation68_spill] sm:$0xff] %v18281_v2 }
 0xbba   :  { %14509 = vmatpush3.bf16.msra.mxu1 %v18038_v30 }
 0xbbb   :  { %14510 = vmatprep.subr.bf16.mxu1 %v19711_v53  ;;  %14489 = vmatpush1.bf16.msra.mxu0 %v18064_v41 }
 0xbbc   :  { %14491 = vmatprep.subr.bf16.mxu0 %v18069_v1 }
 0xbbe   :  { %14512 = vmatpush3.bf16.msra.mxu1 %v18056_v35 }
 0xbbf   :  { %14513 = vmatprep.subr.bf16.mxu1 %v19711_v53  ;;  %14493 = vmatpush1.bf16.msra.mxu0 %v18080_v39 }
 0xbc0   :  { %14495 = vmatprep.subr.bf16.mxu0 %v18085_v61 }
 0xbc2   :  { %14515 = vmatpush3.bf16.msra.mxu1 %v18072_v8 }
 0xbc3   :  { %14516 = vmatprep.subr.bf16.mxu1 %v19711_v53  ;;  %14497 = vmatpush1.bf16.msra.mxu0 %v18100_v44 }
 0xbc4   :  { %14554 = vmatprep.subr.bf16.mxu0 %v19711_v53 }
 0xbc6   :  { %14518 = vmatpush3.bf16.msra.mxu1 %v18088_v34 }
 0xbc7   :  { %14519 = vmatprep.subr.bf16.mxu1 %v19711_v53 }
 0xbca   :  { %14521 = vmatpush3.bf16.msra.mxu1 %v18103_v22 }
 0xbcb   :  { %14523 = vmatprep.subr.bf16.mxu1 %v18107_v10 }
 0xc34   :  { %v4662_v4 = vpop.f32.mrb[68].mxu0  ;;  %v11855_v14 = vpop.f32.mrb[58].mxu1 }
 0xc35   :  { %v4664_v56 = vpop.f32.mrb[69].mxu0  ;;  %v18240_v46 = vpop.f32.mrb[59].mxu1 }
 0xc36   :  { %19865 = vst [vmem:[#allocation75_spill] sm:$0xff] %v18240_v46 }
 0xc38   :  { %v11890_v36 = vpop.f32.mrb[70].mxu0 }
 0xc39   :  { %v18246_v33 = vadd.f32 %v11890_v36, %v18243_v31  ;;  %v18248_v48 = vpop.f32.mrb[71].mxu0 }
 0xc3b   :  { %19868 = vst [vmem:[#allocation81_spill] sm:$0xff] %v18246_v33 }
 0xc3c   :  { %v11893_v59 = vpop.f32.mrb[72].mxu0 }
 0xc3d   :  { %v18251_v38 = vadd.f32 %v11893_v59, %v18243_v31  ;;  %v5088_v37 = vpop.f32.mrb[73].mxu0 }
 0xc3e   :  { %v18254_v4 = vadd.f32 %v5088_v37, %v18243_v31 }
 0xc3f   :  { %19869 = vst [vmem:[#allocation58_spill] sm:$0xff] %v18251_v38  ;;  %v4525_v38 = vld [vmem:[%s19867_s9] sm:$0x7] }
 0xc40   :  { %19870 = vst [vmem:[#allocation60_spill] sm:$0xff] %v18254_v4  ;;  %v11896_v14 = vpop.f32.mrb[74].mxu0  ;;  %v19875_v4 = vld [vmem:[#allocation76_spill] sm:$0xff]  ;;  %v18284_v35 = vrot.slane %v4525_v38, %v19866_v45 }
 0xc41   :  { %v18257_v56 = vadd.f32 %v11896_v14, %v18243_v31  ;;  %v5098_v46 = vpop.f32.mrb[75].mxu0  ;;  %v18270_v61 = vrot.slane %v4525_v38, %v19875_v4 }
 0xc42   :  { %v18260_v10 = vadd.f32 %v5098_v46, %v18243_v31  ;;  %v19878_v46 = vld [vmem:[#allocation77_spill] sm:$0xff] }
 0xc43   :  { %19871 = vst [vmem:[#allocation59_spill] sm:$0xff] %v18257_v56  ;;  %19876 = vst [vmem:[#allocation82_spill] sm:$0xff] %v18270_v61 }
 0xc44   :  { %19872 = vst [vmem:[#allocation80_spill] sm:$0xff] %v18260_v10  ;;  %v11899_v36 = vpop.f32.mrb[76].mxu0  ;;  %v18276_v10 = vrot.slane %v4525_v38, %v19878_v46  ;;  %v18293_v38 = vrot.slane %v4870_v58, %v19878_v46 }
 0xc45   :  { %v18263_v33 = vadd.f32 %v11899_v36, %v18243_v31  ;;  %v5108_v22 = vpop.f32.mrb[77].mxu0 }
 0xc46   :  { %v18266_v59 = vadd.f32 %v5108_v22, %v18243_v31  ;;  %19879 = vst [vmem:[#allocation69_spill] sm:$0xff] %v18276_v10 }
 0xc47   :  { %19873 = vst [vmem:[#allocation61_spill] sm:$0xff] %v18263_v33 }
 0xc48   :  { %19874 = vst [vmem:[#allocation65_spill] sm:$0xff] %v18266_v59 }
 0xc55   :  { %v11902_v44 = vpop.f32.mrb[78].mxu0 }
 0xc56   :  { %v5118_v37 = vpop.f32.mrb[79].mxu0 }
 0xc57   :  { %v18273_v14 = vadd.f32 %v5118_v37, %v18243_v31 }
 0xc59   :  { %19877 = vst [vmem:[#allocation67_spill] sm:$0xff] %v18273_v14  ;;  %v5339_v56 = vpop.f32.mrb[50].mxu0 }
 0xc5a   :  { %v15683_v36 = vadd.f32 %v5339_v56, %v18270_v61  ;;  %v5341_v33 = vpop.f32.mrb[51].mxu0 }
 0xc5b   :  { %v15684_v59 = vadd.f32 %v5341_v33, %v18276_v10  ;;  %v4734_v33 = vadd.f32 %v18049_v43, %v18284_v35 }
 0xc5c   :  { %v10007_v34 = vmul.f32 -1.442695, %v15683_v36  ;;  %v5007_v22 = vpop.f32.mrb[78].mxu1 }
 0xc5d   :  { %v5009_v44 = vpop.f32.mrb[79].mxu1  ;;  %v10008_v1 = vmul.f32 -1.442695, %v15684_v59 }
 0xc5e   :  { %16050 = vpow2.f32 %v10007_v34 }
 0xc5f   :  { %16052 = vpow2.f32 %v10008_v1 }
 0xc60   :  { %v5410_v39 = vpop.f32.mrb[80].mxu1 }
 0xc61   :  { %v11937_v8 = vpop.f32.mrb[81].mxu1  ;;  %v5569_v36 = vadd.f32 %v18281_v2, %v5410_v39 }
 0xc68   :  { %v16051_v37 = vpop.eup %16050 }
 0xc69   :  { %v5563_v14 = vadd.f32 1.0, %v16051_v37  ;;  %v16053_v41 = vpop.eup %16052 }
 0xc6a   :  { %v5564_v56 = vadd.f32 1.0, %v16053_v41 }
 0xc6b   :  { %16054 = vrcp.f32 %v5563_v14  ;;  %v18290_v14 = vrot.slane %v4870_v58, %v19875_v4 }
 0xc6c   :  { %16056 = vrcp.f32 %v5564_v56 }
 0xc75   :  { %v16055_v22 = vpop.eup %16054 }
 0xc76   :  { %v5570_v34 = vmul.f32 %v16055_v22, %v5569_v36  ;;  %v16057_v44 = vpop.eup %16056 }
 0xc77   :  { %v5573_v45 = vsub.f32 1.0, %v16057_v44  ;;  %v5575_v36 = vmul.f32 0.0, %v16057_v44 }
 0xc78   :  { %v5571_v8 = vadd.f32 %v5570_v34, %v4734_v33  ;;  %v18317_v34 = vld [vmem:[%s19883_s21] ss:$0 sm:$0xff] }
 0xc79   :  { %v5551_v1 = vpop.f32.mrb[80].mxu0 }
 0xc7a   :  { %16058 = vtanh.f32 %v5571_v8  ;;  %v11972_v59 = vpop.f32.mrb[81].mxu0 }
 0xc7b   :  { %v5591_v59 = vadd.f32 %v18317_v34, %v5551_v1 }
 0xc80   :  { %v5480_v37 = vpop.f32.mrb[60].mxu1 }
 0xc81   :  { %v15701_v41 = vadd.f32 %v5480_v37, %v18290_v14  ;;  %v5482_v39 = vpop.f32.mrb[61].mxu1  ;;  %v5079_v37 = vadd.f32 %v18248_v48, %v18243_v31 }
 0xc82   :  { %v15702_v56 = vadd.f32 %v5482_v39, %v18293_v38 }
 0xc83   :  { %v10009_v2 = vmul.f32 -1.442695, %v15701_v41 }
 0xc84   :  { %v16059_v43 = vpop.eup %16058  ;;  %v10010_v4 = vmul.f32 -1.442695, %v15702_v56 }
 0xc85   :  { %v5574_v22 = vmul.f32 %v16059_v43, %v5573_v45  ;;  %16060 = vpow2.f32 %v10009_v2 }
 0xc86   :  { %16062 = vpow2.f32 %v10010_v4  ;;  %v19887_v4 = vld [vmem:[#allocation72_spill] sm:$0xff] }
 0xc87   :  { %v18297_v33 = vadd.f32 %v5575_v36, %v5574_v22  ;;  %v19885_v36 = vld [vmem:[#allocation73_spill] sm:$0xff]  ;;  %v19886_v22 = vld [vmem:[#allocation64_spill] sm:$0xff] }
 0xc89   :  { %19882 = vst [vmem:[#allocation62_spill] sm:$0xff] %v18297_v33  ;;  %5673 = vmatmul.mubr.f32.vlgmr.msra.gmra.mrb[52].mxu0 %v18297_v33  ;;  %12006 = vmatmul.mubr.f32.vlgmr.msra.gmra.mrb[82].mxu1 %v18297_v33 }
 0xc8a   :  { %14525 = vmatpush1.bf16.msra.mxu1 %v18128_v6  ;;  %14556 = vmatpush3.bf16.msra.mxu0 %v18112_v40 }
 0xc8b   :  { %14527 = vmatprep.subr.bf16.mxu1 %v18130_v7  ;;  %14557 = vmatprep.subr.bf16.mxu0 %v19711_v53 }
 0xc8c   :  { %5813 = vmatprep.mubr.f32.mxu1 %v19712_v62  ;;  %12040 = vmatprep.mubr.msk.f32.mxu0 %vm16515_vm0, %v19712_v62 }
 0xc8e   :  { %14529 = vmatpush1.bf16.msra.mxu1 %v18138_v23  ;;  %14559 = vmatpush3.bf16.msra.mxu0 %v18121_v12 }
 0xc8f   :  { %v16061_v2 = vpop.eup %16060  ;;  %14531 = vmatprep.subr.bf16.mxu1 %v18142_v60  ;;  %14560 = vmatprep.subr.bf16.mxu0 %v19711_v53 }
 0xc90   :  { %v5585_v58 = vadd.f32 1.0, %v16061_v2  ;;  %v16063_v46 = vpop.eup %16062  ;;  %v19888_v2 = vld [vmem:[#allocation47_spill] sm:$0xff] }
 0xc91   :  { %v5586_v8 = vadd.f32 1.0, %v16063_v46  ;;  %v19890_v46 = vld [vmem:[#allocation54_spill] sm:$0xff] }
 0xc92   :  { %16064 = vrcp.f32 %v5585_v58  ;;  %14533 = vmatpush1.bf16.msra.mxu1 %v18149_v13  ;;  %14562 = vmatpush3.bf16.msra.mxu0 %v18133_v32  ;;  %v19889_v58 = vld [vmem:[#allocation50_spill] sm:$0xff] }
 0xc93   :  { %14535 = vmatprep.subr.bf16.mxu1 %v18152_v51  ;;  %14563 = vmatprep.subr.bf16.mxu0 %v19711_v53  ;;  %16066 = vrcp.f32 %v5586_v8  ;;  %v19891_v8 = vld [vmem:[#allocation56_spill] sm:$0xff] }
 0xc96   :  { %14537 = vmatpush1.bf16.msra.mxu1 %v18159_v11  ;;  %14565 = vmatpush3.bf16.msra.mxu0 %v18145_v17 }
 0xc97   :  { %14539 = vmatprep.subr.bf16.mxu1 %v18162_v20  ;;  %14566 = vmatprep.subr.bf16.mxu0 %v19711_v53 }
 0xc9a   :  { %14541 = vmatpush1.bf16.msra.mxu1 %v18169_v18  ;;  %14568 = vmatpush3.bf16.msra.mxu0 %v18155_v42 }
 0xc9b   :  { %14543 = vmatprep.subr.bf16.mxu1 %v18172_v52  ;;  %14569 = vmatprep.subr.bf16.mxu0 %v19711_v53 }
 0xc9c   :  { %v16065_v44 = vpop.eup %16064 }
 0xc9d   :  { %v5592_v41 = vmul.f32 %v16065_v44, %v5591_v59  ;;  %v16067_v48 = vpop.eup %16066  ;;  %v19892_v59 = vld [vmem:[#allocation55_spill] sm:$0xff] }
 0xc9e   :  { %14545 = vmatpush1.bf16.msra.mxu1 %v18179_v24  ;;  %14571 = vmatpush3.bf16.msra.mxu0 %v18165_v26  ;;  %v5595_v31 = vsub.f32 1.0, %v16067_v48  ;;  %v5597_v45 = vmul.f32 0.0, %v16067_v48  ;;  %v19893_v44 = vld [vmem:[#allocation79_spill] sm:$0xff] }
 0xc9f   :  { %v5593_v39 = vadd.f32 %v5592_v41, %v5079_v37  ;;  %14547 = vmatprep.subr.bf16.mxu1 %v18182_v9  ;;  %14572 = vmatprep.subr.bf16.mxu0 %v19711_v53  ;;  %v19894_v37 = vld [vmem:[#allocation71_spill] sm:$0xff]  ;;  %v19895_v41 = vld [vmem:[#allocation66_spill] sm:$0xff] }
 0xca1   :  { %16068 = vtanh.f32 %v5593_v39 }
 0xca2   :  { %14549 = vmatpush1.bf16.msra.mxu1 %v18189_v28  ;;  %14574 = vmatpush3.bf16.msra.mxu0 %v18175_v55 }
 0xca3   :  { %14551 = vmatprep.subr.bf16.mxu1 %v18192_v21  ;;  %14575 = vmatprep.subr.bf16.mxu0 %v19711_v53 }
 0xca6   :  { %14553 = vmatpush1.bf16.msra.mxu1 %v18197_v54  ;;  %14577 = vmatpush3.bf16.msra.mxu0 %v18185_v29 }
 0xca7   :  { %14579 = vmatprep.subr.bf16.mxu0 %v17977_v19  ;;  %14610 = vmatprep.subr.bf16.mxu1 %v19711_v53 }
 0xcab   :  { %v16069_v1 = vpop.eup %16068 }
 0xcac   :  { %v5596_v43 = vmul.f32 %v16069_v1, %v5595_v31 }
 0xcae   :  { %v18342_v56 = vadd.f32 %v5597_v45, %v5596_v43 }
 0xcb0   :  { %19884 = vst [vmem:[#allocation70_spill] sm:$0xff] %v18342_v56  ;;  %5814 = vmatmul.mubr.f32.vlgmr.msra.gmra.mrb[62].mxu1 %v18342_v56  ;;  %12041 = vmatmul.mubr.f32.vlgmr.msra.gmra.mrb[82].mxu0 %v18342_v56 }
 0xcb1   :  { %14581 = vmatpush1.bf16.msra.mxu0 %v17991_v47  ;;  %14612 = vmatpush3.bf16.msra.mxu1 %v17993_v49 }
 0xcb2   :  { %14583 = vmatprep.subr.bf16.mxu0 %v17995_v57  ;;  %14613 = vmatprep.subr.bf16.mxu1 %v19711_v53 }
 0xcb3   :  { %6008 = vmatprep.mubr.f32.mxu0 %v19712_v62  ;;  %12075 = vmatprep.mubr.msk.f32.mxu1 %vm16515_vm0, %v19712_v62 }
 0xcb5   :  { %14585 = vmatpush1.bf16.msra.mxu0 %v18001_v15  ;;  %14615 = vmatpush3.bf16.msra.mxu1 %v18005_v16 }
 0xcb6   :  { %14587 = vmatprep.subr.bf16.mxu0 %v18009_v27  ;;  %14616 = vmatprep.subr.bf16.mxu1 %v19711_v53 }
 0xcb9   :  { %14589 = vmatpush1.bf16.msra.mxu0 %v18015_v50  ;;  %14618 = vmatpush3.bf16.msra.mxu1 %v18019_v5 }
 0xcba   :  { %14591 = vmatprep.subr.bf16.mxu0 %v18023_v25  ;;  %14619 = vmatprep.subr.bf16.mxu1 %v19711_v53 }
 0xcbd   :  { %14593 = vmatpush1.bf16.msra.mxu0 %v18030_v63  ;;  %14621 = vmatpush3.bf16.msra.mxu1 %v18038_v30 }
 0xcbe   :  { %14595 = vmatprep.subr.bf16.mxu0 %v18034_v3  ;;  %14622 = vmatprep.subr.bf16.mxu1 %v19711_v53 }
 0xcc1   :  { %14597 = vmatpush1.bf16.msra.mxu0 %v18047_v0  ;;  %14624 = vmatpush3.bf16.msra.mxu1 %v19885_v36 }
 0xcc2   :  { %14599 = vmatprep.subr.bf16.mxu0 %v19886_v22  ;;  %14625 = vmatprep.subr.bf16.mxu1 %v19711_v53  ;;  %v19897_v22 = vld [vmem:[#allocation78_spill] sm:$0xff] }
 0xcc3   :  { %v4739_v36 = vadd.f32 %v19897_v22, %v18284_v35 }
 0xcc5   :  { %14601 = vmatpush1.bf16.msra.mxu0 %v19887_v4  ;;  %14627 = vmatpush3.bf16.msra.mxu1 %v19888_v2 }
 0xcc6   :  { %14603 = vmatprep.subr.bf16.mxu0 %v19889_v58  ;;  %14628 = vmatprep.subr.bf16.mxu1 %v19711_v53 }
 0xcc9   :  { %14605 = vmatpush1.bf16.msra.mxu0 %v19890_v46  ;;  %14630 = vmatpush3.bf16.msra.mxu1 %v19891_v8 }
 0xcca   :  { %14607 = vmatprep.subr.bf16.mxu0 %v19892_v59  ;;  %14631 = vmatprep.subr.bf16.mxu1 %v19711_v53 }
 0xccd   :  { %14609 = vmatpush1.bf16.msra.mxu0 %v19893_v44  ;;  %14633 = vmatpush3.bf16.msra.mxu1 %v19894_v37 }
 0xcce   :  { %14635 = vmatprep.subr.bf16.mxu1 %v19895_v41  ;;  %14666 = vmatprep.subr.bf16.mxu0 %v19711_v53  ;;  %v19896_v41 = vld [vmem:[#allocation68_spill] sm:$0xff] }
 0xd5c   :  { %v5674_v39 = vpop.f32.mrb[52].mxu0  ;;  %v5745_v48 = vpop.f32.mrb[82].mxu1 }
 0xd5d   :  { %v15685_v31 = vadd.f32 %v5674_v39, %v18270_v61  ;;  %v5676_v1 = vpop.f32.mrb[53].mxu0  ;;  %v12007_v45 = vpop.f32.mrb[83].mxu1  ;;  %v5904_v2 = vadd.f32 %v19896_v41, %v5745_v48 }
 0xd5e   :  { %v15686_v8 = vadd.f32 %v5676_v1, %v18276_v10 }
 0xd5f   :  { %v10011_v43 = vmul.f32 -1.442695, %v15685_v31 }
 0xd60   :  { %v10012_v59 = vmul.f32 -1.442695, %v15686_v8 }
 0xd61   :  { %16070 = vpow2.f32 %v10011_v43 }
 0xd62   :  { %16072 = vpow2.f32 %v10012_v59 }
 0xd6b   :  { %v16071_v46 = vpop.eup %16070 }
 0xd6c   :  { %v5898_v44 = vadd.f32 1.0, %v16071_v46  ;;  %v16073_v37 = vpop.eup %16072 }
 0xd6d   :  { %v5899_v58 = vadd.f32 1.0, %v16073_v37 }
 0xd6e   :  { %16074 = vrcp.f32 %v5898_v44 }
 0xd6f   :  { %16076 = vrcp.f32 %v5899_v58 }
 0xd78   :  { %v16075_v4 = vpop.eup %16074 }
 0xd79   :  { %v5905_v39 = vmul.f32 %v16075_v4, %v5904_v2  ;;  %v16077_v31 = vpop.eup %16076 }
 0xd7a   :  { %v5908_v44 = vsub.f32 1.0, %v16077_v31  ;;  %v5910_v61 = vmul.f32 %v16077_v31, %v18297_v33 }
 0xd7b   :  { %v5906_v45 = vadd.f32 %v5905_v39, %v4739_v36 }
 0xd7d   :  { %16078 = vtanh.f32 %v5906_v45  ;;  %v19899_v45 = vld [vmem:[#allocation81_spill] sm:$0xff] }
 0xd83   :  { %v5815_v1 = vpop.f32.mrb[62].mxu1  ;;  %v5886_v43 = vpop.f32.mrb[82].mxu0 }
 0xd84   :  { %v15703_v8 = vadd.f32 %v5815_v1, %v18290_v14  ;;  %v5817_v59 = vpop.f32.mrb[63].mxu1  ;;  %v12042_v46 = vpop.f32.mrb[83].mxu0  ;;  %v5926_v58 = vadd.f32 %v18317_v34, %v5886_v43 }
 0xd85   :  { %v15704_v48 = vadd.f32 %v5817_v59, %v18293_v38 }
 0xd86   :  { %v10013_v10 = vmul.f32 -1.442695, %v15703_v8 }
 0xd87   :  { %v16079_v37 = vpop.eup %16078  ;;  %v10014_v36 = vmul.f32 -1.442695, %v15704_v48  ;;  %v19902_v48 = vld [vmem:[#allocation64_spill] sm:$0xff] }
 0xd88   :  { %v5909_v41 = vmul.f32 %v16079_v37, %v5908_v44  ;;  %16080 = vpow2.f32 %v10013_v10  ;;  %v19901_v37 = vld [vmem:[#allocation73_spill] sm:$0xff] }
 0xd89   :  { %16082 = vpow2.f32 %v10014_v36  ;;  %v19903_v36 = vld [vmem:[#allocation72_spill] sm:$0xff] }
 0xd8a   :  { %v18389_v22 = vadd.f32 %v5910_v61, %v5909_v41 }
 0xd8c   :  { %19898 = vst [vmem:[#allocation74_spill] sm:$0xff] %v18389_v22  ;;  %6009 = vmatmul.mubr.f32.vlgmr.msra.gmra.mrb[54].mxu0 %v18389_v22  ;;  %12076 = vmatmul.mubr.f32.vlgmr.msra.gmra.mrb[84].mxu1 %v18389_v22 }
 0xd8d   :  { %14637 = vmatpush1.bf16.msra.mxu1 %v18128_v6  ;;  %14668 = vmatpush3.bf16.msra.mxu0 %v18112_v40 }
 0xd8e   :  { %14639 = vmatprep.subr.bf16.mxu1 %v18130_v7  ;;  %14669 = vmatprep.subr.bf16.mxu0 %v19711_v53 }
 0xd8f   :  { %6149 = vmatprep.mubr.f32.mxu1 %v19712_v62  ;;  %12110 = vmatprep.mubr.msk.f32.mxu0 %vm16515_vm0, %v19712_v62 }
 0xd91   :  { %14641 = vmatpush1.bf16.msra.mxu1 %v18138_v23  ;;  %14671 = vmatpush3.bf16.msra.mxu0 %v18121_v12 }
 0xd92   :  { %v16081_v61 = vpop.eup %16080  ;;  %14643 = vmatprep.subr.bf16.mxu1 %v18142_v60  ;;  %14672 = vmatprep.subr.bf16.mxu0 %v19711_v53 }
 0xd93   :  { %v5920_v10 = vadd.f32 1.0, %v16081_v61  ;;  %v16083_v4 = vpop.eup %16082  ;;  %v19904_v61 = vld [vmem:[#allocation47_spill] sm:$0xff] }
 0xd94   :  { %v5921_v2 = vadd.f32 1.0, %v16083_v4  ;;  %v19906_v4 = vld [vmem:[#allocation54_spill] sm:$0xff] }
 0xd95   :  { %16084 = vrcp.f32 %v5920_v10  ;;  %14645 = vmatpush1.bf16.msra.mxu1 %v18149_v13  ;;  %14674 = vmatpush3.bf16.msra.mxu0 %v18133_v32  ;;  %v19905_v10 = vld [vmem:[#allocation50_spill] sm:$0xff] }
 0xd96   :  { %14647 = vmatprep.subr.bf16.mxu1 %v18152_v51  ;;  %14675 = vmatprep.subr.bf16.mxu0 %v19711_v53  ;;  %16086 = vrcp.f32 %v5921_v2  ;;  %v19907_v2 = vld [vmem:[#allocation56_spill] sm:$0xff] }
 0xd99   :  { %14649 = vmatpush1.bf16.msra.mxu1 %v18159_v11  ;;  %14677 = vmatpush3.bf16.msra.mxu0 %v18145_v17 }
 0xd9a   :  { %14651 = vmatprep.subr.bf16.mxu1 %v18162_v20  ;;  %14678 = vmatprep.subr.bf16.mxu0 %v19711_v53 }
 0xd9d   :  { %14653 = vmatpush1.bf16.msra.mxu1 %v18169_v18  ;;  %14680 = vmatpush3.bf16.msra.mxu0 %v18155_v42 }
 0xd9e   :  { %14655 = vmatprep.subr.bf16.mxu1 %v18172_v52  ;;  %14681 = vmatprep.subr.bf16.mxu0 %v19711_v53 }
 0xd9f   :  { %v16085_v41 = vpop.eup %16084 }
 0xda0   :  { %v5927_v39 = vmul.f32 %v16085_v41, %v5926_v58  ;;  %v16087_v1 = vpop.eup %16086  ;;  %v19908_v58 = vld [vmem:[#allocation55_spill] sm:$0xff] }
 0xda1   :  { %14657 = vmatpush1.bf16.msra.mxu1 %v18179_v24  ;;  %14683 = vmatpush3.bf16.msra.mxu0 %v18165_v26  ;;  %v5930_v43 = vsub.f32 1.0, %v16087_v1  ;;  %v5932_v46 = vmul.f32 %v16087_v1, %v18342_v56  ;;  %v19909_v41 = vld [vmem:[#allocation79_spill] sm:$0xff]  ;;  %v19913_v56 = vld [vmem:[#allocation69_spill] sm:$0xff] }
 0xda2   :  { %v5928_v31 = vadd.f32 %v5927_v39, %v19899_v45  ;;  %14659 = vmatprep.subr.bf16.mxu1 %v18182_v9  ;;  %14684 = vmatprep.subr.bf16.mxu0 %v19711_v53  ;;  %v19910_v39 = vld [vmem:[#allocation71_spill] sm:$0xff]  ;;  %v19911_v45 = vld [vmem:[#allocation66_spill] sm:$0xff] }
 0xda4   :  { %16088 = vtanh.f32 %v5928_v31 }
 0xda5   :  { %14661 = vmatpush1.bf16.msra.mxu1 %v18189_v28  ;;  %14686 = vmatpush3.bf16.msra.mxu0 %v18175_v55 }
 0xda6   :  { %14663 = vmatprep.subr.bf16.mxu1 %v18192_v21  ;;  %14687 = vmatprep.subr.bf16.mxu0 %v19711_v53 }
 0xda9   :  { %14665 = vmatpush1.bf16.msra.mxu1 %v18197_v54  ;;  %14689 = vmatpush3.bf16.msra.mxu0 %v18185_v29 }
 0xdaa   :  { %14691 = vmatprep.subr.bf16.mxu0 %v17977_v19  ;;  %14722 = vmatprep.subr.bf16.mxu1 %v19711_v53 }
 0xdae   :  { %v16089_v8 = vpop.eup %16088 }
 0xdaf   :  { %v5931_v59 = vmul.f32 %v16089_v8, %v5930_v43  ;;  %v19912_v43 = vld [vmem:[#allocation82_spill] sm:$0xff] }
 0xdb1   :  { %v18431_v44 = vadd.f32 %v5932_v46, %v5931_v59 }
 0xdb3   :  { %19900 = vst [vmem:[#allocation57_spill] sm:$0xff] %v18431_v44  ;;  %6150 = vmatmul.mubr.f32.vlgmr.msra.gmra.mrb[64].mxu1 %v18431_v44  ;;  %12111 = vmatmul.mubr.f32.vlgmr.msra.gmra.mrb[84].mxu0 %v18431_v44 }
 0xdb4   :  { %14693 = vmatpush1.bf16.msra.mxu0 %v17991_v47  ;;  %14724 = vmatpush3.bf16.msra.mxu1 %v17993_v49 }
 0xdb5   :  { %14695 = vmatprep.subr.bf16.mxu0 %v17995_v57  ;;  %14725 = vmatprep.subr.bf16.mxu1 %v19711_v53 }
 0xdb6   :  { %6344 = vmatprep.mubr.f32.mxu0 %v19712_v62  ;;  %12145 = vmatprep.mubr.msk.f32.mxu1 %vm16515_vm0, %v19712_v62 }
 0xdb8   :  { %14697 = vmatpush1.bf16.msra.mxu0 %v18001_v15  ;;  %14727 = vmatpush3.bf16.msra.mxu1 %v18005_v16 }
 0xdb9   :  { %14699 = vmatprep.subr.bf16.mxu0 %v18009_v27  ;;  %14728 = vmatprep.subr.bf16.mxu1 %v19711_v53 }
 0xdbc   :  { %14701 = vmatpush1.bf16.msra.mxu0 %v18015_v50  ;;  %14730 = vmatpush3.bf16.msra.mxu1 %v18019_v5 }
 0xdbd   :  { %14703 = vmatprep.subr.bf16.mxu0 %v18023_v25  ;;  %14731 = vmatprep.subr.bf16.mxu1 %v19711_v53 }
 0xdc0   :  { %14705 = vmatpush1.bf16.msra.mxu0 %v18030_v63  ;;  %14733 = vmatpush3.bf16.msra.mxu1 %v18038_v30 }
 0xdc1   :  { %14707 = vmatprep.subr.bf16.mxu0 %v18034_v3  ;;  %14734 = vmatprep.subr.bf16.mxu1 %v19711_v53 }
 0xdc4   :  { %14709 = vmatpush1.bf16.msra.mxu0 %v18047_v0  ;;  %14736 = vmatpush3.bf16.msra.mxu1 %v19901_v37 }
 0xdc5   :  { %14711 = vmatprep.subr.bf16.mxu0 %v19902_v48  ;;  %14737 = vmatprep.subr.bf16.mxu1 %v19711_v53  ;;  %v19915_v48 = vld [vmem:[#allocation48_spill] sm:$0xff] }
 0xdc6   :  { %v4744_v37 = vadd.f32 %v19915_v48, %v18284_v35 }
 0xdc8   :  { %14713 = vmatpush1.bf16.msra.mxu0 %v19903_v36  ;;  %14739 = vmatpush3.bf16.msra.mxu1 %v19904_v61 }
 0xdc9   :  { %14715 = vmatprep.subr.bf16.mxu0 %v19905_v10  ;;  %14740 = vmatprep.subr.bf16.mxu1 %v19711_v53 }
 0xdcc   :  { %14717 = vmatpush1.bf16.msra.mxu0 %v19906_v4  ;;  %14742 = vmatpush3.bf16.msra.mxu1 %v19907_v2 }
 0xdcd   :  { %14719 = vmatprep.subr.bf16.mxu0 %v19908_v58  ;;  %14743 = vmatprep.subr.bf16.mxu1 %v19711_v53 }
 0xdd0   :  { %14721 = vmatpush1.bf16.msra.mxu0 %v19909_v41  ;;  %14745 = vmatpush3.bf16.msra.mxu1 %v19910_v39 }
 0xdd1   :  { %14747 = vmatprep.subr.bf16.mxu1 %v19911_v45  ;;  %14778 = vmatprep.subr.bf16.mxu0 %v19711_v53  ;;  %v19914_v45 = vld [vmem:[#allocation68_spill] sm:$0xff] }
 0xe5f   :  { %v6010_v31 = vpop.f32.mrb[54].mxu0  ;;  %v6081_v1 = vpop.f32.mrb[84].mxu1 }
 0xe60   :  { %v15687_v8 = vadd.f32 %v6010_v31, %v19912_v43  ;;  %v6012_v59 = vpop.f32.mrb[55].mxu0  ;;  %v12077_v46 = vpop.f32.mrb[85].mxu1  ;;  %v6240_v61 = vadd.f32 %v19914_v45, %v6081_v1 }
 0xe61   :  { %v15688_v2 = vadd.f32 %v6012_v59, %v19913_v56 }
 0xe62   :  { %v10015_v33 = vmul.f32 -1.442695, %v15687_v8 }
 0xe63   :  { %v10016_v58 = vmul.f32 -1.442695, %v15688_v2 }
 0xe64   :  { %16090 = vpow2.f32 %v10015_v33 }
 0xe65   :  { %16092 = vpow2.f32 %v10016_v58 }
 0xe6e   :  { %v16091_v4 = vpop.eup %16090 }
 0xe6f   :  { %v6234_v41 = vadd.f32 1.0, %v16091_v4  ;;  %v16093_v39 = vpop.eup %16092 }
 0xe70   :  { %v6235_v10 = vadd.f32 1.0, %v16093_v39 }
 0xe71   :  { %16094 = vrcp.f32 %v6234_v41 }
 0xe72   :  { %16096 = vrcp.f32 %v6235_v10 }
 0xe7b   :  { %v16095_v36 = vpop.eup %16094 }
 0xe7c   :  { %v6241_v31 = vmul.f32 %v16095_v36, %v6240_v61  ;;  %v16097_v8 = vpop.eup %16096 }
 0xe7d   :  { %v6244_v41 = vsub.f32 1.0, %v16097_v8  ;;  %v6246_v43 = vmul.f32 %v16097_v8, %v18389_v22  ;;  %v19931_v22 = vld [vmem:[#allocation69_spill] sm:$0xff] }
 0xe7e   :  { %v6242_v46 = vadd.f32 %v6241_v31, %v4744_v37 }
 0xe80   :  { %16098 = vtanh.f32 %v6242_v46  ;;  %v19917_v46 = vld [vmem:[#allocation60_spill] sm:$0xff] }
 0xe86   :  { %v6151_v59 = vpop.f32.mrb[64].mxu1  ;;  %v6222_v33 = vpop.f32.mrb[84].mxu0 }
 0xe87   :  { %v15705_v2 = vadd.f32 %v6151_v59, %v18290_v14  ;;  %v6153_v58 = vpop.f32.mrb[65].mxu1  ;;  %v12112_v4 = vpop.f32.mrb[85].mxu0 }
 0xe88   :  { %v15706_v1 = vadd.f32 %v6153_v58, %v18293_v38 }
 0xe89   :  { %v10017_v56 = vmul.f32 -1.442695, %v15705_v2 }
 0xe8a   :  { %v16099_v39 = vpop.eup %16098  ;;  %v10018_v37 = vmul.f32 -1.442695, %v15706_v1  ;;  %v19920_v1 = vld [vmem:[#allocation64_spill] sm:$0xff] }
 0xe8b   :  { %v6245_v45 = vmul.f32 %v16099_v39, %v6244_v41  ;;  %16100 = vpow2.f32 %v10017_v56  ;;  %v19919_v39 = vld [vmem:[#allocation73_spill] sm:$0xff] }
 0xe8c   :  { %16102 = vpow2.f32 %v10018_v37  ;;  %v19921_v37 = vld [vmem:[#allocation72_spill] sm:$0xff] }
 0xe8d   :  { %v18478_v48 = vadd.f32 %v6246_v43, %v6245_v45  ;;  %v6262_v45 = vadd.f32 %v18317_v34, %v6222_v33 }
 0xe8f   :  { %19916 = vst [vmem:[#allocation76_spill] sm:$0xff] %v18478_v48  ;;  %6345 = vmatmul.mubr.f32.vlgmr.msra.gmra.mrb[56].mxu0 %v18478_v48  ;;  %12146 = vmatmul.mubr.f32.vlgmr.msra.gmra.mrb[86].mxu1 %v18478_v48 }
 0xe90   :  { %14749 = vmatpush1.bf16.msra.mxu1 %v18128_v6  ;;  %14780 = vmatpush3.bf16.msra.mxu0 %v18112_v40 }
 0xe91   :  { %14751 = vmatprep.subr.bf16.mxu1 %v18130_v7  ;;  %14781 = vmatprep.subr.bf16.mxu0 %v19711_v53 }
 0xe92   :  { %6485 = vmatprep.mubr.f32.mxu1 %v19712_v62  ;;  %12180 = vmatprep.mubr.msk.f32.mxu0 %vm16515_vm0, %v19712_v62 }
 0xe94   :  { %14753 = vmatpush1.bf16.msra.mxu1 %v18138_v23  ;;  %14783 = vmatpush3.bf16.msra.mxu0 %v18121_v12 }
 0xe95   :  { %v16101_v56 = vpop.eup %16100  ;;  %14755 = vmatprep.subr.bf16.mxu1 %v18142_v60  ;;  %14784 = vmatprep.subr.bf16.mxu0 %v19711_v53 }
 0xe96   :  { %v6256_v36 = vadd.f32 1.0, %v16101_v56  ;;  %v16103_v61 = vpop.eup %16102  ;;  %v19922_v56 = vld [vmem:[#allocation47_spill] sm:$0xff] }
 0xe97   :  { %v6257_v10 = vadd.f32 1.0, %v16103_v61  ;;  %v19924_v61 = vld [vmem:[#allocation54_spill] sm:$0xff] }
 0xe98   :  { %16104 = vrcp.f32 %v6256_v36  ;;  %14757 = vmatpush1.bf16.msra.mxu1 %v18149_v13  ;;  %14786 = vmatpush3.bf16.msra.mxu0 %v18133_v32  ;;  %v19923_v36 = vld [vmem:[#allocation50_spill] sm:$0xff] }
 0xe99   :  { %14759 = vmatprep.subr.bf16.mxu1 %v18152_v51  ;;  %14787 = vmatprep.subr.bf16.mxu0 %v19711_v53  ;;  %16106 = vrcp.f32 %v6257_v10  ;;  %v19925_v10 = vld [vmem:[#allocation56_spill] sm:$0xff] }
 0xe9c   :  { %14761 = vmatpush1.bf16.msra.mxu1 %v18159_v11  ;;  %14789 = vmatpush3.bf16.msra.mxu0 %v18145_v17 }
 0xe9d   :  { %14763 = vmatprep.subr.bf16.mxu1 %v18162_v20  ;;  %14790 = vmatprep.subr.bf16.mxu0 %v19711_v53 }
 0xea0   :  { %14765 = vmatpush1.bf16.msra.mxu1 %v18169_v18  ;;  %14792 = vmatpush3.bf16.msra.mxu0 %v18155_v42 }
 0xea1   :  { %14767 = vmatprep.subr.bf16.mxu1 %v18172_v52  ;;  %14793 = vmatprep.subr.bf16.mxu0 %v19711_v53 }
 0xea2   :  { %v16105_v43 = vpop.eup %16104 }
 0xea3   :  { %v6263_v31 = vmul.f32 %v16105_v43, %v6262_v45  ;;  %v16107_v59 = vpop.eup %16106  ;;  %v19926_v45 = vld [vmem:[#allocation55_spill] sm:$0xff] }
 0xea4   :  { %14769 = vmatpush1.bf16.msra.mxu1 %v18179_v24  ;;  %14795 = vmatpush3.bf16.msra.mxu0 %v18165_v26  ;;  %v6266_v33 = vsub.f32 1.0, %v16107_v59  ;;  %v6268_v4 = vmul.f32 %v16107_v59, %v18431_v44  ;;  %v19927_v43 = vld [vmem:[#allocation79_spill] sm:$0xff] }
 0xea5   :  { %v6264_v8 = vadd.f32 %v6263_v31, %v19917_v46  ;;  %14771 = vmatprep.subr.bf16.mxu1 %v18182_v9  ;;  %14796 = vmatprep.subr.bf16.mxu0 %v19711_v53  ;;  %v19928_v31 = vld [vmem:[#allocation71_spill] sm:$0xff]  ;;  %v19929_v46 = vld [vmem:[#allocation66_spill] sm:$0xff] }
 0xea7   :  { %16108 = vtanh.f32 %v6264_v8 }
 0xea8   :  { %14773 = vmatpush1.bf16.msra.mxu1 %v18189_v28  ;;  %14798 = vmatpush3.bf16.msra.mxu0 %v18175_v55 }
 0xea9   :  { %14775 = vmatprep.subr.bf16.mxu1 %v18192_v21  ;;  %14799 = vmatprep.subr.bf16.mxu0 %v19711_v53 }
 0xeac   :  { %14777 = vmatpush1.bf16.msra.mxu1 %v18197_v54  ;;  %14801 = vmatpush3.bf16.msra.mxu0 %v18185_v29 }
 0xead   :  { %14803 = vmatprep.subr.bf16.mxu0 %v17977_v19  ;;  %14834 = vmatprep.subr.bf16.mxu1 %v19711_v53 }
 0xeb1   :  { %v16109_v2 = vpop.eup %16108 }
 0xeb2   :  { %v6267_v58 = vmul.f32 %v16109_v2, %v6266_v33  ;;  %v19930_v33 = vld [vmem:[#allocation82_spill] sm:$0xff] }
 0xeb4   :  { %v18520_v41 = vadd.f32 %v6268_v4, %v6267_v58 }
 0xeb6   :  { %19918 = vst [vmem:[#allocation77_spill] sm:$0xff] %v18520_v41  ;;  %6486 = vmatmul.mubr.f32.vlgmr.msra.gmra.mrb[66].mxu1 %v18520_v41  ;;  %12181 = vmatmul.mubr.f32.vlgmr.msra.gmra.mrb[86].mxu0 %v18520_v41 }
 0xeb7   :  { %14805 = vmatpush1.bf16.msra.mxu0 %v17991_v47  ;;  %14836 = vmatpush3.bf16.msra.mxu1 %v17993_v49 }
 0xeb8   :  { %14807 = vmatprep.subr.bf16.mxu0 %v17995_v57  ;;  %14837 = vmatprep.subr.bf16.mxu1 %v19711_v53 }
 0xeb9   :  { %6680 = vmatprep.mubr.f32.mxu0 %v19712_v62  ;;  %12215 = vmatprep.mubr.msk.f32.mxu1 %vm16515_vm0, %v19712_v62 }
 0xebb   :  { %14809 = vmatpush1.bf16.msra.mxu0 %v18001_v15  ;;  %14839 = vmatpush3.bf16.msra.mxu1 %v18005_v16 }
 0xebc   :  { %14811 = vmatprep.subr.bf16.mxu0 %v18009_v27  ;;  %14840 = vmatprep.subr.bf16.mxu1 %v19711_v53 }
 0xebf   :  { %14813 = vmatpush1.bf16.msra.mxu0 %v18015_v50  ;;  %14842 = vmatpush3.bf16.msra.mxu1 %v18019_v5 }
 0xec0   :  { %14815 = vmatprep.subr.bf16.mxu0 %v18023_v25  ;;  %14843 = vmatprep.subr.bf16.mxu1 %v19711_v53 }
 0xec3   :  { %14817 = vmatpush1.bf16.msra.mxu0 %v18030_v63  ;;  %14845 = vmatpush3.bf16.msra.mxu1 %v18038_v30 }
 0xec4   :  { %14819 = vmatprep.subr.bf16.mxu0 %v18034_v3  ;;  %14846 = vmatprep.subr.bf16.mxu1 %v19711_v53 }
 0xec7   :  { %14821 = vmatpush1.bf16.msra.mxu0 %v18047_v0  ;;  %14848 = vmatpush3.bf16.msra.mxu1 %v19919_v39 }
 0xec8   :  { %14823 = vmatprep.subr.bf16.mxu0 %v19920_v1  ;;  %14849 = vmatprep.subr.bf16.mxu1 %v19711_v53  ;;  %v19933_v1 = vld [vmem:[#allocation63_spill] sm:$0xff] }
 0xec9   :  { %v4749_v39 = vadd.f32 %v19933_v1, %v18284_v35 }
 0xecb   :  { %14825 = vmatpush1.bf16.msra.mxu0 %v19921_v37  ;;  %14851 = vmatpush3.bf16.msra.mxu1 %v19922_v56 }
 0xecc   :  { %14827 = vmatprep.subr.bf16.mxu0 %v19923_v36  ;;  %14852 = vmatprep.subr.bf16.mxu1 %v19711_v53 }
 0xecf   :  { %14829 = vmatpush1.bf16.msra.mxu0 %v19924_v61  ;;  %14854 = vmatpush3.bf16.msra.mxu1 %v19925_v10 }
 0xed0   :  { %14831 = vmatprep.subr.bf16.mxu0 %v19926_v45  ;;  %14855 = vmatprep.subr.bf16.mxu1 %v19711_v53 }
 0xed3   :  { %14833 = vmatpush1.bf16.msra.mxu0 %v19927_v43  ;;  %14857 = vmatpush3.bf16.msra.mxu1 %v19928_v31 }
 0xed4   :  { %14859 = vmatprep.subr.bf16.mxu1 %v19929_v46  ;;  %14890 = vmatprep.subr.bf16.mxu0 %v19711_v53  ;;  %v19932_v46 = vld [vmem:[#allocation68_spill] sm:$0xff] }
 0xf62   :  { %v6346_v8 = vpop.f32.mrb[56].mxu0  ;;  %v6417_v59 = vpop.f32.mrb[86].mxu1 }
 0xf63   :  { %v15689_v2 = vadd.f32 %v6346_v8, %v19930_v33  ;;  %v6348_v58 = vpop.f32.mrb[57].mxu0  ;;  %v12147_v4 = vpop.f32.mrb[87].mxu1  ;;  %v6576_v56 = vadd.f32 %v19932_v46, %v6417_v59 }
 0xf64   :  { %v15690_v10 = vadd.f32 %v6348_v58, %v19931_v22 }
 0xf65   :  { %v10019_v44 = vmul.f32 -1.442695, %v15689_v2 }
 0xf66   :  { %v10020_v45 = vmul.f32 -1.442695, %v15690_v10 }
 0xf67   :  { %16110 = vpow2.f32 %v10019_v44 }
 0xf68   :  { %16112 = vpow2.f32 %v10020_v45 }
 0xf71   :  { %v16111_v61 = vpop.eup %16110 }
 0xf72   :  { %v6570_v43 = vadd.f32 1.0, %v16111_v61  ;;  %v16113_v31 = vpop.eup %16112 }
 0xf73   :  { %v6571_v36 = vadd.f32 1.0, %v16113_v31 }
 0xf74   :  { %16114 = vrcp.f32 %v6570_v43 }
 0xf75   :  { %16116 = vrcp.f32 %v6571_v36 }
 0xf7e   :  { %v16115_v37 = vpop.eup %16114 }
 0xf7f   :  { %v6577_v8 = vmul.f32 %v16115_v37, %v6576_v56  ;;  %v16117_v2 = vpop.eup %16116 }
 0xf80   :  { %v6580_v43 = vsub.f32 1.0, %v16117_v2  ;;  %v6582_v1 = vmul.f32 %v16117_v2, %v18478_v48 }
 0xf81   :  { %v6578_v4 = vadd.f32 %v6577_v8, %v4749_v39 }
 0xf83   :  { %16118 = vtanh.f32 %v6578_v4 }
 0xf89   :  { %v6487_v58 = vpop.f32.mrb[66].mxu1  ;;  %v6558_v44 = vpop.f32.mrb[86].mxu0 }
 0xf8a   :  { %v15707_v10 = vadd.f32 %v6487_v58, %v18290_v14  ;;  %v6489_v45 = vpop.f32.mrb[67].mxu1  ;;  %v12182_v61 = vpop.f32.mrb[87].mxu0  ;;  %v6598_v4 = vadd.f32 %v18317_v34, %v6558_v44 }
 0xf8b   :  { %v15708_v46 = vadd.f32 %v6489_v45, %v18293_v38 }
 0xf8c   :  { %v10021_v22 = vmul.f32 -1.442695, %v15707_v10  ;;  %v19935_v10 = vld [vmem:[#allocation58_spill] sm:$0xff] }
 0xf8d   :  { %v16119_v31 = vpop.eup %16118  ;;  %v10022_v39 = vmul.f32 -1.442695, %v15708_v46 }
 0xf8e   :  { %16120 = vpow2.f32 %v10021_v22  ;;  %v6581_v59 = vmul.f32 %v16119_v31, %v6580_v43 }
 0xf8f   :  { %16122 = vpow2.f32 %v10022_v39  ;;  %v19939_v39 = vld [vmem:[#allocation72_spill] sm:$0xff] }
 0xf90   :  { %v18567_v37 = vadd.f32 %v6582_v1, %v6581_v59  ;;  %v19937_v59 = vld [vmem:[#allocation73_spill] sm:$0xff]  ;;  %v19938_v1 = vld [vmem:[#allocation64_spill] sm:$0xff] }
 0xf92   :  { %19934 = vst [vmem:[#allocation78_spill] sm:$0xff] %v18567_v37  ;;  %6681 = vmatmul.mubr.f32.vlgmr.msra.gmra.mrb[58].mxu0 %v18567_v37  ;;  %12216 = vmatmul.mubr.f32.vlgmr.msra.gmra.mrb[88].mxu1 %v18567_v37 }
 0xf93   :  { %14861 = vmatpush1.bf16.msra.mxu1 %v18128_v6  ;;  %14892 = vmatpush3.bf16.msra.mxu0 %v18112_v40 }
 0xf94   :  { %14863 = vmatprep.subr.bf16.mxu1 %v18130_v7  ;;  %14893 = vmatprep.subr.bf16.mxu0 %v19711_v53 }
 0xf95   :  { %6821 = vmatprep.mubr.f32.mxu1 %v19712_v62  ;;  %12250 = vmatprep.mubr.msk.f32.mxu0 %vm16515_vm0, %v19712_v62 }
 0xf97   :  { %14865 = vmatpush1.bf16.msra.mxu1 %v18138_v23  ;;  %14895 = vmatpush3.bf16.msra.mxu0 %v18121_v12 }
 0xf98   :  { %v16121_v22 = vpop.eup %16120  ;;  %14867 = vmatprep.subr.bf16.mxu1 %v18142_v60  ;;  %14896 = vmatprep.subr.bf16.mxu0 %v19711_v53 }
 0xf99   :  { %v6592_v56 = vadd.f32 1.0, %v16121_v22  ;;  %v16123_v36 = vpop.eup %16122  ;;  %v19940_v22 = vld [vmem:[#allocation47_spill] sm:$0xff] }
 0xf9a   :  { %v6593_v8 = vadd.f32 1.0, %v16123_v36  ;;  %v19942_v36 = vld [vmem:[#allocation54_spill] sm:$0xff] }
 0xf9b   :  { %16124 = vrcp.f32 %v6592_v56  ;;  %14869 = vmatpush1.bf16.msra.mxu1 %v18149_v13  ;;  %14898 = vmatpush3.bf16.msra.mxu0 %v18133_v32  ;;  %v19941_v56 = vld [vmem:[#allocation50_spill] sm:$0xff] }
 0xf9c   :  { %14871 = vmatprep.subr.bf16.mxu1 %v18152_v51  ;;  %14899 = vmatprep.subr.bf16.mxu0 %v19711_v53  ;;  %16126 = vrcp.f32 %v6593_v8  ;;  %v19943_v8 = vld [vmem:[#allocation56_spill] sm:$0xff] }
 0xf9f   :  { %14873 = vmatpush1.bf16.msra.mxu1 %v18159_v11  ;;  %14901 = vmatpush3.bf16.msra.mxu0 %v18145_v17 }
 0xfa0   :  { %14875 = vmatprep.subr.bf16.mxu1 %v18162_v20  ;;  %14902 = vmatprep.subr.bf16.mxu0 %v19711_v53 }
 0xfa3   :  { %14877 = vmatpush1.bf16.msra.mxu1 %v18169_v18  ;;  %14904 = vmatpush3.bf16.msra.mxu0 %v18155_v42 }
 0xfa4   :  { %14879 = vmatprep.subr.bf16.mxu1 %v18172_v52  ;;  %14905 = vmatprep.subr.bf16.mxu0 %v19711_v53 }
 0xfa5   :  { %v16125_v2 = vpop.eup %16124 }
 0xfa6   :  { %v6599_v58 = vmul.f32 %v16125_v2, %v6598_v4  ;;  %v16127_v34 = vpop.eup %16126  ;;  %v19944_v4 = vld [vmem:[#allocation55_spill] sm:$0xff] }
 0xfa7   :  { %14881 = vmatpush1.bf16.msra.mxu1 %v18179_v24  ;;  %14907 = vmatpush3.bf16.msra.mxu0 %v18165_v26  ;;  %v6602_v44 = vsub.f32 1.0, %v16127_v34  ;;  %v6604_v31 = vmul.f32 %v16127_v34, %v18520_v41  ;;  %v19945_v2 = vld [vmem:[#allocation79_spill] sm:$0xff]  ;;  %v19948_v41 = vld [vmem:[#allocation69_spill] sm:$0xff] }
 0xfa8   :  { %v6600_v45 = vadd.f32 %v6599_v58, %v19935_v10  ;;  %14883 = vmatprep.subr.bf16.mxu1 %v18182_v9  ;;  %14908 = vmatprep.subr.bf16.mxu0 %v19711_v53  ;;  %v19946_v58 = vld [vmem:[#allocation71_spill] sm:$0xff]  ;;  %v19947_v10 = vld [vmem:[#allocation66_spill] sm:$0xff] }
 0xfaa   :  { %16128 = vtanh.f32 %v6600_v45 }
 0xfab   :  { %14885 = vmatpush1.bf16.msra.mxu1 %v18189_v28  ;;  %14910 = vmatpush3.bf16.msra.mxu0 %v18175_v55 }
 0xfac   :  { %14887 = vmatprep.subr.bf16.mxu1 %v18192_v21  ;;  %14911 = vmatprep.subr.bf16.mxu0 %v19711_v53 }
 0xfaf   :  { %14889 = vmatpush1.bf16.msra.mxu1 %v18197_v54  ;;  %14913 = vmatpush3.bf16.msra.mxu0 %v18185_v29 }
 0xfb0   :  { %14915 = vmatprep.subr.bf16.mxu0 %v17977_v19  ;;  %14946 = vmatprep.subr.bf16.mxu1 %v19711_v53 }
 0xfb4   :  { %v16129_v61 = vpop.eup %16128 }
 0xfb5   :  { %v6603_v43 = vmul.f32 %v16129_v61, %v6602_v44 }
 0xfb7   :  { %v18609_v46 = vadd.f32 %v6604_v31, %v6603_v43 }
 0xfb9   :  { %19936 = vst [vmem:[#allocation81_spill] sm:$0xff] %v18609_v46  ;;  %6822 = vmatmul.mubr.f32.vlgmr.msra.gmra.mrb[68].mxu1 %v18609_v46  ;;  %12251 = vmatmul.mubr.f32.vlgmr.msra.gmra.mrb[88].mxu0 %v18609_v46 }
 0xfba   :  { %14917 = vmatpush1.bf16.msra.mxu0 %v17991_v47  ;;  %14948 = vmatpush3.bf16.msra.mxu1 %v17993_v49 }
 0xfbb   :  { %14919 = vmatprep.subr.bf16.mxu0 %v17995_v57  ;;  %14949 = vmatprep.subr.bf16.mxu1 %v19711_v53 }
 0xfbc   :  { %7016 = vmatprep.mubr.f32.mxu0 %v19712_v62  ;;  %12285 = vmatprep.mubr.msk.f32.mxu1 %vm16515_vm0, %v19712_v62 }
 0xfbe   :  { %14921 = vmatpush1.bf16.msra.mxu0 %v18001_v15  ;;  %14951 = vmatpush3.bf16.msra.mxu1 %v18005_v16 }
 0xfbf   :  { %14923 = vmatprep.subr.bf16.mxu0 %v18009_v27  ;;  %14952 = vmatprep.subr.bf16.mxu1 %v19711_v53 }
 0xfc2   :  { %14925 = vmatpush1.bf16.msra.mxu0 %v18015_v50  ;;  %14954 = vmatpush3.bf16.msra.mxu1 %v18019_v5 }
 0xfc3   :  { %14927 = vmatprep.subr.bf16.mxu0 %v18023_v25  ;;  %14955 = vmatprep.subr.bf16.mxu1 %v19711_v53 }
 0xfc6   :  { %14929 = vmatpush1.bf16.msra.mxu0 %v18030_v63  ;;  %14957 = vmatpush3.bf16.msra.mxu1 %v18038_v30 }
 0xfc7   :  { %14931 = vmatprep.subr.bf16.mxu0 %v18034_v3  ;;  %14958 = vmatprep.subr.bf16.mxu1 %v19711_v53 }
 0xfca   :  { %14933 = vmatpush1.bf16.msra.mxu0 %v18047_v0  ;;  %14960 = vmatpush3.bf16.msra.mxu1 %v19937_v59 }
 0xfcb   :  { %14935 = vmatprep.subr.bf16.mxu0 %v19938_v1  ;;  %14961 = vmatprep.subr.bf16.mxu1 %v19711_v53 }
 0xfce   :  { %14937 = vmatpush1.bf16.msra.mxu0 %v19939_v39  ;;  %14963 = vmatpush3.bf16.msra.mxu1 %v19940_v22 }
 0xfcf   :  { %14939 = vmatprep.subr.bf16.mxu0 %v19941_v56  ;;  %14964 = vmatprep.subr.bf16.mxu1 %v19711_v53 }
 0xfd2   :  { %14941 = vmatpush1.bf16.msra.mxu0 %v19942_v36  ;;  %14966 = vmatpush3.bf16.msra.mxu1 %v19943_v8  ;;  %v18651_v36 = vld [vmem:[%s19880_s17] ss:$0 sm:$0xff] }
 0xfd3   :  { %14943 = vmatprep.subr.bf16.mxu0 %v19944_v4  ;;  %14967 = vmatprep.subr.bf16.mxu1 %v19711_v53  ;;  %19949 = vst [vmem:[#allocation48_spill] sm:$0xff] %v18651_v36 }
 0xfd6   :  { %14945 = vmatpush1.bf16.msra.mxu0 %v19945_v2  ;;  %14969 = vmatpush3.bf16.msra.mxu1 %v19946_v58 }
 0xfd7   :  { %14971 = vmatprep.subr.bf16.mxu1 %v19947_v10  ;;  %15002 = vmatprep.subr.bf16.mxu0 %v19711_v53 }
0x1065   :  { %v6682_v45 = vpop.f32.mrb[58].mxu0  ;;  %v6753_v34 = vpop.f32.mrb[88].mxu1 }
0x1066   :  { %v15691_v44 = vadd.f32 %v6682_v45, %v19930_v33  ;;  %v6684_v61 = vpop.f32.mrb[59].mxu0  ;;  %v12217_v43 = vpop.f32.mrb[89].mxu1  ;;  %v6912_v56 = vadd.f32 %v18651_v36, %v6753_v34  ;;  %v19950_v45 = vld [vmem:[#allocation49_spill] sm:$0xff] }
0x1067   :  { %v15692_v48 = vadd.f32 %v6684_v61, %v19948_v41  ;;  %v4754_v33 = vadd.f32 %v19950_v45, %v18284_v35 }
0x1068   :  { %v10023_v31 = vmul.f32 -1.442695, %v15691_v44 }
0x1069   :  { %v10024_v4 = vmul.f32 -1.442695, %v15692_v48 }
0x106a   :  { %16130 = vpow2.f32 %v10023_v31 }
0x106b   :  { %16132 = vpow2.f32 %v10024_v4 }
0x1074   :  { %v16131_v2 = vpop.eup %16130 }
0x1075   :  { %v6906_v8 = vadd.f32 1.0, %v16131_v2  ;;  %v16133_v58 = vpop.eup %16132 }
0x1076   :  { %v6907_v10 = vadd.f32 1.0, %v16133_v58 }
0x1077   :  { %16134 = vrcp.f32 %v6906_v8 }
0x1078   :  { %16136 = vrcp.f32 %v6907_v10  ;;  %v18685_v10 = vld [vmem:[%s19883_s21] ss:$0 sm:$0xff] }
0x1081   :  { %v16135_v22 = vpop.eup %16134 }
0x1082   :  { %v6913_v43 = vmul.f32 %v16135_v22, %v6912_v56  ;;  %v16137_v61 = vpop.eup %16136 }
0x1083   :  { %v6916_v58 = vsub.f32 1.0, %v16137_v61  ;;  %v6918_v45 = vmul.f32 %v16137_v61, %v18567_v37  ;;  %v19964_v37 = vld [vmem:[#allocation69_spill] sm:$0xff] }
0x1084   :  { %v6914_v44 = vadd.f32 %v6913_v43, %v4754_v33 }
0x1086   :  { %16138 = vtanh.f32 %v6914_v44 }
0x108c   :  { %v6823_v48 = vpop.f32.mrb[68].mxu1  ;;  %v6894_v4 = vpop.f32.mrb[88].mxu0 }
0x108d   :  { %v15709_v2 = vadd.f32 %v6823_v48, %v18290_v14  ;;  %v6825_v8 = vpop.f32.mrb[69].mxu1  ;;  %v12252_v31 = vpop.f32.mrb[89].mxu0  ;;  %v6934_v43 = vadd.f32 %v18685_v10, %v6894_v4  ;;  %v19952_v48 = vld [vmem:[#allocation80_spill] sm:$0xff] }
0x108e   :  { %v15710_v34 = vadd.f32 %v6825_v8, %v18293_v38 }
0x108f   :  { %v10025_v41 = vmul.f32 -1.442695, %v15709_v2 }
0x1090   :  { %v16139_v39 = vpop.eup %16138  ;;  %v10026_v33 = vmul.f32 -1.442695, %v15710_v34 }
0x1091   :  { %16140 = vpow2.f32 %v10025_v41  ;;  %v6917_v36 = vmul.f32 %v16139_v39, %v6916_v58 }
0x1092   :  { %16142 = vpow2.f32 %v10026_v33  ;;  %v19954_v33 = vld [vmem:[#allocation72_spill] sm:$0xff] }
0x1093   :  { %v18659_v22 = vadd.f32 %v6918_v45, %v6917_v36 }
0x1095   :  { %19951 = vst [vmem:[#allocation60_spill] sm:$0xff] %v18659_v22  ;;  %7017 = vmatmul.mubr.f32.vlgmr.msra.gmra.mrb[60].mxu0 %v18659_v22  ;;  %12286 = vmatmul.mubr.f32.vlgmr.msra.gmra.mrb[90].mxu1 %v18659_v22 }
0x1096   :  { %14973 = vmatpush1.bf16.msra.mxu1 %v18128_v6  ;;  %15004 = vmatpush3.bf16.msra.mxu0 %v18112_v40 }
0x1097   :  { %14975 = vmatprep.subr.bf16.mxu1 %v18130_v7  ;;  %15005 = vmatprep.subr.bf16.mxu0 %v19711_v53 }
0x1098   :  { %7157 = vmatprep.mubr.f32.mxu1 %v19712_v62  ;;  %12320 = vmatprep.mubr.msk.f32.mxu0 %vm16515_vm0, %v19712_v62 }
0x109a   :  { %14977 = vmatpush1.bf16.msra.mxu1 %v18138_v23  ;;  %15007 = vmatpush3.bf16.msra.mxu0 %v18121_v12 }
0x109b   :  { %v16141_v41 = vpop.eup %16140  ;;  %14979 = vmatprep.subr.bf16.mxu1 %v18142_v60  ;;  %15008 = vmatprep.subr.bf16.mxu0 %v19711_v53 }
0x109c   :  { %v6928_v39 = vadd.f32 1.0, %v16141_v41  ;;  %v16143_v56 = vpop.eup %16142  ;;  %v19955_v41 = vld [vmem:[#allocation47_spill] sm:$0xff] }
0x109d   :  { %v6929_v36 = vadd.f32 1.0, %v16143_v56  ;;  %v19957_v56 = vld [vmem:[#allocation54_spill] sm:$0xff] }
0x109e   :  { %16144 = vrcp.f32 %v6928_v39  ;;  %14981 = vmatpush1.bf16.msra.mxu1 %v18149_v13  ;;  %15010 = vmatpush3.bf16.msra.mxu0 %v18133_v32  ;;  %v19956_v39 = vld [vmem:[#allocation50_spill] sm:$0xff] }
0x109f   :  { %14983 = vmatprep.subr.bf16.mxu1 %v18152_v51  ;;  %15011 = vmatprep.subr.bf16.mxu0 %v19711_v53  ;;  %16146 = vrcp.f32 %v6929_v36  ;;  %v19958_v36 = vld [vmem:[#allocation56_spill] sm:$0xff] }
0x10a2   :  { %14985 = vmatpush1.bf16.msra.mxu1 %v18159_v11  ;;  %15013 = vmatpush3.bf16.msra.mxu0 %v18145_v17 }
0x10a3   :  { %14987 = vmatprep.subr.bf16.mxu1 %v18162_v20  ;;  %15014 = vmatprep.subr.bf16.mxu0 %v19711_v53 }
0x10a6   :  { %14989 = vmatpush1.bf16.msra.mxu1 %v18169_v18  ;;  %15016 = vmatpush3.bf16.msra.mxu0 %v18155_v42 }
0x10a7   :  { %14991 = vmatprep.subr.bf16.mxu1 %v18172_v52  ;;  %15017 = vmatprep.subr.bf16.mxu0 %v19711_v53 }
0x10a8   :  { %v16145_v44 = vpop.eup %16144 }
0x10a9   :  { %v6935_v61 = vmul.f32 %v16145_v44, %v6934_v43  ;;  %v16147_v4 = vpop.eup %16146  ;;  %v19959_v43 = vld [vmem:[#allocation55_spill] sm:$0xff] }
0x10aa   :  { %14993 = vmatpush1.bf16.msra.mxu1 %v18179_v24  ;;  %15019 = vmatpush3.bf16.msra.mxu0 %v18165_v26  ;;  %v6938_v8 = vsub.f32 1.0, %v16147_v4  ;;  %v6940_v34 = vmul.f32 %v16147_v4, %v18609_v46  ;;  %v19960_v44 = vld [vmem:[#allocation79_spill] sm:$0xff] }
0x10ab   :  { %v6936_v2 = vadd.f32 %v6935_v61, %v19952_v48  ;;  %14995 = vmatprep.subr.bf16.mxu1 %v18182_v9  ;;  %15020 = vmatprep.subr.bf16.mxu0 %v19711_v53  ;;  %v19961_v61 = vld [vmem:[#allocation71_spill] sm:$0xff]  ;;  %v19962_v48 = vld [vmem:[#allocation66_spill] sm:$0xff] }
0x10ad   :  { %16148 = vtanh.f32 %v6936_v2 }
0x10ae   :  { %14997 = vmatpush1.bf16.msra.mxu1 %v18189_v28  ;;  %15022 = vmatpush3.bf16.msra.mxu0 %v18175_v55 }
0x10af   :  { %14999 = vmatprep.subr.bf16.mxu1 %v18192_v21  ;;  %15023 = vmatprep.subr.bf16.mxu0 %v19711_v53 }
0x10b2   :  { %15001 = vmatpush1.bf16.msra.mxu1 %v18197_v54  ;;  %15025 = vmatpush3.bf16.msra.mxu0 %v18185_v29 }
0x10b3   :  { %15027 = vmatprep.subr.bf16.mxu0 %v17977_v19  ;;  %15058 = vmatprep.subr.bf16.mxu1 %v19711_v53 }
0x10b7   :  { %v16149_v31 = vpop.eup %16148 }
0x10b8   :  { %v6939_v58 = vmul.f32 %v16149_v31, %v6938_v8  ;;  %v19963_v8 = vld [vmem:[#allocation82_spill] sm:$0xff] }
0x10ba   :  { %v18704_v45 = vadd.f32 %v6940_v34, %v6939_v58 }
0x10bc   :  { %19953 = vst [vmem:[#allocation68_spill] sm:$0xff] %v18704_v45  ;;  %7158 = vmatmul.mubr.f32.vlgmr.msra.gmra.mrb[70].mxu1 %v18704_v45  ;;  %12321 = vmatmul.mubr.f32.vlgmr.msra.gmra.mrb[90].mxu0 %v18704_v45 }
0x10bd   :  { %15029 = vmatpush1.bf16.msra.mxu0 %v17991_v47  ;;  %15060 = vmatpush3.bf16.msra.mxu1 %v17993_v49 }
0x10be   :  { %15031 = vmatprep.subr.bf16.mxu0 %v17995_v57  ;;  %15061 = vmatprep.subr.bf16.mxu1 %v19711_v53 }
0x10bf   :  { %7352 = vmatprep.mubr.f32.mxu0 %v19712_v62  ;;  %12355 = vmatprep.mubr.msk.f32.mxu1 %vm16515_vm0, %v19712_v62 }
0x10c1   :  { %15033 = vmatpush1.bf16.msra.mxu0 %v18001_v15  ;;  %15063 = vmatpush3.bf16.msra.mxu1 %v18005_v16 }
0x10c2   :  { %15035 = vmatprep.subr.bf16.mxu0 %v18009_v27  ;;  %15064 = vmatprep.subr.bf16.mxu1 %v19711_v53 }
0x10c5   :  { %15037 = vmatpush1.bf16.msra.mxu0 %v18015_v50  ;;  %15066 = vmatpush3.bf16.msra.mxu1 %v18019_v5 }
0x10c6   :  { %15039 = vmatprep.subr.bf16.mxu0 %v18023_v25  ;;  %15067 = vmatprep.subr.bf16.mxu1 %v19711_v53 }
0x10c9   :  { %15041 = vmatpush1.bf16.msra.mxu0 %v18030_v63  ;;  %15069 = vmatpush3.bf16.msra.mxu1 %v18038_v30 }
0x10ca   :  { %15043 = vmatprep.subr.bf16.mxu0 %v18034_v3  ;;  %15070 = vmatprep.subr.bf16.mxu1 %v19711_v53 }
0x10cd   :  { %15045 = vmatpush1.bf16.msra.mxu0 %v18047_v0  ;;  %15072 = vmatpush3.bf16.msra.mxu1 %v19937_v59 }
0x10ce   :  { %15047 = vmatprep.subr.bf16.mxu0 %v19938_v1  ;;  %15073 = vmatprep.subr.bf16.mxu1 %v19711_v53  ;;  %v19966_v1 = vld [vmem:[#allocation51_spill] sm:$0xff] }
0x10cf   :  { %v4759_v59 = vadd.f32 %v19966_v1, %v18284_v35 }
0x10d1   :  { %15049 = vmatpush1.bf16.msra.mxu0 %v19954_v33  ;;  %15075 = vmatpush3.bf16.msra.mxu1 %v19955_v41 }
0x10d2   :  { %15051 = vmatprep.subr.bf16.mxu0 %v19956_v39  ;;  %15076 = vmatprep.subr.bf16.mxu1 %v19711_v53 }
0x10d5   :  { %15053 = vmatpush1.bf16.msra.mxu0 %v19957_v56  ;;  %15078 = vmatpush3.bf16.msra.mxu1 %v19958_v36 }
0x10d6   :  { %15055 = vmatprep.subr.bf16.mxu0 %v19959_v43  ;;  %15079 = vmatprep.subr.bf16.mxu1 %v19711_v53 }
0x10d9   :  { %15057 = vmatpush1.bf16.msra.mxu0 %v19960_v44  ;;  %15081 = vmatpush3.bf16.msra.mxu1 %v19961_v61 }
0x10da   :  { %15083 = vmatprep.subr.bf16.mxu1 %v19962_v48  ;;  %15114 = vmatprep.subr.bf16.mxu0 %v19711_v53  ;;  %v19965_v48 = vld [vmem:[#allocation48_spill] sm:$0xff] }
0x1168   :  { %v7018_v2 = vpop.f32.mrb[60].mxu0  ;;  %v7089_v4 = vpop.f32.mrb[90].mxu1 }
0x1169   :  { %v15693_v31 = vadd.f32 %v7018_v2, %v19963_v8  ;;  %v7020_v58 = vpop.f32.mrb[61].mxu0  ;;  %v12287_v34 = vpop.f32.mrb[91].mxu1  ;;  %v7248_v41 = vadd.f32 %v19965_v48, %v7089_v4 }
0x116a   :  { %v15694_v36 = vadd.f32 %v7020_v58, %v19964_v37 }
0x116b   :  { %v10027_v46 = vmul.f32 -1.442695, %v15693_v31 }
0x116c   :  { %v10028_v43 = vmul.f32 -1.442695, %v15694_v36 }
0x116d   :  { %16150 = vpow2.f32 %v10027_v46 }
0x116e   :  { %16152 = vpow2.f32 %v10028_v43 }
0x1177   :  { %v16151_v56 = vpop.eup %16150 }
0x1178   :  { %v7242_v44 = vadd.f32 1.0, %v16151_v56  ;;  %v16153_v61 = vpop.eup %16152 }
0x1179   :  { %v7243_v39 = vadd.f32 1.0, %v16153_v61 }
0x117a   :  { %16154 = vrcp.f32 %v7242_v44 }
0x117b   :  { %16156 = vrcp.f32 %v7243_v39 }
0x1184   :  { %v16155_v33 = vpop.eup %16154 }
0x1185   :  { %v7249_v2 = vmul.f32 %v16155_v33, %v7248_v41  ;;  %v16157_v31 = vpop.eup %16156 }
0x1186   :  { %v7252_v44 = vsub.f32 1.0, %v16157_v31  ;;  %v7254_v1 = vmul.f32 %v16157_v31, %v18659_v22 }
0x1187   :  { %v7250_v34 = vadd.f32 %v7249_v2, %v4759_v59 }
0x1189   :  { %16158 = vtanh.f32 %v7250_v34 }
0x118f   :  { %v7159_v58 = vpop.f32.mrb[70].mxu1  ;;  %v7230_v46 = vpop.f32.mrb[90].mxu0 }
0x1190   :  { %v15711_v36 = vadd.f32 %v7159_v58, %v18290_v14  ;;  %v7161_v43 = vpop.f32.mrb[71].mxu1  ;;  %v12322_v56 = vpop.f32.mrb[91].mxu0  ;;  %v7270_v2 = vadd.f32 %v18685_v10, %v7230_v46  ;;  %v19968_v58 = vld [vmem:[#allocation59_spill] sm:$0xff] }
0x1191   :  { %v15712_v4 = vadd.f32 %v7161_v43, %v18293_v38 }
0x1192   :  { %v10029_v37 = vmul.f32 -1.442695, %v15711_v36 }
0x1193   :  { %v16159_v61 = vpop.eup %16158  ;;  %v10030_v59 = vmul.f32 -1.442695, %v15712_v4 }
0x1194   :  { %16160 = vpow2.f32 %v10029_v37  ;;  %v7253_v48 = vmul.f32 %v16159_v61, %v7252_v44 }
0x1195   :  { %16162 = vpow2.f32 %v10030_v59  ;;  %v19971_v59 = vld [vmem:[#allocation64_spill] sm:$0xff] }
0x1196   :  { %v18751_v33 = vadd.f32 %v7254_v1, %v7253_v48  ;;  %v19970_v1 = vld [vmem:[#allocation73_spill] sm:$0xff] }
0x1198   :  { %19967 = vst [vmem:[#allocation63_spill] sm:$0xff] %v18751_v33  ;;  %7353 = vmatmul.mubr.f32.vlgmr.msra.gmra.mrb[62].mxu0 %v18751_v33  ;;  %12356 = vmatmul.mubr.f32.vlgmr.msra.gmra.mrb[92].mxu1 %v18751_v33 }
0x1199   :  { %15085 = vmatpush1.bf16.msra.mxu1 %v18128_v6  ;;  %15116 = vmatpush3.bf16.msra.mxu0 %v18112_v40 }
0x119a   :  { %15087 = vmatprep.subr.bf16.mxu1 %v18130_v7  ;;  %15117 = vmatprep.subr.bf16.mxu0 %v19711_v53 }
0x119b   :  { %7493 = vmatprep.mubr.f32.mxu1 %v19712_v62  ;;  %12390 = vmatprep.mubr.msk.f32.mxu0 %vm16515_vm0, %v19712_v62 }
0x119d   :  { %15089 = vmatpush1.bf16.msra.mxu1 %v18138_v23  ;;  %15119 = vmatpush3.bf16.msra.mxu0 %v18121_v12 }
0x119e   :  { %v16161_v37 = vpop.eup %16160  ;;  %15091 = vmatprep.subr.bf16.mxu1 %v18142_v60  ;;  %15120 = vmatprep.subr.bf16.mxu0 %v19711_v53 }
0x119f   :  { %v7264_v41 = vadd.f32 1.0, %v16161_v37  ;;  %v16163_v39 = vpop.eup %16162  ;;  %v19972_v37 = vld [vmem:[#allocation72_spill] sm:$0xff] }
0x11a0   :  { %v7265_v48 = vadd.f32 1.0, %v16163_v39  ;;  %v19974_v39 = vld [vmem:[#allocation50_spill] sm:$0xff] }
0x11a1   :  { %16164 = vrcp.f32 %v7264_v41  ;;  %15093 = vmatpush1.bf16.msra.mxu1 %v18149_v13  ;;  %15122 = vmatpush3.bf16.msra.mxu0 %v18133_v32  ;;  %v19973_v41 = vld [vmem:[#allocation47_spill] sm:$0xff] }
0x11a2   :  { %15095 = vmatprep.subr.bf16.mxu1 %v18152_v51  ;;  %15123 = vmatprep.subr.bf16.mxu0 %v19711_v53  ;;  %16166 = vrcp.f32 %v7265_v48  ;;  %v19975_v48 = vld [vmem:[#allocation54_spill] sm:$0xff] }
0x11a5   :  { %15097 = vmatpush1.bf16.msra.mxu1 %v18159_v11  ;;  %15125 = vmatpush3.bf16.msra.mxu0 %v18145_v17 }
0x11a6   :  { %15099 = vmatprep.subr.bf16.mxu1 %v18162_v20  ;;  %15126 = vmatprep.subr.bf16.mxu0 %v19711_v53 }
0x11a9   :  { %15101 = vmatpush1.bf16.msra.mxu1 %v18169_v18  ;;  %15128 = vmatpush3.bf16.msra.mxu0 %v18155_v42 }
0x11aa   :  { %15103 = vmatprep.subr.bf16.mxu1 %v18172_v52  ;;  %15129 = vmatprep.subr.bf16.mxu0 %v19711_v53 }
0x11ab   :  { %v16165_v34 = vpop.eup %16164 }
0x11ac   :  { %v7271_v31 = vmul.f32 %v16165_v34, %v7270_v2  ;;  %v16167_v46 = vpop.eup %16166  ;;  %v19976_v2 = vld [vmem:[#allocation56_spill] sm:$0xff]  ;;  %v19977_v34 = vld [vmem:[#allocation55_spill] sm:$0xff] }
0x11ad   :  { %15105 = vmatpush1.bf16.msra.mxu1 %v18179_v24  ;;  %15131 = vmatpush3.bf16.msra.mxu0 %v18165_v26  ;;  %v7274_v43 = vsub.f32 1.0, %v16167_v46  ;;  %v7276_v61 = vmul.f32 %v16167_v46, %v18704_v45  ;;  %v19981_v45 = vld [vmem:[#allocation69_spill] sm:$0xff] }
0x11ae   :  { %v7272_v36 = vadd.f32 %v7271_v31, %v19968_v58  ;;  %15107 = vmatprep.subr.bf16.mxu1 %v18182_v9  ;;  %15132 = vmatprep.subr.bf16.mxu0 %v19711_v53  ;;  %v19978_v31 = vld [vmem:[#allocation79_spill] sm:$0xff] }
0x11af   :  { %v19979_v58 = vld [vmem:[#allocation71_spill] sm:$0xff] }
0x11b0   :  { %16168 = vtanh.f32 %v7272_v36  ;;  %v19980_v36 = vld [vmem:[#allocation66_spill] sm:$0xff] }
0x11b1   :  { %15109 = vmatpush1.bf16.msra.mxu1 %v18189_v28  ;;  %15134 = vmatpush3.bf16.msra.mxu0 %v18175_v55 }
0x11b2   :  { %15111 = vmatprep.subr.bf16.mxu1 %v18192_v21  ;;  %15135 = vmatprep.subr.bf16.mxu0 %v19711_v53 }
0x11b5   :  { %15113 = vmatpush1.bf16.msra.mxu1 %v18197_v54  ;;  %15137 = vmatpush3.bf16.msra.mxu0 %v18185_v29 }
0x11b6   :  { %15139 = vmatprep.subr.bf16.mxu0 %v17977_v19  ;;  %15170 = vmatprep.subr.bf16.mxu1 %v19711_v53 }
0x11ba   :  { %v16169_v56 = vpop.eup %16168 }
0x11bb   :  { %v7275_v44 = vmul.f32 %v16169_v56, %v7274_v43 }
0x11bd   :  { %v18793_v4 = vadd.f32 %v7276_v61, %v7275_v44 }
0x11bf   :  { %19969 = vst [vmem:[#allocation58_spill] sm:$0xff] %v18793_v4  ;;  %7494 = vmatmul.mubr.f32.vlgmr.msra.gmra.mrb[72].mxu1 %v18793_v4  ;;  %12391 = vmatmul.mubr.f32.vlgmr.msra.gmra.mrb[92].mxu0 %v18793_v4 }
0x11c0   :  { %15141 = vmatpush1.bf16.msra.mxu0 %v17991_v47  ;;  %15172 = vmatpush3.bf16.msra.mxu1 %v17993_v49 }
0x11c1   :  { %15143 = vmatprep.subr.bf16.mxu0 %v17995_v57  ;;  %15173 = vmatprep.subr.bf16.mxu1 %v19711_v53 }
0x11c2   :  { %7688 = vmatprep.mubr.f32.mxu0 %v19712_v62  ;;  %12425 = vmatprep.mubr.msk.f32.mxu1 %vm16515_vm0, %v19712_v62 }
0x11c4   :  { %15145 = vmatpush1.bf16.msra.mxu0 %v18001_v15  ;;  %15175 = vmatpush3.bf16.msra.mxu1 %v18005_v16 }
0x11c5   :  { %15147 = vmatprep.subr.bf16.mxu0 %v18009_v27  ;;  %15176 = vmatprep.subr.bf16.mxu1 %v19711_v53 }
0x11c8   :  { %15149 = vmatpush1.bf16.msra.mxu0 %v18015_v50  ;;  %15178 = vmatpush3.bf16.msra.mxu1 %v18019_v5 }
0x11c9   :  { %15151 = vmatprep.subr.bf16.mxu0 %v18023_v25  ;;  %15179 = vmatprep.subr.bf16.mxu1 %v19711_v53 }
0x11cc   :  { %15153 = vmatpush1.bf16.msra.mxu0 %v18030_v63  ;;  %15181 = vmatpush3.bf16.msra.mxu1 %v18038_v30 }
0x11cd   :  { %15155 = vmatprep.subr.bf16.mxu0 %v18034_v3  ;;  %15182 = vmatprep.subr.bf16.mxu1 %v19711_v53 }
0x11d0   :  { %15157 = vmatpush1.bf16.msra.mxu0 %v18047_v0  ;;  %15184 = vmatpush3.bf16.msra.mxu1 %v19970_v1 }
0x11d1   :  { %15159 = vmatprep.subr.bf16.mxu0 %v19971_v59  ;;  %15185 = vmatprep.subr.bf16.mxu1 %v19711_v53  ;;  %v19983_v59 = vld [vmem:[#allocation53_spill] sm:$0xff] }
0x11d2   :  { %v4764_v1 = vadd.f32 %v19983_v59, %v18284_v35 }
0x11d4   :  { %15161 = vmatpush1.bf16.msra.mxu0 %v19972_v37  ;;  %15187 = vmatpush3.bf16.msra.mxu1 %v19973_v41 }
0x11d5   :  { %15163 = vmatprep.subr.bf16.mxu0 %v19974_v39  ;;  %15188 = vmatprep.subr.bf16.mxu1 %v19711_v53 }
0x11d8   :  { %15165 = vmatpush1.bf16.msra.mxu0 %v19975_v48  ;;  %15190 = vmatpush3.bf16.msra.mxu1 %v19976_v2 }
0x11d9   :  { %15167 = vmatprep.subr.bf16.mxu0 %v19977_v34  ;;  %15191 = vmatprep.subr.bf16.mxu1 %v19711_v53 }
0x11dc   :  { %15169 = vmatpush1.bf16.msra.mxu0 %v19978_v31  ;;  %15193 = vmatpush3.bf16.msra.mxu1 %v19979_v58 }
0x11dd   :  { %15195 = vmatprep.subr.bf16.mxu1 %v19980_v36  ;;  %15226 = vmatprep.subr.bf16.mxu0 %v19711_v53  ;;  %v19982_v36 = vld [vmem:[#allocation48_spill] sm:$0xff] }
0x126b   :  { %v7354_v46 = vpop.f32.mrb[62].mxu0  ;;  %v7425_v43 = vpop.f32.mrb[92].mxu1 }
0x126c   :  { %v15695_v56 = vadd.f32 %v7354_v46, %v19963_v8  ;;  %v7356_v44 = vpop.f32.mrb[63].mxu0  ;;  %v12357_v61 = vpop.f32.mrb[93].mxu1  ;;  %v7584_v41 = vadd.f32 %v19982_v36, %v7425_v43 }
0x126d   :  { %v15696_v2 = vadd.f32 %v7356_v44, %v19981_v45 }
0x126e   :  { %v10031_v22 = vmul.f32 -1.442695, %v15695_v56 }
0x126f   :  { %v10032_v34 = vmul.f32 -1.442695, %v15696_v2 }
0x1270   :  { %16170 = vpow2.f32 %v10031_v22 }
0x1271   :  { %16172 = vpow2.f32 %v10032_v34 }
0x127a   :  { %v16171_v48 = vpop.eup %16170 }
0x127b   :  { %v7578_v31 = vadd.f32 1.0, %v16171_v48  ;;  %v16173_v58 = vpop.eup %16172 }
0x127c   :  { %v7579_v39 = vadd.f32 1.0, %v16173_v58 }
0x127d   :  { %16174 = vrcp.f32 %v7578_v31 }
0x127e   :  { %16176 = vrcp.f32 %v7579_v39 }
0x1287   :  { %v16175_v37 = vpop.eup %16174 }
0x1288   :  { %v7585_v46 = vmul.f32 %v16175_v37, %v7584_v41  ;;  %v16177_v56 = vpop.eup %16176 }
0x1289   :  { %v7588_v31 = vsub.f32 1.0, %v16177_v56  ;;  %v7590_v59 = vmul.f32 %v16177_v56, %v18751_v33 }
0x128a   :  { %v7586_v61 = vadd.f32 %v7585_v46, %v4764_v1 }
0x128c   :  { %16178 = vtanh.f32 %v7586_v61 }
0x1292   :  { %v7495_v44 = vpop.f32.mrb[72].mxu1  ;;  %v7566_v22 = vpop.f32.mrb[92].mxu0 }
0x1293   :  { %v15713_v2 = vadd.f32 %v7495_v44, %v18290_v14  ;;  %v7497_v34 = vpop.f32.mrb[73].mxu1  ;;  %v12392_v48 = vpop.f32.mrb[93].mxu0  ;;  %v7606_v46 = vadd.f32 %v18685_v10, %v7566_v22  ;;  %v19984_v44 = vld [vmem:[#allocation65_spill] sm:$0xff] }
0x1294   :  { %v15714_v43 = vadd.f32 %v7497_v34, %v18293_v38 }
0x1295   :  { %v10033_v45 = vmul.f32 -1.442695, %v15713_v2 }
0x1296   :  { %v16179_v58 = vpop.eup %16178  ;;  %v10034_v1 = vmul.f32 -1.442695, %v15714_v43 }
0x1297   :  { %16180 = vpow2.f32 %v10033_v45  ;;  %v7589_v36 = vmul.f32 %v16179_v58, %v7588_v31 }
0x1298   :  { %16182 = vpow2.f32 %v10034_v1  ;;  %v19986_v1 = vld [vmem:[#allocation64_spill] sm:$0xff] }
0x1299   :  { %v18840_v37 = vadd.f32 %v7590_v59, %v7589_v36  ;;  %v19985_v59 = vld [vmem:[#allocation73_spill] sm:$0xff] }
0x129b   :  { %7689 = vmatmul.mubr.f32.vlgmr.msra.gmra.mrb[64].mxu0 %v18840_v37  ;;  %12426 = vmatmul.mubr.f32.vlgmr.msra.gmra.mrb[94].mxu1 %v18840_v37 }
0x129c   :  { %15197 = vmatpush1.bf16.msra.mxu1 %v18128_v6  ;;  %15228 = vmatpush3.bf16.msra.mxu0 %v18112_v40 }
0x129d   :  { %15199 = vmatprep.subr.bf16.mxu1 %v18130_v7  ;;  %15229 = vmatprep.subr.bf16.mxu0 %v19711_v53 }
0x129e   :  { %7829 = vmatprep.mubr.f32.mxu1 %v19712_v62  ;;  %12460 = vmatprep.mubr.msk.f32.mxu0 %vm16515_vm0, %v19712_v62 }
0x12a0   :  { %15201 = vmatpush1.bf16.msra.mxu1 %v18138_v23  ;;  %15231 = vmatpush3.bf16.msra.mxu0 %v18121_v12 }
0x12a1   :  { %v16181_v45 = vpop.eup %16180  ;;  %15203 = vmatprep.subr.bf16.mxu1 %v18142_v60  ;;  %15232 = vmatprep.subr.bf16.mxu0 %v19711_v53 }
0x12a2   :  { %v7600_v41 = vadd.f32 1.0, %v16181_v45  ;;  %v16183_v39 = vpop.eup %16182  ;;  %v19987_v45 = vld [vmem:[#allocation72_spill] sm:$0xff] }
0x12a3   :  { %v7601_v36 = vadd.f32 1.0, %v16183_v39  ;;  %v19989_v39 = vld [vmem:[#allocation50_spill] sm:$0xff] }
0x12a4   :  { %16184 = vrcp.f32 %v7600_v41  ;;  %15205 = vmatpush1.bf16.msra.mxu1 %v18149_v13  ;;  %15234 = vmatpush3.bf16.msra.mxu0 %v18133_v32  ;;  %v19988_v41 = vld [vmem:[#allocation47_spill] sm:$0xff] }
0x12a5   :  { %15207 = vmatprep.subr.bf16.mxu1 %v18152_v51  ;;  %15235 = vmatprep.subr.bf16.mxu0 %v19711_v53  ;;  %16186 = vrcp.f32 %v7601_v36  ;;  %v19990_v36 = vld [vmem:[#allocation54_spill] sm:$0xff] }
0x12a8   :  { %15209 = vmatpush1.bf16.msra.mxu1 %v18159_v11  ;;  %15237 = vmatpush3.bf16.msra.mxu0 %v18145_v17 }
0x12a9   :  { %15211 = vmatprep.subr.bf16.mxu1 %v18162_v20  ;;  %15238 = vmatprep.subr.bf16.mxu0 %v19711_v53 }
0x12ac   :  { %15213 = vmatpush1.bf16.msra.mxu1 %v18169_v18  ;;  %15240 = vmatpush3.bf16.msra.mxu0 %v18155_v42 }
0x12ad   :  { %15215 = vmatprep.subr.bf16.mxu1 %v18172_v52  ;;  %15241 = vmatprep.subr.bf16.mxu0 %v19711_v53 }
0x12ae   :  { %v16185_v61 = vpop.eup %16184 }
0x12af   :  { %v7607_v56 = vmul.f32 %v16185_v61, %v7606_v46  ;;  %v16187_v22 = vpop.eup %16186  ;;  %v19991_v46 = vld [vmem:[#allocation56_spill] sm:$0xff]  ;;  %v19992_v61 = vld [vmem:[#allocation55_spill] sm:$0xff] }
0x12b0   :  { %15217 = vmatpush1.bf16.msra.mxu1 %v18179_v24  ;;  %15243 = vmatpush3.bf16.msra.mxu0 %v18165_v26  ;;  %v7610_v34 = vsub.f32 1.0, %v16187_v22  ;;  %v7612_v58 = vmul.f32 %v16187_v22, %v18793_v4  ;;  %v19996_v4 = vld [vmem:[#allocation69_spill] sm:$0xff] }
0x12b1   :  { %v7608_v2 = vadd.f32 %v7607_v56, %v19984_v44  ;;  %15219 = vmatprep.subr.bf16.mxu1 %v18182_v9  ;;  %15244 = vmatprep.subr.bf16.mxu0 %v19711_v53  ;;  %v19993_v56 = vld [vmem:[#allocation79_spill] sm:$0xff] }
0x12b2   :  { %v19994_v44 = vld [vmem:[#allocation71_spill] sm:$0xff] }
0x12b3   :  { %16188 = vtanh.f32 %v7608_v2  ;;  %v19995_v2 = vld [vmem:[#allocation66_spill] sm:$0xff] }
0x12b4   :  { %15221 = vmatpush1.bf16.msra.mxu1 %v18189_v28  ;;  %15246 = vmatpush3.bf16.msra.mxu0 %v18175_v55 }
0x12b5   :  { %15223 = vmatprep.subr.bf16.mxu1 %v18192_v21  ;;  %15247 = vmatprep.subr.bf16.mxu0 %v19711_v53 }
0x12b8   :  { %15225 = vmatpush1.bf16.msra.mxu1 %v18197_v54  ;;  %15249 = vmatpush3.bf16.msra.mxu0 %v18185_v29 }
0x12b9   :  { %15251 = vmatprep.subr.bf16.mxu0 %v17977_v19  ;;  %15282 = vmatprep.subr.bf16.mxu1 %v19711_v53 }
0x12bd   :  { %v16189_v48 = vpop.eup %16188 }
0x12be   :  { %v7611_v31 = vmul.f32 %v16189_v48, %v7610_v34 }
0x12c0   :  { %v18882_v43 = vadd.f32 %v7612_v58, %v7611_v31 }
0x12c2   :  { %7830 = vmatmul.mubr.f32.vlgmr.msra.gmra.mrb[74].mxu1 %v18882_v43  ;;  %12461 = vmatmul.mubr.f32.vlgmr.msra.gmra.mrb[94].mxu0 %v18882_v43 }
0x12c3   :  { %15253 = vmatpush1.bf16.msra.mxu0 %v17991_v47  ;;  %15284 = vmatpush3.bf16.msra.mxu1 %v17993_v49 }
0x12c4   :  { %15255 = vmatprep.subr.bf16.mxu0 %v17995_v57  ;;  %15285 = vmatprep.subr.bf16.mxu1 %v19711_v53 }
0x12c5   :  { %8024 = vmatprep.mubr.f32.mxu0 %v19712_v62  ;;  %12495 = vmatprep.mubr.msk.f32.mxu1 %vm16515_vm0, %v19712_v62 }
0x12c7   :  { %15257 = vmatpush1.bf16.msra.mxu0 %v18001_v15  ;;  %15287 = vmatpush3.bf16.msra.mxu1 %v18005_v16 }
0x12c8   :  { %15259 = vmatprep.subr.bf16.mxu0 %v18009_v27  ;;  %15288 = vmatprep.subr.bf16.mxu1 %v19711_v53 }
0x12cb   :  { %15261 = vmatpush1.bf16.msra.mxu0 %v18015_v50  ;;  %15290 = vmatpush3.bf16.msra.mxu1 %v18019_v5 }
0x12cc   :  { %15263 = vmatprep.subr.bf16.mxu0 %v18023_v25  ;;  %15291 = vmatprep.subr.bf16.mxu1 %v19711_v53 }
0x12cf   :  { %15265 = vmatpush1.bf16.msra.mxu0 %v18030_v63  ;;  %15293 = vmatpush3.bf16.msra.mxu1 %v18038_v30 }
0x12d0   :  { %15267 = vmatprep.subr.bf16.mxu0 %v18034_v3  ;;  %15294 = vmatprep.subr.bf16.mxu1 %v19711_v53 }
0x12d3   :  { %15269 = vmatpush1.bf16.msra.mxu0 %v18047_v0  ;;  %15296 = vmatpush3.bf16.msra.mxu1 %v19985_v59 }
0x12d4   :  { %15271 = vmatprep.subr.bf16.mxu0 %v19986_v1  ;;  %15297 = vmatprep.subr.bf16.mxu1 %v19711_v53  ;;  %v19998_v1 = vld [vmem:[#allocation52_spill] sm:$0xff] }
0x12d5   :  { %v4769_v59 = vadd.f32 %v19998_v1, %v18284_v35 }
0x12d7   :  { %15273 = vmatpush1.bf16.msra.mxu0 %v19987_v45  ;;  %15299 = vmatpush3.bf16.msra.mxu1 %v19988_v41 }
0x12d8   :  { %15275 = vmatprep.subr.bf16.mxu0 %v19989_v39  ;;  %15300 = vmatprep.subr.bf16.mxu1 %v19711_v53 }
0x12db   :  { %15277 = vmatpush1.bf16.msra.mxu0 %v19990_v36  ;;  %15302 = vmatpush3.bf16.msra.mxu1 %v19991_v46 }
0x12dc   :  { %15279 = vmatprep.subr.bf16.mxu0 %v19992_v61  ;;  %15303 = vmatprep.subr.bf16.mxu1 %v19711_v53 }
0x12df   :  { %15281 = vmatpush1.bf16.msra.mxu0 %v19993_v56  ;;  %15305 = vmatpush3.bf16.msra.mxu1 %v19994_v44 }
0x12e0   :  { %15307 = vmatprep.subr.bf16.mxu1 %v19995_v2  ;;  %15338 = vmatprep.subr.bf16.mxu0 %v19711_v53  ;;  %v19997_v2 = vld [vmem:[#allocation48_spill] sm:$0xff] }
0x136e   :  { %v7690_v22 = vpop.f32.mrb[64].mxu0  ;;  %v7761_v34 = vpop.f32.mrb[94].mxu1 }
0x136f   :  { %v15697_v48 = vadd.f32 %v7690_v22, %v19963_v8  ;;  %v7692_v31 = vpop.f32.mrb[65].mxu0  ;;  %v12427_v58 = vpop.f32.mrb[95].mxu1  ;;  %v7920_v41 = vadd.f32 %v19997_v2, %v7761_v34 }
0x1370   :  { %v15698_v46 = vadd.f32 %v7692_v31, %v19996_v4 }
0x1371   :  { %v10035_v33 = vmul.f32 -1.442695, %v15697_v48 }
0x1372   :  { %v10036_v61 = vmul.f32 -1.442695, %v15698_v46 }
0x1373   :  { %16190 = vpow2.f32 %v10035_v33 }
0x1374   :  { %16192 = vpow2.f32 %v10036_v61 }
0x137d   :  { %v16191_v36 = vpop.eup %16190 }
0x137e   :  { %v7914_v56 = vadd.f32 1.0, %v16191_v36  ;;  %v16193_v44 = vpop.eup %16192 }
0x137f   :  { %v7915_v39 = vadd.f32 1.0, %v16193_v44 }
0x1380   :  { %16194 = vrcp.f32 %v7914_v56 }
0x1381   :  { %16196 = vrcp.f32 %v7915_v39 }
0x138a   :  { %v16195_v45 = vpop.eup %16194 }
0x138b   :  { %v7921_v22 = vmul.f32 %v16195_v45, %v7920_v41  ;;  %v16197_v48 = vpop.eup %16196 }
0x138c   :  { %v7924_v4 = vsub.f32 1.0, %v16197_v48  ;;  %v7926_v1 = vmul.f32 %v16197_v48, %v18840_v37 }
0x138d   :  { %v7922_v58 = vadd.f32 %v7921_v22, %v4769_v59 }
0x138f   :  { %16198 = vtanh.f32 %v7922_v58 }
0x1395   :  { %v7831_v31 = vpop.f32.mrb[74].mxu1  ;;  %v7902_v33 = vpop.f32.mrb[94].mxu0 }
0x1396   :  { %v15715_v46 = vadd.f32 %v7831_v31, %v18290_v14  ;;  %v7833_v61 = vpop.f32.mrb[75].mxu1  ;;  %v12462_v36 = vpop.f32.mrb[95].mxu0  ;;  %v7942_v22 = vadd.f32 %v18685_v10, %v7902_v33  ;;  %v19999_v31 = vld [vmem:[#allocation61_spill] sm:$0xff] }
0x1397   :  { %v15716_v34 = vadd.f32 %v7833_v61, %v18293_v38 }
0x1398   :  { %v10037_v56 = vmul.f32 -1.442695, %v15715_v46 }
0x1399   :  { %v16199_v44 = vpop.eup %16198  ;;  %v10038_v59 = vmul.f32 -1.442695, %v15716_v34 }
0x139a   :  { %16200 = vpow2.f32 %v10037_v56  ;;  %v7925_v2 = vmul.f32 %v16199_v44, %v7924_v4 }
0x139b   :  { %16202 = vpow2.f32 %v10038_v59 }
0x139c   :  { %v18929_v45 = vadd.f32 %v7926_v1, %v7925_v2 }
0x139e   :  { %8025 = vmatmul.mubr.f32.vlgmr.msra.gmra.mrb[66].mxu0 %v18929_v45  ;;  %12496 = vmatmul.mubr.f32.vlgmr.msra.gmra.mrb[96].mxu1 %v18929_v45 }
0x139f   :  { %15309 = vmatpush1.bf16.msra.mxu1 %v18128_v6  ;;  %15340 = vmatpush3.bf16.msra.mxu0 %v18112_v40 }
0x13a0   :  { %15311 = vmatprep.subr.bf16.mxu1 %v18130_v7  ;;  %15341 = vmatprep.subr.bf16.mxu0 %v19711_v53 }
0x13a1   :  { %8165 = vmatprep.mubr.f32.mxu1 %v19712_v62  ;;  %12530 = vmatprep.mubr.msk.f32.mxu0 %vm16515_vm0, %v19712_v62 }
0x13a3   :  { %15313 = vmatpush1.bf16.msra.mxu1 %v18138_v23  ;;  %15343 = vmatpush3.bf16.msra.mxu0 %v18121_v12 }
0x13a4   :  { %v16201_v4 = vpop.eup %16200  ;;  %15315 = vmatprep.subr.bf16.mxu1 %v18142_v60  ;;  %15344 = vmatprep.subr.bf16.mxu0 %v19711_v53 }
0x13a5   :  { %v7936_v41 = vadd.f32 1.0, %v16201_v4  ;;  %v16203_v39 = vpop.eup %16202 }
0x13a6   :  { %v7937_v2 = vadd.f32 1.0, %v16203_v39 }
0x13a7   :  { %16204 = vrcp.f32 %v7936_v41  ;;  %15317 = vmatpush1.bf16.msra.mxu1 %v18149_v13  ;;  %15346 = vmatpush3.bf16.msra.mxu0 %v18133_v32  ;;  %v20011_v41 = vld [vmem:[#allocation69_spill] sm:$0xff] }
0x13a8   :  { %15319 = vmatprep.subr.bf16.mxu1 %v18152_v51  ;;  %15347 = vmatprep.subr.bf16.mxu0 %v19711_v53  ;;  %16206 = vrcp.f32 %v7937_v2 }
0x13ab   :  { %15321 = vmatpush1.bf16.msra.mxu1 %v18159_v11  ;;  %15349 = vmatpush3.bf16.msra.mxu0 %v18145_v17 }
0x13ac   :  { %15323 = vmatprep.subr.bf16.mxu1 %v18162_v20  ;;  %15350 = vmatprep.subr.bf16.mxu0 %v19711_v53 }
0x13af   :  { %15325 = vmatpush1.bf16.msra.mxu1 %v18169_v18  ;;  %15352 = vmatpush3.bf16.msra.mxu0 %v18155_v42 }
0x13b0   :  { %15327 = vmatprep.subr.bf16.mxu1 %v18172_v52  ;;  %15353 = vmatprep.subr.bf16.mxu0 %v19711_v53 }
0x13b1   :  { %v16205_v58 = vpop.eup %16204 }
0x13b2   :  { %v7943_v48 = vmul.f32 %v16205_v58, %v7942_v22  ;;  %v16207_v33 = vpop.eup %16206 }
0x13b3   :  { %15329 = vmatpush1.bf16.msra.mxu1 %v18179_v24  ;;  %15355 = vmatpush3.bf16.msra.mxu0 %v18165_v26  ;;  %v7946_v61 = vsub.f32 1.0, %v16207_v33  ;;  %v7948_v44 = vmul.f32 %v16207_v33, %v18882_v43 }
0x13b4   :  { %v7944_v46 = vadd.f32 %v7943_v48, %v19999_v31  ;;  %15331 = vmatprep.subr.bf16.mxu1 %v18182_v9  ;;  %15356 = vmatprep.subr.bf16.mxu0 %v19711_v53 }
0x13b6   :  { %16208 = vtanh.f32 %v7944_v46  ;;  %v20012_v46 = vld [vmem:[#allocation48_spill] sm:$0xff] }
0x13b7   :  { %15333 = vmatpush1.bf16.msra.mxu1 %v18189_v28  ;;  %15358 = vmatpush3.bf16.msra.mxu0 %v18175_v55 }
0x13b8   :  { %15335 = vmatprep.subr.bf16.mxu1 %v18192_v21  ;;  %15359 = vmatprep.subr.bf16.mxu0 %v19711_v53 }
0x13bb   :  { %15337 = vmatpush1.bf16.msra.mxu1 %v18197_v54  ;;  %15361 = vmatpush3.bf16.msra.mxu0 %v18185_v29 }
0x13bc   :  { %15363 = vmatprep.subr.bf16.mxu0 %v17977_v19  ;;  %15394 = vmatprep.subr.bf16.mxu1 %v19711_v53  ;;  %v20000_v19 = vld [vmem:[#allocation73_spill] sm:$0xff] }
0x13c0   :  { %v16209_v36 = vpop.eup %16208 }
0x13c1   :  { %v7947_v56 = vmul.f32 %v16209_v36, %v7946_v61  ;;  %v20013_v36 = vld [vmem:[#allocation75_spill] sm:$0xff] }
0x13c3   :  { %v18971_v34 = vadd.f32 %v7948_v44, %v7947_v56  ;;  %v4774_v56 = vadd.f32 %v20013_v36, %v18284_v35  ;;  %v8678_v36 = vld [vmem:[%s20014_s14 + $0x48] sm:$0xff] }
0x13c5   :  { %8166 = vmatmul.mubr.f32.vlgmr.msra.gmra.mrb[76].mxu1 %v18971_v34  ;;  %12531 = vmatmul.mubr.f32.vlgmr.msra.gmra.mrb[96].mxu0 %v18971_v34 }
0x13c6   :  { %15365 = vmatpush1.bf16.msra.mxu0 %v17991_v47  ;;  %15396 = vmatpush3.bf16.msra.mxu1 %v17993_v49  ;;  %v20001_v47 = vld [vmem:[#allocation64_spill] sm:$0xff] }
0x13c7   :  { %15367 = vmatprep.subr.bf16.mxu0 %v17995_v57  ;;  %15397 = vmatprep.subr.bf16.mxu1 %v19711_v53  ;;  %v20002_v49 = vld [vmem:[#allocation72_spill] sm:$0xff]  ;;  %v20003_v57 = vld [vmem:[#allocation47_spill] sm:$0xff] }
0x13c8   :  { %8360 = vmatprep.mubr.f32.mxu0 %v19712_v62  ;;  %12565 = vmatprep.mubr.msk.f32.mxu1 %vm16515_vm0, %v19712_v62 }
0x13ca   :  { %15369 = vmatpush1.bf16.msra.mxu0 %v18001_v15  ;;  %15399 = vmatpush3.bf16.msra.mxu1 %v18005_v16  ;;  %v20004_v15 = vld [vmem:[#allocation50_spill] sm:$0xff] }
0x13cb   :  { %15371 = vmatprep.subr.bf16.mxu0 %v18009_v27  ;;  %15400 = vmatprep.subr.bf16.mxu1 %v19711_v53  ;;  %v20005_v16 = vld [vmem:[#allocation54_spill] sm:$0xff]  ;;  %v20006_v27 = vld [vmem:[#allocation56_spill] sm:$0xff] }
0x13ce   :  { %15373 = vmatpush1.bf16.msra.mxu0 %v18015_v50  ;;  %15402 = vmatpush3.bf16.msra.mxu1 %v18019_v5  ;;  %v20007_v50 = vld [vmem:[#allocation55_spill] sm:$0xff] }
0x13cf   :  { %15375 = vmatprep.subr.bf16.mxu0 %v18023_v25  ;;  %15403 = vmatprep.subr.bf16.mxu1 %v19711_v53  ;;  %v20008_v5 = vld [vmem:[#allocation79_spill] sm:$0xff] }
0x13d0   :  { %v20009_v25 = vld [vmem:[#allocation71_spill] sm:$0xff] }
0x13d2   :  { %15377 = vmatpush1.bf16.msra.mxu0 %v18030_v63  ;;  %15405 = vmatpush3.bf16.msra.mxu1 %v18038_v30  ;;  %v20010_v63 = vld [vmem:[#allocation66_spill] sm:$0xff] }
0x13d3   :  { %15379 = vmatprep.subr.bf16.mxu0 %v18034_v3  ;;  %15406 = vmatprep.subr.bf16.mxu1 %v19711_v53 }
0x13d6   :  { %15381 = vmatpush1.bf16.msra.mxu0 %v18047_v0  ;;  %15408 = vmatpush3.bf16.msra.mxu1 %v20000_v19 }
0x13d7   :  { %15383 = vmatprep.subr.bf16.mxu0 %v20001_v47  ;;  %15409 = vmatprep.subr.bf16.mxu1 %v19711_v53 }
0x13da   :  { %15385 = vmatpush1.bf16.msra.mxu0 %v20002_v49  ;;  %15411 = vmatpush3.bf16.msra.mxu1 %v20003_v57 }
0x13db   :  { %15387 = vmatprep.subr.bf16.mxu0 %v20004_v15  ;;  %15412 = vmatprep.subr.bf16.mxu1 %v19711_v53 }
0x13de   :  { %15389 = vmatpush1.bf16.msra.mxu0 %v20005_v16  ;;  %15414 = vmatpush3.bf16.msra.mxu1 %v20006_v27 }
0x13df   :  { %15391 = vmatprep.subr.bf16.mxu0 %v20007_v50  ;;  %15415 = vmatprep.subr.bf16.mxu1 %v19711_v53 }
0x13e2   :  { %15393 = vmatpush1.bf16.msra.mxu0 %v20008_v5  ;;  %15417 = vmatpush3.bf16.msra.mxu1 %v20009_v25 }
0x13e3   :  { %15419 = vmatprep.subr.bf16.mxu0 %v20010_v63  ;;  %15450 = vmatprep.subr.bf16.mxu1 %v19711_v53 }
0x1471   :  { %v8026_v3 = vpop.f32.mrb[66].mxu0  ;;  %v8097_v30 = vpop.f32.mrb[96].mxu1 }
0x1472   :  { %v15699_v0 = vadd.f32 %v8026_v3, %v19963_v8  ;;  %v8028_v1 = vpop.f32.mrb[67].mxu0  ;;  %v12497_v59 = vpop.f32.mrb[97].mxu1  ;;  %v8256_v33 = vadd.f32 %v20012_v46, %v8097_v30 }
0x1473   :  { %v15700_v39 = vadd.f32 %v8028_v1, %v20011_v41  ;;  %v8673_v1 = vld [vmem:[%s20014_s14 + $0x20] sm:$0xff]  ;;  %v8674_v59 = vld [vmem:[%s20014_s14 + $0x28] sm:$0xff] }
0x1474   :  { %v10039_v4 = vmul.f32 -1.442695, %v15699_v0  ;;  %v8658_v41 = vld [vmem:[%s20016_s30 + $0x28] sm:$0xff] }
0x1475   :  { %v10040_v2 = vmul.f32 -1.442695, %v15700_v39  ;;  %v15481_v39 = vpack.c.bf16 %v8674_v59, %v8673_v1  ;;  %v20024_v1 = vld [vmem:[#allocation81_spill] sm:$0xff]  ;;  %v20025_v59 = vld [vmem:[#allocation63_spill] sm:$0xff] }
0x1476   :  { %16210 = vpow2.f32 %v10039_v4  ;;  %v8657_v4 = vld [vmem:[%s20016_s30 + $0x20] sm:$0xff] }
0x1477   :  { %16212 = vpow2.f32 %v10040_v2  ;;  %v19084_v2 = vpack.c.bf16 %v8658_v41, %v8657_v4  ;;  %v9166_v41 = vld [vmem:[%s20017_s27 + $0x60] sm:$0xff] }
0x1480   :  { %v16211_v22 = vpop.eup %16210 }
0x1481   :  { %v8250_v58 = vadd.f32 1.0, %v16211_v22  ;;  %v16213_v48 = vpop.eup %16212  ;;  %v8675_v22 = vld [vmem:[%s20014_s14 + $0x30] sm:$0xff] }
0x1482   :  { %v8251_v31 = vadd.f32 1.0, %v16213_v48  ;;  %v8659_v48 = vld [vmem:[%s20016_s30 + $0x30] sm:$0xff] }
0x1483   :  { %16214 = vrcp.f32 %v8250_v58  ;;  %v8676_v58 = vld [vmem:[%s20014_s14 + $0x38] sm:$0xff] }
0x1484   :  { %16216 = vrcp.f32 %v8251_v31  ;;  %v8660_v31 = vld [vmem:[%s20016_s30 + $0x38] sm:$0xff]  ;;  %v15484_v46 = vpack.c.bf16 %v8676_v58, %v8675_v22  ;;  %v9168_v58 = vld [vmem:[%s20017_s27 + $0x70] sm:$0xff] }
0x148d   :  { %v16215_v61 = vpop.eup %16214 }
0x148e   :  { %v8257_v8 = vmul.f32 %v16215_v61, %v8256_v33  ;;  %v16217_v19 = vpop.eup %16216  ;;  %v19093_v33 = vpack.c.bf16 %v8660_v31, %v8659_v48  ;;  %v8677_v61 = vld [vmem:[%s20014_s14 + $0x40] sm:$0xff]  ;;  %v9169_v48 = vld [vmem:[%s20017_s27 + $0x78] sm:$0xff] }
0x148f   :  { %v8260_v50 = vsub.f32 1.0, %v16217_v19  ;;  %v8262_v35 = vmul.f32 %v16217_v19, %v18929_v45  ;;  %v20028_v31 = vld [vmem:[#allocation57_spill] sm:$0xff] }
0x1490   :  { %v8258_v44 = vadd.f32 %v8257_v8, %v4774_v56  ;;  %v8661_v56 = vld [vmem:[%s20016_s30 + $0x40] sm:$0xff]  ;;  %v8662_v8 = vld [vmem:[%s20016_s30 + $0x48] sm:$0xff] }
0x1491   :  { %v19102_v19 = vpack.c.bf16 %v8662_v8, %v8661_v56  ;;  %v9140_v56 = vld [vmem:[%s20027_s10 + $0x10] sm:$0xff]  ;;  %v9141_v8 = vld [vmem:[%s20027_s10 + $0x18] sm:$0xff] }
0x1492   :  { %16218 = vtanh.f32 %v8258_v44  ;;  %v15487_v44 = vpack.c.bf16 %v8678_v36, %v8677_v61  ;;  %v9139_v61 = vld [vmem:[%s20027_s10 + $0x8] sm:$0xff] }
0x1493   :  { %v20029_v36 = vld [vmem:[#allocation70_spill] sm:$0xff] }
0x1498   :  { %v8167_v47 = vpop.f32.mrb[76].mxu1  ;;  %v8238_v49 = vpop.f32.mrb[96].mxu0 }
0x1499   :  { %v15717_v57 = vadd.f32 %v8167_v47, %v18290_v14  ;;  %v8169_v15 = vpop.f32.mrb[77].mxu1  ;;  %v12532_v16 = vpop.f32.mrb[97].mxu0  ;;  %v8679_v47 = vld [vmem:[%s20014_s14 + $0x50] sm:$0xff] }
0x149a   :  { %v15718_v25 = vadd.f32 %v8169_v15, %v18293_v38  ;;  %v8656_v38 = vld [vmem:[%s20016_s30 + $0x18] sm:$0xff] }
0x149b   :  { %v10041_v27 = vmul.f32 -1.442695, %v15717_v57  ;;  %v8663_v57 = vld [vmem:[%s20016_s30 + $0x50] sm:$0xff]  ;;  %v8664_v15 = vld [vmem:[%s20016_s30 + $0x58] sm:$0xff] }
0x149c   :  { %v16219_v5 = vpop.eup %16218  ;;  %v10042_v30 = vmul.f32 -1.442695, %v15718_v25  ;;  %v8665_v25 = vld [vmem:[%s20016_s30 + $0x60] sm:$0xff] }
0x149d   :  { %16220 = vpow2.f32 %v10041_v27  ;;  %v8261_v63 = vmul.f32 %v16219_v5, %v8260_v50  ;;  %v19111_v27 = vpack.c.bf16 %v8664_v15, %v8663_v57  ;;  %v8681_v50 = vld [vmem:[%s20014_s14 + $0x60] sm:$0xff]  ;;  %v8682_v5 = vld [vmem:[%s20014_s14 + $0x68] sm:$0xff]  ;;  %v9144_v57 = vld [vmem:[%s20027_s10 + $0x30] sm:$0xff] }
0x149e   :  { %16222 = vpow2.f32 %v10042_v30  ;;  %v9145_v15 = vld [vmem:[%s20027_s10 + $0x38] sm:$0xff] }
0x149f   :  { %v19018_v3 = vadd.f32 %v8262_v35, %v8261_v63  ;;  %v8666_v63 = vld [vmem:[%s20016_s30 + $0x68] sm:$0xff]  ;;  %v15493_v35 = vpack.c.bf16 %v8682_v5, %v8681_v50 }
0x14a0   :  { %v19120_v30 = vpack.c.bf16 %v8666_v63, %v8665_v25  ;;  %v9147_v50 = vld [vmem:[%s20027_s10 + $0x48] sm:$0xff]  ;;  %v9148_v25 = vld [vmem:[%s20027_s10 + $0x50] sm:$0xff]  ;;  %v9149_v63 = vld [vmem:[%s20027_s10 + $0x58] sm:$0xff] }
0x14a1   :  { %8361 = vmatmul.mubr.f32.vlgmr.msra.gmra.mrb[98].mxu0 %v19018_v3  ;;  %12566 = vmatmul.mubr.f32.vlgmr.msra.gmra.mrb[98].mxu1 %v19018_v3 }
0x14a2   :  { %15421 = vmatpush1.bf16.msra.mxu0 %v18128_v6  ;;  %15452 = vmatpush3.bf16.msra.mxu1 %v18112_v40 }
0x14a3   :  { %15423 = vmatprep.subr.bf16.mxu0 %v18130_v7  ;;  %15453 = vmatprep.subr.bf16.mxu1 %v19711_v53  ;;  %v8278_v7 = vadd.f32 %v18685_v10, %v8238_v49  ;;  %v8680_v49 = vld [vmem:[%s20014_s14 + $0x58] sm:$0xff] }
0x14a4   :  { %8501 = vmatprep.mubr.f32.mxu0 %v19712_v62  ;;  %12600 = vmatprep.mubr.msk.f32.mxu1 %vm16515_vm0, %v19712_v62  ;;  %v15490_v16 = vpack.c.bf16 %v8680_v49, %v8679_v47  ;;  %v20030_v47 = vld [vmem:[#allocation62_spill] sm:$0xff] }
0x14a6   :  { %15425 = vmatpush1.bf16.msra.mxu0 %v18138_v23  ;;  %15455 = vmatpush3.bf16.msra.mxu1 %v18121_v12 }
0x14a7   :  { %v16221_v14 = vpop.eup %16220  ;;  %15427 = vmatprep.subr.bf16.mxu0 %v18142_v60  ;;  %15456 = vmatprep.subr.bf16.mxu1 %v19711_v53  ;;  %v20015_v60 = vld [vmem:[#allocation67_spill] sm:$0xff] }
0x14a8   :  { %v8272_v40 = vadd.f32 1.0, %v16221_v14  ;;  %v16223_v6 = vpop.eup %16222  ;;  %v8683_v14 = vld [vmem:[%s20014_s14 + $0x70] sm:$0xff] }
0x14a9   :  { %v8273_v12 = vadd.f32 1.0, %v16223_v6  ;;  %v8667_v6 = vld [vmem:[%s20016_s30 + $0x70] sm:$0xff] }
0x14aa   :  { %16224 = vrcp.f32 %v8272_v40  ;;  %15429 = vmatpush1.bf16.msra.mxu0 %v18149_v13  ;;  %15458 = vmatpush3.bf16.msra.mxu1 %v18133_v32  ;;  %v8684_v40 = vld [vmem:[%s20014_s14 + $0x78] sm:$0xff] }
0x14ab   :  { %15431 = vmatprep.subr.bf16.mxu0 %v18152_v51  ;;  %15459 = vmatprep.subr.bf16.mxu1 %v19711_v53  ;;  %16226 = vrcp.f32 %v8273_v12  ;;  %v8668_v12 = vld [vmem:[%s20016_s30 + $0x78] sm:$0xff] }
0x14ae   :  { %15433 = vmatpush1.bf16.msra.mxu0 %v18159_v11  ;;  %15461 = vmatpush3.bf16.msra.mxu1 %v18145_v17  ;;  %v8653_v11 = vld [vmem:[%s20016_s30] sm:$0xff] }
0x14af   :  { %15435 = vmatprep.subr.bf16.mxu0 %v18162_v20  ;;  %15462 = vmatprep.subr.bf16.mxu1 %v19711_v53  ;;  %v8654_v20 = vld [vmem:[%s20016_s30 + $0x8] sm:$0xff] }
0x14b2   :  { %15437 = vmatpush1.bf16.msra.mxu0 %v18169_v18  ;;  %15464 = vmatpush3.bf16.msra.mxu1 %v18155_v42  ;;  %v8670_v42 = vld [vmem:[%s20014_s14 + $0x8] sm:$0xff] }
0x14b3   :  { %15439 = vmatprep.subr.bf16.mxu0 %v18172_v52  ;;  %15465 = vmatprep.subr.bf16.mxu1 %v19711_v53 }
0x14b4   :  { %v16225_v32 = vpop.eup %16224 }
0x14b5   :  { %v8279_v23 = vmul.f32 %v16225_v32, %v8278_v7  ;;  %v16227_v13 = vpop.eup %16226  ;;  %v15496_v7 = vpack.c.bf16 %v8684_v40, %v8683_v14  ;;  %v19129_v32 = vpack.c.bf16 %v8668_v12, %v8667_v6  ;;  %v9151_v14 = vld [vmem:[%s20027_s10 + $0x68] sm:$0xff]  ;;  %v9152_v6 = vld [vmem:[%s20027_s10 + $0x70] sm:$0xff]  ;;  %v9153_v12 = vld [vmem:[%s20027_s10 + $0x78] sm:$0xff] }
0x14b6   :  { %15441 = vmatpush1.bf16.msra.mxu0 %v18179_v24  ;;  %15467 = vmatpush3.bf16.msra.mxu1 %v18165_v26  ;;  %v8282_v51 = vsub.f32 1.0, %v16227_v13  ;;  %v8284_v52 = vmul.f32 %v16227_v13, %v18971_v34  ;;  %v8671_v24 = vld [vmem:[%s20014_s14 + $0x10] sm:$0xff] }
0x14b7   :  { %v8280_v17 = vadd.f32 %v8279_v23, %v20015_v60  ;;  %15443 = vmatprep.subr.bf16.mxu0 %v18182_v9  ;;  %15468 = vmatprep.subr.bf16.mxu1 %v19711_v53  ;;  %v9154_v23 = vld [vmem:[%s20017_s27] sm:$0xff]  ;;  %v9155_v60 = vld [vmem:[%s20017_s27 + $0x8] sm:$0xff]  ;;  %v9156_v13 = vld [vmem:[%s20017_s27 + $0x10] sm:$0xff] }
0x14b9   :  { %16228 = vtanh.f32 %v8280_v17  ;;  %v15526_v17 = vpack.c.bf16 %v9155_v60, %v9154_v23  ;;  %v9582_v23 = vld [vmem:[%s20031_s29 + $0x8] sm:$0xff] }
0x14ba   :  { %15445 = vmatpush1.bf16.msra.mxu0 %v18189_v28  ;;  %15470 = vmatpush3.bf16.msra.mxu1 %v18175_v55  ;;  %v8669_v28 = vld [vmem:[%s20014_s14] sm:$0xff] }
0x14bb   :  { %15447 = vmatprep.subr.bf16.mxu0 %v18192_v21  ;;  %15471 = vmatprep.subr.bf16.mxu1 %v19711_v53  ;;  %v15475_v55 = vpack.c.bf16 %v8670_v42, %v8669_v28  ;;  %v8672_v21 = vld [vmem:[%s20014_s14 + $0x18] sm:$0xff] }
0x14bc   :  { %v15478_v10 = vpack.c.bf16 %v8672_v21, %v8671_v24  ;;  %v9157_v28 = vld [vmem:[%s20017_s27 + $0x18] sm:$0xff]  ;;  %v9162_v24 = vld [vmem:[%s20017_s27 + $0x40] sm:$0xff] }
0x14bd   :  { %v15529_v42 = vpack.c.bf16 %v9157_v28, %v9156_v13  ;;  %v20022_v21 = vld [vmem:[#allocation68_spill] sm:$0xff] }
0x14be   :  { %15449 = vmatpush1.bf16.msra.mxu0 %v18197_v54  ;;  %15473 = vmatpush3.bf16.msra.mxu1 %v18185_v29  ;;  %v19064_v29 = vpack.c.bf16 %v8654_v20, %v8653_v11  ;;  %v8655_v54 = vld [vmem:[%s20016_s30 + $0x10] sm:$0xff]  ;;  %v9158_v11 = vld [vmem:[%s20017_s27 + $0x20] sm:$0xff]  ;;  %v9159_v20 = vld [vmem:[%s20017_s27 + $0x28] sm:$0xff] }
0x14bf   :  { %15474 = vmatprep.subr.bf16.mxu0 %v19711_v53  ;;  %15627 = vmatprep.subr.bf16.mxu1 %v19711_v53  ;;  %v19071_v0 = vpack.c.bf16 %v8656_v38, %v8655_v54  ;;  %v20023_v54 = vld [vmem:[#allocation60_spill] sm:$0xff] }
0x14c0   :  { %v9584_v13 = vld [vmem:[%s20031_s29 + $0x18] sm:$0xff] }
0x14c3   :  { %v16229_v26 = vpop.eup %16228 }
0x14c4   :  { %v8283_v18 = vmul.f32 %v16229_v26, %v8282_v51  ;;  %v20018_v51 = vld [vmem:[#allocation74_spill] sm:$0xff]  ;;  %v15532_v26 = vpack.c.bf16 %v9159_v20, %v9158_v11 }
0x14c5   :  { %v9586_v11 = vld [vmem:[%s20031_s29 + $0x28] sm:$0xff] }
0x14c6   :  { %v8285_v9 = vadd.f32 %v8284_v52, %v8283_v18  ;;  %v9160_v18 = vld [vmem:[%s20017_s27 + $0x30] sm:$0xff]  ;;  %v9161_v52 = vld [vmem:[%s20017_s27 + $0x38] sm:$0xff] }
0x14c8   :  { %8502 = vmatmul.mubr.f32.vlgmr.msra.gmra.mrb[100].mxu0 %v8285_v9  ;;  %12601 = vmatmul.mubr.f32.vlgmr.msra.gmra.mrb[100].mxu1 %v8285_v9  ;;  %v9163_v9 = vld [vmem:[%s20017_s27 + $0x48] sm:$0xff] }
0x14c9   :  { %15476 = vmatpush3.bf16.msra.mxu0 %v15475_v55  ;;  %15635 = vmatpush3.bf16.msra.mxu1 %v19064_v29  ;;  %v20021_v55 = vld [vmem:[#allocation78_spill] sm:$0xff]  ;;  %v15538_v38 = vpack.c.bf16 %v9163_v9, %v9162_v24  ;;  %v9591_v9 = vld [vmem:[%s20031_s29 + $0x50] sm:$0xff] }
0x14ca   :  { %15477 = vmatprep.subr.bf16.mxu0 %v19711_v53  ;;  %15628 = vmatprep.subr.bf16.mxu1 %v19711_v53 }
0x14cb   :  { %12635 = vmatprep.mubr.msk.f32.mxu0 %vm16515_vm0, %v19712_v62  ;;  %12697 = vmatprep.mubr.msk.f32.mxu1 %vm16515_vm0, %v19712_v62 }
0x14cd   :  { %15479 = vmatpush3.bf16.msra.mxu0 %v15478_v10  ;;  %15636 = vmatpush3.bf16.msra.mxu1 %v19071_v0  ;;  %v9164_v10 = vld [vmem:[%s20017_s27 + $0x50] sm:$0xff] }
0x14ce   :  { %15480 = vmatprep.subr.bf16.mxu0 %v19711_v53  ;;  %15629 = vmatprep.subr.bf16.mxu1 %v19711_v53 }
0x14d1   :  { %15482 = vmatpush3.bf16.msra.mxu0 %v15481_v39  ;;  %15637 = vmatpush3.bf16.msra.mxu1 %v19084_v2  ;;  %v9167_v39 = vld [vmem:[%s20017_s27 + $0x68] sm:$0xff] }
0x14d2   :  { %15483 = vmatprep.subr.bf16.mxu0 %v19711_v53  ;;  %15630 = vmatprep.subr.bf16.mxu1 %v19711_v53  ;;  %v15544_v22 = vpack.c.bf16 %v9167_v39, %v9166_v41 }
0x14d5   :  { %15485 = vmatpush3.bf16.msra.mxu0 %v15484_v46  ;;  %15638 = vmatpush3.bf16.msra.mxu1 %v19093_v33  ;;  %v15547_v46 = vpack.c.bf16 %v9169_v48, %v9168_v58 }
0x14d6   :  { %15486 = vmatprep.subr.bf16.mxu0 %v19711_v53  ;;  %15631 = vmatprep.subr.bf16.mxu1 %v19711_v53 }
0x14d9   :  { %15488 = vmatpush3.bf16.msra.mxu0 %v15487_v44  ;;  %15639 = vmatpush3.bf16.msra.mxu1 %v19102_v19  ;;  %v9142_v44 = vld [vmem:[%s20027_s10 + $0x20] sm:$0xff] }
0x14da   :  { %15489 = vmatprep.subr.bf16.mxu0 %v19711_v53  ;;  %15632 = vmatprep.subr.bf16.mxu1 %v19711_v53 }
0x14dd   :  { %15491 = vmatpush3.bf16.msra.mxu0 %v15490_v16  ;;  %15640 = vmatpush3.bf16.msra.mxu1 %v19111_v27  ;;  %v15559_v16 = vpack.c.bf16 %v9145_v15, %v9144_v57 }
0x14de   :  { %15492 = vmatprep.subr.bf16.mxu0 %v19711_v53  ;;  %15633 = vmatprep.subr.bf16.mxu1 %v19711_v53 }
0x14e1   :  { %15494 = vmatpush3.bf16.msra.mxu0 %v15493_v35  ;;  %15641 = vmatpush3.bf16.msra.mxu1 %v19120_v30  ;;  %v15565_v35 = vpack.c.bf16 %v9149_v63, %v9148_v25 }
0x14e2   :  { %15495 = vmatprep.subr.bf16.mxu0 %v19711_v53  ;;  %15634 = vmatprep.subr.bf16.mxu1 %v19711_v53 }
0x14e5   :  { %15497 = vmatpush3.bf16.msra.mxu0 %v15496_v7  ;;  %15642 = vmatpush3.bf16.msra.mxu1 %v19129_v32  ;;  %v15571_v7 = vpack.c.bf16 %v9153_v12, %v9152_v6 }
0x14e6   :  { %15498 = vmatprep.subr.bf16.mxu0 %v19711_v53  ;;  %15525 = vmatprep.subr.bf16.mxu1 %v19711_v53 }
0x14e8   :  { %12636 = vmatmul.mubr.f32.vlgmr.msra.gmra.mrb[102].mxu0 %v18971_v34  ;;  %12698 = vmatmul.mubr.f32.vlgmr.msra.gmra.mrb[102].mxu1 %v20018_v51  ;;  %v20019_v34 = vld [vmem:[#allocation76_spill] sm:$0xff] }
0x14e9   :  { %15500 = vmatpush3.bf16.msra.mxu0 %v19064_v29  ;;  %15527 = vmatpush3.bf16.msra.mxu1 %v15526_v17  ;;  %v15535_v29 = vpack.c.bf16 %v9161_v52, %v9160_v18  ;;  %v9583_v17 = vld [vmem:[%s20031_s29 + $0x10] sm:$0xff]  ;;  %v9588_v18 = vld [vmem:[%s20031_s29 + $0x38] sm:$0xff] }
0x14ea   :  { %12638 = vmatprep.mubr.msk.f32.mxu0 %vm16515_vm0, %v19712_v62  ;;  %12700 = vmatprep.mubr.msk.f32.mxu1 %vm16515_vm0, %v19712_v62  ;;  %v15580_v28 = vpack.c.bf16 %v9584_v13, %v9583_v17 }
0x14eb   :  { %15528 = vmatprep.subr.bf16.mxu1 %v19711_v53  ;;  %15501 = vmatprep.subr.bf16.mxu0 %v19711_v53 }
0x14ec   :  { %12639 = vmatmul.mubr.f32.gmra.mrb[104].mxu0 %v18882_v43  ;;  %12701 = vmatmul.mubr.f32.gmra.mrb[104].mxu1 %v20019_v34  ;;  %v20020_v43 = vld [vmem:[#allocation58_spill] sm:$0xff] }
0x14ed   :  { %15530 = vmatpush3.bf16.msra.mxu1 %v15529_v42  ;;  %15503 = vmatpush3.bf16.msra.mxu0 %v19071_v0  ;;  %v9165_v0 = vld [vmem:[%s20017_s27 + $0x58] sm:$0xff]  ;;  %v9585_v42 = vld [vmem:[%s20031_s29 + $0x20] sm:$0xff] }
0x14ee   :  { %12641 = vmatprep.mubr.msk.f32.mxu0 %vm16515_vm0, %v19712_v62  ;;  %12703 = vmatprep.mubr.msk.f32.mxu1 %vm16515_vm0, %v19712_v62  ;;  %v15541_v4 = vpack.c.bf16 %v9165_v0, %v9164_v10  ;;  %v15583_v20 = vpack.c.bf16 %v9586_v11, %v9585_v42  ;;  %v9594_v10 = vld [vmem:[%s20031_s29 + $0x68] sm:$0xff] }
0x14ef   :  { %15531 = vmatprep.subr.bf16.mxu1 %v19711_v53  ;;  %15504 = vmatprep.subr.bf16.mxu0 %v19711_v53 }
0x14f0   :  { %12642 = vmatmul.mubr.f32.gmra.mrb[106].mxu0 %v20020_v43  ;;  %12704 = vmatmul.mubr.f32.gmra.mrb[106].mxu1 %v20021_v55 }
0x14f1   :  { %15533 = vmatpush3.bf16.msra.mxu1 %v15532_v26  ;;  %15506 = vmatpush3.bf16.msra.mxu0 %v19084_v2  ;;  %v20026_v2 = vld [vmem:[#allocation77_spill] sm:$0xff]  ;;  %v9587_v26 = vld [vmem:[%s20031_s29 + $0x30] sm:$0xff] }
0x14f2   :  { %12644 = vmatprep.mubr.msk.f32.mxu0 %vm16515_vm0, %v19712_v62  ;;  %12706 = vmatprep.mubr.msk.f32.mxu1 %vm16515_vm0, %v19712_v62  ;;  %v15586_v52 = vpack.c.bf16 %v9588_v18, %v9587_v26 }
0x14f3   :  { %15534 = vmatprep.subr.bf16.mxu1 %v19711_v53  ;;  %15507 = vmatprep.subr.bf16.mxu0 %v19711_v53 }
0x14f4   :  { %12645 = vmatmul.mubr.f32.gmra.mrb[108].mxu0 %v20022_v21  ;;  %12707 = vmatmul.mubr.f32.gmra.mrb[108].mxu1 %v20023_v54 }
0x14f5   :  { %15536 = vmatpush3.bf16.msra.mxu1 %v15535_v29  ;;  %12647 = vmatprep.mubr.msk.f32.mxu0 %vm16515_vm0, %v19712_v62  ;;  %v9590_v29 = vld [vmem:[%s20031_s29 + $0x48] sm:$0xff] }
0x14f6   :  { %15509 = vmatpush3.bf16.msra.mxu0 %v19093_v33  ;;  %12709 = vmatprep.mubr.msk.f32.mxu1 %vm16515_vm0, %v19712_v62  ;;  %v9138_v33 = vld [vmem:[%s20027_s10] sm:$0xff] }
0x14f7   :  { %15537 = vmatprep.subr.bf16.mxu1 %v19711_v53  ;;  %15510 = vmatprep.subr.bf16.mxu0 %v19711_v53 }
0x14f8   :  { %12648 = vmatmul.mubr.f32.gmra.mrb[110].mxu0 %v20024_v1  ;;  %12710 = vmatmul.mubr.f32.gmra.mrb[110].mxu1 %v20025_v59 }
0x14f9   :  { %15539 = vmatpush3.bf16.msra.mxu1 %v15538_v38  ;;  %12650 = vmatprep.mubr.msk.f32.mxu0 %vm16515_vm0, %v19712_v62 }
0x14fa   :  { %15512 = vmatpush3.bf16.msra.mxu0 %v19102_v19  ;;  %12712 = vmatprep.mubr.msk.f32.mxu1 %vm16515_vm0, %v19712_v62  ;;  %v9143_v19 = vld [vmem:[%s20027_s10 + $0x28] sm:$0xff] }
0x14fb   :  { %15540 = vmatprep.subr.bf16.mxu1 %v19711_v53  ;;  %15513 = vmatprep.subr.bf16.mxu0 %v19711_v53  ;;  %v15556_v49 = vpack.c.bf16 %v9143_v19, %v9142_v44 }
0x14fc   :  { %12651 = vmatmul.mubr.f32.gmra.mrb[112].mxu0 %v20026_v2  ;;  %12713 = vmatmul.mubr.f32.gmra.mrb[112].mxu1 %v18840_v37 }
0x14fd   :  { %15542 = vmatpush3.bf16.msra.mxu1 %v15541_v4  ;;  %12653 = vmatprep.mubr.msk.f32.mxu0 %vm16515_vm0, %v19712_v62 }
0x14fe   :  { %12715 = vmatprep.mubr.msk.f32.mxu1 %vm16515_vm0, %v19712_v62  ;;  %15515 = vmatpush3.bf16.msra.mxu0 %v19111_v27  ;;  %v9146_v27 = vld [vmem:[%s20027_s10 + $0x40] sm:$0xff] }
0x14ff   :  { %15543 = vmatprep.subr.bf16.mxu1 %v19711_v53  ;;  %15516 = vmatprep.subr.bf16.mxu0 %v19711_v53  ;;  %v15562_v5 = vpack.c.bf16 %v9147_v50, %v9146_v27 }
0x1500   :  { %12654 = vmatmul.mubr.f32.gmra.mrb[114].mxu0 %v20028_v31  ;;  %12716 = vmatmul.mubr.f32.gmra.mrb[114].mxu1 %v18929_v45  ;;  %v15550_v45 = vpack.c.bf16 %v9139_v61, %v9138_v33 }
0x1501   :  { %15545 = vmatpush3.bf16.msra.mxu1 %v15544_v22  ;;  %12656 = vmatprep.mubr.msk.f32.mxu0 %vm16515_vm0, %v19712_v62 }
0x1502   :  { %12718 = vmatprep.mubr.msk.f32.mxu1 %vm16515_vm0, %v19712_v62  ;;  %15518 = vmatpush3.bf16.msra.mxu0 %v19120_v30  ;;  %v9150_v30 = vld [vmem:[%s20027_s10 + $0x60] sm:$0xff] }
0x1503   :  { %15546 = vmatprep.subr.bf16.mxu1 %v19711_v53  ;;  %15519 = vmatprep.subr.bf16.mxu0 %v19711_v53  ;;  %v15568_v40 = vpack.c.bf16 %v9151_v14, %v9150_v30 }
0x1504   :  { %12657 = vmatmul.mubr.f32.gmra.mrb[116].mxu0 %v20029_v36  ;;  %12719 = vmatmul.mubr.f32.gmra.mrb[116].mxu1 %v19018_v3  ;;  %v15553_v3 = vpack.c.bf16 %v9141_v8, %v9140_v56 }
0x1505   :  { %15548 = vmatpush3.bf16.msra.mxu1 %v15547_v46  ;;  %12659 = vmatprep.mubr.msk.f32.mxu0 %vm16515_vm0, %v19712_v62 }
0x1506   :  { %12784 = vmatprep.mubr.msk.f32.mxu1 %vm16515_vm0, %v19712_v62  ;;  %15549 = vmatprep.subr.bf16.mxu1 %v19711_v53 }
0x1507   :  { %15521 = vmatpush3.bf16.msra.mxu0 %v19129_v32  ;;  %v9581_v32 = vld [vmem:[%s20031_s29] sm:$0xff] }
0x1508   :  { %12660 = vmatmul.mubr.f32.gmra.mrb[118].mxu0 %v19712_v62  ;;  %12785 = vmatmul.mubr.f32.vlgmr.msra.gmra.mrb[118].mxu1 %v20020_v43  ;;  %v15577_v60 = vpack.c.bf16 %v9582_v23, %v9581_v32  ;;  %v9589_v43 = vld [vmem:[%s20031_s29 + $0x40] sm:$0xff] }
0x1509   :  { %15551 = vmatpush3.bf16.msra.mxu1 %v15550_v45  ;;  %12694 = vmatprep.mubr.msk.f32.mxu0 %vm16515_vm0, %v19712_v62  ;;  %v15589_v24 = vpack.c.bf16 %v9590_v29, %v9589_v43 }
0x150a   :  { %12787 = vmatprep.mubr.msk.f32.mxu1 %vm16515_vm0, %v19712_v62  ;;  %15552 = vmatprep.subr.bf16.mxu1 %v19711_v53 }
0x150b   :  { %15522 = vmatprep.subr.bf16.mxu0 %v19711_v53 }
0x150c   :  { %12695 = vmatmul.mubr.f32.vlgmr.msra.gmra.mrb[120].mxu0 %v20030_v47  ;;  %12788 = vmatmul.mubr.f32.gmra.mrb[120].mxu1 %v20022_v21  ;;  %v9592_v21 = vld [vmem:[%s20031_s29 + $0x58] sm:$0xff] }
0x150d   :  { %15554 = vmatpush3.bf16.msra.mxu1 %v15553_v3  ;;  %12790 = vmatprep.mubr.msk.f32.mxu1 %vm16515_vm0, %v19712_v62  ;;  %v15592_v38 = vpack.c.bf16 %v9592_v21, %v9591_v9 }
0x150e   :  { %15555 = vmatprep.subr.bf16.mxu1 %v19711_v53  ;;  %12725 = vmatprep.mubr.msk.f32.mxu0 %vm16515_vm0, %v19712_v62 }
0x1510   :  { %12791 = vmatmul.mubr.f32.gmra.mrb[122].mxu1 %v20024_v1  ;;  %v9596_v1 = vld [vmem:[%s20031_s29 + $0x78] sm:$0xff] }
0x1511   :  { %15557 = vmatpush3.bf16.msra.mxu1 %v15556_v49  ;;  %12793 = vmatprep.mubr.msk.f32.mxu1 %vm16515_vm0, %v19712_v62 }
0x1512   :  { %15558 = vmatprep.subr.bf16.mxu1 %v19711_v53 }
0x1514   :  { %12794 = vmatmul.mubr.f32.gmra.mrb[124].mxu1 %v20026_v2 }
0x1515   :  { %15560 = vmatpush3.bf16.msra.mxu1 %v15559_v16  ;;  %12796 = vmatprep.mubr.msk.f32.mxu1 %vm16515_vm0, %v19712_v62 }
0x1516   :  { %15561 = vmatprep.subr.bf16.mxu1 %v19711_v53 }
0x1518   :  { %12797 = vmatmul.mubr.f32.gmra.mrb[126].mxu1 %v20028_v31 }
0x1519   :  { %15563 = vmatpush3.bf16.msra.mxu1 %v15562_v5  ;;  %12799 = vmatprep.mubr.msk.f32.mxu1 %vm16515_vm0, %v19712_v62 }
0x151a   :  { %15564 = vmatprep.subr.bf16.mxu1 %v19711_v53 }
0x151c   :  { %12800 = vmatmul.mubr.f32.gmra.mrb[128].mxu1 %v20029_v36 }
0x151d   :  { %15566 = vmatpush3.bf16.msra.mxu1 %v15565_v35  ;;  %12802 = vmatprep.mubr.msk.f32.mxu1 %vm16515_vm0, %v19712_v62 }
0x151e   :  { %15567 = vmatprep.subr.bf16.mxu1 %v19711_v53 }
0x1520   :  { %12803 = vmatmul.mubr.f32.gmra.mrb[130].mxu1 %v19712_v62 }
0x1521   :  { %15569 = vmatpush3.bf16.msra.mxu1 %v15568_v40  ;;  %12837 = vmatprep.mubr.msk.f32.mxu1 %vm16515_vm0, %v19712_v62 }
0x1522   :  { %15570 = vmatprep.subr.bf16.mxu1 %v19711_v53 }
0x1525   :  { %15572 = vmatpush3.bf16.msra.mxu1 %v15571_v7 }
0x1526   :  { %15576 = vmatprep.subr.bf16.mxu1 %v19711_v53 }
0x1528   :  { %12838 = vmatmul.mubr.f32.vlgmr.msra.gmra.mrb[132].mxu1 %v20030_v47 }
0x1529   :  { %15578 = vmatpush3.bf16.msra.mxu1 %v15577_v60  ;;  %12840 = vmatprep.mubr.msk.f32.mxu1 %vm16515_vm0, %v19712_v62 }
0x152a   :  { %15579 = vmatprep.subr.bf16.mxu1 %v19711_v53 }
0x152c   :  { %12841 = vmatmul.mubr.f32.gmra.mrb[134].mxu1 %v20018_v51 }
0x152d   :  { %15581 = vmatpush3.bf16.msra.mxu1 %v15580_v28  ;;  %12843 = vmatprep.mubr.msk.f32.mxu1 %vm16515_vm0, %v19712_v62 }
0x152e   :  { %15582 = vmatprep.subr.bf16.mxu1 %v19711_v53 }
0x1530   :  { %12844 = vmatmul.mubr.f32.gmra.mrb[136].mxu1 %v20019_v34 }
0x1531   :  { %15584 = vmatpush3.bf16.msra.mxu1 %v15583_v20  ;;  %12846 = vmatprep.mubr.msk.f32.mxu1 %vm16515_vm0, %v19712_v62 }
0x1532   :  { %15585 = vmatprep.subr.bf16.mxu1 %v19711_v53 }
0x1534   :  { %12847 = vmatmul.mubr.f32.gmra.mrb[138].mxu1 %v20021_v55  ;;  %v9593_v55 = vld [vmem:[%s20031_s29 + $0x60] sm:$0xff] }
0x1535   :  { %15587 = vmatpush3.bf16.msra.mxu1 %v15586_v52  ;;  %12849 = vmatprep.mubr.msk.f32.mxu1 %vm16515_vm0, %v19712_v62  ;;  %v15595_v0 = vpack.c.bf16 %v9594_v10, %v9593_v55 }
0x1536   :  { %15588 = vmatprep.subr.bf16.mxu1 %v19711_v53 }
0x1538   :  { %12850 = vmatmul.mubr.f32.gmra.mrb[140].mxu1 %v20023_v54  ;;  %v9595_v54 = vld [vmem:[%s20031_s29 + $0x70] sm:$0xff] }
0x1539   :  { %15590 = vmatpush3.bf16.msra.mxu1 %v15589_v24  ;;  %12852 = vmatprep.mubr.msk.f32.mxu1 %vm16515_vm0, %v19712_v62  ;;  %v15598_v4 = vpack.c.bf16 %v9596_v1, %v9595_v54 }
0x153a   :  { %15591 = vmatprep.subr.bf16.mxu1 %v19711_v53 }
0x153c   :  { %12853 = vmatmul.mubr.f32.gmra.mrb[142].mxu1 %v20025_v59  ;;  %v8931_v59 = vld [vmem:[%s20032_s28 + $0x8] sm:$0xff] }
0x153d   :  { %15593 = vmatpush3.bf16.msra.mxu1 %v15592_v38  ;;  %12855 = vmatprep.mubr.msk.f32.mxu1 %vm16515_vm0, %v19712_v62 }
0x153e   :  { %15594 = vmatprep.subr.bf16.mxu1 %v19711_v53 }
0x1540   :  { %12856 = vmatmul.mubr.f32.gmra.mrb[144].mxu1 %v18840_v37  ;;  %v8930_v37 = vld [vmem:[%s20032_s28] sm:$0xff] }
0x1541   :  { %15596 = vmatpush3.bf16.msra.mxu1 %v15595_v0  ;;  %12915 = vmatprep.mubr.msk.f32.mxu1 %vm16515_vm0, %v19712_v62  ;;  %v15523_v41 = vpack.c.bf16 %v8931_v59, %v8930_v37  ;;  %v9391_v59 = vld [vmem:[%s20033_s20] sm:$0xff] }
0x1542   :  { %15597 = vmatprep.subr.bf16.mxu1 %v19711_v53 }
0x1543   :  { %15524 = vmatpush3.bf16.msra.mxu0 %v15523_v41  ;;  %v9392_v41 = vld [vmem:[%s20033_s20 + $0x8] sm:$0xff] }
0x1544   :  { %15573 = vmatprep.subr.bf16.mxu0 %v19711_v53 }
0x1545   :  { %15599 = vmatpush3.bf16.msra.mxu1 %v15598_v4 }
0x1546   :  { %15624 = vmatprep.subr.bf16.mxu1 %v19711_v53 }
0x1548   :  { %12916 = vmatmul.mubr.f32.vlgmr.msra.gmra.mrb[146].mxu1 %v20028_v31 }
0x1549   :  { %12918 = vmatprep.mubr.msk.f32.mxu1 %vm16515_vm0, %v19712_v62 }
0x154c   :  { %12919 = vmatmul.mubr.f32.gmra.mrb[148].mxu1 %v20029_v36 }
0x154d   :  { %12921 = vmatprep.mubr.msk.f32.mxu1 %vm16515_vm0, %v19712_v62 }
0x1550   :  { %12922 = vmatmul.mubr.f32.gmra.mrb[150].mxu1 %v19712_v62 }
0x1551   :  { %12969 = vmatprep.mubr.msk.f32.mxu1 %vm16515_vm0, %v19712_v62 }
0x1574   :  { %v8362_v39 = vpop.f32.mrb[98].mxu0  ;;  %v8433_v2 = vpop.f32.mrb[98].mxu1 }
0x1575   :  { %v8364_v22 = vpop.f32.mrb[99].mxu0  ;;  %v12567_v58 = vpop.f32.mrb[99].mxu1  ;;  %v10047_v39 = vld [vmem:[%s20034_s1] ss:$0 sm:$0xff] }
0x1576   :  { %v15574_v58 = vpack.c.bf16 %v9392_v41, %v9391_v59  ;;  %v9569_v59 = vld [vmem:[%s20036_s7 + $0x20] sm:$0xff]  ;;  %v9570_v41 = vld [vmem:[%s20036_s7 + $0x28] sm:$0xff] }
0x159b   :  { %v8503_v48 = vpop.f32.mrb[100].mxu0  ;;  %v8574_v31 = vpop.f32.mrb[100].mxu1 }
0x159c   :  { %v8505_v46 = vpop.f32.mrb[101].mxu0  ;;  %v12602_v33 = vpop.f32.mrb[101].mxu1 }
0x15bb   :  { %v8751_v61 = vpop.f32.mrb[102].mxu0  ;;  %v8866_v36 = vpop.f32.mrb[102].mxu1 }
0x15bc   :  { %v12637_v45 = vpop.f32.mrb[103].mxu0  ;;  %v12699_v56 = vpop.f32.mrb[103].mxu1 }
0x15bf   :  { %v8756_v8 = vpop.f32.mrb[104].mxu0  ;;  %v8871_v3 = vpop.f32.mrb[104].mxu1 }
0x15c0   :  { %v8867_v44 = vadd.f32 %v8866_v36, %v8756_v8  ;;  %v12640_v19 = vpop.f32.mrb[105].mxu0  ;;  %v12702_v49 = vpop.f32.mrb[105].mxu1 }
0x15c2   :  { %v8913_v48 = vadd.f32 %v10047_v39, %v8867_v44 }
0x15c3   :  { %v8761_v57 = vpop.f32.mrb[106].mxu0  ;;  %v8876_v15 = vpop.f32.mrb[106].mxu1 }
0x15c4   :  { %v8872_v16 = vadd.f32 %v8871_v3, %v8761_v57  ;;  %v12643_v27 = vpop.f32.mrb[107].mxu0  ;;  %v12705_v50 = vpop.f32.mrb[107].mxu1 }
0x15c6   :  { %v8914_v36 = vadd.f32 %v10047_v39, %v8872_v16 }
0x15c7   :  { %v8766_v5 = vpop.f32.mrb[108].mxu0  ;;  %v8881_v25 = vpop.f32.mrb[108].mxu1 }
0x15c8   :  { %v8877_v63 = vadd.f32 %v8876_v15, %v8766_v5  ;;  %v12646_v35 = vpop.f32.mrb[109].mxu0  ;;  %v12708_v30 = vpop.f32.mrb[109].mxu1  ;;  %v8923_v8 = vmax.f32 %v8914_v36, 0.0 }
0x15ca   :  { %v8915_v3 = vadd.f32 %v10047_v39, %v8877_v63 }
0x15cb   :  { %v8771_v14 = vpop.f32.mrb[110].mxu0  ;;  %v8886_v40 = vpop.f32.mrb[110].mxu1 }
0x15cc   :  { %v8882_v6 = vadd.f32 %v8881_v25, %v8771_v14  ;;  %v12649_v12 = vpop.f32.mrb[111].mxu0  ;;  %v12711_v7 = vpop.f32.mrb[111].mxu1  ;;  %v8924_v49 = vmax.f32 %v8915_v3, 0.0 }
0x15ce   :  { %v8916_v57 = vadd.f32 %v10047_v39, %v8882_v6 }
0x15cf   :  { %v8776_v32 = vpop.f32.mrb[112].mxu0  ;;  %v8891_v23 = vpop.f32.mrb[112].mxu1 }
0x15d0   :  { %v8887_v60 = vadd.f32 %v8886_v40, %v8776_v32  ;;  %v12652_v17 = vpop.f32.mrb[113].mxu0  ;;  %v12714_v13 = vpop.f32.mrb[113].mxu1  ;;  %v8925_v27 = vmax.f32 %v8916_v57, 0.0 }
0x15d1   :  { %v19362_v17 = vld [vmem:[%s20035_s2] ss:$0 sm:$0xff] }
0x15d2   :  { %v8917_v50 = vadd.f32 %v10047_v39, %v8887_v60 }
0x15d3   :  { %v8781_v28 = vpop.f32.mrb[114].mxu0  ;;  %v8896_v42 = vpop.f32.mrb[114].mxu1 }
0x15d4   :  { %v8892_v11 = vadd.f32 %v8891_v23, %v8781_v28  ;;  %v12655_v20 = vpop.f32.mrb[115].mxu0  ;;  %v12717_v26 = vpop.f32.mrb[115].mxu1  ;;  %v8926_v25 = vmax.f32 %v8917_v50, 0.0 }
0x15d5   :  { %v9565_v26 = vld [vmem:[%s20036_s7] sm:$0xff] }
0x15d6   :  { %v8918_v63 = vadd.f32 %v10047_v39, %v8892_v11 }
0x15d7   :  { %v8786_v18 = vpop.f32.mrb[116].mxu0  ;;  %v8901_v52 = vpop.f32.mrb[116].mxu1 }
0x15d8   :  { %v8897_v43 = vadd.f32 %v8896_v42, %v8786_v18  ;;  %v12658_v29 = vpop.f32.mrb[117].mxu0  ;;  %v12720_v24 = vpop.f32.mrb[117].mxu1  ;;  %v8927_v30 = vmax.f32 %v8918_v63, 0.0  ;;  %v9566_v18 = vld [vmem:[%s20036_s7 + $0x8] sm:$0xff] }
0x15da   :  { %v8919_v14 = vadd.f32 %v10047_v39, %v8897_v43  ;;  %v15601_v43 = vpack.c.bf16 %v9566_v18, %v9565_v26 }
0x15db   :  { %v8791_v9 = vpop.f32.mrb[118].mxu0  ;;  %v9236_v21 = vpop.f32.mrb[118].mxu1 }
0x15dc   :  { %v8902_v38 = vadd.f32 %v8901_v52, %v8791_v9  ;;  %v12661_v55 = vpop.f32.mrb[119].mxu0  ;;  %v12786_v10 = vpop.f32.mrb[119].mxu1  ;;  %v8928_v7 = vmax.f32 %v8919_v14, 0.0  ;;  %v9578_v14 = vld [vmem:[%s20036_s7 + $0x68] sm:$0xff] }
0x15dd   :  { %v9568_v55 = vld [vmem:[%s20036_s7 + $0x18] sm:$0xff] }
0x15de   :  { %v8920_v32 = vadd.f32 %v10047_v39, %v8902_v38  ;;  %v9567_v38 = vld [vmem:[%s20036_s7 + $0x10] sm:$0xff] }
0x15df   :  { %v8861_v0 = vpop.f32.mrb[120].mxu0  ;;  %v9241_v54 = vpop.f32.mrb[120].mxu1 }
0x15e0   :  { %v8862_v1 = vadd.f32 %v8861_v0, %v8751_v61  ;;  %v12696_v4 = vpop.f32.mrb[121].mxu0  ;;  %v12789_v37 = vpop.f32.mrb[121].mxu1  ;;  %v8922_v61 = vmax.f32 %v8913_v48, 0.0  ;;  %v8929_v28 = vmax.f32 %v8920_v32, 0.0  ;;  %v15604_v0 = vpack.c.bf16 %v9568_v55, %v9567_v38  ;;  %v9579_v32 = vld [vmem:[%s20036_s7 + $0x70] sm:$0xff] }
0x15e2   :  { %v8912_v2 = vadd.f32 %v10047_v39, %v8862_v1 }
0x15e3   :  { %v9246_v22 = vpop.f32.mrb[122].mxu1 }
0x15e4   :  { %v8921_v31 = vmax.f32 %v8912_v2, 0.0  ;;  %v12792_v46 = vpop.f32.mrb[123].mxu1  ;;  %v15607_v2 = vpack.c.bf16 %v9570_v41, %v9569_v59  ;;  %v19456_v59 = vld [vmem:[%s20038_s15 + $0x20] sm:$0xff] }
0x15e5   :  { %v9571_v46 = vld [vmem:[%s20036_s7 + $0x30] sm:$0xff] }
0x15e6   :  { %12726 = vmatmul.mubr.msk.f32.vlgmr.msra.gmra.mrb[122].mxu0 %vm8939_vm1, %v8921_v31 }
0x15e7   :  { %v9251_v33 = vpop.f32.mrb[124].mxu1  ;;  %15575 = vmatpush3.bf16.msra.mxu0 %v15574_v58  ;;  %12728 = vmatprep.mubr.msk.f32.mxu0 %vm16515_vm0, %v19712_v62 }
0x15e8   :  { %v12795_v45 = vpop.f32.mrb[125].mxu1  ;;  %15600 = vmatprep.subr.bf16.mxu0 %v19711_v53 }
0x15ea   :  { %12729 = vmatmul.mubr.msk.f32.gmra.mrb[124].mxu0 %vm8939_vm1, %v8922_v61 }
0x15eb   :  { %v9256_v56 = vpop.f32.mrb[126].mxu1  ;;  %12731 = vmatprep.mubr.msk.f32.mxu0 %vm16515_vm0, %v19712_v62 }
0x15ec   :  { %v12798_v44 = vpop.f32.mrb[127].mxu1 }
0x15ed   :  { %v9573_v44 = vld [vmem:[%s20036_s7 + $0x40] sm:$0xff] }
0x15ee   :  { %12732 = vmatmul.mubr.msk.f32.gmra.mrb[126].mxu0 %vm8939_vm1, %v8923_v8 }
0x15ef   :  { %v19343_v19 = vpop.f32.mrb[128].mxu1  ;;  %12734 = vmatprep.mubr.msk.f32.mxu0 %vm16515_vm0, %v19712_v62 }
0x15f0   :  { %v12801_v15 = vpop.f32.mrb[129].mxu1 }
0x15f2   :  { %12735 = vmatmul.mubr.msk.f32.gmra.mrb[128].mxu0 %vm8939_vm1, %v8924_v49 }
0x15f3   :  { %12737 = vmatprep.mubr.msk.f32.mxu0 %vm16515_vm0, %v19712_v62  ;;  %v19350_v16 = vpop.f32.mrb[130].mxu1 }
0x15f4   :  { %v12804_v5 = vpop.f32.mrb[131].mxu1 }
0x15f6   :  { %12738 = vmatmul.mubr.msk.f32.gmra.mrb[130].mxu0 %vm8939_vm1, %v8925_v27  ;;  %v9576_v27 = vld [vmem:[%s20036_s7 + $0x58] sm:$0xff] }
0x15f7   :  { %12740 = vmatprep.mubr.msk.f32.mxu0 %vm16515_vm0, %v19712_v62 }
0x15fa   :  { %12741 = vmatmul.mubr.msk.f32.gmra.mrb[132].mxu0 %vm8939_vm1, %v8926_v25 }
0x15fb   :  { %v9336_v35 = vpop.f32.mrb[132].mxu1  ;;  %12743 = vmatprep.mubr.msk.f32.mxu0 %vm16515_vm0, %v19712_v62 }
0x15fc   :  { %v9337_v40 = vadd.f32 %v9336_v35, %v9236_v21  ;;  %v12839_v6 = vpop.f32.mrb[133].mxu1 }
0x15fe   :  { %12744 = vmatmul.mubr.msk.f32.gmra.mrb[134].mxu0 %vm8939_vm1, %v8927_v30  ;;  %v9377_v42 = vadd.f32 %v19362_v17, %v9337_v40  ;;  %v9577_v30 = vld [vmem:[%s20036_s7 + $0x60] sm:$0xff] }
0x15ff   :  { %v9341_v12 = vpop.f32.mrb[134].mxu1  ;;  %12746 = vmatprep.mubr.msk.f32.mxu0 %vm16515_vm0, %v19712_v62  ;;  %v15619_v6 = vpack.c.bf16 %v9578_v14, %v9577_v30 }
0x1600   :  { %v9342_v23 = vadd.f32 %v9341_v12, %v9241_v54  ;;  %v12842_v60 = vpop.f32.mrb[135].mxu1  ;;  %v9384_v29 = vmax.f32 %v9377_v42, 0.0 }
0x1602   :  { %12747 = vmatmul.mubr.msk.f32.gmra.mrb[136].mxu0 %vm8939_vm1, %v8928_v7  ;;  %v9378_v24 = vadd.f32 %v19362_v17, %v9342_v23  ;;  %v9580_v23 = vld [vmem:[%s20036_s7 + $0x78] sm:$0xff] }
0x1603   :  { %v9346_v13 = vpop.f32.mrb[136].mxu1  ;;  %12749 = vmatprep.mubr.msk.f32.mxu0 %vm16515_vm0, %v19712_v62  ;;  %v15622_v60 = vpack.c.bf16 %v9580_v23, %v9579_v32 }
0x1604   :  { %v9347_v11 = vadd.f32 %v9346_v13, %v9246_v22  ;;  %v12845_v20 = vpop.f32.mrb[137].mxu1  ;;  %v9385_v54 = vmax.f32 %v9378_v24, 0.0  ;;  %v9771_v13 = vld [vmem:[%s16685_s6 + $0x8] sm:$0xff] }
0x1606   :  { %12750 = vmatmul.mubr.msk.f32.gmra.mrb[138].mxu0 %vm8939_vm1, %v8929_v28  ;;  %v9379_v1 = vadd.f32 %v19362_v17, %v9347_v11  ;;  %v8644_v11 = vld [vmem:[%s20038_s15 + $0x8] sm:$0xff] }
0x1607   :  { %v9351_v52 = vpop.f32.mrb[138].mxu1  ;;  %12862 = vmatprep.mubr.msk.f32.mxu0 %vm16515_vm0, %v19712_v62 }
0x1608   :  { %v9352_v9 = vadd.f32 %v9351_v52, %v9251_v33  ;;  %v12848_v21 = vpop.f32.mrb[139].mxu1  ;;  %v9386_v22 = vmax.f32 %v9379_v1, 0.0  ;;  %v9572_v33 = vld [vmem:[%s20036_s7 + $0x38] sm:$0xff]  ;;  %v19444_v52 = vld [vmem:[%s20038_s15 + $0x10] sm:$0xff] }
0x1609   :  { %v15610_v36 = vpack.c.bf16 %v9572_v33, %v9571_v46  ;;  %v19449_v21 = vld [vmem:[%s20038_s15 + $0x18] sm:$0xff]  ;;  %v19462_v46 = vld [vmem:[%s20038_s15 + $0x28] sm:$0xff] }
0x160a   :  { %12863 = vmatmul.mubr.msk.f32.vlgmr.msra.gmra.mrb[140].mxu0 %vm8939_vm1, %v9384_v29  ;;  %v9380_v58 = vadd.f32 %v19362_v17, %v9352_v9 }
0x160b   :  { %15602 = vmatpush3.bf16.msra.mxu0 %v15601_v43  ;;  %v9356_v10 = vpop.f32.mrb[140].mxu1  ;;  %12865 = vmatprep.mubr.msk.f32.mxu0 %vm16515_vm0, %v19712_v62 }
0x160c   :  { %v9357_v4 = vadd.f32 %v9356_v10, %v9256_v56  ;;  %v12851_v37 = vpop.f32.mrb[141].mxu1  ;;  %15603 = vmatprep.subr.bf16.mxu0 %v19711_v53  ;;  %v9387_v45 = vmax.f32 %v9380_v58, 0.0 }
0x160e   :  { %12866 = vmatmul.mubr.msk.f32.gmra.mrb[142].mxu0 %vm8939_vm1, %v9385_v54  ;;  %v9381_v56 = vadd.f32 %v19362_v17, %v9357_v4 }
0x160f   :  { %15605 = vmatpush3.bf16.msra.mxu0 %v15604_v0  ;;  %v9361_v39 = vpop.f32.mrb[142].mxu1  ;;  %12868 = vmatprep.mubr.msk.f32.mxu0 %vm16515_vm0, %v19712_v62 }
0x1610   :  { %v9362_v48 = vadd.f32 %v9361_v39, %v19343_v19  ;;  %v12854_v31 = vpop.f32.mrb[143].mxu1  ;;  %15606 = vmatprep.subr.bf16.mxu0 %v19711_v53  ;;  %v9574_v19 = vld [vmem:[%s20036_s7 + $0x48] sm:$0xff]  ;;  %v9388_v57 = vmax.f32 %v9381_v56, 0.0 }
0x1611   :  { %v15613_v49 = vpack.c.bf16 %v9574_v19, %v9573_v44  ;;  %v19468_v44 = vld [vmem:[%s20038_s15 + $0x30] sm:$0xff] }
0x1612   :  { %12869 = vmatmul.mubr.msk.f32.gmra.mrb[144].mxu0 %vm8939_vm1, %v9386_v22  ;;  %v9382_v15 = vadd.f32 %v19362_v17, %v9362_v48 }
0x1613   :  { %15608 = vmatpush3.bf16.msra.mxu0 %v15607_v2  ;;  %v9366_v61 = vpop.f32.mrb[144].mxu1  ;;  %12871 = vmatprep.mubr.msk.f32.mxu0 %vm16515_vm0, %v19712_v62 }
0x1614   :  { %v9367_v8 = vadd.f32 %v9366_v61, %v19350_v16  ;;  %v12857_v3 = vpop.f32.mrb[145].mxu1  ;;  %15609 = vmatprep.subr.bf16.mxu0 %v19711_v53  ;;  %v9575_v16 = vld [vmem:[%s20036_s7 + $0x50] sm:$0xff]  ;;  %v9389_v25 = vmax.f32 %v9382_v15, 0.0 }
0x1615   :  { %v15616_v5 = vpack.c.bf16 %v9576_v27, %v9575_v16 }
0x1616   :  { %12872 = vmatmul.mubr.msk.f32.gmra.mrb[146].mxu0 %vm8939_vm1, %v9387_v45  ;;  %v9383_v63 = vadd.f32 %v19362_v17, %v9367_v8  ;;  %v9770_v17 = vld [vmem:[%s16685_s6] sm:$0xff]  ;;  %s20039_s6 = sld [smem:[#allocation44_spill]] }
0x1617   :  { %15611 = vmatpush3.bf16.msra.mxu0 %v15610_v36  ;;  %12874 = vmatprep.mubr.msk.f32.mxu0 %vm16515_vm0, %v19712_v62  ;;  %v15625_v28 = vpack.c.bf16 %v9771_v13, %v9770_v17 }
0x1618   :  { %15612 = vmatprep.subr.bf16.mxu0 %v19711_v53  ;;  %v9390_v12 = vmax.f32 %v9383_v63, 0.0 }
0x1619   :  { %15626 = vmatpush3.bf16.msra.mxu1 %v15625_v28 }
0x161a   :  { %12875 = vmatmul.mubr.msk.f32.gmra.mrb[148].mxu0 %vm8939_vm1, %v9388_v57 }
0x161b   :  { %15614 = vmatpush3.bf16.msra.mxu0 %v15613_v49  ;;  %v19407_v50 = vpop.f32.mrb[146].mxu1  ;;  %12877 = vmatprep.mubr.msk.f32.mxu0 %vm16515_vm0, %v19712_v62 }
0x161c   :  { %v12917_v35 = vpop.f32.mrb[147].mxu1  ;;  %15615 = vmatprep.subr.bf16.mxu0 %v19711_v53 }
0x161e   :  { %12878 = vmatmul.mubr.msk.f32.gmra.mrb[150].mxu0 %vm8939_vm1, %v9389_v25  ;;  %v19474_v25 = vld [vmem:[%s20038_s15 + $0x38] sm:$0xff] }
0x161f   :  { %15617 = vmatpush3.bf16.msra.mxu0 %v15616_v5  ;;  %v19416_v40 = vpop.f32.mrb[148].mxu1  ;;  %12880 = vmatprep.mubr.msk.f32.mxu0 %vm16515_vm0, %v19712_v62 }
0x1620   :  { %v12920_v7 = vpop.f32.mrb[149].mxu1  ;;  %15618 = vmatprep.subr.bf16.mxu0 %v19711_v53 }
0x1621   :  { %v19480_v7 = vld [vmem:[%s20038_s15 + $0x40] sm:$0xff] }
0x1622   :  { %12881 = vmatmul.mubr.msk.f32.gmra.mrb[152].mxu0 %vm8939_vm1, %v9390_v12 }
0x1623   :  { %15620 = vmatpush3.bf16.msra.mxu0 %v15619_v6  ;;  %12956 = vmatprep.mubr.msk.f32.mxu0 %vm16515_vm0, %v19712_v62 }
0x1624   :  { %15621 = vmatprep.subr.bf16.mxu0 %v19711_v53  ;;  %v19436_v53 = vpop.f32.mrb[150].mxu1 }
0x1625   :  { %v12923_v42 = vpop.f32.mrb[151].mxu1 }
0x1627   :  { %15623 = vmatpush3.bf16.msra.mxu0 %v15622_v60 }
0x162a   :  { %12957 = vmatmul.mubr.f32.vlgmr.msra.gmra.mrb[154].mxu0 %v20030_v47  ;;  %v19439_v47 = vld [vmem:[%s20037_s11] ss:$0 sm:$0xff] }
0x162b   :  { %12959 = vmatprep.mubr.msk.f32.mxu0 %vm16515_vm0, %v19712_v62 }
0x162e   :  { %12960 = vmatmul.mubr.f32.gmra.mrb[156].mxu0 %v20018_v51 }
0x162f   :  { %12962 = vmatprep.mubr.msk.f32.mxu0 %vm16515_vm0, %v19712_v62 }
0x1632   :  { %12963 = vmatmul.mubr.f32.gmra.mrb[158].mxu0 %v20019_v34 }
0x16b9   :  { %v9033_v20 = vpop.f32.mrb[122].mxu0 }
0x16ba   :  { %v9034_v26 = vadd.f32 %v19439_v47, %v9033_v20  ;;  %v12727_v51 = vpop.f32.mrb[123].mxu0 }
0x16bc   :  { %v9077_v18 = vsub.f32 %v9034_v26, %v8644_v11  ;;  %v8652_v11 = vld [vmem:[%s20038_s15 + $0x48] sm:$0xff] }
0x16bd   :  { %v9038_v34 = vpop.f32.mrb[124].mxu0 }
0x16be   :  { %v9039_v43 = vadd.f32 %v19439_v47, %v9038_v34  ;;  %v12730_v29 = vpop.f32.mrb[125].mxu0  ;;  %v9086_v24 = vmul.f32 %v9077_v18, %v9077_v18 }
0x16c0   :  { %v9078_v9 = vsub.f32 %v9039_v43, %v19444_v52  ;;  %v9096_v54 = vsel %vm9095_vm2, %v9086_v24, 0.0  ;;  %v10059_v43 = vld [vmem:[%s20039_s6] ss:$0 sm:$0xff] }
0x16c1   :  { %v9043_v38 = vpop.f32.mrb[126].mxu0 }
0x16c2   :  { %v9087_v55 = vmul.f32 %v9078_v9, %v9078_v9  ;;  %v9044_v10 = vadd.f32 %v19439_v47, %v9043_v38  ;;  %v12733_v0 = vpop.f32.mrb[127].mxu0 }
0x16c4   :  { %v9097_v1 = vsel %vm9095_vm2, %v9087_v55, 0.0  ;;  %v9079_v4 = vsub.f32 %v9044_v10, %v19449_v21 }
0x16c5   :  { %v9098_v37 = vadd.f32 %v9097_v1, %v9096_v54  ;;  %v9048_v41 = vpop.f32.mrb[128].mxu0 }
0x16c6   :  { %v9088_v39 = vmul.f32 %v9079_v4, %v9079_v4  ;;  %v9049_v2 = vadd.f32 %v19439_v47, %v9048_v41  ;;  %v12736_v22 = vpop.f32.mrb[129].mxu0 }
0x16c8   :  { %v9099_v58 = vsel %vm9095_vm2, %v9088_v39, 0.0  ;;  %v9080_v48 = vsub.f32 %v9049_v2, %v19456_v59 }
0x16c9   :  { %v9100_v31 = vadd.f32 %v9099_v58, %v9098_v37  ;;  %v9053_v33 = vpop.f32.mrb[130].mxu0 }
0x16ca   :  { %v9089_v61 = vmul.f32 %v9080_v48, %v9080_v48  ;;  %v9054_v36 = vadd.f32 %v19439_v47, %v9053_v33  ;;  %v12739_v45 = vpop.f32.mrb[131].mxu0 }
0x16cc   :  { %v9101_v56 = vsel %vm9095_vm2, %v9089_v61, 0.0  ;;  %v9081_v8 = vsub.f32 %v9054_v36, %v19462_v46 }
0x16cd   :  { %v9102_v3 = vadd.f32 %v9101_v56, %v9100_v31  ;;  %v9058_v19 = vpop.f32.mrb[132].mxu0 }
0x16ce   :  { %v9090_v49 = vmul.f32 %v9081_v8, %v9081_v8  ;;  %v9059_v57 = vadd.f32 %v19439_v47, %v9058_v19  ;;  %v12742_v15 = vpop.f32.mrb[133].mxu0 }
0x16d0   :  { %v9103_v16 = vsel %vm9095_vm2, %v9090_v49, 0.0  ;;  %v9082_v27 = vsub.f32 %v9059_v57, %v19468_v44 }
0x16d1   :  { %v9104_v5 = vadd.f32 %v9103_v16, %v9102_v3  ;;  %v9063_v63 = vpop.f32.mrb[134].mxu0 }
0x16d2   :  { %v9091_v35 = vmul.f32 %v9082_v27, %v9082_v27  ;;  %v9064_v30 = vadd.f32 %v19439_v47, %v9063_v63  ;;  %v12745_v14 = vpop.f32.mrb[135].mxu0 }
0x16d4   :  { %v9105_v6 = vsel %vm9095_vm2, %v9091_v35, 0.0  ;;  %v9083_v12 = vsub.f32 %v9064_v30, %v19474_v25 }
0x16d5   :  { %v9068_v32 = vpop.f32.mrb[136].mxu0  ;;  %v9106_v23 = vadd.f32 %v9105_v6, %v9104_v5 }
0x16d6   :  { %v9092_v60 = vmul.f32 %v9083_v12, %v9083_v12  ;;  %v9069_v17 = vadd.f32 %v19439_v47, %v9068_v32  ;;  %v12748_v13 = vpop.f32.mrb[137].mxu0 }
0x16d8   :  { %v9084_v28 = vsub.f32 %v9069_v17, %v19480_v7  ;;  %v9107_v42 = vsel %vm9095_vm2, %v9092_v60, 0.0 }
0x16d9   :  { %v9073_v20 = vpop.f32.mrb[138].mxu0  ;;  %v9108_v26 = vadd.f32 %v9107_v42, %v9106_v23 }
0x16da   :  { %v9093_v51 = vmul.f32 %v9084_v28, %v9084_v28  ;;  %v9074_v18 = vadd.f32 %v19439_v47, %v9073_v20  ;;  %v12751_v34 = vpop.f32.mrb[139].mxu0 }
0x16dc   :  { %v9085_v29 = vsub.f32 %v9074_v18, %v8652_v11  ;;  %v9109_v24 = vsel %vm9095_vm2, %v9093_v51, 0.0 }
0x16dd   :  { %v9487_v9 = vpop.f32.mrb[140].mxu0  ;;  %v9110_v38 = vadd.f32 %v9109_v24, %v9108_v26 }
0x16de   :  { %v9488_v55 = vadd.f32 %v10059_v43, %v9487_v9  ;;  %v12864_v10 = vpop.f32.mrb[141].mxu0  ;;  %v9094_v0 = vmul.f32 %v9085_v29, %v9085_v29  ;;  %v10067_v29 = vld [vmem:[%s16680_s12] ss:$0 sm:$0xff] }
0x16e0   :  { %v9521_v54 = vsub.f32 %v9488_v55, %v19444_v52  ;;  %v9111_v1 = vsel %vm9095_vm2, %v9094_v0, 0.0 }
0x16e1   :  { %v9492_v4 = vpop.f32.mrb[142].mxu0  ;;  %v9112_v37 = vadd.f32 %v9111_v1, %v9110_v38 }
0x16e2   :  { %v9493_v41 = vadd.f32 %v10059_v43, %v9492_v4  ;;  %v12867_v39 = vpop.f32.mrb[143].mxu0  ;;  %v9528_v47 = vmul.f32 %v9521_v54, %v9521_v54 }
0x16e3   :  { %9113 = vadd.xlane.f32.xlu0 %v9112_v37 }
0x16e4   :  { %v9522_v2 = vsub.f32 %v9493_v41, %v19449_v21  ;;  %v9535_v33 = vsel %vm9095_vm2, %v9528_v47, 0.0 }
0x16e5   :  { %v9497_v22 = vpop.f32.mrb[144].mxu0 }
0x16e6   :  { %v9529_v58 = vmul.f32 %v9522_v2, %v9522_v2  ;;  %v9498_v48 = vadd.f32 %v10059_v43, %v9497_v22  ;;  %v12870_v31 = vpop.f32.mrb[145].mxu0 }
0x16e8   :  { %v9536_v61 = vsel %vm9095_vm2, %v9529_v58, 0.0  ;;  %v9523_v52 = vsub.f32 %v9498_v48, %v19456_v59 }
0x16e9   :  { %v9537_v36 = vadd.f32 %v9536_v61, %v9535_v33  ;;  %v9502_v45 = vpop.f32.mrb[146].mxu0 }
0x16ea   :  { %v9530_v56 = vmul.f32 %v9523_v52, %v9523_v52  ;;  %v9503_v8 = vadd.f32 %v10059_v43, %v9502_v45  ;;  %v12873_v3 = vpop.f32.mrb[147].mxu0 }
0x16ec   :  { %v9538_v19 = vsel %vm9095_vm2, %v9530_v56, 0.0  ;;  %v9524_v49 = vsub.f32 %v9503_v8, %v19462_v46 }
0x16ed   :  { %v9539_v21 = vadd.f32 %v9538_v19, %v9537_v36  ;;  %v9507_v57 = vpop.f32.mrb[148].mxu0 }
0x16ee   :  { %v9531_v15 = vmul.f32 %v9524_v49, %v9524_v49  ;;  %v9508_v16 = vadd.f32 %v10059_v43, %v9507_v57  ;;  %v12876_v27 = vpop.f32.mrb[149].mxu0 }
0x16f0   :  { %v9540_v5 = vsel %vm9095_vm2, %v9531_v15, 0.0  ;;  %v9525_v63 = vsub.f32 %v9508_v16, %v19468_v44 }
0x16f1   :  { %v9541_v35 = vadd.f32 %v9540_v5, %v9539_v21  ;;  %v9512_v30 = vpop.f32.mrb[150].mxu0 }
0x16f2   :  { %v9532_v14 = vmul.f32 %v9525_v63, %v9525_v63  ;;  %v9513_v6 = vadd.f32 %v10059_v43, %v9512_v30  ;;  %v12879_v12 = vpop.f32.mrb[151].mxu0 }
0x16f4   :  { %v9542_v32 = vsel %vm9095_vm2, %v9532_v14, 0.0  ;;  %v9526_v23 = vsub.f32 %v9513_v6, %v19474_v25 }
0x16f5   :  { %v9517_v60 = vpop.f32.mrb[152].mxu0  ;;  %v9543_v17 = vadd.f32 %v9542_v32, %v9541_v35 }
0x16f6   :  { %v9533_v13 = vmul.f32 %v9526_v23, %v9526_v23  ;;  %v9518_v28 = vadd.f32 %v10059_v43, %v9517_v60  ;;  %v12882_v42 = vpop.f32.mrb[153].mxu0 }
0x16f8   :  { %v9527_v11 = vsub.f32 %v9518_v28, %v19480_v7  ;;  %v9544_v20 = vsel %vm9095_vm2, %v9533_v13, 0.0 }
0x16f9   :  { %v9545_v26 = vadd.f32 %v9544_v20, %v9543_v17 }
0x16fa   :  { %v9534_v51 = vmul.f32 %v9527_v11, %v9527_v11 }
0x16fc   :  { %v9546_v18 = vsel %vm9095_vm2, %v9534_v51, 0.0 }
0x16fd   :  { %v9743_v34 = vpop.f32.mrb[154].mxu0  ;;  %v9547_v24 = vadd.f32 %v9546_v18, %v9545_v26 }
0x16fe   :  { %v9744_v9 = vadd.f32 %v9743_v34, %v19407_v50  ;;  %v12958_v38 = vpop.f32.mrb[155].mxu0 }
0x16ff   :  { %9548 = vadd.xlane.f32.xlu0 %v9547_v24 }
0x1700   :  { %v9764_v25 = vadd.f32 %v10067_v29, %v9744_v9 }
0x1701   :  { %v9748_v55 = vpop.f32.mrb[156].mxu0 }
0x1702   :  { %v9767_v10 = vmax.f32 %v9764_v25, 0.0  ;;  %v9749_v43 = vadd.f32 %v9748_v55, %v19416_v40  ;;  %v12961_v0 = vpop.f32.mrb[157].mxu0 }
0x1704   :  { %v9765_v7 = vadd.f32 %v10067_v29, %v9749_v43  ;;  %12970 = vmatmul.mubr.msk.f32.vlgmr.msra.gmra.mrb[152].mxu1 %vm8939_vm1, %v9767_v10 }
0x1705   :  { %v9753_v54 = vpop.f32.mrb[158].mxu0  ;;  %12972 = vmatprep.mubr.msk.f32.mxu1 %vm16515_vm0, %v19712_v62 }
0x1706   :  { %v9768_v1 = vmax.f32 %v9765_v7, 0.0  ;;  %v9754_v4 = vadd.f32 %v9753_v54, %v19436_v53  ;;  %v12964_v37 = vpop.f32.mrb[159].mxu0 }
0x1708   :  { %v9766_v50 = vadd.f32 %v10067_v29, %v9754_v4  ;;  %12973 = vmatmul.mubr.msk.f32.gmra.mrb[154].mxu1 %vm8939_vm1, %v9768_v1 }
0x1709   :  { %12975 = vmatprep.mubr.msk.f32.mxu1 %vm16515_vm0, %v19712_v62  ;;  %v10068_v62 = vld [vmem:[%s16690_s4] ss:$0 sm:$0xff] }
0x170a   :  { %v9769_v41 = vmax.f32 %v9766_v50, 0.0 }
0x170c   :  { %12976 = vmatmul.mubr.msk.f32.gmra.mrb[156].mxu1 %vm8939_vm1, %v9769_v41 }
0x1770   :  { %v9114_v40 = vpop.xlane.xlu0 %9113 }
0x1771   :  { %v9115_v39 = vrot.slane %v9114_v40, 4 }
0x1773   :  { %v9116_v47 = vadd.f32 %v9115_v39, %v9114_v40 }
0x1775   :  { %v9117_v2 = vrot.slane %v9116_v47, 2 }
0x1777   :  { %v9118_v22 = vadd.f32 %v9117_v2, %v9116_v47 }
0x1779   :  { %v9119_v58 = vrot.slane %v9118_v22, 1 }
0x177b   :  { %v9120_v48 = vadd.f32 %v9119_v58, %v9118_v22 }
0x177d   :  { %15795 = vpush %v9120_v48 }
0x178c   :  { %v9549_v53 = vpop.xlane.xlu0 %9548 }
0x178d   :  { %v9550_v31 = vrot.slane %v9549_v53, 4 }
0x178f   :  { %v9551_v33 = vadd.f32 %v9550_v31, %v9549_v53 }
0x1791   :  { %v9552_v61 = vrot.slane %v9551_v33, 2 }
0x1793   :  { %v9553_v52 = vadd.f32 %v9552_v61, %v9551_v33 }
0x1795   :  { %v9554_v36 = vrot.slane %v9553_v52, 1 }
0x1797   :  { %v9555_v45 = vadd.f32 %v9554_v36, %v9553_v52 }
0x1799   :  { %15797 = vpush %v9555_v45 }
0x17ae   :  { %s15796_s12 = spop %15795 }
0x17af   :  { %v9122_v20 = vstv %s15796_s12 }
0x17ca   :  { %s15798_s4 = spop %15797 }
0x17d7   :  { %v9854_v56 = vpop.f32.mrb[152].mxu1 }
0x17d8   :  { %v9855_v8 = vadd.f32 %v10068_v62, %v9854_v56  ;;  %v12971_v3 = vpop.f32.mrb[153].mxu1 }
0x17da   :  { %v9868_v19 = vsub.f32 %v9855_v8, %v19456_v59 }
0x17db   :  { %v9859_v49 = vpop.f32.mrb[154].mxu1 }
0x17dc   :  { %v9860_v21 = vadd.f32 %v10068_v62, %v9859_v49  ;;  %v12974_v57 = vpop.f32.mrb[155].mxu1  ;;  %v9871_v15 = vmul.f32 %v9868_v19, %v9868_v19 }
0x17de   :  { %v9869_v16 = vsub.f32 %v9860_v21, %v19462_v46  ;;  %v9874_v14 = vsel %vm9095_vm2, %v9871_v15, 0.0 }
0x17df   :  { %v9864_v27 = vpop.f32.mrb[156].mxu1 }
0x17e0   :  { %v9872_v5 = vmul.f32 %v9869_v16, %v9869_v16  ;;  %v9865_v63 = vadd.f32 %v10068_v62, %v9864_v27  ;;  %v12977_v35 = vpop.f32.mrb[157].mxu1 }
0x17e2   :  { %v9870_v30 = vsub.f32 %v9865_v63, %v19468_v44  ;;  %v9875_v6 = vsel %vm9095_vm2, %v9872_v5, 0.0  ;;  %v9557_v44 = vstv %s15798_s4 }
0x17e3   :  { %v9876_v12 = vadd.f32 %v9875_v6, %v9874_v14  ;;  %v9558_v26 = vadd.f32 %v9557_v44, %v9122_v20 }
0x17e4   :  { %v9873_v32 = vmul.f32 %v9870_v30, %v9870_v30 }
0x17e6   :  { %v9877_v59 = vsel %vm9095_vm2, %v9873_v32, 0.0 }
0x17e7   :  { %v9878_v23 = vadd.f32 %v9877_v59, %v9876_v12 }
0x17e9   :  { %9879 = vadd.xlane.f32.xlu1 %v9878_v23 }
0x1876   :  { %v9880_v60 = vpop.xlane.xlu1 %9879 }
0x1877   :  { %v9881_v17 = vrot.slane %v9880_v60, 4 }
0x1879   :  { %v9882_v13 = vadd.f32 %v9881_v17, %v9880_v60 }
0x187b   :  { %v9883_v46 = vrot.slane %v9882_v13, 2 }
0x187d   :  { %v9884_v28 = vadd.f32 %v9883_v46, %v9882_v13 }
0x187f   :  { %v9885_v42 = vrot.slane %v9884_v28, 1 }
0x1881   :  { %v9886_v11 = vadd.f32 %v9885_v42, %v9884_v28 }
0x1883   :  { %15799 = vpush %v9886_v11 }
0x18b4   :  { %s15800_s16 = spop %15799 }
0x18b5   :  { %v9888_v51 = vstv %s15800_s16 }
0x18b6   :  { %v9889_v18 = vadd.f32 %v9888_v51, %v9558_v26 }
0x18b8   :  { %9891 = vst.msk [vmem:[#allocation23] sm:$0x1] %vm9890_vm3, %v9889_v18 }
0x18b9   :  { %16445 = shalt.err (!%p16442_p6)
}
0x18ba   :  { %s16446_s22 = scalar_lea.hbm %s16695_s13, 16 }
0x18bb   :  { %p16447_p7 = scmp.ne.s32.totalorder %s16695_s13, %s16446_s22  ;;  %p16450_p8 = scmp.lt.u32.totalorder %s16446_s22, %s16695_s13 }
0x18bd   :  { %p16452_p9 = pnand %p16450_p8, %p16447_p7 }
0x18bf   :  { %16455 = shalt.err (!%p16452_p9)
}
0x18c0   :  { %9901 = dma.vmem_to_hbm [thread:$0]  %s9899_s8, 16, %s16695_s13, [#allocation10]  }
0x18c1   :  { %16466 = dma.done.wait [#allocation10], 16  }
0x18c2   :  { %16467 = vsyncadd [#allocation10], 4294967280 }
0x18c3   :  { %9905 = vsyncpa [#allocation9], 1 }
0x18c4   :  { %9906 = vsyncpa [#allocation12], 1 }
0x18c5   :  { %9907 = vsyncpa [#allocation15], 1 }
0x18c6   :  { %9908 = vsyncpa [#allocation18], 1 }
0x18c7   :  { %9909 = vsyncpa [#allocation21], 1 }
0x18c8   :  { %9910 = vsyncpa [#allocation10], 1 }

</bundles_post_ra>
